<compile_context>
chip_gen: v6e
topology: v6e:2x2x1
jax: 0.10.0
libtpu: 0.0.40
codegen_flags: <defaults>
</compile_context>

<pallas_src>
import functools
import math

import numpy as np

import jax
import jax.numpy as jnp
from jax.experimental import pallas as pl
from jax.experimental.pallas import tpu as pltpu  # noqa: F401  (kept for TPU backend import)


# ---------------------------------------------------------------------------
# Config (plays the role of cfg / DictConfig in the PyTorch module)
# ---------------------------------------------------------------------------
CFG = dict(
    image_shape=(16, 16, 3),                      # (H, W, C)
    enc_img=dict(channel_list=[8, 16], kernel_list=[3, 3], stride_list=[2, 2],
                 activation="relu"),
    enc_cvt=dict(feature_list=[32, 32], activation="relu"),
    enc_slot=dict(num_steps=2, qry_size=16, slot_view_size=8, slot_attr_size=16,
                  feature_res_list=[32], activation="relu"),
    enc_view=dict(feature_list=[16], activation="relu"),
    enc_bck_in=dict(feature_list=[16, 8], activation="relu"),
    enc_bck_out=dict(feature_list=[16], activation="relu"),
    enc_obj=dict(feature_list=[16], activation="relu"),
    latent_view_size=4,
    latent_bck_size=4,
    latent_obj_size=6,
)


# ---------------------------------------------------------------------------
# In-kernel helpers
# ---------------------------------------------------------------------------
def _dot(a, b):
    return jnp.dot(a, b, preferred_element_type=jnp.float32)


def _ln_f32(x, g, b, eps=1e-5):
    mu = jnp.mean(x, axis=-1, keepdims=True)
    var = jnp.mean(jnp.square(x - mu), axis=-1, keepdims=True)
    return (x - mu) * jax.lax.rsqrt(var + eps) * g + b


# ---------------------------------------------------------------------------
# Kernel 1: fused front-end (conv block + pos-embed + LayerNorm + enc_cvt MLP)
# ---------------------------------------------------------------------------
def _frontend_kernel(p1_ref, w1_ref, b1_ref, sel_ref, w2_ref, b2_ref,
                     grid_ref, pos_w_ref, pos_b_ref, ln_g_ref, ln_b_ref,
                     cw1_ref, cb1_ref, cw2_ref, cb2_ref, out_ref,
                     *, n_taps, cin2, rows2):
    # conv1: one matmul over im2col patches (patches built from the raw input by XLA)
    y1 = jnp.maximum(_dot(p1_ref[...], w1_ref[...]) + b1_ref[...], 0.0)      # (N*H1*W1, C1)

    # conv2: the spatial gather is a constant 0/1 selection matrix, so each tap is a
    # plain matmul — no strided slicing / im2col / HBM round trip needed in-kernel.
    acc = jnp.zeros((rows2, w2_ref.shape[1]), jnp.float32)
    for t in range(n_taps):
        z_t = _dot(sel_ref[pl.ds(t * rows2, rows2), :], y1)                  # (rows2, C1)
        acc = acc + _dot(z_t, w2_ref[pl.ds(t * cin2, cin2), :])              # (rows2, C2)
    y2 = jnp.maximum(acc + b2_ref[...], 0.0)

    # LinearPosEmbedLayer + LayerNorm + enc_cvt (2-layer MLP), fused as an epilogue.
    pos = _dot(grid_ref[...], pos_w_ref[...]) + pos_b_ref[...]
    x = _ln_f32(y2 + pos, ln_g_ref[...], ln_b_ref[...])
    h = jnp.maximum(_dot(x, cw1_ref[...]) + cb1_ref[...], 0.0)
    out_ref[...] = _dot(h, cw2_ref[...]) + cb2_ref[...]


# ---------------------------------------------------------------------------
# Kernel 2: fused SlotAttnMulti (kv projection + full num_steps loop)
# ---------------------------------------------------------------------------
def _slot_kernel(feat_ref, kv_ln_g_ref, kv_ln_b_ref, key_w_ref, val_w_ref,
                 sv0_ref, sa0_ref,
                 e_view_ref, e_attr_ref, p_view_ref, p_attr_ref,
                 m_view_ref, m_attr_ref, mask_ref,
                 qry_ln_g_ref, qry_ln_b_ref, qry_w_ref,
                 wihr_ref, wihz_ref, wihn_ref, whhr_ref, whhz_ref, whhn_ref, gru_b_ref,
                 res_ln_g_ref, res_ln_b_ref, res_w1_ref, res_b1_ref, res_w2_ref, res_b2_ref,
                 sv_out_ref, sa_out_ref,
                 *, num_steps, coef, dv):
    x = feat_ref[...]                                                        # (BVP, F)
    h = _ln_f32(x, kv_ln_g_ref[...], kv_ln_b_ref[...])
    key = _dot(h, key_w_ref[...]) * coef                                     # (BVP, Q)
    val = _dot(h, val_w_ref[...])                                            # (BVP, Dfull)
    mask = mask_ref[...]                                                     # (BVS, BVP)

    e_view = e_view_ref[...]
    e_attr = e_attr_ref[...]
    p_view = p_view_ref[...]
    p_attr = p_attr_ref[...]
    m_view = m_view_ref[...]
    m_attr = m_attr_ref[...]

    b_r = gru_b_ref[pl.ds(0, 1), :]
    b_z = gru_b_ref[pl.ds(1, 1), :]
    b_in = gru_b_ref[pl.ds(2, 1), :]
    b_hn = gru_b_ref[pl.ds(3, 1), :]

    slot_view = sv0_ref[...]                                                 # (BV, dv)
    slot_attr = sa0_ref[...]                                                 # (BS, da)

    for _ in range(num_steps):                                               # unrolled
        # broadcast (b,v)/(b,s) slot state onto all (b,v,s) rows via constant 0/1 matmuls
        slot_full = (_dot(_dot(e_view, slot_view), p_view) +
                     _dot(_dot(e_attr, slot_attr), p_attr))                  # (BVS, Dfull)

        q_in = _ln_f32(slot_full, qry_ln_g_ref[...], qry_ln_b_ref[...])
        x_qry = _dot(q_in, qry_w_ref[...])                                   # (BVS, Q)

        # all batch entries at once: full (BVS, BVP) logits with a block-diagonal mask;
        # masked entries are -1e30 so both softmaxes reduce to the per-batch ones exactly.
        logits = jax.lax.dot_general(
            x_qry, key, (((1,), (1,)), ((), ())),
            preferred_element_type=jnp.float32) + mask
        m0 = jnp.max(logits, axis=0, keepdims=True)
        ls = logits - m0 - jnp.log(jnp.sum(jnp.exp(logits - m0), axis=0, keepdims=True))
        m1 = jnp.max(ls, axis=1, keepdims=True)
        e = jnp.exp(ls - m1)
        attn = e / jnp.sum(e, axis=1, keepdims=True)
        x_upd = _dot(attn, val)                                              # (BVS, Dfull)

        # GRUCell (PyTorch gate order r, z, n); weights pre-split -> no lane slicing
        r = jax.nn.sigmoid(_dot(x_upd, wihr_ref[...]) +
                           _dot(slot_full, whhr_ref[...]) + b_r)
        z = jax.nn.sigmoid(_dot(x_upd, wihz_ref[...]) +
                           _dot(slot_full, whhz_ref[...]) + b_z)
        ncand = jnp.tanh(_dot(x_upd, wihn_ref[...]) + b_in +
                         r * (_dot(slot_full, whhn_ref[...]) + b_hn))
        x_main = (1.0 - z) * ncand + z * slot_full                           # (BVS, Dfull)

        # residual branch: LayerNorm + 2-layer MLP
        rr = _ln_f32(x_main, res_ln_g_ref[...], res_ln_b_ref[...])
        rr = jnp.maximum(_dot(rr, res_w1_ref[...]) + res_b1_ref[...], 0.0)
        rr = _dot(rr, res_w2_ref[...]) + res_b2_ref[...]
        slot_full_new = x_main + rr

        # slot_view = mean over slots, slot_attr = mean over views (constant matmuls)
        slot_view = _dot(m_view, slot_full_new[:, :dv])                      # (BV, dv)
        slot_attr = _dot(m_attr, slot_full_new[:, dv:])                      # (BS, da)

    sv_out_ref[...] = slot_view
    sa_out_ref[...] = slot_attr


# ---------------------------------------------------------------------------
# Kernel 3: fused posterior heads
# ---------------------------------------------------------------------------
def _posterior_kernel(sv_ref, sa_ref,
                      vw1_ref, vb1_ref, vw2_ref, vb2_ref,
                      biw1_ref, bib1_ref, biw2_ref, bib2_ref,
                      bow1_ref, bob1_ref, bow2_ref, bob2_ref,
                      ow1_ref, ob1_ref, ow2_ref, ob2_ref,
                      seg_sum_ref, seg_exp_ref,
                      vp_ref, bp_ref, op_ref, *, nfeat):
    def mlp2(x, w1, b1, w2, b2):
        hh = jnp.maximum(_dot(x, w1[...]) + b1[...], 0.0)
        return _dot(hh, w2[...]) + b2[...]

    sv = sv_ref[...]
    sa = sa_ref[...]

    vp_ref[...] = mlp2(sv, vw1_ref, vb1_ref, vw2_ref, vb2_ref)               # view head

    xb = mlp2(sa, biw1_ref, bib1_ref, biw2_ref, bib2_ref)                    # (BS, nfeat+1)
    fb = xb[:, :nfeat]
    lg = xb[:, nfeat:nfeat + 1]
    # per-batch softmax over slots; a global max shift is exact (shift-invariance)
    m0 = jnp.max(lg, axis=0, keepdims=True)
    e = jnp.exp(lg - m0)
    tot = _dot(seg_sum_ref[...], e)                                          # (B, 1)
    den = _dot(seg_exp_ref[...], tot)                                        # (BS, 1)
    wgt = e / den
    pooled = _dot(seg_sum_ref[...], fb * wgt)                                # (B, nfeat)
    bp_ref[...] = mlp2(pooled, bow1_ref, bob1_ref, bow2_ref, bob2_ref)       # bck head

    op_ref[...] = mlp2(sa, ow1_ref, ob1_ref, ow2_ref, ob2_ref)               # obj head


# ---------------------------------------------------------------------------
# Trace-time constant builders (become compile-time constants under jit)
# ---------------------------------------------------------------------------
def _build_conv_select(n, h1, w1, k, stride, pad, h2, w2):
    """0/1 matrix mapping flat conv1 activations to per-tap conv2 gather rows."""
    rows2 = n * h2 * w2
    sel = np.zeros((k * k * rows2, n * h1 * w1), np.float32)
    for di in range(k):
        for dj in range(k):
            t = di * k + dj
            for nn in range(n):
                for i in range(h2):
                    for j in range(w2):
                        rr = i * stride - pad + di
                        cc = j * stride - pad + dj
                        if 0 <= rr < h1 and 0 <= cc < w1:
                            sel[t * rows2 + nn * h2 * w2 + i * w2 + j,
                                nn * h1 * w1 + rr * w1 + cc] = 1.0
    return jnp.asarray(sel)


def _build_slot_constants(bsz, nviews, num_slots, npix, dv, da):
    bv = bsz * nviews
    bvs = bv * num_slots
    bs = bsz * num_slots
    dfull = dv + da
    e_view = np.zeros((bvs, bv), np.float32)
    e_attr = np.zeros((bvs, bs), np.float32)
    m_view = np.zeros((bv, bvs), np.float32)
    m_attr = np.zeros((bs, bvs), np.float32)
    mask = np.full((bvs, bv * npix), -1e30, np.float32)
    for b in range(bsz):
        for v in range(nviews):
            for s in range(num_slots):
                r = (b * nviews + v) * num_slots + s
                e_view[r, b * nviews + v] = 1.0
                e_attr[r, b * num_slots + s] = 1.0
                m_view[b * nviews + v, r] = 1.0 / num_slots
                m_attr[b * num_slots + s, r] = 1.0 / nviews
                mask[r, (b * nviews + v) * npix:(b * nviews + v + 1) * npix] = 0.0
    p_view = np.zeros((dv, dfull), np.float32)
    p_view[:, :dv] = np.eye(dv, dtype=np.float32)
    p_attr = np.zeros((da, dfull), np.float32)
    p_attr[:, dv:] = np.eye(da, dtype=np.float32)
    return tuple(jnp.asarray(a) for a in
                 (e_view, e_attr, p_view, p_attr, m_view, m_attr, mask))


def _build_posterior_constants(bsz, num_slots):
    seg = np.zeros((bsz, bsz * num_slots), np.float32)
    for b in range(bsz):
        seg[b, b * num_slots:(b + 1) * num_slots] = 1.0
    return jnp.asarray(seg), jnp.asarray(seg.T)


def _pos_grid(ht, wd):
    ys = (jnp.arange(ht, dtype=jnp.float32) + 0.5) / ht
    xs = (jnp.arange(wd, dtype=jnp.float32) + 0.5) / wd
    gy, gx = jnp.meshgrid(ys, xs, indexing="ij")
    g = jnp.stack([gy, gx, 1.0 - gy, 1.0 - gx], axis=-1)
    return g.reshape(ht * wd, 4)


# ---------------------------------------------------------------------------
# Parameter init (deterministic, synthetic; arrays only -> jit-safe pytree)
# ---------------------------------------------------------------------------
def _init_linear(key, fin, fout):
    kw, kb = jax.random.split(key)
    w = jax.random.normal(kw, (fin, fout), jnp.float32) * (1.0 / math.sqrt(fin))
    b = jax.random.normal(kb, (fout,), jnp.float32) * 0.01
    return w, b


def _init_linear_block(key, fin, feats):
    params = []
    f = fin
    for fo in feats:
        key, sub = jax.random.split(key)
        params.append(_init_linear(sub, f, fo))
        f = fo
    return params


def init_encoder_params(key):
    cfg = CFG
    keys = iter(jax.random.split(key, 64))
    params = {}

    ih, iw, ic = cfg["image_shape"]
    cin = ic
    conv_w, conv_b = [], []
    for cout, k, _s in zip(cfg["enc_img"]["channel_list"],
                           cfg["enc_img"]["kernel_list"],
                           cfg["enc_img"]["stride_list"]):
        kk = next(keys)
        conv_w.append(jax.random.normal(kk, (k, k, cin, cout), jnp.float32)
                      * (1.0 / math.sqrt(k * k * cin)))
        conv_b.append(jnp.zeros((cout,), jnp.float32))
        cin = cout
    params["conv_w"] = conv_w
    params["conv_b"] = conv_b
    conv_ch = cin

    params["pos_w"], params["pos_b"] = _init_linear(next(keys), 4, conv_ch)
    params["ln_g"] = jnp.ones((conv_ch,), jnp.float32)
    params["ln_b"] = jnp.zeros((conv_ch,), jnp.float32)
    params["cvt"] = _init_linear_block(next(keys), conv_ch, cfg["enc_cvt"]["feature_list"])

    in_feat = cfg["enc_cvt"]["feature_list"][-1]
    es = cfg["enc_slot"]
    qs, dv, da = es["qry_size"], es["slot_view_size"], es["slot_attr_size"]
    dfull = dv + da
    params["slot"] = dict(
        view_loc=jnp.zeros((1, 1, dv), jnp.float32),
        view_log_scl=jnp.zeros((1, 1, dv), jnp.float32),
        attr_loc=jnp.zeros((1, 1, da), jnp.float32),
        attr_log_scl=jnp.zeros((1, 1, da), jnp.float32),
        kv_ln_g=jnp.ones((in_feat,), jnp.float32),
        kv_ln_b=jnp.zeros((in_feat,), jnp.float32),
        kv_w=jax.random.normal(next(keys), (in_feat, qs + dfull), jnp.float32)
        * (1.0 / math.sqrt(in_feat)),
        qry_ln_g=jnp.ones((dfull,), jnp.float32),
        qry_ln_b=jnp.zeros((dfull,), jnp.float32),
        qry_w=jax.random.normal(next(keys), (dfull, qs), jnp.float32)
        * (1.0 / math.sqrt(dfull)),
        gru_w_ih=jax.random.normal(next(keys), (dfull, 3 * dfull), jnp.float32)
        * (1.0 / math.sqrt(dfull)),
        gru_w_hh=jax.random.normal(next(keys), (dfull, 3 * dfull), jnp.float32)
        * (1.0 / math.sqrt(dfull)),
        gru_b_ih=jnp.zeros((3 * dfull,), jnp.float32),
        gru_b_hh=jnp.zeros((3 * dfull,), jnp.float32),
        res_ln_g=jnp.ones((dfull,), jnp.float32),
        res_ln_b=jnp.zeros((dfull,), jnp.float32),
        res=_init_linear_block(next(keys), dfull, es["feature_res_list"] + [dfull]),
    )

    params["view"] = _init_linear_block(
        next(keys), dv, cfg["enc_view"]["feature_list"] + [cfg["latent_view_size"] * 2])
    bck_in_feats = (cfg["enc_bck_in"]["feature_list"][:-1]
                    + [cfg["enc_bck_in"]["feature_list"][-1] + 1])
    params["bck_in"] = _init_linear_block(next(keys), da, bck_in_feats)
    params["bck_out"] = _init_linear_block(
        next(keys), cfg["enc_bck_in"]["feature_list"][-1],
        cfg["enc_bck_out"]["feature_list"] + [cfg["latent_bck_size"] * 2])
    params["obj"] = _init_linear_block(
        next(keys), da, cfg["enc_obj"]["feature_list"] + [cfg["latent_obj_size"] * 2 + 3])
    return params


# ---------------------------------------------------------------------------
# Forward pass
# ---------------------------------------------------------------------------
def encoder_forward(params, image, num_slots, noise_key):
    cfg = CFG
    bsz, nviews, ih, iw, ic = image.shape
    n = bsz * nviews
    x = image.reshape(n, ih, iw, ic).astype(jnp.float32)

    # ---------------- front-end: ConvBlock + pos-embed + LN + enc_cvt (ONE kernel)
    assert len(cfg["enc_img"]["kernel_list"]) == 2, "fused front-end assumes 2 conv layers"
    k1, k2 = cfg["enc_img"]["kernel_list"]
    s1, s2 = cfg["enc_img"]["stride_list"]
    c1, c2 = cfg["enc_img"]["channel_list"]
    pad1, pad2 = k1 // 2, k2 // 2
    h1 = (ih + 2 * pad1 - k1) // s1 + 1
    w1 = (iw + 2 * pad1 - k1) // s1 + 1
    h2 = (h1 + 2 * pad2 - k2) // s2 + 1
    w2 = (w1 + 2 * pad2 - k2) // s2 + 1
    npix = h2 * w2

    # im2col of the raw input only (single fused XLA prep op)
    xp = jnp.pad(x, ((0, 0), (pad1, pad1), (pad1, pad1), (0, 0)))
    cols = []
    for di in range(k1):
        for dj in range(k1):
            cols.append(xp[:, di:di + (h1 - 1) * s1 + 1:s1,
                           dj:dj + (w1 - 1) * s1 + 1:s1, :])
    patches1 = jnp.concatenate(cols, axis=-1).reshape(n * h1 * w1, k1 * k1 * ic)

    sel = _build_conv_select(n, h1, w1, k2, s2, pad2, h2, w2)
    # TODO(synk): exact grid convention of LinearPosEmbedLayer is unspecified upstream;
    #             using (y, x, 1-y, 1-x) -> Linear(4, conv_ch).
    grid = jnp.tile(_pos_grid(h2, w2), (n, 1))                               # (n*npix, 4)

    w1m = params["conv_w"][0].reshape(k1 * k1 * ic, c1)
    w2m = params["conv_w"][1].reshape(k2 * k2 * c1, c2)
    (cw1, cb1), (cw2, cb2) = params["cvt"]
    cvt_out = cw2.shape[1]

    feat = pl.pallas_call(
        functools.partial(_frontend_kernel, n_taps=k2 * k2, cin2=c1, rows2=n * npix),
        out_shape=jax.ShapeDtypeStruct((n * npix, cvt_out), jnp.float32),
    )(patches1, w1m, params["conv_b"][0].reshape(1, c1),
      sel, w2m, params["conv_b"][1].reshape(1, c2),
      grid, params["pos_w"], params["pos_b"].reshape(1, c2),
      params["ln_g"].reshape(1, c2), params["ln_b"].reshape(1, c2),
      cw1, cb1.reshape(1, -1), cw2, cb2.reshape(1, -1))

    # ---------------- SlotAttnMulti: entire num_steps loop fused in one kernel
    es = cfg["enc_slot"]
    qs, dv, da = es["qry_size"], es["slot_view_size"], es["slot_attr_size"]
    dfull = dv + da
    sp = params["slot"]

    k_view, k_attr = jax.random.split(noise_key)
    noise_view = jax.random.normal(k_view, (bsz, nviews, dv), jnp.float32)
    slot_view0 = (sp["view_loc"] + jnp.exp(sp["view_log_scl"]) * noise_view).reshape(n, dv)
    noise_attr = jax.random.normal(k_attr, (bsz, num_slots, da), jnp.float32)
    slot_attr0 = (sp["attr_loc"] + jnp.exp(sp["attr_log_scl"]) * noise_attr
                  ).reshape(bsz * num_slots, da)

    # trace-time weight splits (avoid unaligned lane slices inside the kernel)
    key_w = sp["kv_w"][:, :qs]
    val_w = sp["kv_w"][:, qs:]
    wih, whh = sp["gru_w_ih"], sp["gru_w_hh"]
    wihr, wihz, wihn = wih[:, :dfull], wih[:, dfull:2 * dfull], wih[:, 2 * dfull:]
    whhr, whhz, whhn = whh[:, :dfull], whh[:, dfull:2 * dfull], whh[:, 2 * dfull:]
    bih, bhh = sp["gru_b_ih"], sp["gru_b_hh"]
    gru_b = jnp.stack([bih[:dfull] + bhh[:dfull],
                       bih[dfull:2 * dfull] + bhh[dfull:2 * dfull],
                       bih[2 * dfull:],
                       bhh[2 * dfull:]], axis=0)                              # (4, dfull)
    (rw1, rb1), (rw2, rb2) = sp["res"]

    e_view, e_attr, p_view, p_attr, m_view, m_attr, attn_mask = _build_slot_constants(
        bsz, nviews, num_slots, npix, dv, da)

    slot_view, slot_attr = pl.pallas_call(
        functools.partial(_slot_kernel, num_steps=es["num_steps"],
                          coef=1.0 / math.sqrt(qs), dv=dv),
        out_shape=(jax.ShapeDtypeStruct((n, dv), jnp.float32),
                   jax.ShapeDtypeStruct((bsz * num_slots, da), jnp.float32)),
    )(feat, sp["kv_ln_g"].reshape(1, -1), sp["kv_ln_b"].reshape(1, -1),
      key_w, val_w, slot_view0, slot_attr0,
      e_view, e_attr, p_view, p_attr, m_view, m_attr, attn_mask,
      sp["qry_ln_g"].reshape(1, -1), sp["qry_ln_b"].reshape(1, -1), sp["qry_w"],
      wihr, wihz, wihn, whhr, whhz, whhn, gru_b,
      sp["res_ln_g"].reshape(1, -1), sp["res_ln_b"].reshape(1, -1),
      rw1, rb1.reshape(1, -1), rw2, rb2.reshape(1, -1))

    # ---------------- posterior heads: one fused kernel
    (vw1, vb1), (vw2, vb2) = params["view"]
    (biw1, bib1), (biw2, bib2) = params["bck_in"]
    (bow1, bob1), (bow2, bob2) = params["bck_out"]
    (ow1, ob1), (ow2, ob2) = params["obj"]
    seg_sum, seg_exp = _build_posterior_constants(bsz, num_slots)

    vp, bp, op = pl.pallas_call(
        functools.partial(_posterior_kernel, nfeat=biw2.shape[1] - 1),
        out_shape=(jax.ShapeDtypeStruct((n, vw2.shape[1]), jnp.float32),
                   jax.ShapeDtypeStruct((bsz, bow2.shape[1]), jnp.float32),
                   jax.ShapeDtypeStruct((bsz * num_slots, ow2.shape[1]), jnp.float32)),
    )(slot_view, slot_attr,
      vw1, vb1.reshape(1, -1), vw2, vb2.reshape(1, -1),
      biw1, bib1.reshape(1, -1), biw2, bib2.reshape(1, -1),
      bow1, bob1.reshape(1, -1), bow2, bob2.reshape(1, -1),
      ow1, ob1.reshape(1, -1), ow2, ob2.reshape(1, -1),
      seg_sum, seg_exp)

    # tiny output-splitting / nonlinearity glue stays in XLA
    vp = vp.reshape(bsz, nviews, -1)
    view_mu, view_logvar = jnp.split(vp, 2, axis=-1)
    bck_mu, bck_logvar = jnp.split(bp, 2, axis=-1)
    op = op.reshape(bsz, num_slots, -1)
    lo = cfg["latent_obj_size"]
    obj_mu = op[..., :lo]
    obj_logvar = op[..., lo:2 * lo]
    logits_tau1 = op[..., 2 * lo:2 * lo + 1]
    logits_tau2 = op[..., 2 * lo + 1:2 * lo + 2]
    logits_zeta = op[..., 2 * lo + 2:2 * lo + 3]
    return {
        "view_mu": view_mu, "view_logvar": view_logvar,
        "bck_mu": bck_mu, "bck_logvar": bck_logvar,
        "obj_mu": obj_mu, "obj_logvar": obj_logvar,
        "tau1": jax.nn.softplus(logits_tau1),
        "tau2": jax.nn.softplus(logits_tau2),
        "zeta": jax.nn.sigmoid(logits_zeta),
        "logits_zeta": logits_zeta,
    }


# ---------------------------------------------------------------------------
if __name__ == "__main__":
    key = jax.random.PRNGKey(0)
    pkey, ikey, nkey = jax.random.split(key, 3)

    params = init_encoder_params(pkey)

    bsz, nviews = 2, 3
    h, w, c = CFG["image_shape"]
    image = jax.random.uniform(ikey, (bsz, nviews, h, w, c), jnp.float32)
    num_slots = 5

    fwd = jax.jit(encoder_forward, static_argnums=(2,))
    out = fwd(params, image, num_slots, nkey)
    jax.block_until_ready(out)
    print("KERNEL_OK")
</pallas_src>

<mosaic_0001>
module attributes {stable_mosaic.version = 11 : i64} {
  func.func @_frontend_kernel(%arg0: memref<384x27xf32, #tpu.memory_space<vmem>>, %arg1: memref<27x8xf32, #tpu.memory_space<vmem>>, %arg2: memref<1x8xf32, #tpu.memory_space<vmem>>, %arg3: memref<864x384xf32, #tpu.memory_space<vmem>>, %arg4: memref<72x16xf32, #tpu.memory_space<vmem>>, %arg5: memref<1x16xf32, #tpu.memory_space<vmem>>, %arg6: memref<96x4xf32, #tpu.memory_space<vmem>>, %arg7: memref<4x16xf32, #tpu.memory_space<vmem>>, %arg8: memref<1x16xf32, #tpu.memory_space<vmem>>, %arg9: memref<1x16xf32, #tpu.memory_space<vmem>>, %arg10: memref<1x16xf32, #tpu.memory_space<vmem>>, %arg11: memref<16x32xf32, #tpu.memory_space<vmem>>, %arg12: memref<1x32xf32, #tpu.memory_space<vmem>>, %arg13: memref<32x32xf32, #tpu.memory_space<vmem>>, %arg14: memref<1x32xf32, #tpu.memory_space<vmem>>, %arg15: memref<96x32xf32, #tpu.memory_space<vmem>>) attributes {dimension_semantics = [], scalar_prefetch = 0 : i64, scratch_operands = 0 : i64, tpu.core_type = #tpu.core_type<tc>} {
    %c0 = arith.constant 0 : index
    %c0_0 = arith.constant 0 : index
    %0 = vector.load %arg0[%c0, %c0_0] : memref<384x27xf32, #tpu.memory_space<vmem>>, vector<384x27xf32>
    %c0_1 = arith.constant 0 : index
    %c0_2 = arith.constant 0 : index
    %1 = vector.load %arg1[%c0_1, %c0_2] : memref<27x8xf32, #tpu.memory_space<vmem>>, vector<27x8xf32>
    %cst = arith.constant dense<0.000000e+00> : vector<384x8xf32>
    %2 = tpu.matmul %0, %1, %cst {dimension_numbers = #tpu.dot_dimension_numbers<[1], [0], [0], [1], [0, 0, 1, 1], [], []>} : vector<384x27xf32>, vector<27x8xf32>, vector<384x8xf32> -> vector<384x8xf32>
    %c0_3 = arith.constant 0 : index
    %c0_4 = arith.constant 0 : index
    %3 = vector.load %arg2[%c0_3, %c0_4] : memref<1x8xf32, #tpu.memory_space<vmem>>, vector<1x8xf32>
    %4 = vector.broadcast %3 : vector<1x8xf32> to vector<384x8xf32>
    %5 = arith.addf %2, %4 : vector<384x8xf32>
    %cst_5 = arith.constant 0.000000e+00 : f32
    %6 = vector.broadcast %cst_5 : f32 to vector<384x8xf32>
    %7 = arith.maximumf %5, %6 : vector<384x8xf32>
    %cst_6 = arith.constant 0.000000e+00 : f32
    %8 = vector.broadcast %cst_6 : f32 to vector<96x16xf32>
    %c0_7 = arith.constant 0 : index
    %c0_8 = arith.constant 0 : index
    %9 = vector.load %arg3[%c0_7, %c0_8] : memref<864x384xf32, #tpu.memory_space<vmem>>, vector<96x384xf32>
    %cst_9 = arith.constant dense<0.000000e+00> : vector<96x8xf32>
    %10 = tpu.matmul %9, %7, %cst_9 {dimension_numbers = #tpu.dot_dimension_numbers<[1], [0], [0], [1], [0, 0, 1, 1], [], []>} : vector<96x384xf32>, vector<384x8xf32>, vector<96x8xf32> -> vector<96x8xf32>
    %c0_10 = arith.constant 0 : index
    %c0_11 = arith.constant 0 : index
    %11 = vector.load %arg4[%c0_10, %c0_11] : memref<72x16xf32, #tpu.memory_space<vmem>>, vector<8x16xf32>
    %cst_12 = arith.constant dense<0.000000e+00> : vector<96x16xf32>
    %12 = tpu.matmul %10, %11, %cst_12 {dimension_numbers = #tpu.dot_dimension_numbers<[1], [0], [0], [1], [0, 0, 1, 1], [], []>} : vector<96x8xf32>, vector<8x16xf32>, vector<96x16xf32> -> vector<96x16xf32>
    %13 = arith.addf %8, %12 : vector<96x16xf32>
    %c96 = arith.constant 96 : index
    %c0_13 = arith.constant 0 : index
    %14 = vector.load %arg3[%c96, %c0_13] : memref<864x384xf32, #tpu.memory_space<vmem>>, vector<96x384xf32>
    %cst_14 = arith.constant dense<0.000000e+00> : vector<96x8xf32>
    %15 = tpu.matmul %14, %7, %cst_14 {dimension_numbers = #tpu.dot_dimension_numbers<[1], [0], [0], [1], [0, 0, 1, 1], [], []>} : vector<96x384xf32>, vector<384x8xf32>, vector<96x8xf32> -> vector<96x8xf32>
    %c8 = arith.constant 8 : index
    %c0_15 = arith.constant 0 : index
    %16 = vector.load %arg4[%c8, %c0_15] : memref<72x16xf32, #tpu.memory_space<vmem>>, vector<8x16xf32>
    %cst_16 = arith.constant dense<0.000000e+00> : vector<96x16xf32>
    %17 = tpu.matmul %15, %16, %cst_16 {dimension_numbers = #tpu.dot_dimension_numbers<[1], [0], [0], [1], [0, 0, 1, 1], [], []>} : vector<96x8xf32>, vector<8x16xf32>, vector<96x16xf32> -> vector<96x16xf32>
    %18 = arith.addf %13, %17 : vector<96x16xf32>
    %c192 = arith.constant 192 : index
    %c0_17 = arith.constant 0 : index
    %19 = vector.load %arg3[%c192, %c0_17] : memref<864x384xf32, #tpu.memory_space<vmem>>, vector<96x384xf32>
    %cst_18 = arith.constant dense<0.000000e+00> : vector<96x8xf32>
    %20 = tpu.matmul %19, %7, %cst_18 {dimension_numbers = #tpu.dot_dimension_numbers<[1], [0], [0], [1], [0, 0, 1, 1], [], []>} : vector<96x384xf32>, vector<384x8xf32>, vector<96x8xf32> -> vector<96x8xf32>
    %c16 = arith.constant 16 : index
    %c0_19 = arith.constant 0 : index
    %21 = vector.load %arg4[%c16, %c0_19] : memref<72x16xf32, #tpu.memory_space<vmem>>, vector<8x16xf32>
    %cst_20 = arith.constant dense<0.000000e+00> : vector<96x16xf32>
    %22 = tpu.matmul %20, %21, %cst_20 {dimension_numbers = #tpu.dot_dimension_numbers<[1], [0], [0], [1], [0, 0, 1, 1], [], []>} : vector<96x8xf32>, vector<8x16xf32>, vector<96x16xf32> -> vector<96x16xf32>
    %23 = arith.addf %18, %22 : vector<96x16xf32>
    %c288 = arith.constant 288 : index
    %c0_21 = arith.constant 0 : index
    %24 = vector.load %arg3[%c288, %c0_21] : memref<864x384xf32, #tpu.memory_space<vmem>>, vector<96x384xf32>
    %cst_22 = arith.constant dense<0.000000e+00> : vector<96x8xf32>
    %25 = tpu.matmul %24, %7, %cst_22 {dimension_numbers = #tpu.dot_dimension_numbers<[1], [0], [0], [1], [0, 0, 1, 1], [], []>} : vector<96x384xf32>, vector<384x8xf32>, vector<96x8xf32> -> vector<96x8xf32>
    %c24 = arith.constant 24 : index
    %c0_23 = arith.constant 0 : index
    %26 = vector.load %arg4[%c24, %c0_23] : memref<72x16xf32, #tpu.memory_space<vmem>>, vector<8x16xf32>
    %cst_24 = arith.constant dense<0.000000e+00> : vector<96x16xf32>
    %27 = tpu.matmul %25, %26, %cst_24 {dimension_numbers = #tpu.dot_dimension_numbers<[1], [0], [0], [1], [0, 0, 1, 1], [], []>} : vector<96x8xf32>, vector<8x16xf32>, vector<96x16xf32> -> vector<96x16xf32>
    %28 = arith.addf %23, %27 : vector<96x16xf32>
    %c384 = arith.constant 384 : index
    %c0_25 = arith.constant 0 : index
    %29 = vector.load %arg3[%c384, %c0_25] : memref<864x384xf32, #tpu.memory_space<vmem>>, vector<96x384xf32>
    %cst_26 = arith.constant dense<0.000000e+00> : vector<96x8xf32>
    %30 = tpu.matmul %29, %7, %cst_26 {dimension_numbers = #tpu.dot_dimension_numbers<[1], [0], [0], [1], [0, 0, 1, 1], [], []>} : vector<96x384xf32>, vector<384x8xf32>, vector<96x8xf32> -> vector<96x8xf32>
    %c32 = arith.constant 32 : index
    %c0_27 = arith.constant 0 : index
    %31 = vector.load %arg4[%c32, %c0_27] : memref<72x16xf32, #tpu.memory_space<vmem>>, vector<8x16xf32>
    %cst_28 = arith.constant dense<0.000000e+00> : vector<96x16xf32>
    %32 = tpu.matmul %30, %31, %cst_28 {dimension_numbers = #tpu.dot_dimension_numbers<[1], [0], [0], [1], [0, 0, 1, 1], [], []>} : vector<96x8xf32>, vector<8x16xf32>, vector<96x16xf32> -> vector<96x16xf32>
    %33 = arith.addf %28, %32 : vector<96x16xf32>
    %c480 = arith.constant 480 : index
    %c0_29 = arith.constant 0 : index
    %34 = vector.load %arg3[%c480, %c0_29] : memref<864x384xf32, #tpu.memory_space<vmem>>, vector<96x384xf32>
    %cst_30 = arith.constant dense<0.000000e+00> : vector<96x8xf32>
    %35 = tpu.matmul %34, %7, %cst_30 {dimension_numbers = #tpu.dot_dimension_numbers<[1], [0], [0], [1], [0, 0, 1, 1], [], []>} : vector<96x384xf32>, vector<384x8xf32>, vector<96x8xf32> -> vector<96x8xf32>
    %c40 = arith.constant 40 : index
    %c0_31 = arith.constant 0 : index
    %36 = vector.load %arg4[%c40, %c0_31] : memref<72x16xf32, #tpu.memory_space<vmem>>, vector<8x16xf32>
    %cst_32 = arith.constant dense<0.000000e+00> : vector<96x16xf32>
    %37 = tpu.matmul %35, %36, %cst_32 {dimension_numbers = #tpu.dot_dimension_numbers<[1], [0], [0], [1], [0, 0, 1, 1], [], []>} : vector<96x8xf32>, vector<8x16xf32>, vector<96x16xf32> -> vector<96x16xf32>
    %38 = arith.addf %33, %37 : vector<96x16xf32>
    %c576 = arith.constant 576 : index
    %c0_33 = arith.constant 0 : index
    %39 = vector.load %arg3[%c576, %c0_33] : memref<864x384xf32, #tpu.memory_space<vmem>>, vector<96x384xf32>
    %cst_34 = arith.constant dense<0.000000e+00> : vector<96x8xf32>
    %40 = tpu.matmul %39, %7, %cst_34 {dimension_numbers = #tpu.dot_dimension_numbers<[1], [0], [0], [1], [0, 0, 1, 1], [], []>} : vector<96x384xf32>, vector<384x8xf32>, vector<96x8xf32> -> vector<96x8xf32>
    %c48 = arith.constant 48 : index
    %c0_35 = arith.constant 0 : index
    %41 = vector.load %arg4[%c48, %c0_35] : memref<72x16xf32, #tpu.memory_space<vmem>>, vector<8x16xf32>
    %cst_36 = arith.constant dense<0.000000e+00> : vector<96x16xf32>
    %42 = tpu.matmul %40, %41, %cst_36 {dimension_numbers = #tpu.dot_dimension_numbers<[1], [0], [0], [1], [0, 0, 1, 1], [], []>} : vector<96x8xf32>, vector<8x16xf32>, vector<96x16xf32> -> vector<96x16xf32>
    %43 = arith.addf %38, %42 : vector<96x16xf32>
    %c672 = arith.constant 672 : index
    %c0_37 = arith.constant 0 : index
    %44 = vector.load %arg3[%c672, %c0_37] : memref<864x384xf32, #tpu.memory_space<vmem>>, vector<96x384xf32>
    %cst_38 = arith.constant dense<0.000000e+00> : vector<96x8xf32>
    %45 = tpu.matmul %44, %7, %cst_38 {dimension_numbers = #tpu.dot_dimension_numbers<[1], [0], [0], [1], [0, 0, 1, 1], [], []>} : vector<96x384xf32>, vector<384x8xf32>, vector<96x8xf32> -> vector<96x8xf32>
    %c56 = arith.constant 56 : index
    %c0_39 = arith.constant 0 : index
    %46 = vector.load %arg4[%c56, %c0_39] : memref<72x16xf32, #tpu.memory_space<vmem>>, vector<8x16xf32>
    %cst_40 = arith.constant dense<0.000000e+00> : vector<96x16xf32>
    %47 = tpu.matmul %45, %46, %cst_40 {dimension_numbers = #tpu.dot_dimension_numbers<[1], [0], [0], [1], [0, 0, 1, 1], [], []>} : vector<96x8xf32>, vector<8x16xf32>, vector<96x16xf32> -> vector<96x16xf32>
    %48 = arith.addf %43, %47 : vector<96x16xf32>
    %c768 = arith.constant 768 : index
    %c0_41 = arith.constant 0 : index
    %49 = vector.load %arg3[%c768, %c0_41] : memref<864x384xf32, #tpu.memory_space<vmem>>, vector<96x384xf32>
    %cst_42 = arith.constant dense<0.000000e+00> : vector<96x8xf32>
    %50 = tpu.matmul %49, %7, %cst_42 {dimension_numbers = #tpu.dot_dimension_numbers<[1], [0], [0], [1], [0, 0, 1, 1], [], []>} : vector<96x384xf32>, vector<384x8xf32>, vector<96x8xf32> -> vector<96x8xf32>
    %c64 = arith.constant 64 : index
    %c0_43 = arith.constant 0 : index
    %51 = vector.load %arg4[%c64, %c0_43] : memref<72x16xf32, #tpu.memory_space<vmem>>, vector<8x16xf32>
    %cst_44 = arith.constant dense<0.000000e+00> : vector<96x16xf32>
    %52 = tpu.matmul %50, %51, %cst_44 {dimension_numbers = #tpu.dot_dimension_numbers<[1], [0], [0], [1], [0, 0, 1, 1], [], []>} : vector<96x8xf32>, vector<8x16xf32>, vector<96x16xf32> -> vector<96x16xf32>
    %53 = arith.addf %48, %52 : vector<96x16xf32>
    %c0_45 = arith.constant 0 : index
    %c0_46 = arith.constant 0 : index
    %54 = vector.load %arg5[%c0_45, %c0_46] : memref<1x16xf32, #tpu.memory_space<vmem>>, vector<1x16xf32>
    %55 = vector.broadcast %54 : vector<1x16xf32> to vector<96x16xf32>
    %56 = arith.addf %53, %55 : vector<96x16xf32>
    %cst_47 = arith.constant 0.000000e+00 : f32
    %57 = vector.broadcast %cst_47 : f32 to vector<96x16xf32>
    %58 = arith.maximumf %56, %57 : vector<96x16xf32>
    %c0_48 = arith.constant 0 : index
    %c0_49 = arith.constant 0 : index
    %59 = vector.load %arg6[%c0_48, %c0_49] : memref<96x4xf32, #tpu.memory_space<vmem>>, vector<96x4xf32>
    %c0_50 = arith.constant 0 : index
    %c0_51 = arith.constant 0 : index
    %60 = vector.load %arg7[%c0_50, %c0_51] : memref<4x16xf32, #tpu.memory_space<vmem>>, vector<4x16xf32>
    %cst_52 = arith.constant dense<0.000000e+00> : vector<96x16xf32>
    %61 = tpu.matmul %59, %60, %cst_52 {dimension_numbers = #tpu.dot_dimension_numbers<[1], [0], [0], [1], [0, 0, 1, 1], [], []>} : vector<96x4xf32>, vector<4x16xf32>, vector<96x16xf32> -> vector<96x16xf32>
    %c0_53 = arith.constant 0 : index
    %c0_54 = arith.constant 0 : index
    %62 = vector.load %arg8[%c0_53, %c0_54] : memref<1x16xf32, #tpu.memory_space<vmem>>, vector<1x16xf32>
    %63 = vector.broadcast %62 : vector<1x16xf32> to vector<96x16xf32>
    %64 = arith.addf %61, %63 : vector<96x16xf32>
    %65 = arith.addf %58, %64 : vector<96x16xf32>
    %c0_55 = arith.constant 0 : index
    %c0_56 = arith.constant 0 : index
    %66 = vector.load %arg9[%c0_55, %c0_56] : memref<1x16xf32, #tpu.memory_space<vmem>>, vector<1x16xf32>
    %c0_57 = arith.constant 0 : index
    %c0_58 = arith.constant 0 : index
    %67 = vector.load %arg10[%c0_57, %c0_58] : memref<1x16xf32, #tpu.memory_space<vmem>>, vector<1x16xf32>
    %cst_59 = arith.constant dense<0.000000e+00> : vector<96xf32>
    %68 = vector.multi_reduction <add>, %65, %cst_59 [1] : vector<96x16xf32> to vector<96xf32>
    %69 = vector.shape_cast %68 : vector<96xf32> to vector<96x1xf32>
    %cst_60 = arith.constant 1.600000e+01 : f32
    %70 = vector.broadcast %cst_60 : f32 to vector<96x1xf32>
    %71 = arith.divf %69, %70 : vector<96x1xf32>
    %72 = vector.broadcast %71 : vector<96x1xf32> to vector<96x16xf32>
    %73 = arith.subf %65, %72 : vector<96x16xf32>
    %74 = arith.mulf %73, %73 : vector<96x16xf32>
    %cst_61 = arith.constant dense<0.000000e+00> : vector<96xf32>
    %75 = vector.multi_reduction <add>, %74, %cst_61 [1] : vector<96x16xf32> to vector<96xf32>
    %76 = vector.shape_cast %75 : vector<96xf32> to vector<96x1xf32>
    %cst_62 = arith.constant 1.600000e+01 : f32
    %77 = vector.broadcast %cst_62 : f32 to vector<96x1xf32>
    %78 = arith.divf %76, %77 : vector<96x1xf32>
    %79 = vector.broadcast %71 : vector<96x1xf32> to vector<96x16xf32>
    %80 = arith.subf %65, %79 : vector<96x16xf32>
    %cst_63 = arith.constant 9.99999974E-6 : f32
    %81 = vector.broadcast %cst_63 : f32 to vector<96x1xf32>
    %82 = arith.addf %78, %81 : vector<96x1xf32>
    %83 = math.rsqrt %82 : vector<96x1xf32>
    %84 = vector.broadcast %83 : vector<96x1xf32> to vector<96x16xf32>
    %85 = arith.mulf %80, %84 : vector<96x16xf32>
    %86 = vector.broadcast %66 : vector<1x16xf32> to vector<96x16xf32>
    %87 = arith.mulf %85, %86 : vector<96x16xf32>
    %88 = vector.broadcast %67 : vector<1x16xf32> to vector<96x16xf32>
    %89 = arith.addf %87, %88 : vector<96x16xf32>
    %c0_64 = arith.constant 0 : index
    %c0_65 = arith.constant 0 : index
    %90 = vector.load %arg11[%c0_64, %c0_65] : memref<16x32xf32, #tpu.memory_space<vmem>>, vector<16x32xf32>
    %cst_66 = arith.constant dense<0.000000e+00> : vector<96x32xf32>
    %91 = tpu.matmul %89, %90, %cst_66 {dimension_numbers = #tpu.dot_dimension_numbers<[1], [0], [0], [1], [0, 0, 1, 1], [], []>} : vector<96x16xf32>, vector<16x32xf32>, vector<96x32xf32> -> vector<96x32xf32>
    %c0_67 = arith.constant 0 : index
    %c0_68 = arith.constant 0 : index
    %92 = vector.load %arg12[%c0_67, %c0_68] : memref<1x32xf32, #tpu.memory_space<vmem>>, vector<1x32xf32>
    %93 = vector.broadcast %92 : vector<1x32xf32> to vector<96x32xf32>
    %94 = arith.addf %91, %93 : vector<96x32xf32>
    %cst_69 = arith.constant 0.000000e+00 : f32
    %95 = vector.broadcast %cst_69 : f32 to vector<96x32xf32>
    %96 = arith.maximumf %94, %95 : vector<96x32xf32>
    %c0_70 = arith.constant 0 : index
    %c0_71 = arith.constant 0 : index
    %97 = vector.load %arg13[%c0_70, %c0_71] : memref<32x32xf32, #tpu.memory_space<vmem>>, vector<32x32xf32>
    %cst_72 = arith.constant dense<0.000000e+00> : vector<96x32xf32>
    %98 = tpu.matmul %96, %97, %cst_72 {dimension_numbers = #tpu.dot_dimension_numbers<[1], [0], [0], [1], [0, 0, 1, 1], [], []>} : vector<96x32xf32>, vector<32x32xf32>, vector<96x32xf32> -> vector<96x32xf32>
    %c0_73 = arith.constant 0 : index
    %c0_74 = arith.constant 0 : index
    %99 = vector.load %arg14[%c0_73, %c0_74] : memref<1x32xf32, #tpu.memory_space<vmem>>, vector<1x32xf32>
    %100 = vector.broadcast %99 : vector<1x32xf32> to vector<96x32xf32>
    %101 = arith.addf %98, %100 : vector<96x32xf32>
    %c0_75 = arith.constant 0 : index
    %c0_76 = arith.constant 0 : index
    %102 = vector.load %arg15[%c0_75, %c0_76] : memref<96x32xf32, #tpu.memory_space<vmem>>, vector<96x32xf32>
    tpu.vector_store %arg15[%c0_75, %c0_76], %101 {strides = array<i32>} : memref<96x32xf32, #tpu.memory_space<vmem>>, vector<96x32xf32>,
    return
  }
}

module attributes {stable_mosaic.version = 11 : i64} {
  func.func @_posterior_kernel(%arg0: memref<6x8xf32, #tpu.memory_space<vmem>>, %arg1: memref<10x16xf32, #tpu.memory_space<vmem>>, %arg2: memref<8x16xf32, #tpu.memory_space<vmem>>, %arg3: memref<1x16xf32, #tpu.memory_space<vmem>>, %arg4: memref<16x8xf32, #tpu.memory_space<vmem>>, %arg5: memref<1x8xf32, #tpu.memory_space<vmem>>, %arg6: memref<16x16xf32, #tpu.memory_space<vmem>>, %arg7: memref<1x16xf32, #tpu.memory_space<vmem>>, %arg8: memref<16x9xf32, #tpu.memory_space<vmem>>, %arg9: memref<1x9xf32, #tpu.memory_space<vmem>>, %arg10: memref<8x16xf32, #tpu.memory_space<vmem>>, %arg11: memref<1x16xf32, #tpu.memory_space<vmem>>, %arg12: memref<16x8xf32, #tpu.memory_space<vmem>>, %arg13: memref<1x8xf32, #tpu.memory_space<vmem>>, %arg14: memref<16x16xf32, #tpu.memory_space<vmem>>, %arg15: memref<1x16xf32, #tpu.memory_space<vmem>>, %arg16: memref<16x15xf32, #tpu.memory_space<vmem>>, %arg17: memref<1x15xf32, #tpu.memory_space<vmem>>, %arg18: memref<2x10xf32, #tpu.memory_space<vmem>>, %arg19: memref<10x2xf32, #tpu.memory_space<vmem>>, %arg20: memref<6x8xf32, #tpu.memory_space<vmem>>, %arg21: memref<2x8xf32, #tpu.memory_space<vmem>>, %arg22: memref<10x15xf32, #tpu.memory_space<vmem>>) attributes {dimension_semantics = [], scalar_prefetch = 0 : i64, scratch_operands = 0 : i64, tpu.core_type = #tpu.core_type<tc>} {
    %c0 = arith.constant 0 : index
    %c0_0 = arith.constant 0 : index
    %0 = vector.load %arg0[%c0, %c0_0] : memref<6x8xf32, #tpu.memory_space<vmem>>, vector<6x8xf32>
    %c0_1 = arith.constant 0 : index
    %c0_2 = arith.constant 0 : index
    %1 = vector.load %arg1[%c0_1, %c0_2] : memref<10x16xf32, #tpu.memory_space<vmem>>, vector<10x16xf32>
    %c0_3 = arith.constant 0 : index
    %c0_4 = arith.constant 0 : index
    %2 = vector.load %arg2[%c0_3, %c0_4] : memref<8x16xf32, #tpu.memory_space<vmem>>, vector<8x16xf32>
    %cst = arith.constant dense<0.000000e+00> : vector<6x16xf32>
    %3 = tpu.matmul %0, %2, %cst {dimension_numbers = #tpu.dot_dimension_numbers<[1], [0], [0], [1], [0, 0, 1, 1], [], []>} : vector<6x8xf32>, vector<8x16xf32>, vector<6x16xf32> -> vector<6x16xf32>
    %c0_5 = arith.constant 0 : index
    %c0_6 = arith.constant 0 : index
    %4 = vector.load %arg3[%c0_5, %c0_6] : memref<1x16xf32, #tpu.memory_space<vmem>>, vector<1x16xf32>
    %5 = vector.broadcast %4 : vector<1x16xf32> to vector<6x16xf32>
    %6 = arith.addf %3, %5 : vector<6x16xf32>
    %cst_7 = arith.constant 0.000000e+00 : f32
    %7 = vector.broadcast %cst_7 : f32 to vector<6x16xf32>
    %8 = arith.maximumf %6, %7 : vector<6x16xf32>
    %c0_8 = arith.constant 0 : index
    %c0_9 = arith.constant 0 : index
    %9 = vector.load %arg4[%c0_8, %c0_9] : memref<16x8xf32, #tpu.memory_space<vmem>>, vector<16x8xf32>
    %cst_10 = arith.constant dense<0.000000e+00> : vector<6x8xf32>
    %10 = tpu.matmul %8, %9, %cst_10 {dimension_numbers = #tpu.dot_dimension_numbers<[1], [0], [0], [1], [0, 0, 1, 1], [], []>} : vector<6x16xf32>, vector<16x8xf32>, vector<6x8xf32> -> vector<6x8xf32>
    %c0_11 = arith.constant 0 : index
    %c0_12 = arith.constant 0 : index
    %11 = vector.load %arg5[%c0_11, %c0_12] : memref<1x8xf32, #tpu.memory_space<vmem>>, vector<1x8xf32>
    %12 = vector.broadcast %11 : vector<1x8xf32> to vector<6x8xf32>
    %13 = arith.addf %10, %12 : vector<6x8xf32>
    %c0_13 = arith.constant 0 : index
    %c0_14 = arith.constant 0 : index
    %14 = vector.load %arg20[%c0_13, %c0_14] : memref<6x8xf32, #tpu.memory_space<vmem>>, vector<6x8xf32>
    tpu.vector_store %arg20[%c0_13, %c0_14], %13 {strides = array<i32>} : memref<6x8xf32, #tpu.memory_space<vmem>>, vector<6x8xf32>,
    %c0_15 = arith.constant 0 : index
    %c0_16 = arith.constant 0 : index
    %15 = vector.load %arg6[%c0_15, %c0_16] : memref<16x16xf32, #tpu.memory_space<vmem>>, vector<16x16xf32>
    %cst_17 = arith.constant dense<0.000000e+00> : vector<10x16xf32>
    %16 = tpu.matmul %1, %15, %cst_17 {dimension_numbers = #tpu.dot_dimension_numbers<[1], [0], [0], [1], [0, 0, 1, 1], [], []>} : vector<10x16xf32>, vector<16x16xf32>, vector<10x16xf32> -> vector<10x16xf32>
    %c0_18 = arith.constant 0 : index
    %c0_19 = arith.constant 0 : index
    %17 = vector.load %arg7[%c0_18, %c0_19] : memref<1x16xf32, #tpu.memory_space<vmem>>, vector<1x16xf32>
    %18 = vector.broadcast %17 : vector<1x16xf32> to vector<10x16xf32>
    %19 = arith.addf %16, %18 : vector<10x16xf32>
    %cst_20 = arith.constant 0.000000e+00 : f32
    %20 = vector.broadcast %cst_20 : f32 to vector<10x16xf32>
    %21 = arith.maximumf %19, %20 : vector<10x16xf32>
    %c0_21 = arith.constant 0 : index
    %c0_22 = arith.constant 0 : index
    %22 = vector.load %arg8[%c0_21, %c0_22] : memref<16x9xf32, #tpu.memory_space<vmem>>, vector<16x9xf32>
    %cst_23 = arith.constant dense<0.000000e+00> : vector<10x9xf32>
    %23 = tpu.matmul %21, %22, %cst_23 {dimension_numbers = #tpu.dot_dimension_numbers<[1], [0], [0], [1], [0, 0, 1, 1], [], []>} : vector<10x16xf32>, vector<16x9xf32>, vector<10x9xf32> -> vector<10x9xf32>
    %c0_24 = arith.constant 0 : index
    %c0_25 = arith.constant 0 : index
    %24 = vector.load %arg9[%c0_24, %c0_25] : memref<1x9xf32, #tpu.memory_space<vmem>>, vector<1x9xf32>
    %25 = vector.broadcast %24 : vector<1x9xf32> to vector<10x9xf32>
    %26 = arith.addf %23, %25 : vector<10x9xf32>
    %27 = vector.extract_strided_slice %26 {offsets = [0, 0], sizes = [10, 8], strides = [1, 1]} : vector<10x9xf32> to vector<10x8xf32>
    %28 = vector.extract_strided_slice %26 {offsets = [0, 8], sizes = [10, 1], strides = [1, 1]} : vector<10x9xf32> to vector<10x1xf32>
    %cst_26 = arith.constant dense<0xFF800000> : vector<1xf32>
    %29 = vector.multi_reduction <maximumf>, %28, %cst_26 [0] : vector<10x1xf32> to vector<1xf32>
    %30 = vector.shape_cast %29 : vector<1xf32> to vector<1x1xf32>
    %31 = vector.broadcast %30 : vector<1x1xf32> to vector<10x1xf32>
    %32 = arith.subf %28, %31 : vector<10x1xf32>
    %33 = math.exp %32 : vector<10x1xf32>
    %c0_27 = arith.constant 0 : index
    %c0_28 = arith.constant 0 : index
    %34 = vector.load %arg18[%c0_27, %c0_28] : memref<2x10xf32, #tpu.memory_space<vmem>>, vector<2x10xf32>
    %cst_29 = arith.constant dense<0.000000e+00> : vector<2x1xf32>
    %35 = tpu.matmul %34, %33, %cst_29 {dimension_numbers = #tpu.dot_dimension_numbers<[1], [0], [0], [1], [0, 0, 1, 1], [], []>} : vector<2x10xf32>, vector<10x1xf32>, vector<2x1xf32> -> vector<2x1xf32>
    %c0_30 = arith.constant 0 : index
    %c0_31 = arith.constant 0 : index
    %36 = vector.load %arg19[%c0_30, %c0_31] : memref<10x2xf32, #tpu.memory_space<vmem>>, vector<10x2xf32>
    %cst_32 = arith.constant dense<0.000000e+00> : vector<10x1xf32>
    %37 = tpu.matmul %36, %35, %cst_32 {dimension_numbers = #tpu.dot_dimension_numbers<[1], [0], [0], [1], [0, 0, 1, 1], [], []>} : vector<10x2xf32>, vector<2x1xf32>, vector<10x1xf32> -> vector<10x1xf32>
    %38 = arith.divf %33, %37 : vector<10x1xf32>
    %c0_33 = arith.constant 0 : index
    %c0_34 = arith.constant 0 : index
    %39 = vector.load %arg18[%c0_33, %c0_34] : memref<2x10xf32, #tpu.memory_space<vmem>>, vector<2x10xf32>
    %40 = vector.broadcast %38 : vector<10x1xf32> to vector<10x8xf32>
    %41 = arith.mulf %27, %40 : vector<10x8xf32>
    %cst_35 = arith.constant dense<0.000000e+00> : vector<2x8xf32>
    %42 = tpu.matmul %39, %41, %cst_35 {dimension_numbers = #tpu.dot_dimension_numbers<[1], [0], [0], [1], [0, 0, 1, 1], [], []>} : vector<2x10xf32>, vector<10x8xf32>, vector<2x8xf32> -> vector<2x8xf32>
    %c0_36 = arith.constant 0 : index
    %c0_37 = arith.constant 0 : index
    %43 = vector.load %arg10[%c0_36, %c0_37] : memref<8x16xf32, #tpu.memory_space<vmem>>, vector<8x16xf32>
    %cst_38 = arith.constant dense<0.000000e+00> : vector<2x16xf32>
    %44 = tpu.matmul %42, %43, %cst_38 {dimension_numbers = #tpu.dot_dimension_numbers<[1], [0], [0], [1], [0, 0, 1, 1], [], []>} : vector<2x8xf32>, vector<8x16xf32>, vector<2x16xf32> -> vector<2x16xf32>
    %c0_39 = arith.constant 0 : index
    %c0_40 = arith.constant 0 : index
    %45 = vector.load %arg11[%c0_39, %c0_40] : memref<1x16xf32, #tpu.memory_space<vmem>>, vector<1x16xf32>
    %46 = vector.broadcast %45 : vector<1x16xf32> to vector<2x16xf32>
    %47 = arith.addf %44, %46 : vector<2x16xf32>
    %cst_41 = arith.constant 0.000000e+00 : f32
    %48 = vector.broadcast %cst_41 : f32 to vector<2x16xf32>
    %49 = arith.maximumf %47, %48 : vector<2x16xf32>
    %c0_42 = arith.constant 0 : index
    %c0_43 = arith.constant 0 : index
    %50 = vector.load %arg12[%c0_42, %c0_43] : memref<16x8xf32, #tpu.memory_space<vmem>>, vector<16x8xf32>
    %cst_44 = arith.constant dense<0.000000e+00> : vector<2x8xf32>
    %51 = tpu.matmul %49, %50, %cst_44 {dimension_numbers = #tpu.dot_dimension_numbers<[1], [0], [0], [1], [0, 0, 1, 1], [], []>} : vector<2x16xf32>, vector<16x8xf32>, vector<2x8xf32> -> vector<2x8xf32>
    %c0_45 = arith.constant 0 : index
    %c0_46 = arith.constant 0 : index
    %52 = vector.load %arg13[%c0_45, %c0_46] : memref<1x8xf32, #tpu.memory_space<vmem>>, vector<1x8xf32>
    %53 = vector.broadcast %52 : vector<1x8xf32> to vector<2x8xf32>
    %54 = arith.addf %51, %53 : vector<2x8xf32>
    %c0_47 = arith.constant 0 : index
    %c0_48 = arith.constant 0 : index
    %55 = vector.load %arg21[%c0_47, %c0_48] : memref<2x8xf32, #tpu.memory_space<vmem>>, vector<2x8xf32>
    tpu.vector_store %arg21[%c0_47, %c0_48], %54 {strides = array<i32>} : memref<2x8xf32, #tpu.memory_space<vmem>>, vector<2x8xf32>,
    %c0_49 = arith.constant 0 : index
    %c0_50 = arith.constant 0 : index
    %56 = vector.load %arg14[%c0_49, %c0_50] : memref<16x16xf32, #tpu.memory_space<vmem>>, vector<16x16xf32>
    %cst_51 = arith.constant dense<0.000000e+00> : vector<10x16xf32>
    %57 = tpu.matmul %1, %56, %cst_51 {dimension_numbers = #tpu.dot_dimension_numbers<[1], [0], [0], [1], [0, 0, 1, 1], [], []>} : vector<10x16xf32>, vector<16x16xf32>, vector<10x16xf32> -> vector<10x16xf32>
    %c0_52 = arith.constant 0 : index
    %c0_53 = arith.constant 0 : index
    %58 = vector.load %arg15[%c0_52, %c0_53] : memref<1x16xf32, #tpu.memory_space<vmem>>, vector<1x16xf32>
    %59 = vector.broadcast %58 : vector<1x16xf32> to vector<10x16xf32>
    %60 = arith.addf %57, %59 : vector<10x16xf32>
    %cst_54 = arith.constant 0.000000e+00 : f32
    %61 = vector.broadcast %cst_54 : f32 to vector<10x16xf32>
    %62 = arith.maximumf %60, %61 : vector<10x16xf32>
    %c0_55 = arith.constant 0 : index
    %c0_56 = arith.constant 0 : index
    %63 = vector.load %arg16[%c0_55, %c0_56] : memref<16x15xf32, #tpu.memory_space<vmem>>, vector<16x15xf32>
    %cst_57 = arith.constant dense<0.000000e+00> : vector<10x15xf32>
    %64 = tpu.matmul %62, %63, %cst_57 {dimension_numbers = #tpu.dot_dimension_numbers<[1], [0], [0], [1], [0, 0, 1, 1], [], []>} : vector<10x16xf32>, vector<16x15xf32>, vector<10x15xf32> -> vector<10x15xf32>
    %c0_58 = arith.constant 0 : index
    %c0_59 = arith.constant 0 : index
    %65 = vector.load %arg17[%c0_58, %c0_59] : memref<1x15xf32, #tpu.memory_space<vmem>>, vector<1x15xf32>
    %66 = vector.broadcast %65 : vector<1x15xf32> to vector<10x15xf32>
    %67 = arith.addf %64, %66 : vector<10x15xf32>
    %c0_60 = arith.constant 0 : index
    %c0_61 = arith.constant 0 : index
    %68 = vector.load %arg22[%c0_60, %c0_61] : memref<10x15xf32, #tpu.memory_space<vmem>>, vector<10x15xf32>
    tpu.vector_store %arg22[%c0_60, %c0_61], %67 {strides = array<i32>} : memref<10x15xf32, #tpu.memory_space<vmem>>, vector<10x15xf32>,
    return
  }
}

module attributes {stable_mosaic.version = 11 : i64} {
  func.func @_slot_kernel(%arg0: memref<96x32xf32, #tpu.memory_space<vmem>>, %arg1: memref<1x32xf32, #tpu.memory_space<vmem>>, %arg2: memref<1x32xf32, #tpu.memory_space<vmem>>, %arg3: memref<32x16xf32, #tpu.memory_space<vmem>>, %arg4: memref<32x24xf32, #tpu.memory_space<vmem>>, %arg5: memref<6x8xf32, #tpu.memory_space<vmem>>, %arg6: memref<10x16xf32, #tpu.memory_space<vmem>>, %arg7: memref<30x6xf32, #tpu.memory_space<vmem>>, %arg8: memref<30x10xf32, #tpu.memory_space<vmem>>, %arg9: memref<8x24xf32, #tpu.memory_space<vmem>>, %arg10: memref<16x24xf32, #tpu.memory_space<vmem>>, %arg11: memref<6x30xf32, #tpu.memory_space<vmem>>, %arg12: memref<10x30xf32, #tpu.memory_space<vmem>>, %arg13: memref<30x96xf32, #tpu.memory_space<vmem>>, %arg14: memref<1x24xf32, #tpu.memory_space<vmem>>, %arg15: memref<1x24xf32, #tpu.memory_space<vmem>>, %arg16: memref<24x16xf32, #tpu.memory_space<vmem>>, %arg17: memref<24x24xf32, #tpu.memory_space<vmem>>, %arg18: memref<24x24xf32, #tpu.memory_space<vmem>>, %arg19: memref<24x24xf32, #tpu.memory_space<vmem>>, %arg20: memref<24x24xf32, #tpu.memory_space<vmem>>, %arg21: memref<24x24xf32, #tpu.memory_space<vmem>>, %arg22: memref<24x24xf32, #tpu.memory_space<vmem>>, %arg23: memref<4x24xf32, #tpu.memory_space<vmem>>, %arg24: memref<1x24xf32, #tpu.memory_space<vmem>>, %arg25: memref<1x24xf32, #tpu.memory_space<vmem>>, %arg26: memref<24x32xf32, #tpu.memory_space<vmem>>, %arg27: memref<1x32xf32, #tpu.memory_space<vmem>>, %arg28: memref<32x24xf32, #tpu.memory_space<vmem>>, %arg29: memref<1x24xf32, #tpu.memory_space<vmem>>, %arg30: memref<6x8xf32, #tpu.memory_space<vmem>>, %arg31: memref<10x16xf32, #tpu.memory_space<vmem>>) attributes {dimension_semantics = [], scalar_prefetch = 0 : i64, scratch_operands = 0 : i64, tpu.core_type = #tpu.core_type<tc>} {
    %c0 = arith.constant 0 : index
    %c0_0 = arith.constant 0 : index
    %0 = vector.load %arg0[%c0, %c0_0] : memref<96x32xf32, #tpu.memory_space<vmem>>, vector<96x32xf32>
    %c0_1 = arith.constant 0 : index
    %c0_2 = arith.constant 0 : index
    %1 = vector.load %arg1[%c0_1, %c0_2] : memref<1x32xf32, #tpu.memory_space<vmem>>, vector<1x32xf32>
    %c0_3 = arith.constant 0 : index
    %c0_4 = arith.constant 0 : index
    %2 = vector.load %arg2[%c0_3, %c0_4] : memref<1x32xf32, #tpu.memory_space<vmem>>, vector<1x32xf32>
    %cst = arith.constant dense<0.000000e+00> : vector<96xf32>
    %3 = vector.multi_reduction <add>, %0, %cst [1] : vector<96x32xf32> to vector<96xf32>
    %4 = vector.shape_cast %3 : vector<96xf32> to vector<96x1xf32>
    %cst_5 = arith.constant 3.200000e+01 : f32
    %5 = vector.broadcast %cst_5 : f32 to vector<96x1xf32>
    %6 = arith.divf %4, %5 : vector<96x1xf32>
    %7 = vector.broadcast %6 : vector<96x1xf32> to vector<96x32xf32>
    %8 = arith.subf %0, %7 : vector<96x32xf32>
    %9 = arith.mulf %8, %8 : vector<96x32xf32>
    %cst_6 = arith.constant dense<0.000000e+00> : vector<96xf32>
    %10 = vector.multi_reduction <add>, %9, %cst_6 [1] : vector<96x32xf32> to vector<96xf32>
    %11 = vector.shape_cast %10 : vector<96xf32> to vector<96x1xf32>
    %cst_7 = arith.constant 3.200000e+01 : f32
    %12 = vector.broadcast %cst_7 : f32 to vector<96x1xf32>
    %13 = arith.divf %11, %12 : vector<96x1xf32>
    %14 = vector.broadcast %6 : vector<96x1xf32> to vector<96x32xf32>
    %15 = arith.subf %0, %14 : vector<96x32xf32>
    %cst_8 = arith.constant 9.99999974E-6 : f32
    %16 = vector.broadcast %cst_8 : f32 to vector<96x1xf32>
    %17 = arith.addf %13, %16 : vector<96x1xf32>
    %18 = math.rsqrt %17 : vector<96x1xf32>
    %19 = vector.broadcast %18 : vector<96x1xf32> to vector<96x32xf32>
    %20 = arith.mulf %15, %19 : vector<96x32xf32>
    %21 = vector.broadcast %1 : vector<1x32xf32> to vector<96x32xf32>
    %22 = arith.mulf %20, %21 : vector<96x32xf32>
    %23 = vector.broadcast %2 : vector<1x32xf32> to vector<96x32xf32>
    %24 = arith.addf %22, %23 : vector<96x32xf32>
    %c0_9 = arith.constant 0 : index
    %c0_10 = arith.constant 0 : index
    %25 = vector.load %arg3[%c0_9, %c0_10] : memref<32x16xf32, #tpu.memory_space<vmem>>, vector<32x16xf32>
    %cst_11 = arith.constant dense<0.000000e+00> : vector<96x16xf32>
    %26 = tpu.matmul %24, %25, %cst_11 {dimension_numbers = #tpu.dot_dimension_numbers<[1], [0], [0], [1], [0, 0, 1, 1], [], []>} : vector<96x32xf32>, vector<32x16xf32>, vector<96x16xf32> -> vector<96x16xf32>
    %cst_12 = arith.constant 2.500000e-01 : f32
    %27 = vector.broadcast %cst_12 : f32 to vector<96x16xf32>
    %28 = arith.mulf %26, %27 : vector<96x16xf32>
    %c0_13 = arith.constant 0 : index
    %c0_14 = arith.constant 0 : index
    %29 = vector.load %arg4[%c0_13, %c0_14] : memref<32x24xf32, #tpu.memory_space<vmem>>, vector<32x24xf32>
    %cst_15 = arith.constant dense<0.000000e+00> : vector<96x24xf32>
    %30 = tpu.matmul %24, %29, %cst_15 {dimension_numbers = #tpu.dot_dimension_numbers<[1], [0], [0], [1], [0, 0, 1, 1], [], []>} : vector<96x32xf32>, vector<32x24xf32>, vector<96x24xf32> -> vector<96x24xf32>
    %c0_16 = arith.constant 0 : index
    %c0_17 = arith.constant 0 : index
    %31 = vector.load %arg13[%c0_16, %c0_17] : memref<30x96xf32, #tpu.memory_space<vmem>>, vector<30x96xf32>
    %c0_18 = arith.constant 0 : index
    %c0_19 = arith.constant 0 : index
    %32 = vector.load %arg7[%c0_18, %c0_19] : memref<30x6xf32, #tpu.memory_space<vmem>>, vector<30x6xf32>
    %c0_20 = arith.constant 0 : index
    %c0_21 = arith.constant 0 : index
    %33 = vector.load %arg8[%c0_20, %c0_21] : memref<30x10xf32, #tpu.memory_space<vmem>>, vector<30x10xf32>
    %c0_22 = arith.constant 0 : index
    %c0_23 = arith.constant 0 : index
    %34 = vector.load %arg9[%c0_22, %c0_23] : memref<8x24xf32, #tpu.memory_space<vmem>>, vector<8x24xf32>
    %c0_24 = arith.constant 0 : index
    %c0_25 = arith.constant 0 : index
    %35 = vector.load %arg10[%c0_24, %c0_25] : memref<16x24xf32, #tpu.memory_space<vmem>>, vector<16x24xf32>
    %c0_26 = arith.constant 0 : index
    %c0_27 = arith.constant 0 : index
    %36 = vector.load %arg11[%c0_26, %c0_27] : memref<6x30xf32, #tpu.memory_space<vmem>>, vector<6x30xf32>
    %c0_28 = arith.constant 0 : index
    %c0_29 = arith.constant 0 : index
    %37 = vector.load %arg12[%c0_28, %c0_29] : memref<10x30xf32, #tpu.memory_space<vmem>>, vector<10x30xf32>
    %c0_30 = arith.constant 0 : index
    %c0_31 = arith.constant 0 : index
    %38 = vector.load %arg23[%c0_30, %c0_31] : memref<4x24xf32, #tpu.memory_space<vmem>>, vector<1x24xf32>
    %c1 = arith.constant 1 : index
    %c0_32 = arith.constant 0 : index
    %39 = vector.load %arg23[%c1, %c0_32] : memref<4x24xf32, #tpu.memory_space<vmem>>, vector<1x24xf32>
    %c2 = arith.constant 2 : index
    %c0_33 = arith.constant 0 : index
    %40 = vector.load %arg23[%c2, %c0_33] : memref<4x24xf32, #tpu.memory_space<vmem>>, vector<1x24xf32>
    %c3 = arith.constant 3 : index
    %c0_34 = arith.constant 0 : index
    %41 = vector.load %arg23[%c3, %c0_34] : memref<4x24xf32, #tpu.memory_space<vmem>>, vector<1x24xf32>
    %c0_35 = arith.constant 0 : index
    %c0_36 = arith.constant 0 : index
    %42 = vector.load %arg5[%c0_35, %c0_36] : memref<6x8xf32, #tpu.memory_space<vmem>>, vector<6x8xf32>
    %c0_37 = arith.constant 0 : index
    %c0_38 = arith.constant 0 : index
    %43 = vector.load %arg6[%c0_37, %c0_38] : memref<10x16xf32, #tpu.memory_space<vmem>>, vector<10x16xf32>
    %cst_39 = arith.constant dense<0.000000e+00> : vector<30x8xf32>
    %44 = tpu.matmul %32, %42, %cst_39 {dimension_numbers = #tpu.dot_dimension_numbers<[1], [0], [0], [1], [0, 0, 1, 1], [], []>} : vector<30x6xf32>, vector<6x8xf32>, vector<30x8xf32> -> vector<30x8xf32>
    %cst_40 = arith.constant dense<0.000000e+00> : vector<30x24xf32>
    %45 = tpu.matmul %44, %34, %cst_40 {dimension_numbers = #tpu.dot_dimension_numbers<[1], [0], [0], [1], [0, 0, 1, 1], [], []>} : vector<30x8xf32>, vector<8x24xf32>, vector<30x24xf32> -> vector<30x24xf32>
    %cst_41 = arith.constant dense<0.000000e+00> : vector<30x16xf32>
    %46 = tpu.matmul %33, %43, %cst_41 {dimension_numbers = #tpu.dot_dimension_numbers<[1], [0], [0], [1], [0, 0, 1, 1], [], []>} : vector<30x10xf32>, vector<10x16xf32>, vector<30x16xf32> -> vector<30x16xf32>
    %cst_42 = arith.constant dense<0.000000e+00> : vector<30x24xf32>
    %47 = tpu.matmul %46, %35, %cst_42 {dimension_numbers = #tpu.dot_dimension_numbers<[1], [0], [0], [1], [0, 0, 1, 1], [], []>} : vector<30x16xf32>, vector<16x24xf32>, vector<30x24xf32> -> vector<30x24xf32>
    %48 = arith.addf %45, %47 : vector<30x24xf32>
    %c0_43 = arith.constant 0 : index
    %c0_44 = arith.constant 0 : index
    %49 = vector.load %arg14[%c0_43, %c0_44] : memref<1x24xf32, #tpu.memory_space<vmem>>, vector<1x24xf32>
    %c0_45 = arith.constant 0 : index
    %c0_46 = arith.constant 0 : index
    %50 = vector.load %arg15[%c0_45, %c0_46] : memref<1x24xf32, #tpu.memory_space<vmem>>, vector<1x24xf32>
    %cst_47 = arith.constant dense<0.000000e+00> : vector<30xf32>
    %51 = vector.multi_reduction <add>, %48, %cst_47 [1] : vector<30x24xf32> to vector<30xf32>
    %52 = vector.shape_cast %51 : vector<30xf32> to vector<30x1xf32>
    %cst_48 = arith.constant 2.400000e+01 : f32
    %53 = vector.broadcast %cst_48 : f32 to vector<30x1xf32>
    %54 = arith.divf %52, %53 : vector<30x1xf32>
    %55 = vector.broadcast %54 : vector<30x1xf32> to vector<30x24xf32>
    %56 = arith.subf %48, %55 : vector<30x24xf32>
    %57 = arith.mulf %56, %56 : vector<30x24xf32>
    %cst_49 = arith.constant dense<0.000000e+00> : vector<30xf32>
    %58 = vector.multi_reduction <add>, %57, %cst_49 [1] : vector<30x24xf32> to vector<30xf32>
    %59 = vector.shape_cast %58 : vector<30xf32> to vector<30x1xf32>
    %cst_50 = arith.constant 2.400000e+01 : f32
    %60 = vector.broadcast %cst_50 : f32 to vector<30x1xf32>
    %61 = arith.divf %59, %60 : vector<30x1xf32>
    %62 = vector.broadcast %54 : vector<30x1xf32> to vector<30x24xf32>
    %63 = arith.subf %48, %62 : vector<30x24xf32>
    %cst_51 = arith.constant 9.99999974E-6 : f32
    %64 = vector.broadcast %cst_51 : f32 to vector<30x1xf32>
    %65 = arith.addf %61, %64 : vector<30x1xf32>
    %66 = math.rsqrt %65 : vector<30x1xf32>
    %67 = vector.broadcast %66 : vector<30x1xf32> to vector<30x24xf32>
    %68 = arith.mulf %63, %67 : vector<30x24xf32>
    %69 = vector.broadcast %49 : vector<1x24xf32> to vector<30x24xf32>
    %70 = arith.mulf %68, %69 : vector<30x24xf32>
    %71 = vector.broadcast %50 : vector<1x24xf32> to vector<30x24xf32>
    %72 = arith.addf %70, %71 : vector<30x24xf32>
    %c0_52 = arith.constant 0 : index
    %c0_53 = arith.constant 0 : index
    %73 = vector.load %arg16[%c0_52, %c0_53] : memref<24x16xf32, #tpu.memory_space<vmem>>, vector<24x16xf32>
    %cst_54 = arith.constant dense<0.000000e+00> : vector<30x16xf32>
    %74 = tpu.matmul %72, %73, %cst_54 {dimension_numbers = #tpu.dot_dimension_numbers<[1], [0], [0], [1], [0, 0, 1, 1], [], []>} : vector<30x24xf32>, vector<24x16xf32>, vector<30x16xf32> -> vector<30x16xf32>
    %cst_55 = arith.constant dense<0.000000e+00> : vector<30x96xf32>
    %75 = tpu.matmul %74, %28, %cst_55 {dimension_numbers = #tpu.dot_dimension_numbers<[1], [1], [0], [0], [0, 0, 1, 0], [], []>} : vector<30x16xf32>, vector<96x16xf32>, vector<30x96xf32> -> vector<30x96xf32>
    %76 = arith.addf %75, %31 : vector<30x96xf32>
    %cst_56 = arith.constant dense<0xFF800000> : vector<96xf32>
    %77 = vector.multi_reduction <maximumf>, %76, %cst_56 [0] : vector<30x96xf32> to vector<96xf32>
    %78 = vector.shape_cast %77 : vector<96xf32> to vector<1x96xf32>
    %79 = vector.broadcast %78 : vector<1x96xf32> to vector<30x96xf32>
    %80 = arith.subf %76, %79 : vector<30x96xf32>
    %81 = vector.broadcast %78 : vector<1x96xf32> to vector<30x96xf32>
    %82 = arith.subf %76, %81 : vector<30x96xf32>
    %83 = math.exp %82 : vector<30x96xf32>
    %cst_57 = arith.constant dense<0.000000e+00> : vector<96xf32>
    %84 = vector.multi_reduction <add>, %83, %cst_57 [0] : vector<30x96xf32> to vector<96xf32>
    %85 = vector.shape_cast %84 : vector<96xf32> to vector<1x96xf32>
    %86 = math.log %85 : vector<1x96xf32>
    %87 = vector.broadcast %86 : vector<1x96xf32> to vector<30x96xf32>
    %88 = arith.subf %80, %87 : vector<30x96xf32>
    %cst_58 = arith.constant dense<0xFF800000> : vector<30xf32>
    %89 = vector.multi_reduction <maximumf>, %88, %cst_58 [1] : vector<30x96xf32> to vector<30xf32>
    %90 = vector.shape_cast %89 : vector<30xf32> to vector<30x1xf32>
    %91 = vector.broadcast %90 : vector<30x1xf32> to vector<30x96xf32>
    %92 = arith.subf %88, %91 : vector<30x96xf32>
    %93 = math.exp %92 : vector<30x96xf32>
    %cst_59 = arith.constant dense<0.000000e+00> : vector<30xf32>
    %94 = vector.multi_reduction <add>, %93, %cst_59 [1] : vector<30x96xf32> to vector<30xf32>
    %95 = vector.shape_cast %94 : vector<30xf32> to vector<30x1xf32>
    %96 = vector.broadcast %95 : vector<30x1xf32> to vector<30x96xf32>
    %97 = arith.divf %93, %96 : vector<30x96xf32>
    %cst_60 = arith.constant dense<0.000000e+00> : vector<30x24xf32>
    %98 = tpu.matmul %97, %30, %cst_60 {dimension_numbers = #tpu.dot_dimension_numbers<[1], [0], [0], [1], [0, 0, 1, 1], [], []>} : vector<30x96xf32>, vector<96x24xf32>, vector<30x24xf32> -> vector<30x24xf32>
    %c0_61 = arith.constant 0 : index
    %c0_62 = arith.constant 0 : index
    %99 = vector.load %arg17[%c0_61, %c0_62] : memref<24x24xf32, #tpu.memory_space<vmem>>, vector<24x24xf32>
    %cst_63 = arith.constant dense<0.000000e+00> : vector<30x24xf32>
    %100 = tpu.matmul %98, %99, %cst_63 {dimension_numbers = #tpu.dot_dimension_numbers<[1], [0], [0], [1], [0, 0, 1, 1], [], []>} : vector<30x24xf32>, vector<24x24xf32>, vector<30x24xf32> -> vector<30x24xf32>
    %c0_64 = arith.constant 0 : index
    %c0_65 = arith.constant 0 : index
    %101 = vector.load %arg20[%c0_64, %c0_65] : memref<24x24xf32, #tpu.memory_space<vmem>>, vector<24x24xf32>
    %cst_66 = arith.constant dense<0.000000e+00> : vector<30x24xf32>
    %102 = tpu.matmul %48, %101, %cst_66 {dimension_numbers = #tpu.dot_dimension_numbers<[1], [0], [0], [1], [0, 0, 1, 1], [], []>} : vector<30x24xf32>, vector<24x24xf32>, vector<30x24xf32> -> vector<30x24xf32>
    %103 = arith.addf %100, %102 : vector<30x24xf32>
    %104 = vector.broadcast %38 : vector<1x24xf32> to vector<30x24xf32>
    %105 = arith.addf %103, %104 : vector<30x24xf32>
    %106 = arith.negf %105 : vector<30x24xf32>
    %107 = math.exp %106 : vector<30x24xf32>
    %cst_67 = arith.constant 1.000000e+00 : f32
    %108 = vector.broadcast %cst_67 : f32 to vector<30x24xf32>
    %109 = arith.addf %108, %107 : vector<30x24xf32>
    %110 = arith.divf %108, %109 : vector<30x24xf32>
    %c0_68 = arith.constant 0 : index
    %c0_69 = arith.constant 0 : index
    %111 = vector.load %arg18[%c0_68, %c0_69] : memref<24x24xf32, #tpu.memory_space<vmem>>, vector<24x24xf32>
    %cst_70 = arith.constant dense<0.000000e+00> : vector<30x24xf32>
    %112 = tpu.matmul %98, %111, %cst_70 {dimension_numbers = #tpu.dot_dimension_numbers<[1], [0], [0], [1], [0, 0, 1, 1], [], []>} : vector<30x24xf32>, vector<24x24xf32>, vector<30x24xf32> -> vector<30x24xf32>
    %c0_71 = arith.constant 0 : index
    %c0_72 = arith.constant 0 : index
    %113 = vector.load %arg21[%c0_71, %c0_72] : memref<24x24xf32, #tpu.memory_space<vmem>>, vector<24x24xf32>
    %cst_73 = arith.constant dense<0.000000e+00> : vector<30x24xf32>
    %114 = tpu.matmul %48, %113, %cst_73 {dimension_numbers = #tpu.dot_dimension_numbers<[1], [0], [0], [1], [0, 0, 1, 1], [], []>} : vector<30x24xf32>, vector<24x24xf32>, vector<30x24xf32> -> vector<30x24xf32>
    %115 = arith.addf %112, %114 : vector<30x24xf32>
    %116 = vector.broadcast %39 : vector<1x24xf32> to vector<30x24xf32>
    %117 = arith.addf %115, %116 : vector<30x24xf32>
    %118 = arith.negf %117 : vector<30x24xf32>
    %119 = math.exp %118 : vector<30x24xf32>
    %cst_74 = arith.constant 1.000000e+00 : f32
    %120 = vector.broadcast %cst_74 : f32 to vector<30x24xf32>
    %121 = arith.addf %120, %119 : vector<30x24xf32>
    %122 = arith.divf %120, %121 : vector<30x24xf32>
    %c0_75 = arith.constant 0 : index
    %c0_76 = arith.constant 0 : index
    %123 = vector.load %arg19[%c0_75, %c0_76] : memref<24x24xf32, #tpu.memory_space<vmem>>, vector<24x24xf32>
    %cst_77 = arith.constant dense<0.000000e+00> : vector<30x24xf32>
    %124 = tpu.matmul %98, %123, %cst_77 {dimension_numbers = #tpu.dot_dimension_numbers<[1], [0], [0], [1], [0, 0, 1, 1], [], []>} : vector<30x24xf32>, vector<24x24xf32>, vector<30x24xf32> -> vector<30x24xf32>
    %125 = vector.broadcast %40 : vector<1x24xf32> to vector<30x24xf32>
    %126 = arith.addf %124, %125 : vector<30x24xf32>
    %c0_78 = arith.constant 0 : index
    %c0_79 = arith.constant 0 : index
    %127 = vector.load %arg22[%c0_78, %c0_79] : memref<24x24xf32, #tpu.memory_space<vmem>>, vector<24x24xf32>
    %cst_80 = arith.constant dense<0.000000e+00> : vector<30x24xf32>
    %128 = tpu.matmul %48, %127, %cst_80 {dimension_numbers = #tpu.dot_dimension_numbers<[1], [0], [0], [1], [0, 0, 1, 1], [], []>} : vector<30x24xf32>, vector<24x24xf32>, vector<30x24xf32> -> vector<30x24xf32>
    %129 = vector.broadcast %41 : vector<1x24xf32> to vector<30x24xf32>
    %130 = arith.addf %128, %129 : vector<30x24xf32>
    %131 = arith.mulf %110, %130 : vector<30x24xf32>
    %132 = arith.addf %126, %131 : vector<30x24xf32>
    %133 = math.tanh %132 : vector<30x24xf32>
    %cst_81 = arith.constant 1.000000e+00 : f32
    %134 = vector.broadcast %cst_81 : f32 to vector<30x24xf32>
    %135 = arith.subf %134, %122 : vector<30x24xf32>
    %136 = arith.mulf %135, %133 : vector<30x24xf32>
    %137 = arith.mulf %122, %48 : vector<30x24xf32>
    %138 = arith.addf %136, %137 : vector<30x24xf32>
    %c0_82 = arith.constant 0 : index
    %c0_83 = arith.constant 0 : index
    %139 = vector.load %arg24[%c0_82, %c0_83] : memref<1x24xf32, #tpu.memory_space<vmem>>, vector<1x24xf32>
    %c0_84 = arith.constant 0 : index
    %c0_85 = arith.constant 0 : index
    %140 = vector.load %arg25[%c0_84, %c0_85] : memref<1x24xf32, #tpu.memory_space<vmem>>, vector<1x24xf32>
    %cst_86 = arith.constant dense<0.000000e+00> : vector<30xf32>
    %141 = vector.multi_reduction <add>, %138, %cst_86 [1] : vector<30x24xf32> to vector<30xf32>
    %142 = vector.shape_cast %141 : vector<30xf32> to vector<30x1xf32>
    %cst_87 = arith.constant 2.400000e+01 : f32
    %143 = vector.broadcast %cst_87 : f32 to vector<30x1xf32>
    %144 = arith.divf %142, %143 : vector<30x1xf32>
    %145 = vector.broadcast %144 : vector<30x1xf32> to vector<30x24xf32>
    %146 = arith.subf %138, %145 : vector<30x24xf32>
    %147 = arith.mulf %146, %146 : vector<30x24xf32>
    %cst_88 = arith.constant dense<0.000000e+00> : vector<30xf32>
    %148 = vector.multi_reduction <add>, %147, %cst_88 [1] : vector<30x24xf32> to vector<30xf32>
    %149 = vector.shape_cast %148 : vector<30xf32> to vector<30x1xf32>
    %cst_89 = arith.constant 2.400000e+01 : f32
    %150 = vector.broadcast %cst_89 : f32 to vector<30x1xf32>
    %151 = arith.divf %149, %150 : vector<30x1xf32>
    %152 = vector.broadcast %144 : vector<30x1xf32> to vector<30x24xf32>
    %153 = arith.subf %138, %152 : vector<30x24xf32>
    %cst_90 = arith.constant 9.99999974E-6 : f32
    %154 = vector.broadcast %cst_90 : f32 to vector<30x1xf32>
    %155 = arith.addf %151, %154 : vector<30x1xf32>
    %156 = math.rsqrt %155 : vector<30x1xf32>
    %157 = vector.broadcast %156 : vector<30x1xf32> to vector<30x24xf32>
    %158 = arith.mulf %153, %157 : vector<30x24xf32>
    %159 = vector.broadcast %139 : vector<1x24xf32> to vector<30x24xf32>
    %160 = arith.mulf %158, %159 : vector<30x24xf32>
    %161 = vector.broadcast %140 : vector<1x24xf32> to vector<30x24xf32>
    %162 = arith.addf %160, %161 : vector<30x24xf32>
    %c0_91 = arith.constant 0 : index
    %c0_92 = arith.constant 0 : index
    %163 = vector.load %arg26[%c0_91, %c0_92] : memref<24x32xf32, #tpu.memory_space<vmem>>, vector<24x32xf32>
    %cst_93 = arith.constant dense<0.000000e+00> : vector<30x32xf32>
    %164 = tpu.matmul %162, %163, %cst_93 {dimension_numbers = #tpu.dot_dimension_numbers<[1], [0], [0], [1], [0, 0, 1, 1], [], []>} : vector<30x24xf32>, vector<24x32xf32>, vector<30x32xf32> -> vector<30x32xf32>
    %c0_94 = arith.constant 0 : index
    %c0_95 = arith.constant 0 : index
    %165 = vector.load %arg27[%c0_94, %c0_95] : memref<1x32xf32, #tpu.memory_space<vmem>>, vector<1x32xf32>
    %166 = vector.broadcast %165 : vector<1x32xf32> to vector<30x32xf32>
    %167 = arith.addf %164, %166 : vector<30x32xf32>
    %cst_96 = arith.constant 0.000000e+00 : f32
    %168 = vector.broadcast %cst_96 : f32 to vector<30x32xf32>
    %169 = arith.maximumf %167, %168 : vector<30x32xf32>
    %c0_97 = arith.constant 0 : index
    %c0_98 = arith.constant 0 : index
    %170 = vector.load %arg28[%c0_97, %c0_98] : memref<32x24xf32, #tpu.memory_space<vmem>>, vector<32x24xf32>
    %cst_99 = arith.constant dense<0.000000e+00> : vector<30x24xf32>
    %171 = tpu.matmul %169, %170, %cst_99 {dimension_numbers = #tpu.dot_dimension_numbers<[1], [0], [0], [1], [0, 0, 1, 1], [], []>} : vector<30x32xf32>, vector<32x24xf32>, vector<30x24xf32> -> vector<30x24xf32>
    %c0_100 = arith.constant 0 : index
    %c0_101 = arith.constant 0 : index
    %172 = vector.load %arg29[%c0_100, %c0_101] : memref<1x24xf32, #tpu.memory_space<vmem>>, vector<1x24xf32>
    %173 = vector.broadcast %172 : vector<1x24xf32> to vector<30x24xf32>
    %174 = arith.addf %171, %173 : vector<30x24xf32>
    %175 = arith.addf %138, %174 : vector<30x24xf32>
    %176 = vector.extract_strided_slice %175 {offsets = [0, 0], sizes = [30, 8], strides = [1, 1]} : vector<30x24xf32> to vector<30x8xf32>
    %cst_102 = arith.constant dense<0.000000e+00> : vector<6x8xf32>
    %177 = tpu.matmul %36, %176, %cst_102 {dimension_numbers = #tpu.dot_dimension_numbers<[1], [0], [0], [1], [0, 0, 1, 1], [], []>} : vector<6x30xf32>, vector<30x8xf32>, vector<6x8xf32> -> vector<6x8xf32>
    %178 = vector.extract_strided_slice %175 {offsets = [0, 8], sizes = [30, 16], strides = [1, 1]} : vector<30x24xf32> to vector<30x16xf32>
    %cst_103 = arith.constant dense<0.000000e+00> : vector<10x16xf32>
    %179 = tpu.matmul %37, %178, %cst_103 {dimension_numbers = #tpu.dot_dimension_numbers<[1], [0], [0], [1], [0, 0, 1, 1], [], []>} : vector<10x30xf32>, vector<30x16xf32>, vector<10x16xf32> -> vector<10x16xf32>
    %cst_104 = arith.constant dense<0.000000e+00> : vector<30x8xf32>
    %180 = tpu.matmul %32, %177, %cst_104 {dimension_numbers = #tpu.dot_dimension_numbers<[1], [0], [0], [1], [0, 0, 1, 1], [], []>} : vector<30x6xf32>, vector<6x8xf32>, vector<30x8xf32> -> vector<30x8xf32>
    %cst_105 = arith.constant dense<0.000000e+00> : vector<30x24xf32>
    %181 = tpu.matmul %180, %34, %cst_105 {dimension_numbers = #tpu.dot_dimension_numbers<[1], [0], [0], [1], [0, 0, 1, 1], [], []>} : vector<30x8xf32>, vector<8x24xf32>, vector<30x24xf32> -> vector<30x24xf32>
    %cst_106 = arith.constant dense<0.000000e+00> : vector<30x16xf32>
    %182 = tpu.matmul %33, %179, %cst_106 {dimension_numbers = #tpu.dot_dimension_numbers<[1], [0], [0], [1], [0, 0, 1, 1], [], []>} : vector<30x10xf32>, vector<10x16xf32>, vector<30x16xf32> -> vector<30x16xf32>
    %cst_107 = arith.constant dense<0.000000e+00> : vector<30x24xf32>
    %183 = tpu.matmul %182, %35, %cst_107 {dimension_numbers = #tpu.dot_dimension_numbers<[1], [0], [0], [1], [0, 0, 1, 1], [], []>} : vector<30x16xf32>, vector<16x24xf32>, vector<30x24xf32> -> vector<30x24xf32>
    %184 = arith.addf %181, %183 : vector<30x24xf32>
    %c0_108 = arith.constant 0 : index
    %c0_109 = arith.constant 0 : index
    %185 = vector.load %arg14[%c0_108, %c0_109] : memref<1x24xf32, #tpu.memory_space<vmem>>, vector<1x24xf32>
    %c0_110 = arith.constant 0 : index
    %c0_111 = arith.constant 0 : index
    %186 = vector.load %arg15[%c0_110, %c0_111] : memref<1x24xf32, #tpu.memory_space<vmem>>, vector<1x24xf32>
    %cst_112 = arith.constant dense<0.000000e+00> : vector<30xf32>
    %187 = vector.multi_reduction <add>, %184, %cst_112 [1] : vector<30x24xf32> to vector<30xf32>
    %188 = vector.shape_cast %187 : vector<30xf32> to vector<30x1xf32>
    %cst_113 = arith.constant 2.400000e+01 : f32
    %189 = vector.broadcast %cst_113 : f32 to vector<30x1xf32>
    %190 = arith.divf %188, %189 : vector<30x1xf32>
    %191 = vector.broadcast %190 : vector<30x1xf32> to vector<30x24xf32>
    %192 = arith.subf %184, %191 : vector<30x24xf32>
    %193 = arith.mulf %192, %192 : vector<30x24xf32>
    %cst_114 = arith.constant dense<0.000000e+00> : vector<30xf32>
    %194 = vector.multi_reduction <add>, %193, %cst_114 [1] : vector<30x24xf32> to vector<30xf32>
    %195 = vector.shape_cast %194 : vector<30xf32> to vector<30x1xf32>
    %cst_115 = arith.constant 2.400000e+01 : f32
    %196 = vector.broadcast %cst_115 : f32 to vector<30x1xf32>
    %197 = arith.divf %195, %196 : vector<30x1xf32>
    %198 = vector.broadcast %190 : vector<30x1xf32> to vector<30x24xf32>
    %199 = arith.subf %184, %198 : vector<30x24xf32>
    %cst_116 = arith.constant 9.99999974E-6 : f32
    %200 = vector.broadcast %cst_116 : f32 to vector<30x1xf32>
    %201 = arith.addf %197, %200 : vector<30x1xf32>
    %202 = math.rsqrt %201 : vector<30x1xf32>
    %203 = vector.broadcast %202 : vector<30x1xf32> to vector<30x24xf32>
    %204 = arith.mulf %199, %203 : vector<30x24xf32>
    %205 = vector.broadcast %185 : vector<1x24xf32> to vector<30x24xf32>
    %206 = arith.mulf %204, %205 : vector<30x24xf32>
    %207 = vector.broadcast %186 : vector<1x24xf32> to vector<30x24xf32>
    %208 = arith.addf %206, %207 : vector<30x24xf32>
    %c0_117 = arith.constant 0 : index
    %c0_118 = arith.constant 0 : index
    %209 = vector.load %arg16[%c0_117, %c0_118] : memref<24x16xf32, #tpu.memory_space<vmem>>, vector<24x16xf32>
    %cst_119 = arith.constant dense<0.000000e+00> : vector<30x16xf32>
    %210 = tpu.matmul %208, %209, %cst_119 {dimension_numbers = #tpu.dot_dimension_numbers<[1], [0], [0], [1], [0, 0, 1, 1], [], []>} : vector<30x24xf32>, vector<24x16xf32>, vector<30x16xf32> -> vector<30x16xf32>
    %cst_120 = arith.constant dense<0.000000e+00> : vector<30x96xf32>
    %211 = tpu.matmul %210, %28, %cst_120 {dimension_numbers = #tpu.dot_dimension_numbers<[1], [1], [0], [0], [0, 0, 1, 0], [], []>} : vector<30x16xf32>, vector<96x16xf32>, vector<30x96xf32> -> vector<30x96xf32>
    %212 = arith.addf %211, %31 : vector<30x96xf32>
    %cst_121 = arith.constant dense<0xFF800000> : vector<96xf32>
    %213 = vector.multi_reduction <maximumf>, %212, %cst_121 [0] : vector<30x96xf32> to vector<96xf32>
    %214 = vector.shape_cast %213 : vector<96xf32> to vector<1x96xf32>
    %215 = vector.broadcast %214 : vector<1x96xf32> to vector<30x96xf32>
    %216 = arith.subf %212, %215 : vector<30x96xf32>
    %217 = vector.broadcast %214 : vector<1x96xf32> to vector<30x96xf32>
    %218 = arith.subf %212, %217 : vector<30x96xf32>
    %219 = math.exp %218 : vector<30x96xf32>
    %cst_122 = arith.constant dense<0.000000e+00> : vector<96xf32>
    %220 = vector.multi_reduction <add>, %219, %cst_122 [0] : vector<30x96xf32> to vector<96xf32>
    %221 = vector.shape_cast %220 : vector<96xf32> to vector<1x96xf32>
    %222 = math.log %221 : vector<1x96xf32>
    %223 = vector.broadcast %222 : vector<1x96xf32> to vector<30x96xf32>
    %224 = arith.subf %216, %223 : vector<30x96xf32>
    %cst_123 = arith.constant dense<0xFF800000> : vector<30xf32>
    %225 = vector.multi_reduction <maximumf>, %224, %cst_123 [1] : vector<30x96xf32> to vector<30xf32>
    %226 = vector.shape_cast %225 : vector<30xf32> to vector<30x1xf32>
    %227 = vector.broadcast %226 : vector<30x1xf32> to vector<30x96xf32>
    %228 = arith.subf %224, %227 : vector<30x96xf32>
    %229 = math.exp %228 : vector<30x96xf32>
    %cst_124 = arith.constant dense<0.000000e+00> : vector<30xf32>
    %230 = vector.multi_reduction <add>, %229, %cst_124 [1] : vector<30x96xf32> to vector<30xf32>
    %231 = vector.shape_cast %230 : vector<30xf32> to vector<30x1xf32>
    %232 = vector.broadcast %231 : vector<30x1xf32> to vector<30x96xf32>
    %233 = arith.divf %229, %232 : vector<30x96xf32>
    %cst_125 = arith.constant dense<0.000000e+00> : vector<30x24xf32>
    %234 = tpu.matmul %233, %30, %cst_125 {dimension_numbers = #tpu.dot_dimension_numbers<[1], [0], [0], [1], [0, 0, 1, 1], [], []>} : vector<30x96xf32>, vector<96x24xf32>, vector<30x24xf32> -> vector<30x24xf32>
    %c0_126 = arith.constant 0 : index
    %c0_127 = arith.constant 0 : index
    %235 = vector.load %arg17[%c0_126, %c0_127] : memref<24x24xf32, #tpu.memory_space<vmem>>, vector<24x24xf32>
    %cst_128 = arith.constant dense<0.000000e+00> : vector<30x24xf32>
    %236 = tpu.matmul %234, %235, %cst_128 {dimension_numbers = #tpu.dot_dimension_numbers<[1], [0], [0], [1], [0, 0, 1, 1], [], []>} : vector<30x24xf32>, vector<24x24xf32>, vector<30x24xf32> -> vector<30x24xf32>
    %c0_129 = arith.constant 0 : index
    %c0_130 = arith.constant 0 : index
    %237 = vector.load %arg20[%c0_129, %c0_130] : memref<24x24xf32, #tpu.memory_space<vmem>>, vector<24x24xf32>
    %cst_131 = arith.constant dense<0.000000e+00> : vector<30x24xf32>
    %238 = tpu.matmul %184, %237, %cst_131 {dimension_numbers = #tpu.dot_dimension_numbers<[1], [0], [0], [1], [0, 0, 1, 1], [], []>} : vector<30x24xf32>, vector<24x24xf32>, vector<30x24xf32> -> vector<30x24xf32>
    %239 = arith.addf %236, %238 : vector<30x24xf32>
    %240 = vector.broadcast %38 : vector<1x24xf32> to vector<30x24xf32>
    %241 = arith.addf %239, %240 : vector<30x24xf32>
    %242 = arith.negf %241 : vector<30x24xf32>
    %243 = math.exp %242 : vector<30x24xf32>
    %cst_132 = arith.constant 1.000000e+00 : f32
    %244 = vector.broadcast %cst_132 : f32 to vector<30x24xf32>
    %245 = arith.addf %244, %243 : vector<30x24xf32>
    %246 = arith.divf %244, %245 : vector<30x24xf32>
    %c0_133 = arith.constant 0 : index
    %c0_134 = arith.constant 0 : index
    %247 = vector.load %arg18[%c0_133, %c0_134] : memref<24x24xf32, #tpu.memory_space<vmem>>, vector<24x24xf32>
    %cst_135 = arith.constant dense<0.000000e+00> : vector<30x24xf32>
    %248 = tpu.matmul %234, %247, %cst_135 {dimension_numbers = #tpu.dot_dimension_numbers<[1], [0], [0], [1], [0, 0, 1, 1], [], []>} : vector<30x24xf32>, vector<24x24xf32>, vector<30x24xf32> -> vector<30x24xf32>
    %c0_136 = arith.constant 0 : index
    %c0_137 = arith.constant 0 : index
    %249 = vector.load %arg21[%c0_136, %c0_137] : memref<24x24xf32, #tpu.memory_space<vmem>>, vector<24x24xf32>
    %cst_138 = arith.constant dense<0.000000e+00> : vector<30x24xf32>
    %250 = tpu.matmul %184, %249, %cst_138 {dimension_numbers = #tpu.dot_dimension_numbers<[1], [0], [0], [1], [0, 0, 1, 1], [], []>} : vector<30x24xf32>, vector<24x24xf32>, vector<30x24xf32> -> vector<30x24xf32>
    %251 = arith.addf %248, %250 : vector<30x24xf32>
    %252 = vector.broadcast %39 : vector<1x24xf32> to vector<30x24xf32>
    %253 = arith.addf %251, %252 : vector<30x24xf32>
    %254 = arith.negf %253 : vector<30x24xf32>
    %255 = math.exp %254 : vector<30x24xf32>
    %cst_139 = arith.constant 1.000000e+00 : f32
    %256 = vector.broadcast %cst_139 : f32 to vector<30x24xf32>
    %257 = arith.addf %256, %255 : vector<30x24xf32>
    %258 = arith.divf %256, %257 : vector<30x24xf32>
    %c0_140 = arith.constant 0 : index
    %c0_141 = arith.constant 0 : index
    %259 = vector.load %arg19[%c0_140, %c0_141] : memref<24x24xf32, #tpu.memory_space<vmem>>, vector<24x24xf32>
    %cst_142 = arith.constant dense<0.000000e+00> : vector<30x24xf32>
    %260 = tpu.matmul %234, %259, %cst_142 {dimension_numbers = #tpu.dot_dimension_numbers<[1], [0], [0], [1], [0, 0, 1, 1], [], []>} : vector<30x24xf32>, vector<24x24xf32>, vector<30x24xf32> -> vector<30x24xf32>
    %261 = vector.broadcast %40 : vector<1x24xf32> to vector<30x24xf32>
    %262 = arith.addf %260, %261 : vector<30x24xf32>
    %c0_143 = arith.constant 0 : index
    %c0_144 = arith.constant 0 : index
    %263 = vector.load %arg22[%c0_143, %c0_144] : memref<24x24xf32, #tpu.memory_space<vmem>>, vector<24x24xf32>
    %cst_145 = arith.constant dense<0.000000e+00> : vector<30x24xf32>
    %264 = tpu.matmul %184, %263, %cst_145 {dimension_numbers = #tpu.dot_dimension_numbers<[1], [0], [0], [1], [0, 0, 1, 1], [], []>} : vector<30x24xf32>, vector<24x24xf32>, vector<30x24xf32> -> vector<30x24xf32>
    %265 = vector.broadcast %41 : vector<1x24xf32> to vector<30x24xf32>
    %266 = arith.addf %264, %265 : vector<30x24xf32>
    %267 = arith.mulf %246, %266 : vector<30x24xf32>
    %268 = arith.addf %262, %267 : vector<30x24xf32>
    %269 = math.tanh %268 : vector<30x24xf32>
    %cst_146 = arith.constant 1.000000e+00 : f32
    %270 = vector.broadcast %cst_146 : f32 to vector<30x24xf32>
    %271 = arith.subf %270, %258 : vector<30x24xf32>
    %272 = arith.mulf %271, %269 : vector<30x24xf32>
    %273 = arith.mulf %258, %184 : vector<30x24xf32>
    %274 = arith.addf %272, %273 : vector<30x24xf32>
    %c0_147 = arith.constant 0 : index
    %c0_148 = arith.constant 0 : index
    %275 = vector.load %arg24[%c0_147, %c0_148] : memref<1x24xf32, #tpu.memory_space<vmem>>, vector<1x24xf32>
    %c0_149 = arith.constant 0 : index
    %c0_150 = arith.constant 0 : index
    %276 = vector.load %arg25[%c0_149, %c0_150] : memref<1x24xf32, #tpu.memory_space<vmem>>, vector<1x24xf32>
    %cst_151 = arith.constant dense<0.000000e+00> : vector<30xf32>
    %277 = vector.multi_reduction <add>, %274, %cst_151 [1] : vector<30x24xf32> to vector<30xf32>
    %278 = vector.shape_cast %277 : vector<30xf32> to vector<30x1xf32>
    %cst_152 = arith.constant 2.400000e+01 : f32
    %279 = vector.broadcast %cst_152 : f32 to vector<30x1xf32>
    %280 = arith.divf %278, %279 : vector<30x1xf32>
    %281 = vector.broadcast %280 : vector<30x1xf32> to vector<30x24xf32>
    %282 = arith.subf %274, %281 : vector<30x24xf32>
    %283 = arith.mulf %282, %282 : vector<30x24xf32>
    %cst_153 = arith.constant dense<0.000000e+00> : vector<30xf32>
    %284 = vector.multi_reduction <add>, %283, %cst_153 [1] : vector<30x24xf32> to vector<30xf32>
    %285 = vector.shape_cast %284 : vector<30xf32> to vector<30x1xf32>
    %cst_154 = arith.constant 2.400000e+01 : f32
    %286 = vector.broadcast %cst_154 : f32 to vector<30x1xf32>
    %287 = arith.divf %285, %286 : vector<30x1xf32>
    %288 = vector.broadcast %280 : vector<30x1xf32> to vector<30x24xf32>
    %289 = arith.subf %274, %288 : vector<30x24xf32>
    %cst_155 = arith.constant 9.99999974E-6 : f32
    %290 = vector.broadcast %cst_155 : f32 to vector<30x1xf32>
    %291 = arith.addf %287, %290 : vector<30x1xf32>
    %292 = math.rsqrt %291 : vector<30x1xf32>
    %293 = vector.broadcast %292 : vector<30x1xf32> to vector<30x24xf32>
    %294 = arith.mulf %289, %293 : vector<30x24xf32>
    %295 = vector.broadcast %275 : vector<1x24xf32> to vector<30x24xf32>
    %296 = arith.mulf %294, %295 : vector<30x24xf32>
    %297 = vector.broadcast %276 : vector<1x24xf32> to vector<30x24xf32>
    %298 = arith.addf %296, %297 : vector<30x24xf32>
    %c0_156 = arith.constant 0 : index
    %c0_157 = arith.constant 0 : index
    %299 = vector.load %arg26[%c0_156, %c0_157] : memref<24x32xf32, #tpu.memory_space<vmem>>, vector<24x32xf32>
    %cst_158 = arith.constant dense<0.000000e+00> : vector<30x32xf32>
    %300 = tpu.matmul %298, %299, %cst_158 {dimension_numbers = #tpu.dot_dimension_numbers<[1], [0], [0], [1], [0, 0, 1, 1], [], []>} : vector<30x24xf32>, vector<24x32xf32>, vector<30x32xf32> -> vector<30x32xf32>
    %c0_159 = arith.constant 0 : index
    %c0_160 = arith.constant 0 : index
    %301 = vector.load %arg27[%c0_159, %c0_160] : memref<1x32xf32, #tpu.memory_space<vmem>>, vector<1x32xf32>
    %302 = vector.broadcast %301 : vector<1x32xf32> to vector<30x32xf32>
    %303 = arith.addf %300, %302 : vector<30x32xf32>
    %cst_161 = arith.constant 0.000000e+00 : f32
    %304 = vector.broadcast %cst_161 : f32 to vector<30x32xf32>
    %305 = arith.maximumf %303, %304 : vector<30x32xf32>
    %c0_162 = arith.constant 0 : index
    %c0_163 = arith.constant 0 : index
    %306 = vector.load %arg28[%c0_162, %c0_163] : memref<32x24xf32, #tpu.memory_space<vmem>>, vector<32x24xf32>
    %cst_164 = arith.constant dense<0.000000e+00> : vector<30x24xf32>
    %307 = tpu.matmul %305, %306, %cst_164 {dimension_numbers = #tpu.dot_dimension_numbers<[1], [0], [0], [1], [0, 0, 1, 1], [], []>} : vector<30x32xf32>, vector<32x24xf32>, vector<30x24xf32> -> vector<30x24xf32>
    %c0_165 = arith.constant 0 : index
    %c0_166 = arith.constant 0 : index
    %308 = vector.load %arg29[%c0_165, %c0_166] : memref<1x24xf32, #tpu.memory_space<vmem>>, vector<1x24xf32>
    %309 = vector.broadcast %308 : vector<1x24xf32> to vector<30x24xf32>
    %310 = arith.addf %307, %309 : vector<30x24xf32>
    %311 = arith.addf %274, %310 : vector<30x24xf32>
    %312 = vector.extract_strided_slice %311 {offsets = [0, 0], sizes = [30, 8], strides = [1, 1]} : vector<30x24xf32> to vector<30x8xf32>
    %cst_167 = arith.constant dense<0.000000e+00> : vector<6x8xf32>
    %313 = tpu.matmul %36, %312, %cst_167 {dimension_numbers = #tpu.dot_dimension_numbers<[1], [0], [0], [1], [0, 0, 1, 1], [], []>} : vector<6x30xf32>, vector<30x8xf32>, vector<6x8xf32> -> vector<6x8xf32>
    %314 = vector.extract_strided_slice %311 {offsets = [0, 8], sizes = [30, 16], strides = [1, 1]} : vector<30x24xf32> to vector<30x16xf32>
    %cst_168 = arith.constant dense<0.000000e+00> : vector<10x16xf32>
    %315 = tpu.matmul %37, %314, %cst_168 {dimension_numbers = #tpu.dot_dimension_numbers<[1], [0], [0], [1], [0, 0, 1, 1], [], []>} : vector<10x30xf32>, vector<30x16xf32>, vector<10x16xf32> -> vector<10x16xf32>
    %c0_169 = arith.constant 0 : index
    %c0_170 = arith.constant 0 : index
    %316 = vector.load %arg30[%c0_169, %c0_170] : memref<6x8xf32, #tpu.memory_space<vmem>>, vector<6x8xf32>
    tpu.vector_store %arg30[%c0_169, %c0_170], %313 {strides = array<i32>} : memref<6x8xf32, #tpu.memory_space<vmem>>, vector<6x8xf32>,
    %c0_171 = arith.constant 0 : index
    %c0_172 = arith.constant 0 : index
    %317 = vector.load %arg31[%c0_171, %c0_172] : memref<10x16xf32, #tpu.memory_space<vmem>>, vector<10x16xf32>
    tpu.vector_store %arg31[%c0_171, %c0_172], %315 {strides = array<i32>} : memref<10x16xf32, #tpu.memory_space<vmem>>, vector<10x16xf32>,
    return
  }
}

</mosaic_0001>

<bundles_post_ra>
// kernel: encoder_forward.7
= control target key start
LH: loop header
LB: loop body
LE: loop exit
PB: predicated region body
PF: predicated region fallthrough
CT: control target
= control target key end

     0   :  { %s1771_s0 = inlined_call_operand.vmem [shape: f32[6,8], index: 0, kind: input, shape index: {}]   ;;  %s1772_s1 = inlined_call_operand.vmem [shape: f32[10,16], index: 1, kind: input, shape index: {}]   ;;  %s1773_s2 = inlined_call_operand.vmem [shape: f32[8,16], index: 2, kind: input, shape index: {}]   ;;  %s1774_s3 = inlined_call_operand.hbm [shape: f32[1,16], index: 3, kind: input, shape index: {}]   ;;  %s1775_s4 = inlined_call_operand.vmem [shape: f32[16,8], index: 4, kind: input, shape index: {}]   ;;  %s1776_s5 = inlined_call_operand.hbm [shape: f32[1,8], index: 5, kind: input, shape index: {}]   ;;  %s1777_s6 = inlined_call_operand.vmem [shape: f32[16,16], index: 6, kind: input, shape index: {}]   ;;  %s1778_s7 = inlined_call_operand.hbm [shape: f32[1,16], index: 7, kind: input, shape index: {}]   ;;  %s1779_s8 = inlined_call_operand.vmem [shape: f32[16,9], index: 8, kind: input, shape index: {}]   ;;  %s1780_s9 = inlined_call_operand.hbm [shape: f32[1,9], index: 9, kind: input, shape index: {}]   ;;  %s1781_s10 = inlined_call_operand.vmem [shape: f32[8,16], index: 10, kind: input, shape index: {}]   ;;  %s1782_s11 = inlined_call_operand.hbm [shape: f32[1,16], index: 11, kind: input, shape index: {}]   ;;  %s1783_s12 = inlined_call_operand.vmem [shape: f32[16,8], index: 12, kind: input, shape index: {}]   ;;  %s1784_s13 = inlined_call_operand.hbm [shape: f32[1,8], index: 13, kind: input, shape index: {}]   ;;  %s1785_s14 = inlined_call_operand.vmem [shape: f32[16,16], index: 14, kind: input, shape index: {}]   ;;  %s1786_s15 = inlined_call_operand.hbm [shape: f32[1,16], index: 15, kind: input, shape index: {}]   ;;  %s1787_s16 = inlined_call_operand.vmem [shape: f32[16,15], index: 16, kind: input, shape index: {}]   ;;  %s1788_s17 = inlined_call_operand.hbm [shape: f32[1,15], index: 17, kind: input, shape index: {}]   ;;  %s1789_s18 = inlined_call_operand.vmem [shape: f32[2,10], index: 18, kind: input, shape index: {}]   ;;  %s1790_s19 = inlined_call_operand.vmem [shape: f32[10,2], index: 19, kind: input, shape index: {}]   ;;  %s1791_s20 = inlined_call_operand.vmem [shape: f32[6,8], index: 20, kind: output, shape index: {0}]   ;;  %s1792_s21 = inlined_call_operand.vmem [shape: f32[2,8], index: 21, kind: output, shape index: {1}]   ;;  %s1793_s22 = inlined_call_operand.vmem [shape: f32[10,15], index: 22, kind: output, shape index: {2}]  }
   0x1   :  { %1797 = sst [smem:[#allocation20_spill]] %s1771_s0 }
   0x2   :  { %1798 = sst [smem:[#allocation21_spill]] %s1772_s1 }
   0x3   :  { %1799 = sst [smem:[#allocation22_spill]] %s1773_s2 }
   0x4   :  { %1800 = sst [smem:[#allocation23_spill]] %s1774_s3 }
   0x5   :  { %1801 = sst [smem:[#allocation24_spill]] %s1775_s4 }
   0x6   :  { %1802 = sst [smem:[#allocation25_spill]] %s1776_s5 }
   0x7   :  { %1803 = sst [smem:[#allocation26_spill]] %s1777_s6 }
   0x8   :  { %28 = vsyncpa [#allocation3], 0 }
   0x9   :  { %29 = vsyncpa [#allocation5], 0 }
   0xa   :  { %30 = vsyncpa [#allocation8], 0 }
   0xb   :  { %31 = vsyncpa [#allocation11], 0 }
   0xc   :  { %32 = vsyncpa [#allocation14], 0  ;;  %s1489_s3 = smov [#allocation4]   ;;  %s1490_s29 = smov [#allocation7]  }
   0xd   :  { %s57_s28 = sshll.u32 %s1489_s3, 4  ;;  %s81_s30 = sshll.u32 %s1490_s29, 4  ;;  %s58_s28 = int_to_ptr.vmem [resolvable:$true] %s57_s28  ;;  %s82_s30 = int_to_ptr.vmem [resolvable:$true] %s81_s30 }
   0xe   :  { %s1327_s4 = scalar_lea.vmem %s58_s28, 16  ;;  %s1331_s0 = scalar_lea.vmem %s58_s28, 32 }
   0xf   :  { %p1328_p0 = scmp.ne.s32.totalorder %s58_s28, %s1327_s4  ;;  %p1332_p1 = scmp.lt.s32.totalorder %s58_s28, %s58_s28 }
  0x10   :  { %p1333_p2 = scmp.lt.s32.totalorder %s1331_s0, %s1327_s4 }
  0x12   :  { %p1334_p3 = por %p1333_p2, %p1332_p1 }
  0x14   :  { %p1335_p4 = pnand %p1334_p3, %p1328_p0 }
  0x16   :  { %1338 = shalt.err (!%p1335_p4)
}
  0x17   :  { %s1804_s5 = sld [smem:[#allocation25_spill]]  ;;  %s1347_s24 = scalar_lea.vmem %s82_s30, 16 }
  0x18   :  { %p1348_p5 = scmp.ne.s32.totalorder %s82_s30, %s1347_s24  ;;  %s1351_s6 = scalar_lea.vmem %s82_s30, 32 }
  0x19   :  { %p1352_p6 = scmp.lt.s32.totalorder %s82_s30, %s82_s30  ;;  %p1353_p7 = scmp.lt.s32.totalorder %s1351_s6, %s1347_s24 }
  0x1b   :  { %p1354_p8 = por %p1353_p7, %p1352_p6 }
  0x1d   :  { %60 = dma.hbm_to_vmem [thread:$0]  %s1804_s5, 16, %s58_s28, [#allocation5]  }
  0x1e   :  { %p1355_p9 = pnand %p1354_p8, %p1348_p5 }
  0x20   :  { %1358 = shalt.err (!%p1355_p9)
}
  0x21   :  { %84 = dma.hbm_to_vmem [thread:$0]  %s1780_s9, 16, %s82_s30, [#allocation8]  }
  0x22   :  { %s1491_s2 = smov [#allocation10]   ;;  %s1492_s3 = smov [#allocation2]  }
  0x23   :  { %s105_s27 = sshll.u32 %s1491_s2, 4  ;;  %s45_s29 = sshll.u32 %s1492_s3, 4  ;;  %s106_s27 = int_to_ptr.vmem [resolvable:$true] %s105_s27  ;;  %s46_s29 = int_to_ptr.vmem [resolvable:$true] %s45_s29 }
  0x24   :  { %s1367_s4 = scalar_lea.vmem %s106_s27, 16  ;;  %s1371_s28 = scalar_lea.vmem %s106_s27, 32 }
  0x25   :  { %p1368_p10 = scmp.ne.s32.totalorder %s106_s27, %s1367_s4  ;;  %p1372_p11 = scmp.lt.s32.totalorder %s106_s27, %s106_s27 }
  0x26   :  { %p1373_p12 = scmp.lt.s32.totalorder %s1371_s28, %s1367_s4 }
  0x28   :  { %p1374_p13 = por %p1373_p12, %p1372_p11 }
  0x2a   :  { %p1375_p0 = pnand %p1374_p13, %p1368_p10 }
  0x2c   :  { %1378 = shalt.err (!%p1375_p0)
}
  0x2d   :  { %108 = dma.hbm_to_vmem [thread:$0]  %s1784_s13, 16, %s106_s27, [#allocation11]  }
  0x2e   :  { %s1387_s1 = scalar_lea.vmem %s46_s29, 16  ;;  %s1391_s9 = scalar_lea.vmem %s46_s29, 32 }
  0x2f   :  { %p1388_p1 = scmp.ne.s32.totalorder %s46_s29, %s1387_s1  ;;  %p1392_p2 = scmp.lt.s32.totalorder %s46_s29, %s46_s29 }
  0x30   :  { %p1393_p3 = scmp.lt.s32.totalorder %s1391_s9, %s1387_s1 }
  0x32   :  { %p1394_p4 = por %p1393_p3, %p1392_p2 }
  0x34   :  { %p1395_p5 = pnand %p1394_p4, %p1388_p1 }
  0x36   :  { %1398 = shalt.err (!%p1395_p5)
}
  0x37   :  { %s1805_s24 = sld [smem:[#allocation23_spill]]  ;;  %s1493_s6 = smov [#allocation6]  }
  0x38   :  { %s69_s25 = sshll.u32 %s1493_s6, 4  ;;  %s1494_s26 = smov [#allocation9]   ;;  %s70_s25 = int_to_ptr.vmem [resolvable:$true] %s69_s25 }
  0x39   :  { %s93_s2 = sshll.u32 %s1494_s26, 4  ;;  %s1407_s3 = scalar_lea.vmem %s70_s25, 16  ;;  %s94_s2 = int_to_ptr.vmem [resolvable:$true] %s93_s2 }
  0x3a   :  { %p1408_p6 = scmp.ne.s32.totalorder %s70_s25, %s1407_s3  ;;  %s1411_s13 = scalar_lea.vmem %s70_s25, 32 }
  0x3b   :  { %p1412_p7 = scmp.lt.s32.totalorder %s70_s25, %s70_s25  ;;  %p1413_p8 = scmp.lt.s32.totalorder %s1411_s13, %s1407_s3 }
  0x3d   :  { %48 = dma.hbm_to_vmem [thread:$0]  %s1805_s24, 16, %s46_s29, [#allocation3]  }
  0x3e   :  { %p1414_p9 = por %p1413_p8, %p1412_p7 }
  0x40   :  { %p1415_p10 = pnand %p1414_p9, %p1408_p6 }
  0x42   :  { %1418 = shalt.err (!%p1415_p10)
}
  0x43   :  { %72 = dma.hbm_to_vmem [thread:$0]  %s1778_s7, 16, %s70_s25, [#allocation5]  }
  0x44   :  { %s1427_s28 = scalar_lea.vmem %s94_s2, 16  ;;  %s1431_s29 = scalar_lea.vmem %s94_s2, 32 }
  0x45   :  { %p1428_p11 = scmp.ne.s32.totalorder %s94_s2, %s1427_s28  ;;  %p1432_p12 = scmp.lt.s32.totalorder %s94_s2, %s94_s2 }
  0x46   :  { %p1433_p13 = scmp.lt.s32.totalorder %s1431_s29, %s1427_s28 }
  0x48   :  { %p1434_p0 = por %p1433_p13, %p1432_p12 }
  0x4a   :  { %p1435_p1 = pnand %p1434_p0, %p1428_p11 }
  0x4c   :  { %1438 = shalt.err (!%p1435_p1)
}
  0x4d   :  { %96 = dma.hbm_to_vmem [thread:$0]  %s1782_s11, 16, %s94_s2, [#allocation8]  }
  0x4e   :  { %s1495_s1 = smov [#allocation12]   ;;  %s1496_s30 = smov [#allocation13]  }
  0x4f   :  { %s117_s9 = sshll.u32 %s1495_s1, 4  ;;  %s129_s5 = sshll.u32 %s1496_s30, 4  ;;  %s118_s9 = int_to_ptr.vmem [resolvable:$true] %s117_s9  ;;  %s130_s5 = int_to_ptr.vmem [resolvable:$true] %s129_s5 }
  0x50   :  { %s1447_s24 = scalar_lea.vmem %s118_s9, 16  ;;  %s1451_s7 = scalar_lea.vmem %s118_s9, 32 }
  0x51   :  { %p1448_p2 = scmp.ne.s32.totalorder %s118_s9, %s1447_s24  ;;  %p1452_p3 = scmp.lt.s32.totalorder %s118_s9, %s118_s9 }
  0x52   :  { %p1453_p4 = scmp.lt.s32.totalorder %s1451_s7, %s1447_s24 }
  0x54   :  { %p1454_p5 = por %p1453_p4, %p1452_p3 }
  0x56   :  { %p1455_p6 = pnand %p1454_p5, %p1448_p2 }
  0x58   :  { %1458 = shalt.err (!%p1455_p6)
}
  0x59   :  { %120 = dma.hbm_to_vmem [thread:$0]  %s1786_s15, 16, %s118_s9, [#allocation11]  }
  0x5a   :  { %s1467_s26 = scalar_lea.vmem %s130_s5, 16  ;;  %s1471_s11 = scalar_lea.vmem %s130_s5, 32 }
  0x5b   :  { %p1468_p7 = scmp.ne.s32.totalorder %s130_s5, %s1467_s26  ;;  %p1472_p8 = scmp.lt.s32.totalorder %s130_s5, %s130_s5 }
  0x5c   :  { %p1473_p9 = scmp.lt.s32.totalorder %s1471_s11, %s1467_s26 }
  0x5e   :  { %p1474_p10 = por %p1473_p9, %p1472_p8 }
  0x60   :  { %p1475_p11 = pnand %p1474_p10, %p1468_p7 }
  0x62   :  { %1478 = shalt.err (!%p1475_p11)
}
  0x63   :  { %132 = dma.hbm_to_vmem [thread:$0]  %s1788_s17, 16, %s130_s5, [#allocation14]  }
  0x64   :  { %1479 = dma.done.wait [#allocation3], 16  }
  0x65   :  { %1480 = vsyncadd [#allocation3], 4294967280 }
  0x66   :  { %1481 = dma.done.wait [#allocation5], 32  }
  0x67   :  { %1482 = vsyncadd [#allocation5], 4294967264 }
  0x68   :  { %1483 = dma.done.wait [#allocation8], 32  }
  0x69   :  { %1484 = vsyncadd [#allocation8], 4294967264 }
  0x6a   :  { %1485 = dma.done.wait [#allocation11], 32  }
  0x6b   :  { %1486 = vsyncadd [#allocation11], 4294967264 }
  0x6c   :  { %1487 = dma.done.wait [#allocation14], 16  }
  0x6d   :  { %1488 = vsyncadd [#allocation14], 4294967280  ;;  %v1497_v0 = vmov 0.0   ;;  %vm1498_vm0 = vmmov 0   ;;  %vm172_vm1 = vcmask 64512   ;;  %s1806_s13 = sld [smem:[#allocation22_spill]] }
  0x6e   :  { %1225 = vmatprep.subr.mxu0 %v1497_v0  ;;  %1227 = vmatprep.mubr.msk.f32.mxu0 %vm1498_vm0, %v1497_v0  ;;  %s1807_s28 = sld [smem:[#allocation20_spill]]  ;;  %vm256_vm2 = vcmask 130048   ;;  %v425_v9 = vld [vmem:[%s1779_s8 + $0x8] sm:$0xff]  ;;  %v1163_v10 = vld [vmem:[#allocation2] ss:$0 sm:$0xff]  ;;  %vm330_vm3 = vcmask 62464  }
  0x6f   :  { %1230 = vmatprep.subr.mxu1 %v1497_v0  ;;  %1234 = vmatprep.mubr.msk.f32.mxu1 %vm1498_vm0, %v1497_v0  ;;  %s1808_s23 = sld [smem:[#allocation26_spill]]  ;;  %v1167_v15 = vld [vmem:[#allocation6] ss:$0 sm:$0xff]  ;;  %v1165_v23 = vld [vmem:[#allocation4] ss:$0 sm:$0xff]  ;;  %vm516_vm4 = vcmask 66624  }
  0x70   :  { %s1809_s24 = sld [smem:[#allocation21_spill]]  ;;  %v424_v17 = vld [vmem:[%s1779_s8] sm:$0xff]  ;;  %vm514_vm5 = vcmask 72768   ;;  %vm543_vm6 = vcmask 1041408   ;;  %vm539_vm7 = vcmask 80896   ;;  %vm618_vm8 = vcmask 15360  }
  0x71   :  { %s1810_s11 = sld [smem:[#allocation24_spill]]  ;;  %v1170_v27 = vld [vmem:[#allocation7] ss:$0 sm:$0xff]  ;;  %v531_v48 = vld [vmem:[%s1789_s18] sm:$0x3]  ;;  %v1500_v54 = vmov 8  }
  0x72   :  { %v616_v50 = vld [vmem:[%s1790_s19] sm:$0xff]  ;;  %v617_v52 = vld [vmem:[%s1790_s19 + $0x8] sm:$0x3]  ;;  %1309 = vset.pattern.permute.xlu0 %v1500_v54  ;;  %1310 = vset.pattern.permute.xlu1 %v1500_v54  ;;  %s1501_s18 = smov 8   ;;  %vm964_vm9 = vcmask 58368   ;;  %vm1144_vm10 = vcmask 115712  }
  0x73   :  { %v164_v1 = vld [vmem:[%s1806_s13] sm:$0xff]  ;;  %vm1142_vm11 = vcmask 121856  }
  0x74   :  { %v161_v2 = vld [vmem:[%s1807_s28] sm:$0x3f]  ;;  %1226 = vmatpush3.msra.mxu0 %v164_v1 }
  0x75   :  { %v333_v3 = vld [vmem:[%s1808_s23 + $0x8] sm:$0xff]  ;;  %v332_v4 = vld [vmem:[%s1808_s23] sm:$0xff]  ;;  %1228 = vmatmul.mubr.msk.f32.vlgmr.msra.gmra.mxu0 %vm172_vm1, %v161_v2 }
  0x76   :  { %v1662_v5 = vld [vmem:[%s1809_s24] sm:$0xff]  ;;  %1237 = vmatprep.subr.mxu0 %v333_v3  ;;  %v1670_v6 = vld [vmem:[%s1809_s24 + $0x8] sm:$0x3] }
  0x77   :  { %1238 = vmatpush3.msra.mxu0 %v333_v3  ;;  %1241 = vmatprep.mubr.msk.f32.mxu0 %vm256_vm2, %v1662_v5  ;;  %v248_v7 = vld [vmem:[%s1810_s11 + $0x8] sm:$0xff]  ;;  %v247_v8 = vld [vmem:[%s1810_s11] sm:$0xff] }
  0x78   :  { %1239 = vmatprep.subr.mxu0 %v332_v4  ;;  %1231 = vmatpush3.msra.mxu1 %v248_v7  ;;  %v967_v7 = vld [vmem:[%s1785_s14 + $0x8] sm:$0xff] }
  0x79   :  { %1240 = vmatpush3.msra.mxu0 %v332_v4  ;;  %1232 = vmatprep.subr.mxu1 %v1497_v0  ;;  %v800_v4 = vld [vmem:[%s1781_s10] sm:$0xff] }
  0x7a   :  { %1242 = vmatmul.mubr.msk.f32.vlgmr.msra.gmra.mxu0 %vm256_vm2, %v1670_v6  ;;  %1251 = vmatprep.subr.mxu0 %v1497_v0 }
  0x7b   :  { %1255 = vmatprep.mubr.msk.f32.mxu0 %vm1498_vm0, %v1497_v0  ;;  %1233 = vmatpush3.msra.mxu1 %v247_v8 }
  0x7c   :  { %1244 = vmatprep.subr.mxu1 %v425_v9 }
 0x135   :  { %v242_v11 = vpop.f32.mrf.mxu0 }
 0x136   :  { %v243_v12 = vadd.f32 %v1163_v10, %v242_v11  ;;  %v883_v11 = vld [vmem:[%s1783_s12 + $0x8] sm:$0xff] }
 0x137   :  { %v1229_v13 = vpop.f32.mrf.mxu0 }
 0x138   :  { %v246_v14 = vmax.f32 %v243_v12, 0.0  ;;  %v882_v12 = vld [vmem:[%s1783_s12] sm:$0xff]  ;;  %v1180_v13 = vld [vmem:[#allocation9] ss:$0 sm:$0xff] }
 0x13a   :  { %v1243_v16 = vpop.f32.mrf.mxu0  ;;  %1235 = vmatmul.mubr.msk.f32.vlgmr.msra.gmra.mxu1 %vm256_vm2, %v246_v14 }
 0x13b   :  { %v419_v18 = vadd.f32 %v1243_v16, %v1167_v15  ;;  %1245 = vmatpush3.msra.mxu1 %v425_v9  ;;  %v966_v9 = vld [vmem:[%s1785_s14] sm:$0xff] }
 0x13c   :  { %v413_v19 = vpop.f32.mrf.mxu0  ;;  %1246 = vmatprep.subr.mxu1 %v424_v17 }
 0x13d   :  { %v414_v20 = vadd.f32 %v1167_v15, %v413_v19  ;;  %1247 = vmatpush3.msra.mxu1 %v424_v17  ;;  %v423_v22 = vmax.f32 %v419_v18, 0.0  ;;  %v1184_v17 = vld [vmem:[#allocation12] ss:$0 sm:$0xff] }
 0x13f   :  { %v422_v21 = vmax.f32 %v414_v20, 0.0 }
 0x141   :  { %1248 = vmatprep.mubr.msk.f32.mxu1 %vm256_vm2, %v422_v21 }
 0x142   :  { %1249 = vmatmul.mubr.msk.f32.vlgmr.msra.gmra.mxu1 %vm256_vm2, %v423_v22 }
 0x143   :  { %1260 = vmatprep.mubr.msk.f32.mxu1 %vm618_vm8, %v616_v50 }
 0x1fa   :  { %v326_v24 = vpop.f32.mrf.mxu1 }
 0x1fb   :  { %v327_v25 = vadd.f32 %v1165_v23, %v326_v24  ;;  %v1182_v24 = vld [vmem:[#allocation10] ss:$0 sm:$0xff] }
 0x1fc   :  { %v1236_v26 = vpop.f32.mrf.mxu1 }
 0x1fd   :  { %331 = vst.msk [vmem:[%s1791_s20] sm:$0x3f] %vm330_vm3, %v327_v25  ;;  %s1499_s20 = smov 120  }
 0x202   :  { %v1250_v28 = vpop.f32.mrf.mxu1 }
 0x203   :  { %v1696_v29 = vadd.f32 %v1250_v28, %v1170_v27  ;;  %v1187_v28 = vld [vmem:[#allocation13] ss:$0 sm:$0xff] }
 0x204   :  { %v505_v30 = vpop.f32.mrf.mxu1 }
 0x205   :  { %v1698_v31 = vadd.f32 %v1170_v27, %v505_v30  ;;  %v517_v32 = vsel %vm516_vm4, %v1696_v29, -inf }
 0x207   :  { %v515_v33 = vsel %vm514_vm5, %v1698_v31, -inf }
 0x208   :  { %v518_v34 = vmax.f32 %v515_v33, %v517_v32 }
 0x20a   :  { %v519_v35 = vrot.slane %v518_v34, 4 }
 0x20c   :  { %v520_v36 = vmax.f32 %v518_v34, %v519_v35 }
 0x20e   :  { %v521_v37 = vrot.slane %v520_v36, 2 }
 0x210   :  { %v522_v38 = vmax.f32 %v520_v36, %v521_v37 }
 0x212   :  { %v523_v39 = vrot.slane %v522_v38, 1 }
 0x214   :  { %v524_v40 = vmax.f32 %v522_v38, %v523_v39 }
 0x216   :  { %v526_v41 = vsub.f32 %v1696_v29, %v524_v40  ;;  %v525_v42 = vsub.f32 %v1698_v31, %v524_v40 }
 0x218   :  { %v529_v43 = vmul.f32 1.442695, %v526_v41  ;;  %v527_v44 = vmul.f32 1.442695, %v525_v42 }
 0x21a   :  { %1311 = vpow2.f32 %v529_v43 }
 0x21b   :  { %1313 = vpow2.f32 %v527_v44 }
 0x227   :  { %v1312_v45 = vpop.eup %1311 }
 0x228   :  { %536 = vrot.lane.b32.xlu0 %v1312_v45, %s1499_s20  ;;  %v1314_v46 = vpop.eup %1313 }
 0x22c   :  { %534 = vrot.lane.b32.xlu0 %v1314_v46, %s1499_s20 }
 0x29a   :  { %v537_v47 = vpop.permute.xlu0 %536 }
 0x29b   :  { %1252 = vmatpush3.msk.msra.mxu0 %vm543_vm6, %v537_v47 }
 0x29c   :  { %1253 = vmatprep.subr.mxu0 %v1497_v0 }
 0x29e   :  { %v535_v49 = vpop.permute.xlu0 %534 }
 0x29f   :  { %1254 = vmatpush3.msra.mxu0 %v535_v49 }
 0x2a0   :  { %1256 = vmatmul.mubr.msk.f32.vlgmr.msra.gmra.mxu0 %vm539_vm7, %v531_v48  ;;  %1263 = vmatprep.subr.mxu0 %v1497_v0 }
 0x2a1   :  { %1267 = vmatprep.mubr.msk.f32.mxu0 %vm1498_vm0, %v1497_v0 }
 0x360   :  { %v612_v51 = vpop.f32.mrf.mxu0 }
 0x361   :  { %1258 = vmatprep.subr.msk.mxu1 %vm543_vm6, %v612_v51 }
 0x362   :  { %v1257_v53 = vpop.f32.mrf.mxu0  ;;  %1259 = vmatpush3.msk.msra.mxu1 %vm543_vm6, %v612_v51 }
 0x363   :  { %1261 = vmatmul.mubr.msk.f32.vlgmr.msra.gmra.mxu1 %vm618_vm8, %v617_v52  ;;  %1270 = vmatprep.subr.mxu1 %v1497_v0 }
 0x364   :  { %1272 = vmatprep.mubr.msk.f32.mxu1 %vm1498_vm0, %v1497_v0  ;;  %1271 = vmatpush3.msra.mxu1 %v800_v4 }
 0x365   :  { %1282 = vmatprep.subr.mxu1 %v967_v7 }
 0x423   :  { %v1262_v55 = vpop.f32.mrf.mxu1 }
 0x424   :  { %707 = vrot.lane.b32.xlu1 %v1262_v55, %s1501_s18 }
 0x425   :  { %v694_v56 = vpop.f32.mrf.mxu1 }
 0x428   :  { %705 = vrot.lane.b32.xlu1 %v694_v56, %s1501_s18 }
 0x496   :  { %v708_v57 = vpop.permute.xlu1 %707 }
 0x497   :  { %1315 = vrcp.f32 %v708_v57 }
 0x49a   :  { %v706_v58 = vpop.permute.xlu1 %705 }
 0x49b   :  { %1317 = vrcp.f32 %v706_v58 }
 0x4a4   :  { %v1316_v59 = vpop.eup %1315 }
 0x4a5   :  { %v714_v60 = vmul.f32 %v1316_v59, %v1312_v45 }
 0x4a7   :  { %722 = vperm.xlu0 %1309, %v714_v60  }
 0x4a8   :  { %v1318_v61 = vpop.eup %1317 }
 0x4a9   :  { %v712_v62 = vmul.f32 %v1318_v61, %v1314_v46 }
 0x4ab   :  { %717 = vperm.xlu1 %1310, %v712_v62  }
 0x522   :  { %v723_v63 = vpop.permute.xlu0 %722 }
 0x523   :  { %v726_v1 = vmul.f32 %v723_v63, %v1696_v29 }
 0x525   :  { %1264 = vmatpush3.msk.msra.mxu0 %vm543_vm6, %v726_v1 }
 0x526   :  { %v718_v2 = vpop.permute.xlu1 %717  ;;  %1265 = vmatprep.subr.mxu0 %v1497_v0 }
 0x527   :  { %v725_v3 = vmul.f32 %v718_v2, %v1698_v31 }
 0x529   :  { %1266 = vmatpush3.msra.mxu0 %v725_v3 }
 0x52a   :  { %1268 = vmatmul.mubr.msk.f32.vlgmr.msra.gmra.mxu0 %vm539_vm7, %v531_v48  ;;  %1275 = vmatprep.subr.mxu0 %v1497_v0 }
 0x52b   :  { %1279 = vmatprep.mubr.msk.f32.mxu0 %vm1498_vm0, %v1497_v0  ;;  %1276 = vmatpush3.msra.mxu0 %v883_v11 }
 0x52c   :  { %1277 = vmatprep.subr.mxu0 %v1497_v0  ;;  %v1052_v0 = vld [vmem:[%s1787_s16] sm:$0xff] }
 0x52d   :  { %1278 = vmatpush3.msra.mxu0 %v882_v12 }
 0x5ea   :  { %v796_v8 = vpop.f32.mrf.mxu0 }
 0x5eb   :  { %1273 = vmatmul.mubr.msk.f32.vlgmr.msra.gmra.mxu1 %vm172_vm1, %v796_v8 }
 0x5ec   :  { %1283 = vmatpush3.msra.mxu1 %v967_v7  ;;  %v1269_v10 = vpop.f32.mrf.mxu0  ;;  %1286 = vmatprep.mubr.msk.f32.mxu1 %vm256_vm2, %v1662_v5  ;;  %v1053_v5 = vld [vmem:[%s1787_s16 + $0x8] sm:$0xff] }
 0x5ed   :  { %1284 = vmatprep.subr.mxu1 %v966_v9  ;;  %1289 = vmatprep.subr.mxu0 %v1053_v5 }
 0x5ee   :  { %1285 = vmatpush3.msra.mxu1 %v966_v9 }
 0x5ef   :  { %1287 = vmatmul.mubr.msk.f32.vlgmr.msra.gmra.mxu1 %vm256_vm2, %v1670_v6 }
 0x6ab   :  { %v877_v14 = vpop.f32.mrf.mxu1 }
 0x6ac   :  { %v878_v6 = vadd.f32 %v1180_v13, %v877_v14 }
 0x6ad   :  { %v1274_v15 = vpop.f32.mrf.mxu1 }
 0x6ae   :  { %v881_v16 = vmax.f32 %v878_v6, 0.0 }
 0x6af   :  { %v1288_v18 = vpop.f32.mrf.mxu1 }
 0x6b0   :  { %1280 = vmatmul.mubr.msk.f32.vlgmr.msra.gmra.mxu0 %vm256_vm2, %v881_v16  ;;  %v1047_v19 = vadd.f32 %v1288_v18, %v1184_v17 }
 0x6b1   :  { %v1041_v20 = vpop.f32.mrf.mxu1  ;;  %1290 = vmatpush3.msra.mxu0 %v1053_v5 }
 0x6b2   :  { %v1042_v21 = vadd.f32 %v1184_v17, %v1041_v20  ;;  %1291 = vmatprep.subr.mxu0 %v1052_v0  ;;  %v1051_v23 = vmax.f32 %v1047_v19, 0.0 }
 0x6b3   :  { %1292 = vmatpush3.msra.mxu0 %v1052_v0 }
 0x6b4   :  { %v1050_v22 = vmax.f32 %v1042_v21, 0.0 }
 0x6b6   :  { %1293 = vmatprep.mubr.msk.f32.mxu0 %vm256_vm2, %v1050_v22 }
 0x6b7   :  { %1294 = vmatmul.mubr.msk.f32.vlgmr.msra.gmra.mxu0 %vm256_vm2, %v1051_v23 }
 0x770   :  { %v960_v25 = vpop.f32.mrf.mxu0 }
 0x771   :  { %v961_v26 = vadd.f32 %v1182_v24, %v960_v25 }
 0x772   :  { %v1281_v27 = vpop.f32.mrf.mxu0 }
 0x773   :  { %965 = vst.msk [vmem:[%s1792_s21] sm:$0x3] %vm964_vm9, %v961_v26 }
 0x777   :  { %v1295_v29 = vpop.f32.mrf.mxu0 }
 0x778   :  { %v1139_v30 = vadd.f32 %v1295_v29, %v1187_v28 }
 0x779   :  { %v1133_v31 = vpop.f32.mrf.mxu0 }
 0x77a   :  { %1145 = vst.msk [vmem:[%s1793_s22 + $0x8] sm:$0x3] %vm1144_vm10, %v1139_v30  ;;  %v1134_v32 = vadd.f32 %v1187_v28, %v1133_v31 }
 0x77c   :  { %1143 = vst.msk [vmem:[%s1793_s22] sm:$0xff] %vm1142_vm11, %v1134_v32 }
 0x77d   :  { %1158 = vsyncpa [#allocation3], 1 }
 0x77e   :  { %1159 = vsyncpa [#allocation5], 1 }
 0x77f   :  { %1160 = vsyncpa [#allocation8], 1 }
 0x780   :  { %1161 = vsyncpa [#allocation11], 1 }
 0x781   :  { %1162 = vsyncpa [#allocation14], 1 }

// kernel: encoder_forward.5
= control target key start
LH: loop header
LB: loop body
LE: loop exit
PB: predicated region body
PF: predicated region fallthrough
CT: control target
= control target key end

     0   :  { %vm254_vm0 = vcmask 1042432   ;;  %vm109_vm1 = vcmask 220160   ;;  %vm1185_vm2 = vcmask 64512   ;;  %vm4816_vm3 = vcmask 1043456   ;;  %s10591_s1 = inlined_call_operand.vmem [shape: f32[27,8], index: 1, kind: input, shape index: {}]   ;;  %s10592_s0 = inlined_call_operand.vmem [shape: f32[384,27], index: 0, kind: input, shape index: {}]   ;;  %s10593_s3 = inlined_call_operand.vmem [shape: f32[864,384], index: 3, kind: input, shape index: {}]   ;;  %s10594_s2 = inlined_call_operand.vmem [shape: f32[1,8], index: 2, kind: input, shape index: {}]   ;;  %s10595_s4 = inlined_call_operand.vmem [shape: f32[72,16], index: 4, kind: input, shape index: {}]   ;;  %s10596_s7 = inlined_call_operand.vmem [shape: f32[4,16], index: 7, kind: input, shape index: {}]   ;;  %s10597_s6 = inlined_call_operand.vmem [shape: f32[96,4], index: 6, kind: input, shape index: {}]   ;;  %s10598_s5 = inlined_call_operand.vmem [shape: f32[1,16], index: 5, kind: input, shape index: {}]   ;;  %s10599_s8 = inlined_call_operand.vmem [shape: f32[1,16], index: 8, kind: input, shape index: {}]   ;;  %s10600_s11 = inlined_call_operand.vmem [shape: f32[16,32], index: 11, kind: input, shape index: {}]   ;;  %s10601_s13 = inlined_call_operand.vmem [shape: f32[32,32], index: 13, kind: input, shape index: {}]   ;;  %s10602_s9 = inlined_call_operand.vmem [shape: f32[1,16], index: 9, kind: input, shape index: {}]   ;;  %s10603_s10 = inlined_call_operand.vmem [shape: f32[1,16], index: 10, kind: input, shape index: {}]   ;;  %s10604_s12 = inlined_call_operand.vmem [shape: f32[1,32], index: 12, kind: input, shape index: {}]   ;;  %s10605_s14 = inlined_call_operand.vmem [shape: f32[1,32], index: 14, kind: input, shape index: {}]   ;;  %s10606_s15 = inlined_call_operand.vmem [shape: f32[96,32], index: 15, kind: output, shape index: {}]  }
   0x1   :  { %v101_v0 = vld [vmem:[%s10591_s1 + $0x18] sm:$0x7]  ;;  %v100_v1 = vld [vmem:[%s10591_s1 + $0x10] sm:$0xff]  ;;  %v50_v2 = vld [vmem:[%s10592_s0] sm:$0xff]  ;;  %vm4779_vm4 = vcmask 31744   ;;  %vm4959_vm5 = vcmask 130048  }
   0x2   :  { %6801 = vmatprep.subr.msk.mxu0 %vm254_vm0, %v101_v0  ;;  %v99_v3 = vld [vmem:[%s10591_s1 + $0x8] sm:$0xff]  ;;  %6809 = vmatprep.mubr.msk.f32.mxu0 %vm109_vm1, %v50_v2  ;;  %v98_v4 = vld [vmem:[%s10591_s1] sm:$0xff]  ;;  %v52_v6 = vld [vmem:[%s10592_s0 + $0x10] sm:$0xff]  ;;  %vm5346_vm6 = vcmask 261120  }
   0x3   :  { %6802 = vmatpush3.msk.msra.mxu0 %vm254_vm0, %v101_v0  ;;  %v51_v5 = vld [vmem:[%s10592_s0 + $0x8] sm:$0xff]  ;;  %v53_v7 = vld [vmem:[%s10592_s0 + $0x18] sm:$0xff]  ;;  %v54_v8 = vld [vmem:[%s10592_s0 + $0x20] sm:$0xff] }
   0x4   :  { %6803 = vmatprep.subr.mxu0 %v100_v1  ;;  %v55_v9 = vld [vmem:[%s10592_s0 + $0x28] sm:$0xff]  ;;  %v56_v10 = vld [vmem:[%s10592_s0 + $0x30] sm:$0xff]  ;;  %v57_v11 = vld [vmem:[%s10592_s0 + $0x38] sm:$0xff] }
   0x5   :  { %6804 = vmatpush3.msra.mxu0 %v100_v1  ;;  %v58_v12 = vld [vmem:[%s10592_s0 + $0x40] sm:$0xff]  ;;  %v59_v13 = vld [vmem:[%s10592_s0 + $0x48] sm:$0xff]  ;;  %v60_v14 = vld [vmem:[%s10592_s0 + $0x50] sm:$0xff] }
   0x6   :  { %6805 = vmatprep.subr.mxu0 %v99_v3  ;;  %v61_v15 = vld [vmem:[%s10592_s0 + $0x58] sm:$0xff]  ;;  %v62_v16 = vld [vmem:[%s10592_s0 + $0x60] sm:$0xff]  ;;  %v63_v17 = vld [vmem:[%s10592_s0 + $0x68] sm:$0xff] }
   0x7   :  { %6806 = vmatpush3.msra.mxu0 %v99_v3  ;;  %v64_v18 = vld [vmem:[%s10592_s0 + $0x70] sm:$0xff]  ;;  %v65_v19 = vld [vmem:[%s10592_s0 + $0x78] sm:$0xff]  ;;  %v66_v20 = vld [vmem:[%s10592_s0 + $0x80] sm:$0xff] }
   0x8   :  { %6807 = vmatprep.subr.mxu0 %v98_v4  ;;  %v67_v21 = vld [vmem:[%s10592_s0 + $0x88] sm:$0xff]  ;;  %v68_v22 = vld [vmem:[%s10592_s0 + $0x90] sm:$0xff]  ;;  %v69_v23 = vld [vmem:[%s10592_s0 + $0x98] sm:$0xff] }
   0x9   :  { %6808 = vmatpush3.msra.mxu0 %v98_v4  ;;  %v70_v24 = vld [vmem:[%s10592_s0 + $0xa0] sm:$0xff]  ;;  %v71_v25 = vld [vmem:[%s10592_s0 + $0xa8] sm:$0xff]  ;;  %v72_v26 = vld [vmem:[%s10592_s0 + $0xb0] sm:$0xff] }
   0xa   :  { %6810 = vmatmul.mubr.msk.f32.vlgmr.msra.gmra.mxu0 %vm109_vm1, %v51_v5  ;;  %v73_v27 = vld [vmem:[%s10592_s0 + $0xb8] sm:$0xff]  ;;  %v74_v28 = vld [vmem:[%s10592_s0 + $0xc0] sm:$0xff]  ;;  %v75_v29 = vld [vmem:[%s10592_s0 + $0xc8] sm:$0xff] }
   0xb   :  { %6812 = vmatprep.mubr.msk.f32.mxu0 %vm109_vm1, %v52_v6  ;;  %v76_v30 = vld [vmem:[%s10592_s0 + $0xd0] sm:$0xff]  ;;  %v77_v31 = vld [vmem:[%s10592_s0 + $0xd8] sm:$0xff]  ;;  %v78_v32 = vld [vmem:[%s10592_s0 + $0xe0] sm:$0xff] }
   0xc   :  { %v79_v33 = vld [vmem:[%s10592_s0 + $0xe8] sm:$0xff]  ;;  %v80_v34 = vld [vmem:[%s10592_s0 + $0xf0] sm:$0xff]  ;;  %v81_v35 = vld [vmem:[%s10592_s0 + $0xf8] sm:$0xff] }
   0xd   :  { %v82_v36 = vld [vmem:[%s10592_s0 + $0x100] sm:$0xff]  ;;  %v83_v37 = vld [vmem:[%s10592_s0 + $0x108] sm:$0xff]  ;;  %v84_v38 = vld [vmem:[%s10592_s0 + $0x110] sm:$0xff] }
   0xe   :  { %6813 = vmatmul.mubr.msk.f32.gmra.mxu0 %vm109_vm1, %v53_v7  ;;  %v85_v39 = vld [vmem:[%s10592_s0 + $0x118] sm:$0xff]  ;;  %v86_v40 = vld [vmem:[%s10592_s0 + $0x120] sm:$0xff]  ;;  %v87_v41 = vld [vmem:[%s10592_s0 + $0x128] sm:$0xff] }
   0xf   :  { %6815 = vmatprep.mubr.msk.f32.mxu0 %vm109_vm1, %v54_v8  ;;  %v88_v42 = vld [vmem:[%s10592_s0 + $0x130] sm:$0xff]  ;;  %v89_v43 = vld [vmem:[%s10592_s0 + $0x138] sm:$0xff]  ;;  %v90_v44 = vld [vmem:[%s10592_s0 + $0x140] sm:$0xff] }
  0x10   :  { %v91_v45 = vld [vmem:[%s10592_s0 + $0x148] sm:$0xff]  ;;  %v92_v46 = vld [vmem:[%s10592_s0 + $0x150] sm:$0xff]  ;;  %v93_v47 = vld [vmem:[%s10592_s0 + $0x158] sm:$0xff] }
  0x11   :  { %v94_v48 = vld [vmem:[%s10592_s0 + $0x160] sm:$0xff]  ;;  %v95_v49 = vld [vmem:[%s10592_s0 + $0x168] sm:$0xff]  ;;  %v96_v50 = vld [vmem:[%s10592_s0 + $0x170] sm:$0xff] }
  0x12   :  { %6816 = vmatmul.mubr.msk.f32.gmra.mxu0 %vm109_vm1, %v55_v9  ;;  %v97_v51 = vld [vmem:[%s10592_s0 + $0x178] sm:$0xff]  ;;  %v612_v52 = vld [vmem:[%s10593_s3 + $0x8] sm:$0xff] }
  0x13   :  { %6818 = vmatprep.mubr.msk.f32.mxu0 %vm109_vm1, %v56_v10  ;;  %711 = vmatprep.mubr.f32.mxu1 %v612_v52  ;;  %v899_v53 = vld [vmem:[%s10593_s3 + $0x128] sm:$0xff] }
  0x16   :  { %6819 = vmatmul.mubr.msk.f32.gmra.mxu0 %vm109_vm1, %v57_v11 }
  0x17   :  { %6821 = vmatprep.mubr.msk.f32.mxu0 %vm109_vm1, %v58_v12 }
  0x1a   :  { %6822 = vmatmul.mubr.msk.f32.gmra.mxu0 %vm109_vm1, %v59_v13 }
  0x1b   :  { %6824 = vmatprep.mubr.msk.f32.mxu0 %vm109_vm1, %v60_v14 }
  0x1e   :  { %6825 = vmatmul.mubr.msk.f32.gmra.mxu0 %vm109_vm1, %v61_v15 }
  0x1f   :  { %6827 = vmatprep.mubr.msk.f32.mxu0 %vm109_vm1, %v62_v16 }
  0x22   :  { %6828 = vmatmul.mubr.msk.f32.gmra.mxu0 %vm109_vm1, %v63_v17 }
  0x23   :  { %6830 = vmatprep.mubr.msk.f32.mxu0 %vm109_vm1, %v64_v18 }
  0x26   :  { %6831 = vmatmul.mubr.msk.f32.gmra.mxu0 %vm109_vm1, %v65_v19 }
  0x27   :  { %6833 = vmatprep.mubr.msk.f32.mxu0 %vm109_vm1, %v66_v20  ;;  %v7964_v20 = vld [vmem:[%s10594_s2] ss:$0 sm:$0xff] }
  0x2a   :  { %6834 = vmatmul.mubr.msk.f32.gmra.mxu0 %vm109_vm1, %v67_v21 }
  0x2b   :  { %6836 = vmatprep.mubr.msk.f32.mxu0 %vm109_vm1, %v68_v22 }
  0x2e   :  { %6837 = vmatmul.mubr.msk.f32.gmra.mxu0 %vm109_vm1, %v69_v23 }
  0x2f   :  { %6839 = vmatprep.mubr.msk.f32.mxu0 %vm109_vm1, %v70_v24 }
  0x32   :  { %6840 = vmatmul.mubr.msk.f32.gmra.mxu0 %vm109_vm1, %v71_v25 }
  0x33   :  { %6842 = vmatprep.mubr.msk.f32.mxu0 %vm109_vm1, %v72_v26 }
  0x36   :  { %6843 = vmatmul.mubr.msk.f32.gmra.mxu0 %vm109_vm1, %v73_v27 }
  0x37   :  { %6845 = vmatprep.mubr.msk.f32.mxu0 %vm109_vm1, %v74_v28 }
  0x3a   :  { %6846 = vmatmul.mubr.msk.f32.gmra.mxu0 %vm109_vm1, %v75_v29 }
  0x3b   :  { %6848 = vmatprep.mubr.msk.f32.mxu0 %vm109_vm1, %v76_v30 }
  0x3e   :  { %6849 = vmatmul.mubr.msk.f32.gmra.mxu0 %vm109_vm1, %v77_v31 }
  0x3f   :  { %6851 = vmatprep.mubr.msk.f32.mxu0 %vm109_vm1, %v78_v32 }
  0x42   :  { %6852 = vmatmul.mubr.msk.f32.gmra.mxu0 %vm109_vm1, %v79_v33 }
  0x43   :  { %6854 = vmatprep.mubr.msk.f32.mxu0 %vm109_vm1, %v80_v34 }
  0x46   :  { %6855 = vmatmul.mubr.msk.f32.gmra.mxu0 %vm109_vm1, %v81_v35 }
  0x47   :  { %6857 = vmatprep.mubr.msk.f32.mxu0 %vm109_vm1, %v82_v36 }
  0x4a   :  { %6858 = vmatmul.mubr.msk.f32.gmra.mxu0 %vm109_vm1, %v83_v37 }
  0x4b   :  { %6860 = vmatprep.mubr.msk.f32.mxu0 %vm109_vm1, %v84_v38 }
  0x4e   :  { %6861 = vmatmul.mubr.msk.f32.gmra.mxu0 %vm109_vm1, %v85_v39 }
  0x4f   :  { %6863 = vmatprep.mubr.msk.f32.mxu0 %vm109_vm1, %v86_v40 }
  0x52   :  { %6864 = vmatmul.mubr.msk.f32.gmra.mxu0 %vm109_vm1, %v87_v41 }
  0x53   :  { %6866 = vmatprep.mubr.msk.f32.mxu0 %vm109_vm1, %v88_v42 }
  0x56   :  { %6867 = vmatmul.mubr.msk.f32.gmra.mxu0 %vm109_vm1, %v89_v43 }
  0x57   :  { %6869 = vmatprep.mubr.msk.f32.mxu0 %vm109_vm1, %v90_v44 }
  0x5a   :  { %6870 = vmatmul.mubr.msk.f32.gmra.mxu0 %vm109_vm1, %v91_v45 }
  0x5b   :  { %6872 = vmatprep.mubr.msk.f32.mxu0 %vm109_vm1, %v92_v46 }
  0x5e   :  { %6873 = vmatmul.mubr.msk.f32.gmra.mxu0 %vm109_vm1, %v93_v47 }
  0x5f   :  { %6875 = vmatprep.mubr.msk.f32.mxu0 %vm109_vm1, %v94_v48 }
  0x62   :  { %6876 = vmatmul.mubr.msk.f32.gmra.mxu0 %vm109_vm1, %v95_v49 }
  0x63   :  { %6878 = vmatprep.mubr.msk.f32.mxu0 %vm109_vm1, %v96_v50 }
  0x66   :  { %6879 = vmatmul.mubr.msk.f32.gmra.mxu0 %vm109_vm1, %v97_v51 }
  0x67   :  { %998 = vmatprep.mubr.f32.mxu0 %v899_v53 }
  0xca   :  { %v7925_v54 = vpop.f32.mrf.mxu0 }
  0xcc   :  { %v7927_v55 = vpop.f32.mrf.mxu0 }
  0xce   :  { %v7929_v56 = vpop.f32.mrf.mxu0 }
  0xd0   :  { %v7931_v57 = vpop.f32.mrf.mxu0 }
  0xd2   :  { %v7933_v58 = vpop.f32.mrf.mxu0 }
  0xd4   :  { %v7935_v59 = vpop.f32.mrf.mxu0 }
  0xd6   :  { %v7937_v60 = vpop.f32.mrf.mxu0 }
  0xd8   :  { %v7939_v61 = vpop.f32.mrf.mxu0 }
  0xda   :  { %v7941_v62 = vpop.f32.mrf.mxu0 }
  0xdb   :  { %v370_v49 = vadd.f32 %v7941_v62, %v7964_v20 }
  0xdc   :  { %v7943_v63 = vpop.f32.mrf.mxu0 }
  0xde   :  { %v6826_v0 = vpop.f32.mrf.mxu0 }
  0xdf   :  { %v380_v39 = vadd.f32 %v6826_v0, %v7964_v20  ;;  %v365_v0 = vadd.f32 %v7964_v20, %v7943_v63  ;;  %v360_v63 = vadd.f32 %v7937_v60, %v7964_v20  ;;  %v355_v60 = vadd.f32 %v7964_v20, %v7939_v61 }
  0xe0   :  { %v374_v1 = vpop.f32.mrf.mxu0  ;;  %v350_v61 = vadd.f32 %v7933_v58, %v7964_v20  ;;  %v345_v58 = vadd.f32 %v7964_v20, %v7935_v59  ;;  %v340_v59 = vadd.f32 %v7929_v56, %v7964_v20 }
  0xe1   :  { %v375_v44 = vadd.f32 %v7964_v20, %v374_v1  ;;  %v8021_v50 = vmax.f32 %v380_v39, 0.0 }
  0xe2   :  { %v6829_v2 = vpop.f32.mrf.mxu0  ;;  %v8116_v56 = vmax.f32 %v345_v58, 0.0 }
  0xe3   :  { %v390_v29 = vadd.f32 %v6829_v2, %v7964_v20  ;;  %10717 = vst [vmem:[#allocation9_spill] sm:$0xff] %v8021_v50  ;;  %v8034_v62 = vmax.f32 %v375_v44, 0.0  ;;  %v325_v44 = vadd.f32 %v7964_v20, %v7927_v55 }
  0xe4   :  { %v384_v3 = vpop.f32.mrf.mxu0  ;;  %10731 = vst [vmem:[#allocation23_spill] sm:$0xff] %v8116_v56 }
  0xe5   :  { %v385_v34 = vadd.f32 %v7964_v20, %v384_v3  ;;  %v7996_v40 = vmax.f32 %v390_v29, 0.0  ;;  %10719 = vst [vmem:[#allocation11_spill] sm:$0xff] %v8034_v62  ;;  %v335_v29 = vadd.f32 %v7964_v20, %v7931_v57  ;;  %v330_v57 = vadd.f32 %v7925_v54, %v7964_v20 }
  0xe6   :  { %v6832_v4 = vpop.f32.mrf.mxu0 }
  0xe7   :  { %v400_v21 = vadd.f32 %v6832_v4, %v7964_v20  ;;  %10713 = vst [vmem:[#allocation5_spill] sm:$0xff] %v7996_v40  ;;  %v8008_v45 = vmax.f32 %v385_v34, 0.0  ;;  %v8048_v4 = vmax.f32 %v370_v49, 0.0  ;;  %v8142_v54 = vmax.f32 %v335_v29, 0.0 }
  0xe8   :  { %v394_v5 = vpop.f32.mrf.mxu0 }
  0xe9   :  { %v395_v24 = vadd.f32 %v7964_v20, %v394_v5  ;;  %v7974_v30 = vmax.f32 %v400_v21, 0.0  ;;  %10715 = vst [vmem:[#allocation7_spill] sm:$0xff] %v8008_v45  ;;  %10721 = vst [vmem:[#allocation13_spill] sm:$0xff] %v8048_v4 }
  0xea   :  { %v7945_v6 = vpop.f32.mrf.mxu0  ;;  %10735 = vst [vmem:[#allocation27_spill] sm:$0xff] %v8142_v54 }
  0xeb   :  { %v7984_v35 = vmax.f32 %v395_v24, 0.0 }
  0xec   :  { %v7947_v7 = vpop.f32.mrf.mxu0 }
  0xed   :  { %10711 = vst [vmem:[#allocation3_spill] sm:$0xff] %v7984_v35 }
  0xee   :  { %v7949_v8 = vpop.f32.mrf.mxu0 }
  0xf0   :  { %v7951_v9 = vpop.f32.mrf.mxu0 }
  0xf2   :  { %v7953_v10 = vpop.f32.mrf.mxu0 }
  0xf4   :  { %v7955_v11 = vpop.f32.mrf.mxu0 }
  0xf6   :  { %v7957_v12 = vpop.f32.mrf.mxu0 }
  0xf7   :  { %v440_v2 = vadd.f32 %v7957_v12, %v7964_v20 }
  0xf8   :  { %v7959_v13 = vpop.f32.mrf.mxu0 }
  0xf9   :  { %v435_v12 = vadd.f32 %v7964_v20, %v7959_v13  ;;  %v430_v13 = vadd.f32 %v7953_v10, %v7964_v20  ;;  %v425_v10 = vadd.f32 %v7964_v20, %v7955_v11  ;;  %v420_v11 = vadd.f32 %v7949_v8, %v7964_v20 }
  0xfa   :  { %v6847_v14 = vpop.f32.mrf.mxu0 }
  0xfb   :  { %v450_v47 = vadd.f32 %v6847_v14, %v7964_v20  ;;  %v8084_v21 = vmax.f32 %v435_v12, 0.0  ;;  %v8098_v24 = vmax.f32 %v430_v13, 0.0  ;;  %v8110_v8 = vmax.f32 %v425_v10, 0.0  ;;  %v897_v10 = vld [vmem:[%s10595_s4] sm:$0xff] }
  0xfc   :  { %v444_v15 = vpop.f32.mrf.mxu0  ;;  %v8124_v34 = vmax.f32 %v420_v11, 0.0  ;;  %v898_v11 = vld [vmem:[%s10593_s3 + $0x120] sm:$0xff] }
  0xfd   :  { %v445_v52 = vadd.f32 %v7964_v20, %v444_v15  ;;  %v8042_v3 = vmax.f32 %v450_v47, 0.0  ;;  %v8062_v15 = vmax.f32 %v365_v0, 0.0  ;;  %10726 = vst [vmem:[#allocation18_spill] sm:$0xff] %v8084_v21  ;;  %10728 = vst [vmem:[#allocation20_spill] sm:$0xff] %v8098_v24 }
  0xfe   :  { %v6850_v16 = vpop.f32.mrf.mxu0  ;;  %10730 = vst [vmem:[#allocation22_spill] sm:$0xff] %v8110_v8  ;;  %10732 = vst [vmem:[#allocation24_spill] sm:$0xff] %v8124_v34 }
  0xff   :  { %v460_v37 = vadd.f32 %v6850_v16, %v7964_v20  ;;  %10720 = vst [vmem:[#allocation12_spill] sm:$0xff] %v8042_v3  ;;  %v8056_v14 = vmax.f32 %v445_v52, 0.0  ;;  %10723 = vst [vmem:[#allocation15_spill] sm:$0xff] %v8062_v15 }
 0x100   :  { %v454_v17 = vpop.f32.mrf.mxu0 }
 0x101   :  { %v455_v42 = vadd.f32 %v7964_v20, %v454_v17  ;;  %v8015_v48 = vmax.f32 %v460_v37, 0.0  ;;  %10722 = vst [vmem:[#allocation14_spill] sm:$0xff] %v8056_v14  ;;  %v8070_v17 = vmax.f32 %v440_v2, 0.0  ;;  %v8130_v37 = vmax.f32 %v340_v59, 0.0 }
 0x102   :  { %v6853_v18 = vpop.f32.mrf.mxu0  ;;  %v8159_v2 = vmax.f32 %v325_v44, 0.0 }
 0x103   :  { %v470_v26 = vadd.f32 %v6853_v18, %v7964_v20  ;;  %10716 = vst [vmem:[#allocation8_spill] sm:$0xff] %v8015_v48  ;;  %v8028_v53 = vmax.f32 %v455_v42, 0.0  ;;  %10724 = vst [vmem:[#allocation16_spill] sm:$0xff] %v8070_v17  ;;  %v8076_v18 = vmax.f32 %v360_v63, 0.0  ;;  %v405_v42 = vadd.f32 %v7964_v20, %v7947_v7 }
 0x104   :  { %v464_v19 = vpop.f32.mrf.mxu0  ;;  %10733 = vst [vmem:[#allocation25_spill] sm:$0xff] %v8130_v37  ;;  %v8150_v7 = vmax.f32 %v330_v57, 0.0  ;;  %10739 = vst [vmem:[#allocation31_spill] sm:$0xff] %v8159_v2  ;;  %v614_v57 = vld [vmem:[%s10593_s3 + $0x18] sm:$0xff] }
 0x105   :  { %v465_v32 = vadd.f32 %v7964_v20, %v464_v19  ;;  %v7991_v38 = vmax.f32 %v470_v26, 0.0  ;;  %10718 = vst [vmem:[#allocation10_spill] sm:$0xff] %v8028_v53  ;;  %10725 = vst [vmem:[#allocation17_spill] sm:$0xff] %v8076_v18  ;;  %v8154_v55 = vmax.f32 %v405_v42, 0.0  ;;  %v902_v42 = vld [vmem:[%s10593_s3 + $0x140] sm:$0xff] }
 0x106   :  { %v6856_v22 = vpop.f32.mrf.mxu0  ;;  %10737 = vst [vmem:[#allocation29_spill] sm:$0xff] %v8150_v7 }
 0x107   :  { %v480_v23 = vadd.f32 %v6856_v22, %v7964_v20  ;;  %10712 = vst [vmem:[#allocation4_spill] sm:$0xff] %v7991_v38  ;;  %v8003_v43 = vmax.f32 %v465_v32, 0.0  ;;  %v8090_v22 = vmax.f32 %v355_v60, 0.0  ;;  %10738 = vst [vmem:[#allocation30_spill] sm:$0xff] %v8154_v55  ;;  %v611_v60 = vld [vmem:[%s10593_s3] sm:$0xff] }
 0x108   :  { %v474_v25 = vpop.f32.mrf.mxu0 }
 0x109   :  { %v7970_v27 = vmax.f32 %v480_v23, 0.0  ;;  %v475_v28 = vadd.f32 %v7964_v20, %v474_v25  ;;  %10714 = vst [vmem:[#allocation6_spill] sm:$0xff] %v8003_v43  ;;  %10727 = vst [vmem:[#allocation19_spill] sm:$0xff] %v8090_v22  ;;  %v8104_v25 = vmax.f32 %v350_v61, 0.0 }
 0x10a   :  { %v7976_v31 = vpop.f32.mrf.mxu0 }
 0x10b   :  { %10710 = vst [vmem:[#allocation2_spill] sm:$0xff] %v7970_v27  ;;  %v7979_v33 = vmax.f32 %v475_v28, 0.0  ;;  %5777 = vmatprep.subr.mxu1 %v7970_v27  ;;  %5873 = vmatprep.subr.mxu0 %v7970_v27  ;;  %10729 = vst [vmem:[#allocation21_spill] sm:$0xff] %v8104_v25  ;;  %v415_v28 = vadd.f32 %v7964_v20, %v7951_v9  ;;  %v410_v9 = vadd.f32 %v7945_v6, %v7964_v20 }
 0x10c   :  { %v7986_v36 = vpop.f32.mrf.mxu0  ;;  %5778 = vmatpush3.msra.mxu1 %v7974_v30  ;;  %5874 = vmatpush3.msra.mxu0 %v7974_v30 }
 0x10d   :  { %5779 = vmatprep.subr.mxu1 %v7979_v33  ;;  %5875 = vmatprep.subr.mxu0 %v7979_v33  ;;  %v8136_v6 = vmax.f32 %v415_v28, 0.0  ;;  %v8146_v49 = vmax.f32 %v410_v9, 0.0  ;;  %v615_v28 = vld [vmem:[%s10593_s3 + $0x20] sm:$0xff] }
 0x10e   :  { %v7998_v41 = vpop.f32.mrf.mxu0  ;;  %5780 = vmatpush3.msra.mxu1 %v7984_v35  ;;  %5876 = vmatpush3.msra.mxu0 %v7984_v35 }
 0x10f   :  { %5781 = vmatprep.subr.mxu1 %v7991_v38  ;;  %5877 = vmatprep.subr.mxu0 %v7991_v38  ;;  %10734 = vst [vmem:[#allocation26_spill] sm:$0xff] %v8136_v6  ;;  %10736 = vst [vmem:[#allocation28_spill] sm:$0xff] %v8146_v49 }
 0x110   :  { %v8010_v46 = vpop.f32.mrf.mxu0  ;;  %5782 = vmatpush3.msra.mxu1 %v7996_v40  ;;  %5878 = vmatpush3.msra.mxu0 %v7996_v40 }
 0x111   :  { %5783 = vmatprep.subr.mxu1 %v8003_v43  ;;  %5879 = vmatprep.subr.mxu0 %v8003_v43 }
 0x112   :  { %v8023_v51 = vpop.f32.mrf.mxu0  ;;  %5784 = vmatpush3.msra.mxu1 %v8008_v45  ;;  %5880 = vmatpush3.msra.mxu0 %v8008_v45 }
 0x113   :  { %5785 = vmatprep.subr.mxu1 %v8015_v48  ;;  %5881 = vmatprep.subr.mxu0 %v8015_v48 }
 0x114   :  { %v8036_v1 = vpop.f32.mrf.mxu0  ;;  %5786 = vmatpush3.msra.mxu1 %v8021_v50  ;;  %5882 = vmatpush3.msra.mxu0 %v8021_v50 }
 0x115   :  { %5787 = vmatprep.subr.mxu1 %v8028_v53  ;;  %5883 = vmatprep.subr.mxu0 %v8028_v53 }
 0x116   :  { %v8050_v5 = vpop.f32.mrf.mxu0  ;;  %5788 = vmatpush3.msra.mxu1 %v8034_v62  ;;  %5884 = vmatpush3.msra.mxu0 %v8034_v62 }
 0x117   :  { %5789 = vmatprep.subr.mxu1 %v8042_v3  ;;  %5885 = vmatprep.subr.mxu0 %v8042_v3 }
 0x118   :  { %v8064_v16 = vpop.f32.mrf.mxu0  ;;  %5790 = vmatpush3.msra.mxu1 %v8048_v4  ;;  %5886 = vmatpush3.msra.mxu0 %v8048_v4 }
 0x119   :  { %5791 = vmatprep.subr.mxu1 %v8056_v14  ;;  %5887 = vmatprep.subr.mxu0 %v8056_v14 }
 0x11a   :  { %v8078_v19 = vpop.f32.mrf.mxu0  ;;  %5792 = vmatpush3.msra.mxu1 %v8062_v15  ;;  %5888 = vmatpush3.msra.mxu0 %v8062_v15 }
 0x11b   :  { %5793 = vmatprep.subr.mxu1 %v8070_v17  ;;  %5889 = vmatprep.subr.mxu0 %v8070_v17 }
 0x11c   :  { %v8092_v23 = vpop.f32.mrf.mxu0  ;;  %5794 = vmatpush3.msra.mxu1 %v8076_v18  ;;  %5890 = vmatpush3.msra.mxu0 %v8076_v18 }
 0x11d   :  { %5795 = vmatprep.subr.mxu1 %v8084_v21  ;;  %5891 = vmatprep.subr.mxu0 %v8084_v21 }
 0x11e   :  { %v6874_v26 = vpop.f32.mrf.mxu0  ;;  %5796 = vmatpush3.msra.mxu1 %v8090_v22  ;;  %5892 = vmatpush3.msra.mxu0 %v8090_v22 }
 0x11f   :  { %5797 = vmatprep.subr.mxu1 %v8098_v24  ;;  %5893 = vmatprep.subr.mxu0 %v8098_v24  ;;  %v540_v29 = vadd.f32 %v6874_v26, %v7964_v20  ;;  %v618_v26 = vld [vmem:[%s10593_s3 + $0x38] sm:$0xff] }
 0x120   :  { %v8118_v32 = vpop.f32.mrf.mxu0  ;;  %5798 = vmatpush3.msra.mxu1 %v8104_v25  ;;  %5894 = vmatpush3.msra.mxu0 %v8104_v25 }
 0x121   :  { %5799 = vmatprep.subr.mxu1 %v8110_v8  ;;  %5895 = vmatprep.subr.mxu0 %v8110_v8  ;;  %v8205_v44 = vmax.f32 %v540_v29, 0.0  ;;  %v515_v29 = vadd.f32 %v7964_v20, %v8064_v16 }
 0x122   :  { %v6877_v39 = vpop.f32.mrf.mxu0  ;;  %5800 = vmatpush3.msra.mxu1 %v8116_v56  ;;  %5896 = vmatpush3.msra.mxu0 %v8116_v56 }
 0x123   :  { %5801 = vmatprep.subr.mxu1 %v8124_v34  ;;  %5897 = vmatprep.subr.mxu0 %v8124_v34  ;;  %v550_v63 = vadd.f32 %v6877_v39, %v7964_v20 }
 0x124   :  { %v544_v47 = vpop.f32.mrf.mxu0  ;;  %5802 = vmatpush3.msra.mxu1 %v8130_v37  ;;  %5898 = vmatpush3.msra.mxu0 %v8130_v37 }
 0x125   :  { %5803 = vmatprep.subr.mxu1 %v8136_v6  ;;  %5899 = vmatprep.subr.mxu0 %v8136_v6  ;;  %v545_v58 = vadd.f32 %v7964_v20, %v544_v47  ;;  %v8188_v9 = vmax.f32 %v550_v63, 0.0  ;;  %v535_v47 = vadd.f32 %v7964_v20, %v8118_v32  ;;  %v530_v63 = vadd.f32 %v8078_v19, %v7964_v20  ;;  %v621_v32 = vld [vmem:[%s10593_s3 + $0x50] sm:$0xff] }
 0x126   :  { %v6880_v52 = vpop.f32.mrf.mxu0  ;;  %5804 = vmatpush3.msra.mxu1 %v8142_v54  ;;  %5900 = vmatpush3.msra.mxu0 %v8142_v54  ;;  %v904_v19 = vld [vmem:[%s10593_s3 + $0x150] sm:$0xff] }
 0x127   :  { %v560_v0 = vadd.f32 %v6880_v52, %v7964_v20  ;;  %5805 = vmatprep.subr.mxu1 %v8146_v49  ;;  %5901 = vmatprep.subr.mxu0 %v8146_v49  ;;  %v8195_v39 = vmax.f32 %v545_v58, 0.0  ;;  %v901_v52 = vld [vmem:[%s10593_s3 + $0x138] sm:$0xff]  ;;  %v520_v58 = vadd.f32 %v8050_v5, %v7964_v20 }
 0x128   :  { %v554_v12 = vpop.f32.mrf.mxu0  ;;  %5806 = vmatpush3.msra.mxu1 %v8150_v7  ;;  %5902 = vmatpush3.msra.mxu0 %v8150_v7 }
 0x129   :  { %v8167_v13 = vmax.f32 %v560_v0, 0.0  ;;  %v555_v61 = vadd.f32 %v7964_v20, %v554_v12  ;;  %5807 = vmatprep.subr.mxu1 %v8154_v55  ;;  %5903 = vmatprep.subr.mxu0 %v8154_v55  ;;  %v617_v0 = vld [vmem:[%s10593_s3 + $0x30] sm:$0xff]  ;;  %v905_v12 = vld [vmem:[%s10593_s3 + $0x158] sm:$0xff]  ;;  %v8265_v16 = vmax.f32 %v520_v58, 0.0 }
 0x12a   :  { %5808 = vmatpush3.msra.mxu1 %v8159_v2  ;;  %5904 = vmatpush3.msra.mxu0 %v8159_v2  ;;  %v913_v58 = vld [vmem:[%s10593_s3 + $0x198] sm:$0xff] }
 0x12b   :  { %v8181_v59 = vmax.f32 %v555_v61, 0.0  ;;  %712 = vmatmul.mubr.f32.vlgmr.msra.gmra.mxu1 %v611_v60  ;;  %6881 = vmatprep.subr.mxu1 %v8167_v13  ;;  %v525_v60 = vadd.f32 %v7964_v20, %v8092_v23  ;;  %v8229_v61 = vmax.f32 %v535_v47, 0.0  ;;  %v8241_v23 = vmax.f32 %v530_v63, 0.0  ;;  %v627_v47 = vld [vmem:[%s10593_s3 + $0x80] sm:$0xff] }
 0x12c   :  { %6882 = vmatpush3.msra.mxu1 %v8167_v13  ;;  %7001 = vmatprep.subr.mxu0 %v897_v10  ;;  %v910_v63 = vld [vmem:[%s10593_s3 + $0x180] sm:$0xff] }
 0x12d   :  { %6883 = vmatprep.subr.mxu1 %v8181_v59  ;;  %999 = vmatmul.mubr.f32.vlgmr.msra.gmra.mxu0 %v898_v11  ;;  %v624_v11 = vld [vmem:[%s10593_s3 + $0x68] sm:$0xff]  ;;  %v8253_v5 = vmax.f32 %v525_v60, 0.0  ;;  %v630_v60 = vld [vmem:[%s10593_s3 + $0x98] sm:$0xff] }
 0x12e   :  { %7002 = vmatpush3.msra.mxu0 %v897_v10  ;;  %716 = vmatprep.mubr.f32.mxu1 %v615_v28  ;;  %v620_v10 = vld [vmem:[%s10593_s3 + $0x48] sm:$0xff]  ;;  %v908_v28 = vld [vmem:[%s10593_s3 + $0x170] sm:$0xff] }
 0x12f   :  { %6884 = vmatpush3.msra.mxu1 %v8181_v59  ;;  %7021 = vmatprep.subr.mxu0 %v8167_v13 }
 0x130   :  { %717 = vmatmul.mubr.f32.gmra.mxu1 %v614_v57  ;;  %6885 = vmatprep.subr.mxu1 %v8188_v9  ;;  %v907_v57 = vld [vmem:[%s10593_s3 + $0x168] sm:$0xff] }
 0x131   :  { %6886 = vmatpush3.msra.mxu1 %v8188_v9  ;;  %721 = vmatprep.mubr.f32.mxu1 %v618_v26  ;;  %v623_v26 = vld [vmem:[%s10593_s3 + $0x60] sm:$0xff] }
 0x132   :  { %6887 = vmatprep.subr.mxu1 %v8195_v39  ;;  %1003 = vmatprep.mubr.f32.mxu0 %v902_v42  ;;  %v510_v42 = vadd.f32 %v8023_v51, %v7964_v20  ;;  %v8277_v51 = vmax.f32 %v515_v29, 0.0  ;;  %v633_v29 = vld [vmem:[%s10593_s3 + $0xb0] sm:$0xff] }
 0x133   :  { %6888 = vmatpush3.msra.mxu1 %v8195_v39  ;;  %1004 = vmatmul.mubr.f32.gmra.mxu0 %v901_v52  ;;  %v911_v52 = vld [vmem:[%s10593_s3 + $0x188] sm:$0xff] }
 0x134   :  { %722 = vmatmul.mubr.f32.gmra.mxu1 %v617_v0  ;;  %6889 = vmatprep.subr.mxu1 %v8205_v44  ;;  %v505_v0 = vadd.f32 %v7964_v20, %v8036_v1  ;;  %v8289_v1 = vmax.f32 %v510_v42, 0.0  ;;  %v916_v42 = vld [vmem:[%s10593_s3 + $0x1b0] sm:$0xff] }
 0x135   :  { %6890 = vmatpush3.msra.mxu1 %v8205_v44  ;;  %726 = vmatprep.mubr.f32.mxu1 %v621_v32  ;;  %v626_v32 = vld [vmem:[%s10593_s3 + $0x78] sm:$0xff] }
 0x136   :  { %6891 = vmatprep.subr.mxu1 %v8229_v61  ;;  %1008 = vmatprep.mubr.f32.mxu0 %v905_v12  ;;  %v500_v12 = vadd.f32 %v7998_v41, %v7964_v20  ;;  %v8301_v41 = vmax.f32 %v505_v0, 0.0 }
 0x137   :  { %6892 = vmatpush3.msra.mxu1 %v8229_v61  ;;  %1009 = vmatmul.mubr.f32.gmra.mxu0 %v904_v19  ;;  %v914_v19 = vld [vmem:[%s10593_s3 + $0x1a0] sm:$0xff] }
 0x138   :  { %727 = vmatmul.mubr.f32.gmra.mxu1 %v620_v10  ;;  %6893 = vmatprep.subr.mxu1 %v8241_v23  ;;  %v495_v10 = vadd.f32 %v7964_v20, %v8010_v46  ;;  %v8313_v46 = vmax.f32 %v500_v12, 0.0  ;;  %v639_v12 = vld [vmem:[%s10593_s3 + $0xe0] sm:$0xff] }
 0x139   :  { %6894 = vmatpush3.msra.mxu1 %v8241_v23  ;;  %731 = vmatprep.mubr.f32.mxu1 %v624_v11  ;;  %v629_v11 = vld [vmem:[%s10593_s3 + $0x90] sm:$0xff] }
 0x13a   :  { %6895 = vmatprep.subr.mxu1 %v8253_v5  ;;  %1013 = vmatprep.mubr.f32.mxu0 %v908_v28  ;;  %v490_v28 = vadd.f32 %v7976_v31, %v7964_v20  ;;  %v8325_v31 = vmax.f32 %v495_v10, 0.0  ;;  %v638_v10 = vld [vmem:[%s10593_s3 + $0xd8] sm:$0xff] }
 0x13b   :  { %6896 = vmatpush3.msra.mxu1 %v8253_v5  ;;  %1014 = vmatmul.mubr.f32.gmra.mxu0 %v907_v57  ;;  %v917_v57 = vld [vmem:[%s10593_s3 + $0x1b8] sm:$0xff] }
 0x13c   :  { %732 = vmatmul.mubr.f32.gmra.mxu1 %v623_v26  ;;  %6897 = vmatprep.subr.mxu1 %v8265_v16  ;;  %v485_v26 = vadd.f32 %v7964_v20, %v7986_v36  ;;  %v636_v20 = vld [vmem:[%s10593_s3 + $0xc8] sm:$0xff]  ;;  %v920_v36 = vld [vmem:[%s10593_s3 + $0x1d0] sm:$0xff] }
 0x13d   :  { %6898 = vmatpush3.msra.mxu1 %v8265_v16  ;;  %736 = vmatprep.mubr.f32.mxu1 %v627_v47  ;;  %v632_v47 = vld [vmem:[%s10593_s3 + $0xa8] sm:$0xff] }
 0x13e   :  { %6899 = vmatprep.subr.mxu1 %v8277_v51  ;;  %1018 = vmatprep.mubr.f32.mxu0 %v911_v52  ;;  %v8335_v52 = vmax.f32 %v490_v28, 0.0  ;;  %v8345_v0 = vmax.f32 %v485_v26, 0.0  ;;  %v925_v28 = vld [vmem:[%s10593_s3 + $0x1f8] sm:$0xff]  ;;  %v645_v26 = vld [vmem:[%s10593_s3 + $0x110] sm:$0xff] }
 0x13f   :  { %6900 = vmatpush3.msra.mxu1 %v8277_v51  ;;  %1019 = vmatmul.mubr.f32.gmra.mxu0 %v910_v63  ;;  %v919_v63 = vld [vmem:[%s10593_s3 + $0x1c8] sm:$0xff] }
 0x140   :  { %737 = vmatmul.mubr.f32.gmra.mxu1 %v626_v32  ;;  %6901 = vmatprep.subr.mxu1 %v8289_v1  ;;  %v635_v32 = vld [vmem:[%s10593_s3 + $0xc0] sm:$0xff] }
 0x141   :  { %6902 = vmatpush3.msra.mxu1 %v8289_v1  ;;  %741 = vmatprep.mubr.f32.mxu1 %v630_v60  ;;  %v923_v60 = vld [vmem:[%s10593_s3 + $0x1e8] sm:$0xff] }
 0x142   :  { %6903 = vmatprep.subr.mxu1 %v8301_v41  ;;  %1023 = vmatprep.mubr.f32.mxu0 %v914_v19  ;;  %v922_v19 = vld [vmem:[%s10593_s3 + $0x1e0] sm:$0xff] }
 0x143   :  { %6904 = vmatpush3.msra.mxu1 %v8301_v41  ;;  %1024 = vmatmul.mubr.f32.gmra.mxu0 %v913_v58  ;;  %v926_v58 = vld [vmem:[%s10593_s3 + $0x200] sm:$0xff] }
 0x144   :  { %742 = vmatmul.mubr.f32.gmra.mxu1 %v629_v11  ;;  %6905 = vmatprep.subr.mxu1 %v8313_v46  ;;  %v642_v11 = vld [vmem:[%s10593_s3 + $0xf8] sm:$0xff] }
 0x145   :  { %6906 = vmatpush3.msra.mxu1 %v8313_v46  ;;  %746 = vmatprep.mubr.f32.mxu1 %v633_v29  ;;  %v641_v29 = vld [vmem:[%s10593_s3 + $0xf0] sm:$0xff] }
 0x146   :  { %6907 = vmatprep.subr.mxu1 %v8325_v31  ;;  %1028 = vmatprep.mubr.f32.mxu0 %v917_v57  ;;  %v929_v57 = vld [vmem:[%s10593_s3 + $0x218] sm:$0xff] }
 0x147   :  { %6908 = vmatpush3.msra.mxu1 %v8325_v31  ;;  %1029 = vmatmul.mubr.f32.gmra.mxu0 %v916_v42  ;;  %v928_v42 = vld [vmem:[%s10593_s3 + $0x210] sm:$0xff] }
 0x148   :  { %747 = vmatmul.mubr.f32.gmra.mxu1 %v632_v47  ;;  %6909 = vmatprep.subr.mxu1 %v8335_v52  ;;  %v644_v47 = vld [vmem:[%s10593_s3 + $0x108] sm:$0xff] }
 0x149   :  { %6910 = vmatpush3.msra.mxu1 %v8335_v52  ;;  %751 = vmatprep.mubr.f32.mxu1 %v636_v20  ;;  %v932_v20 = vld [vmem:[%s10593_s3 + $0x230] sm:$0xff] }
 0x14a   :  { %6911 = vmatprep.subr.mxu1 %v8345_v0  ;;  %1033 = vmatprep.mubr.f32.mxu0 %v920_v36  ;;  %v613_v36 = vld [vmem:[%s10593_s3 + $0x10] sm:$0xff] }
 0x14b   :  { %6912 = vmatpush3.msra.mxu1 %v8345_v0  ;;  %1034 = vmatmul.mubr.f32.gmra.mxu0 %v919_v63  ;;  %v931_v63 = vld [vmem:[%s10593_s3 + $0x228] sm:$0xff] }
 0x14c   :  { %752 = vmatmul.mubr.f32.gmra.mxu1 %v635_v32  ;;  %6931 = vmatprep.subr.mxu1 %v8167_v13  ;;  %v616_v32 = vld [vmem:[%s10593_s3 + $0x28] sm:$0xff] }
 0x14d   :  { %756 = vmatprep.mubr.f32.mxu1 %v639_v12  ;;  %1038 = vmatprep.mubr.f32.mxu0 %v923_v60  ;;  %v619_v12 = vld [vmem:[%s10593_s3 + $0x40] sm:$0xff]  ;;  %v622_v60 = vld [vmem:[%s10593_s3 + $0x58] sm:$0xff] }
 0x14f   :  { %1039 = vmatmul.mubr.f32.gmra.mxu0 %v922_v19  ;;  %v625_v19 = vld [vmem:[%s10593_s3 + $0x70] sm:$0xff] }
 0x150   :  { %757 = vmatmul.mubr.f32.gmra.mxu1 %v638_v10  ;;  %1043 = vmatprep.mubr.f32.mxu0 %v926_v58  ;;  %v628_v10 = vld [vmem:[%s10593_s3 + $0x88] sm:$0xff]  ;;  %v631_v58 = vld [vmem:[%s10593_s3 + $0xa0] sm:$0xff] }
 0x151   :  { %761 = vmatprep.mubr.f32.mxu1 %v642_v11  ;;  %v634_v11 = vld [vmem:[%s10593_s3 + $0xb8] sm:$0xff] }
 0x153   :  { %1044 = vmatmul.mubr.f32.gmra.mxu0 %v925_v28  ;;  %v637_v28 = vld [vmem:[%s10593_s3 + $0xd0] sm:$0xff] }
 0x154   :  { %762 = vmatmul.mubr.f32.gmra.mxu1 %v641_v29  ;;  %1048 = vmatprep.mubr.f32.mxu0 %v929_v57  ;;  %v640_v29 = vld [vmem:[%s10593_s3 + $0xe8] sm:$0xff]  ;;  %v643_v57 = vld [vmem:[%s10593_s3 + $0x100] sm:$0xff] }
 0x155   :  { %766 = vmatprep.mubr.f32.mxu1 %v645_v26  ;;  %v646_v26 = vld [vmem:[%s10593_s3 + $0x118] sm:$0xff] }
 0x157   :  { %1049 = vmatmul.mubr.f32.gmra.mxu0 %v928_v42  ;;  %v900_v42 = vld [vmem:[%s10593_s3 + $0x130] sm:$0xff] }
 0x158   :  { %767 = vmatmul.mubr.f32.gmra.mxu1 %v644_v47  ;;  %1053 = vmatprep.mubr.f32.mxu0 %v932_v20  ;;  %v903_v47 = vld [vmem:[%s10593_s3 + $0x148] sm:$0xff] }
 0x159   :  { %6913 = vmatprep.mubr.f32.mxu1 %v613_v36  ;;  %v1184_v20 = vld [vmem:[%s10595_s4 + $0x8] sm:$0xff]  ;;  %v906_v36 = vld [vmem:[%s10593_s3 + $0x160] sm:$0xff] }
 0x15b   :  { %1054 = vmatmul.mubr.f32.gmra.mxu0 %v931_v63  ;;  %v909_v63 = vld [vmem:[%s10593_s3 + $0x178] sm:$0xff] }
 0x15c   :  { %6914 = vmatmul.mubr.f32.vlgmr.msra.gmra.mxu1 %v616_v32  ;;  %v912_v32 = vld [vmem:[%s10593_s3 + $0x190] sm:$0xff] }
 0x15d   :  { %6932 = vmatpush3.msra.mxu1 %v8167_v13  ;;  %6916 = vmatprep.mubr.f32.mxu1 %v619_v12  ;;  %v915_v12 = vld [vmem:[%s10593_s3 + $0x1a8] sm:$0xff] }
 0x15e   :  { %6933 = vmatprep.subr.mxu1 %v8181_v59 }
 0x15f   :  { %6934 = vmatpush3.msra.mxu1 %v8181_v59 }
 0x160   :  { %6935 = vmatprep.subr.mxu1 %v8188_v9  ;;  %6917 = vmatmul.mubr.f32.gmra.mxu1 %v622_v60  ;;  %v918_v60 = vld [vmem:[%s10593_s3 + $0x1c0] sm:$0xff] }
 0x161   :  { %6936 = vmatpush3.msra.mxu1 %v8188_v9  ;;  %6919 = vmatprep.mubr.f32.mxu1 %v625_v19  ;;  %v921_v19 = vld [vmem:[%s10593_s3 + $0x1d8] sm:$0xff] }
 0x162   :  { %6937 = vmatprep.subr.mxu1 %v8195_v39 }
 0x163   :  { %6938 = vmatpush3.msra.mxu1 %v8195_v39 }
 0x164   :  { %6939 = vmatprep.subr.mxu1 %v8205_v44  ;;  %6920 = vmatmul.mubr.f32.gmra.mxu1 %v628_v10  ;;  %v924_v10 = vld [vmem:[%s10593_s3 + $0x1f0] sm:$0xff] }
 0x165   :  { %6940 = vmatpush3.msra.mxu1 %v8205_v44  ;;  %6922 = vmatprep.mubr.f32.mxu1 %v631_v58  ;;  %v927_v58 = vld [vmem:[%s10593_s3 + $0x208] sm:$0xff] }
 0x166   :  { %6941 = vmatprep.subr.mxu1 %v8229_v61 }
 0x167   :  { %6942 = vmatpush3.msra.mxu1 %v8229_v61 }
 0x168   :  { %6943 = vmatprep.subr.mxu1 %v8241_v23  ;;  %6923 = vmatmul.mubr.f32.gmra.mxu1 %v634_v11  ;;  %v930_v11 = vld [vmem:[%s10593_s3 + $0x220] sm:$0xff] }
 0x169   :  { %6944 = vmatpush3.msra.mxu1 %v8241_v23  ;;  %6925 = vmatprep.mubr.f32.mxu1 %v637_v28  ;;  %v933_v28 = vld [vmem:[%s10593_s3 + $0x238] sm:$0xff] }
 0x16a   :  { %6945 = vmatprep.subr.mxu1 %v8253_v5 }
 0x16b   :  { %6946 = vmatpush3.msra.mxu1 %v8253_v5 }
 0x16c   :  { %6947 = vmatprep.subr.mxu1 %v8265_v16  ;;  %6926 = vmatmul.mubr.f32.gmra.mxu1 %v640_v29 }
 0x16d   :  { %6948 = vmatpush3.msra.mxu1 %v8265_v16  ;;  %6928 = vmatprep.mubr.f32.mxu1 %v643_v57 }
 0x16e   :  { %6949 = vmatprep.subr.mxu1 %v8277_v51 }
 0x16f   :  { %6950 = vmatpush3.msra.mxu1 %v8277_v51 }
 0x170   :  { %6951 = vmatprep.subr.mxu1 %v8289_v1  ;;  %6929 = vmatmul.mubr.f32.gmra.mxu1 %v646_v26 }
 0x171   :  { %6952 = vmatpush3.msra.mxu1 %v8289_v1  ;;  %6963 = vmatprep.mubr.f32.mxu1 %v900_v42 }
 0x172   :  { %6953 = vmatprep.subr.mxu1 %v8301_v41 }
 0x173   :  { %6954 = vmatpush3.msra.mxu1 %v8301_v41 }
 0x174   :  { %6955 = vmatprep.subr.mxu1 %v8313_v46 }
 0x175   :  { %6956 = vmatpush3.msra.mxu1 %v8313_v46 }
 0x176   :  { %6957 = vmatprep.subr.mxu1 %v8325_v31 }
 0x177   :  { %6958 = vmatpush3.msra.mxu1 %v8325_v31 }
 0x178   :  { %6959 = vmatprep.subr.mxu1 %v8335_v52 }
 0x179   :  { %6960 = vmatpush3.msra.mxu1 %v8335_v52 }
 0x17a   :  { %6961 = vmatprep.subr.mxu1 %v8345_v0 }
 0x17b   :  { %6962 = vmatpush3.msra.mxu1 %v8345_v0 }
 0x17c   :  { %6964 = vmatmul.mubr.f32.vlgmr.msra.gmra.mxu1 %v903_v47  ;;  %6981 = vmatprep.subr.mxu1 %v1184_v20 }
 0x17d   :  { %6982 = vmatpush3.msra.mxu1 %v1184_v20  ;;  %6966 = vmatprep.mubr.f32.mxu1 %v906_v36 }
 0x17e   :  { %5995 = vmatprep.subr.mxu1 %v7970_v27 }
 0x180   :  { %6967 = vmatmul.mubr.f32.gmra.mxu1 %v909_v63 }
 0x181   :  { %6969 = vmatprep.mubr.f32.mxu1 %v912_v32 }
 0x184   :  { %6970 = vmatmul.mubr.f32.gmra.mxu1 %v915_v12 }
 0x185   :  { %6972 = vmatprep.mubr.f32.mxu1 %v918_v60 }
 0x188   :  { %6973 = vmatmul.mubr.f32.gmra.mxu1 %v921_v19 }
 0x189   :  { %6975 = vmatprep.mubr.f32.mxu1 %v924_v10 }
 0x18c   :  { %6976 = vmatmul.mubr.f32.gmra.mxu1 %v927_v58 }
 0x18d   :  { %6978 = vmatprep.mubr.f32.mxu1 %v930_v11 }
 0x190   :  { %6979 = vmatmul.mubr.f32.gmra.mxu1 %v933_v28 }
 0x1eb   :  { %v5809_v29 = vpop.f32.mrf.mxu1 }
 0x1ed   :  { %v5810_v57 = vpop.f32.mrf.mxu1  ;;  %v8507_v42 = vpop.f32.mrf.mxu0 }
 0x1ee   :  { %v5811_v62 = vadd.f32 %v5810_v57, %v5809_v29 }
 0x1ef   :  { %v8509_v36 = vpop.f32.mrf.mxu0 }
 0x1f0   :  { %v5812_v26 = vpop.f32.mrf.mxu1 }
 0x1f2   :  { %v5813_v47 = vpop.f32.mrf.mxu1 }
 0x1f3   :  { %v8511_v12 = vpop.f32.mrf.mxu0  ;;  %v5814_v53 = vadd.f32 %v5813_v47, %v5812_v26 }
 0x1f4   :  { %v5815_v20 = vpop.f32.mrf.mxu1 }
 0x1f5   :  { %v8513_v10 = vpop.f32.mrf.mxu0 }
 0x1f6   :  { %v5816_v63 = vpop.f32.mrf.mxu1 }
 0x1f7   :  { %v8515_v28 = vpop.f32.mrf.mxu0  ;;  %v5817_v38 = vadd.f32 %v5816_v63, %v5815_v20 }
 0x1f8   :  { %v5818_v32 = vpop.f32.mrf.mxu1 }
 0x1f9   :  { %v8517_v55 = vpop.f32.mrf.mxu0 }
 0x1fa   :  { %v5819_v60 = vpop.f32.mrf.mxu1 }
 0x1fb   :  { %v8519_v54 = vpop.f32.mrf.mxu0  ;;  %v5820_v35 = vadd.f32 %v5819_v60, %v5818_v32 }
 0x1fc   :  { %v5821_v19 = vpop.f32.mrf.mxu1 }
 0x1fd   :  { %v8521_v34 = vpop.f32.mrf.mxu0 }
 0x1fe   :  { %v5822_v58 = vpop.f32.mrf.mxu1 }
 0x1ff   :  { %v8523_v25 = vpop.f32.mrf.mxu0 }
 0x200   :  { %v5824_v11 = vpop.f32.mrf.mxu1 }
 0x201   :  { %v8527_v21 = vpop.f32.mrf.mxu0 }
 0x202   :  { %v5825_v27 = vpop.f32.mrf.mxu1  ;;  %10740 = vst [vmem:[#allocation32_spill] sm:$0xff] %v8527_v21 }
 0x203   :  { %v8533_v15 = vpop.f32.mrf.mxu0 }
 0x204   :  { %v5827_v2 = vpop.f32.mrf.mxu1  ;;  %10741 = vst [vmem:[#allocation33_spill] sm:$0xff] %v8533_v15 }
 0x205   :  { %v8537_v3 = vpop.f32.mrf.mxu0 }
 0x206   :  { %v5828_v7 = vpop.f32.mrf.mxu1  ;;  %10742 = vst [vmem:[#allocation34_spill] sm:$0xff] %v8537_v3 }
 0x207   :  { %v8539_v40 = vpop.f32.mrf.mxu0 }
 0x208   :  { %v5830_v49 = vpop.f32.mrf.mxu1 }
 0x209   :  { %v8545_v57 = vpop.f32.mrf.mxu0 }
 0x20a   :  { %v5831_v6 = vpop.f32.mrf.mxu1 }
 0x20c   :  { %v5833_v37 = vpop.f32.mrf.mxu1 }
 0x20e   :  { %v5834_v56 = vpop.f32.mrf.mxu1 }
 0x210   :  { %v5836_v8 = vpop.f32.mrf.mxu1 }
 0x212   :  { %v5837_v24 = vpop.f32.mrf.mxu1 }
 0x214   :  { %v8525_v22 = vpop.f32.mrf.mxu1 }
 0x216   :  { %v8529_v18 = vpop.f32.mrf.mxu1 }
 0x218   :  { %v8531_v17 = vpop.f32.mrf.mxu1 }
 0x21a   :  { %v8535_v14 = vpop.f32.mrf.mxu1 }
 0x21c   :  { %v6915_v4 = vpop.f32.mrf.mxu1 }
 0x21d   :  { %v844_v45 = vadd.f32 %v6915_v4, %v5814_v53  ;;  %v5826_v53 = vadd.f32 %v5825_v27, %v5824_v11  ;;  %v5832_v27 = vadd.f32 %v5831_v6, %v5830_v49  ;;  %v5838_v6 = vadd.f32 %v5837_v24, %v5836_v8 }
 0x21e   :  { %v838_v50 = vpop.f32.mrf.mxu1  ;;  %v5844_v24 = vadd.f32 %v8535_v14, %v8531_v17 }
 0x21f   :  { %v839_v48 = vadd.f32 %v5811_v62, %v838_v50  ;;  %v5823_v50 = vadd.f32 %v5822_v58, %v5821_v19  ;;  %v5829_v62 = vadd.f32 %v5828_v7, %v5827_v2  ;;  %v5835_v7 = vadd.f32 %v5834_v56, %v5833_v37 }
 0x220   :  { %v6918_v43 = vpop.f32.mrf.mxu1  ;;  %v5841_v56 = vadd.f32 %v8529_v18, %v8525_v22  ;;  %v1510_v18 = vld [vmem:[%s10593_s3 + $0x250] sm:$0xff]  ;;  %v5907_v19 = vadd.f32 %v8509_v36, %v8507_v42  ;;  %v5910_v58 = vadd.f32 %v8513_v10, %v8511_v12  ;;  %v1513_v42 = vld [vmem:[%s10593_s3 + $0x268] sm:$0xff]  ;;  %v5913_v12 = vadd.f32 %v8517_v55, %v8515_v28  ;;  %v1516_v28 = vld [vmem:[%s10593_s3 + $0x280] sm:$0xff] }
 0x221   :  { %7003 = vmatprep.mubr.msk.f32.mxu0 %vm1185_vm2, %v839_v48  ;;  %v854_v3 = vadd.f32 %v6918_v43, %v5820_v35 }
 0x222   :  { %v848_v21 = vpop.f32.mrf.mxu1  ;;  %7004 = vmatmul.mubr.msk.f32.vlgmr.msra.gmra.mxu0 %vm1185_vm2, %v844_v45  ;;  %v8553_v45 = vpop.f32.mrf.mxu0 }
 0x223   :  { %v849_v15 = vadd.f32 %v5817_v38, %v848_v21  ;;  %7022 = vmatpush3.msra.mxu0 %v8167_v13 }
 0x224   :  { %7023 = vmatprep.subr.mxu0 %v8181_v59  ;;  %v6921_v29 = vpop.f32.mrf.mxu1  ;;  %v8561_v26 = vpop.f32.mrf.mxu0 }
 0x225   :  { %7024 = vmatpush3.msra.mxu0 %v8181_v59  ;;  %7006 = vmatprep.mubr.msk.f32.mxu0 %vm1185_vm2, %v849_v15  ;;  %v864_v35 = vadd.f32 %v6921_v29, %v5826_v53 }
 0x226   :  { %7025 = vmatprep.subr.mxu0 %v8188_v9  ;;  %v858_v48 = vpop.f32.mrf.mxu1  ;;  %7007 = vmatmul.mubr.msk.f32.gmra.mxu0 %vm1185_vm2, %v854_v3  ;;  %v8569_v63 = vpop.f32.mrf.mxu0 }
 0x227   :  { %v859_v38 = vadd.f32 %v5823_v50, %v858_v48  ;;  %7026 = vmatpush3.msra.mxu0 %v8188_v9  ;;  %v1794_v50 = vld [vmem:[%s10595_s4 + $0x10] sm:$0xff] }
 0x228   :  { %7027 = vmatprep.subr.mxu0 %v8195_v39  ;;  %v6924_v43 = vpop.f32.mrf.mxu1  ;;  %v8584_v22 = vpop.f32.mrf.mxu0 }
 0x229   :  { %7028 = vmatpush3.msra.mxu0 %v8195_v39  ;;  %7009 = vmatprep.mubr.msk.f32.mxu0 %vm1185_vm2, %v859_v38  ;;  %v874_v15 = vadd.f32 %v6924_v43, %v5832_v27  ;;  %v5916_v38 = vadd.f32 %v8521_v34, %v8519_v54  ;;  %v1519_v34 = vld [vmem:[%s10593_s3 + $0x298] sm:$0xff]  ;;  %v10745_v54 = vld [vmem:[#allocation4_spill] sm:$0xff] }
 0x22a   :  { %7029 = vmatprep.subr.mxu0 %v8205_v44  ;;  %v868_v4 = vpop.f32.mrf.mxu1  ;;  %7010 = vmatmul.mubr.msk.f32.gmra.mxu0 %vm1185_vm2, %v864_v35  ;;  %v5932_v14 = vpop.f32.mrf.mxu0 }
 0x22b   :  { %v869_v3 = vadd.f32 %v5829_v62, %v868_v4  ;;  %7030 = vmatpush3.msra.mxu0 %v8205_v44  ;;  %v10743_v62 = vld [vmem:[#allocation32_spill] sm:$0xff] }
 0x22c   :  { %7031 = vmatprep.subr.mxu0 %v8229_v61  ;;  %v6927_v21 = vpop.f32.mrf.mxu1  ;;  %v5933_v60 = vpop.f32.mrf.mxu0  ;;  %v5919_v27 = vadd.f32 %v10743_v62, %v8523_v25  ;;  %v1522_v25 = vld [vmem:[%s10593_s3 + $0x2b0] sm:$0xff] }
 0x22d   :  { %7032 = vmatpush3.msra.mxu0 %v8229_v61  ;;  %7012 = vmatprep.mubr.msk.f32.mxu0 %vm1185_vm2, %v869_v3  ;;  %v884_v47 = vadd.f32 %v6927_v21, %v5838_v6  ;;  %v10744_v3 = vld [vmem:[#allocation3_spill] sm:$0xff]  ;;  %v10746_v21 = vld [vmem:[#allocation33_spill] sm:$0xff] }
 0x22e   :  { %7033 = vmatprep.subr.mxu0 %v8241_v23  ;;  %v878_v49 = vpop.f32.mrf.mxu1  ;;  %7013 = vmatmul.mubr.msk.f32.gmra.mxu0 %vm1185_vm2, %v874_v15  ;;  %v5935_v36 = vpop.f32.mrf.mxu0 }
 0x22f   :  { %v879_v2 = vadd.f32 %v5835_v7, %v878_v49  ;;  %7034 = vmatpush3.msra.mxu0 %v8241_v23  ;;  %v10747_v7 = vld [vmem:[#allocation34_spill] sm:$0xff] }
 0x230   :  { %7035 = vmatprep.subr.mxu0 %v8253_v5  ;;  %v6930_v20 = vpop.f32.mrf.mxu1  ;;  %v5936_v55 = vpop.f32.mrf.mxu0  ;;  %v5922_v6 = vadd.f32 %v10747_v7, %v10746_v21  ;;  %v10760_v21 = vld [vmem:[#allocation17_spill] sm:$0xff]  ;;  %v10761_v7 = vld [vmem:[#allocation18_spill] sm:$0xff] }
 0x231   :  { %7036 = vmatpush3.msra.mxu0 %v8253_v5  ;;  %7015 = vmatprep.mubr.msk.f32.mxu0 %vm1185_vm2, %v879_v2  ;;  %v894_v32 = vadd.f32 %v6930_v20, %v5844_v24  ;;  %v10748_v2 = vld [vmem:[#allocation5_spill] sm:$0xff]  ;;  %v5928_v24 = vadd.f32 %v8561_v26, %v8553_v45 }
 0x232   :  { %7037 = vmatprep.subr.mxu0 %v8265_v16  ;;  %v888_v8 = vpop.f32.mrf.mxu1  ;;  %7016 = vmatmul.mubr.msk.f32.gmra.mxu0 %vm1185_vm2, %v884_v47  ;;  %v5938_v20 = vpop.f32.mrf.mxu0  ;;  %v10752_v45 = vld [vmem:[#allocation9_spill] sm:$0xff] }
 0x233   :  { %v889_v37 = vadd.f32 %v5841_v56, %v888_v8  ;;  %7038 = vmatpush3.msra.mxu0 %v8265_v16  ;;  %v5925_v56 = vadd.f32 %v8545_v57, %v8539_v40  ;;  %v1528_v57 = vld [vmem:[%s10593_s3 + $0x2e0] sm:$0xff] }
 0x234   :  { %7039 = vmatprep.subr.mxu0 %v8277_v51 }
 0x235   :  { %7040 = vmatpush3.msra.mxu0 %v8277_v51  ;;  %7018 = vmatprep.mubr.msk.f32.mxu0 %vm1185_vm2, %v889_v37  ;;  %v10749_v37 = vld [vmem:[#allocation6_spill] sm:$0xff] }
 0x236   :  { %7041 = vmatprep.subr.mxu0 %v8289_v1  ;;  %7019 = vmatmul.mubr.msk.f32.gmra.mxu0 %vm1185_vm2, %v894_v32  ;;  %v1525_v32 = vld [vmem:[%s10593_s3 + $0x2c8] sm:$0xff] }
 0x237   :  { %7042 = vmatpush3.msra.mxu0 %v8289_v1  ;;  %7053 = vmatprep.mubr.f32.mxu0 %v1510_v18  ;;  %v10750_v18 = vld [vmem:[#allocation7_spill] sm:$0xff] }
 0x238   :  { %7043 = vmatprep.subr.mxu0 %v8301_v41 }
 0x239   :  { %7044 = vmatpush3.msra.mxu0 %v8301_v41 }
 0x23a   :  { %7045 = vmatprep.subr.mxu0 %v8313_v46 }
 0x23b   :  { %7046 = vmatpush3.msra.mxu0 %v8313_v46 }
 0x23c   :  { %v6965_v17 = vpop.f32.mrf.mxu1  ;;  %7047 = vmatprep.subr.mxu0 %v8325_v31 }
 0x23d   :  { %7048 = vmatpush3.msra.mxu0 %v8325_v31  ;;  %v1131_v53 = vadd.f32 %v6965_v17, %v5910_v58  ;;  %v10751_v58 = vld [vmem:[#allocation8_spill] sm:$0xff] }
 0x23e   :  { %v1125_v11 = vpop.f32.mrf.mxu1  ;;  %7049 = vmatprep.subr.mxu0 %v8335_v52 }
 0x23f   :  { %v1126_v29 = vadd.f32 %v5907_v19, %v1125_v11  ;;  %7050 = vmatpush3.msra.mxu0 %v8335_v52  ;;  %v5934_v19 = vadd.f32 %v5933_v60, %v5932_v14  ;;  %v5939_v11 = vpop.f32.mrf.mxu0  ;;  %v1531_v14 = vld [vmem:[%s10593_s3 + $0x2f8] sm:$0xff]  ;;  %v10754_v60 = vld [vmem:[#allocation11_spill] sm:$0xff] }
 0x240   :  { %v6968_v48 = vpop.f32.mrf.mxu1  ;;  %7051 = vmatprep.subr.mxu0 %v8345_v0 }
 0x241   :  { %6983 = vmatprep.mubr.msk.f32.mxu1 %vm1185_vm2, %v1126_v29  ;;  %7052 = vmatpush3.msra.mxu0 %v8345_v0  ;;  %v1141_v4 = vadd.f32 %v6968_v48, %v5916_v38  ;;  %v5931_v29 = vadd.f32 %v8584_v22, %v8569_v63  ;;  %v5937_v48 = vadd.f32 %v5936_v55, %v5935_v36  ;;  %v1534_v22 = vld [vmem:[%s10593_s3 + $0x310] sm:$0xff]  ;;  %v1537_v36 = vld [vmem:[%s10593_s3 + $0x328] sm:$0xff] }
 0x242   :  { %v1135_v10 = vpop.f32.mrf.mxu1  ;;  %6984 = vmatmul.mubr.msk.f32.vlgmr.msra.gmra.mxu1 %vm1185_vm2, %v1131_v53  ;;  %7071 = vmatprep.subr.mxu0 %v1794_v50  ;;  %v10753_v53 = vld [vmem:[#allocation10_spill] sm:$0xff]  ;;  %v5940_v63 = vadd.f32 %v5939_v11, %v5938_v20  ;;  %v10758_v55 = vld [vmem:[#allocation15_spill] sm:$0xff]  ;;  %v10764_v20 = vld [vmem:[#allocation21_spill] sm:$0xff] }
 0x243   :  { %v1136_v35 = vadd.f32 %v5913_v12, %v1135_v10  ;;  %5996 = vmatpush3.msra.mxu1 %v7974_v30  ;;  %7054 = vmatmul.mubr.f32.vlgmr.msra.gmra.mxu0 %v1513_v42  ;;  %v10755_v10 = vld [vmem:[#allocation12_spill] sm:$0xff]  ;;  %v10773_v11 = vld [vmem:[#allocation30_spill] sm:$0xff] }
 0x244   :  { %5997 = vmatprep.subr.mxu1 %v7979_v33  ;;  %7072 = vmatpush3.msra.mxu0 %v1794_v50  ;;  %v6971_v43 = vpop.f32.mrf.mxu1 }
 0x245   :  { %5998 = vmatpush3.msra.mxu1 %v10744_v3  ;;  %7091 = vmatprep.subr.mxu0 %v8167_v13  ;;  %v1151_v8 = vadd.f32 %v6971_v43, %v5922_v6  ;;  %v1509_v6 = vld [vmem:[%s10593_s3 + $0x248] sm:$0xff] }
 0x246   :  { %6986 = vmatprep.mubr.msk.f32.mxu1 %vm1185_vm2, %v1136_v35  ;;  %5999 = vmatprep.subr.mxu1 %v10745_v54  ;;  %v1145_v15 = vpop.f32.mrf.mxu1  ;;  %v10756_v35 = vld [vmem:[#allocation13_spill] sm:$0xff] }
 0x247   :  { %v1146_v49 = vadd.f32 %v5919_v27, %v1145_v15  ;;  %6987 = vmatmul.mubr.msk.f32.gmra.mxu1 %vm1185_vm2, %v1141_v4  ;;  %7056 = vmatprep.mubr.f32.mxu0 %v1516_v28  ;;  %v10757_v28 = vld [vmem:[#allocation14_spill] sm:$0xff]  ;;  %v10759_v4 = vld [vmem:[#allocation16_spill] sm:$0xff] }
 0x248   :  { %6000 = vmatpush3.msra.mxu1 %v10748_v2  ;;  %v6974_v47 = vpop.f32.mrf.mxu1  ;;  %7057 = vmatmul.mubr.f32.gmra.mxu0 %v1519_v34  ;;  %v1540_v15 = vld [vmem:[%s10593_s3 + $0x340] sm:$0xff] }
 0x249   :  { %6001 = vmatprep.subr.mxu1 %v10749_v37  ;;  %6989 = vmatprep.mubr.msk.f32.mxu1 %vm1185_vm2, %v1146_v49  ;;  %v1161_v50 = vadd.f32 %v6974_v47, %v5928_v24  ;;  %v10762_v49 = vld [vmem:[#allocation19_spill] sm:$0xff]  ;;  %v10763_v47 = vld [vmem:[#allocation20_spill] sm:$0xff] }
 0x24a   :  { %6002 = vmatpush3.msra.mxu1 %v10750_v18  ;;  %v1155_v17 = vpop.f32.mrf.mxu1  ;;  %7059 = vmatprep.mubr.f32.mxu0 %v1522_v25  ;;  %v1543_v25 = vld [vmem:[%s10593_s3 + $0x358] sm:$0xff]  ;;  %v10766_v24 = vld [vmem:[#allocation23_spill] sm:$0xff] }
 0x24b   :  { %6003 = vmatprep.subr.mxu1 %v10751_v58  ;;  %v1156_v40 = vadd.f32 %v5925_v56, %v1155_v17  ;;  %6990 = vmatmul.mubr.msk.f32.gmra.mxu1 %vm1185_vm2, %v1151_v8  ;;  %v10765_v56 = vld [vmem:[#allocation22_spill] sm:$0xff]  ;;  %v10767_v8 = vld [vmem:[#allocation24_spill] sm:$0xff] }
 0x24c   :  { %6004 = vmatpush3.msra.mxu1 %v10752_v45  ;;  %v6977_v26 = vpop.f32.mrf.mxu1  ;;  %7060 = vmatmul.mubr.f32.gmra.mxu0 %v1525_v32  ;;  %v10768_v32 = vld [vmem:[#allocation25_spill] sm:$0xff]  ;;  %v10769_v17 = vld [vmem:[#allocation26_spill] sm:$0xff] }
 0x24d   :  { %6005 = vmatprep.subr.mxu1 %v10753_v53  ;;  %6992 = vmatprep.mubr.msk.f32.mxu1 %vm1185_vm2, %v1156_v40  ;;  %v1171_v12 = vadd.f32 %v6977_v26, %v5934_v19  ;;  %v10770_v19 = vld [vmem:[#allocation27_spill] sm:$0xff]  ;;  %v10771_v40 = vld [vmem:[#allocation28_spill] sm:$0xff]  ;;  %v1508_v26 = vld [vmem:[%s10593_s3 + $0x240] sm:$0xff] }
 0x24e   :  { %6006 = vmatpush3.msra.mxu1 %v10754_v60  ;;  %v1165_v42 = vpop.f32.mrf.mxu1  ;;  %7062 = vmatprep.mubr.f32.mxu0 %v1528_v57  ;;  %v10772_v57 = vld [vmem:[#allocation29_spill] sm:$0xff] }
 0x24f   :  { %6007 = vmatprep.subr.mxu1 %v10755_v10  ;;  %v1166_v38 = vadd.f32 %v5931_v29, %v1165_v42  ;;  %6993 = vmatmul.mubr.msk.f32.gmra.mxu1 %vm1185_vm2, %v1161_v50  ;;  %v1512_v29 = vld [vmem:[%s10593_s3 + $0x260] sm:$0xff]  ;;  %v10774_v50 = vld [vmem:[#allocation31_spill] sm:$0xff]  ;;  %v1515_v42 = vld [vmem:[%s10593_s3 + $0x278] sm:$0xff] }
 0x250   :  { %6008 = vmatpush3.msra.mxu1 %v10756_v35  ;;  %v6980_v43 = vpop.f32.mrf.mxu1  ;;  %7063 = vmatmul.mubr.f32.gmra.mxu0 %v1531_v14  ;;  %v10775_v14 = vld [vmem:[#allocation2_spill] sm:$0xff] }
 0x251   :  { %6009 = vmatprep.subr.mxu1 %v10757_v28  ;;  %6995 = vmatprep.mubr.msk.f32.mxu1 %vm1185_vm2, %v1166_v38  ;;  %v1181_v27 = vadd.f32 %v6980_v43, %v5940_v63  ;;  %v1518_v38 = vld [vmem:[%s10593_s3 + $0x290] sm:$0xff]  ;;  %v1517_v63 = vld [vmem:[%s10593_s3 + $0x288] sm:$0xff]  ;;  %v1520_v43 = vld [vmem:[%s10593_s3 + $0x2a0] sm:$0xff] }
 0x252   :  { %6010 = vmatpush3.msra.mxu1 %v10758_v55  ;;  %v1175_v62 = vpop.f32.mrf.mxu1  ;;  %7065 = vmatprep.mubr.f32.mxu0 %v1534_v22  ;;  %v1521_v22 = vld [vmem:[%s10593_s3 + $0x2a8] sm:$0xff] }
 0x253   :  { %6011 = vmatprep.subr.mxu1 %v10759_v4  ;;  %v1176_v34 = vadd.f32 %v5937_v48, %v1175_v62  ;;  %6996 = vmatmul.mubr.msk.f32.gmra.mxu1 %vm1185_vm2, %v1171_v12  ;;  %v1511_v48 = vld [vmem:[%s10593_s3 + $0x258] sm:$0xff]  ;;  %v1514_v12 = vld [vmem:[%s10593_s3 + $0x270] sm:$0xff] }
 0x254   :  { %6012 = vmatpush3.msra.mxu1 %v10760_v21  ;;  %7066 = vmatmul.mubr.f32.gmra.mxu0 %v1537_v36  ;;  %v1524_v36 = vld [vmem:[%s10593_s3 + $0x2c0] sm:$0xff]  ;;  %v1523_v62 = vld [vmem:[%s10593_s3 + $0x2b8] sm:$0xff] }
 0x255   :  { %6013 = vmatprep.subr.mxu1 %v10761_v7  ;;  %6998 = vmatprep.mubr.msk.f32.mxu1 %vm1185_vm2, %v1176_v34  ;;  %v1526_v34 = vld [vmem:[%s10593_s3 + $0x2d0] sm:$0xff] }
 0x256   :  { %6014 = vmatpush3.msra.mxu1 %v10762_v49  ;;  %7068 = vmatprep.mubr.f32.mxu0 %v1540_v15  ;;  %v1530_v15 = vld [vmem:[%s10593_s3 + $0x2f0] sm:$0xff] }
 0x257   :  { %6015 = vmatprep.subr.mxu1 %v10763_v47  ;;  %6999 = vmatmul.mubr.msk.f32.gmra.mxu1 %vm1185_vm2, %v1181_v27  ;;  %v1527_v27 = vld [vmem:[%s10593_s3 + $0x2d8] sm:$0xff] }
 0x258   :  { %6016 = vmatpush3.msra.mxu1 %v10764_v20  ;;  %1608 = vmatprep.mubr.f32.mxu1 %v1509_v6  ;;  %v1529_v6 = vld [vmem:[%s10593_s3 + $0x2e8] sm:$0xff] }
 0x259   :  { %6017 = vmatprep.subr.mxu1 %v10765_v56  ;;  %7069 = vmatmul.mubr.f32.gmra.mxu0 %v1543_v25  ;;  %v1533_v25 = vld [vmem:[%s10593_s3 + $0x308] sm:$0xff] }
 0x25a   :  { %6018 = vmatpush3.msra.mxu1 %v10766_v24 }
 0x25b   :  { %6019 = vmatprep.subr.mxu1 %v10767_v8 }
 0x25c   :  { %6020 = vmatpush3.msra.mxu1 %v10768_v32 }
 0x25d   :  { %6021 = vmatprep.subr.mxu1 %v10769_v17 }
 0x25e   :  { %6022 = vmatpush3.msra.mxu1 %v10770_v19 }
 0x25f   :  { %6023 = vmatprep.subr.mxu1 %v10771_v40 }
 0x260   :  { %6024 = vmatpush3.msra.mxu1 %v10772_v57 }
 0x261   :  { %6025 = vmatprep.subr.mxu1 %v10773_v11 }
 0x262   :  { %6026 = vmatpush3.msra.mxu1 %v10774_v50 }
 0x263   :  { %1609 = vmatmul.mubr.f32.vlgmr.msra.gmra.mxu1 %v1508_v26  ;;  %6104 = vmatprep.subr.mxu1 %v10775_v14  ;;  %v1532_v26 = vld [vmem:[%s10593_s3 + $0x300] sm:$0xff] }
 0x264   :  { %6105 = vmatpush3.msra.mxu1 %v7974_v30  ;;  %1613 = vmatprep.mubr.f32.mxu1 %v1512_v29  ;;  %v1536_v29 = vld [vmem:[%s10593_s3 + $0x320] sm:$0xff] }
 0x265   :  { %6106 = vmatprep.subr.mxu1 %v7979_v33 }
 0x266   :  { %6107 = vmatpush3.msra.mxu1 %v10744_v3 }
 0x267   :  { %1614 = vmatmul.mubr.f32.gmra.mxu1 %v1511_v48  ;;  %6108 = vmatprep.subr.mxu1 %v10745_v54  ;;  %v1535_v48 = vld [vmem:[%s10593_s3 + $0x318] sm:$0xff] }
 0x268   :  { %6109 = vmatpush3.msra.mxu1 %v10748_v2  ;;  %1618 = vmatprep.mubr.f32.mxu1 %v1515_v42  ;;  %v1539_v42 = vld [vmem:[%s10593_s3 + $0x338] sm:$0xff] }
 0x269   :  { %6110 = vmatprep.subr.mxu1 %v10749_v37 }
 0x26a   :  { %6111 = vmatpush3.msra.mxu1 %v10750_v18 }
 0x26b   :  { %1619 = vmatmul.mubr.f32.gmra.mxu1 %v1514_v12  ;;  %6112 = vmatprep.subr.mxu1 %v10751_v58  ;;  %v1538_v12 = vld [vmem:[%s10593_s3 + $0x330] sm:$0xff] }
 0x26c   :  { %6113 = vmatpush3.msra.mxu1 %v10752_v45  ;;  %1623 = vmatprep.mubr.f32.mxu1 %v1518_v38  ;;  %v1542_v38 = vld [vmem:[%s10593_s3 + $0x350] sm:$0xff] }
 0x26d   :  { %6114 = vmatprep.subr.mxu1 %v10753_v53 }
 0x26e   :  { %6115 = vmatpush3.msra.mxu1 %v10754_v60 }
 0x26f   :  { %1624 = vmatmul.mubr.f32.gmra.mxu1 %v1517_v63  ;;  %6116 = vmatprep.subr.mxu1 %v10755_v10  ;;  %v1541_v63 = vld [vmem:[%s10593_s3 + $0x348] sm:$0xff] }
 0x270   :  { %6117 = vmatpush3.msra.mxu1 %v10756_v35  ;;  %1628 = vmatprep.mubr.f32.mxu1 %v1521_v22  ;;  %v1969_v22 = vld [vmem:[%s10593_s3 + $0x368] sm:$0xff] }
 0x271   :  { %6118 = vmatprep.subr.mxu1 %v10757_v28 }
 0x272   :  { %6119 = vmatpush3.msra.mxu1 %v10758_v55 }
 0x273   :  { %1629 = vmatmul.mubr.f32.gmra.mxu1 %v1520_v43  ;;  %6120 = vmatprep.subr.mxu1 %v10759_v4  ;;  %v1968_v43 = vld [vmem:[%s10593_s3 + $0x360] sm:$0xff] }
 0x274   :  { %6121 = vmatpush3.msra.mxu1 %v10760_v21  ;;  %1633 = vmatprep.mubr.f32.mxu1 %v1524_v36  ;;  %v1972_v36 = vld [vmem:[%s10593_s3 + $0x380] sm:$0xff] }
 0x275   :  { %6122 = vmatprep.subr.mxu1 %v10761_v7 }
 0x276   :  { %6123 = vmatpush3.msra.mxu1 %v10762_v49 }
 0x277   :  { %1634 = vmatmul.mubr.f32.gmra.mxu1 %v1523_v62  ;;  %6124 = vmatprep.subr.mxu1 %v10763_v47  ;;  %v1971_v62 = vld [vmem:[%s10593_s3 + $0x378] sm:$0xff] }
 0x278   :  { %6125 = vmatpush3.msra.mxu1 %v10764_v20  ;;  %1638 = vmatprep.mubr.f32.mxu1 %v1527_v27  ;;  %v1975_v27 = vld [vmem:[%s10593_s3 + $0x398] sm:$0xff] }
 0x279   :  { %6126 = vmatprep.subr.mxu1 %v10765_v56 }
 0x27a   :  { %6127 = vmatpush3.msra.mxu1 %v10766_v24 }
 0x27b   :  { %1639 = vmatmul.mubr.f32.gmra.mxu1 %v1526_v34  ;;  %6128 = vmatprep.subr.mxu1 %v10767_v8  ;;  %v1974_v34 = vld [vmem:[%s10593_s3 + $0x390] sm:$0xff] }
 0x27c   :  { %6129 = vmatpush3.msra.mxu1 %v10768_v32  ;;  %1643 = vmatprep.mubr.f32.mxu1 %v1530_v15  ;;  %v1978_v15 = vld [vmem:[%s10593_s3 + $0x3b0] sm:$0xff] }
 0x27d   :  { %6130 = vmatprep.subr.mxu1 %v10769_v17 }
 0x27e   :  { %6131 = vmatpush3.msra.mxu1 %v10770_v19 }
 0x27f   :  { %1644 = vmatmul.mubr.f32.gmra.mxu1 %v1529_v6  ;;  %6132 = vmatprep.subr.mxu1 %v10771_v40  ;;  %v1977_v6 = vld [vmem:[%s10593_s3 + $0x3a8] sm:$0xff] }
 0x280   :  { %6133 = vmatpush3.msra.mxu1 %v10772_v57  ;;  %1648 = vmatprep.mubr.f32.mxu1 %v1533_v25  ;;  %v1981_v25 = vld [vmem:[%s10593_s3 + $0x3c8] sm:$0xff] }
 0x281   :  { %6134 = vmatprep.subr.mxu1 %v10773_v11 }
 0x282   :  { %6135 = vmatpush3.msra.mxu1 %v10774_v50 }
 0x283   :  { %1649 = vmatmul.mubr.f32.gmra.mxu1 %v1532_v26  ;;  %6213 = vmatprep.subr.mxu1 %v10775_v14  ;;  %v1980_v26 = vld [vmem:[%s10593_s3 + $0x3c0] sm:$0xff] }
 0x284   :  { %1653 = vmatprep.mubr.f32.mxu1 %v1536_v29  ;;  %v1984_v29 = vld [vmem:[%s10593_s3 + $0x3e0] sm:$0xff] }
 0x287   :  { %1654 = vmatmul.mubr.f32.gmra.mxu1 %v1535_v48  ;;  %v1983_v48 = vld [vmem:[%s10593_s3 + $0x3d8] sm:$0xff] }
 0x288   :  { %1658 = vmatprep.mubr.f32.mxu1 %v1539_v42  ;;  %v1987_v42 = vld [vmem:[%s10593_s3 + $0x3f8] sm:$0xff] }
 0x28b   :  { %1659 = vmatmul.mubr.f32.gmra.mxu1 %v1538_v12  ;;  %v1986_v12 = vld [vmem:[%s10593_s3 + $0x3f0] sm:$0xff] }
 0x28c   :  { %1663 = vmatprep.mubr.f32.mxu1 %v1542_v38  ;;  %v1990_v38 = vld [vmem:[%s10593_s3 + $0x410] sm:$0xff] }
 0x28f   :  { %1664 = vmatmul.mubr.f32.gmra.mxu1 %v1541_v63  ;;  %v1989_v63 = vld [vmem:[%s10593_s3 + $0x408] sm:$0xff] }
 0x290   :  { %2068 = vmatprep.mubr.f32.mxu1 %v1969_v22  ;;  %v1993_v22 = vld [vmem:[%s10593_s3 + $0x428] sm:$0xff] }
 0x293   :  { %2069 = vmatmul.mubr.f32.vlgmr.msra.gmra.mxu1 %v1968_v43  ;;  %v1992_v43 = vld [vmem:[%s10593_s3 + $0x420] sm:$0xff] }
 0x294   :  { %6214 = vmatpush3.msra.mxu1 %v7974_v30  ;;  %2073 = vmatprep.mubr.f32.mxu1 %v1972_v36  ;;  %v2714_v36 = vld [vmem:[%s10595_s4 + $0x20] sm:$0xff] }
 0x295   :  { %6215 = vmatprep.subr.mxu1 %v7979_v33 }
 0x296   :  { %6216 = vmatpush3.msra.mxu1 %v10744_v3 }
 0x297   :  { %6217 = vmatprep.subr.mxu1 %v10745_v54  ;;  %2074 = vmatmul.mubr.f32.gmra.mxu1 %v1971_v62  ;;  %v1996_v62 = vld [vmem:[%s10593_s3 + $0x440] sm:$0xff] }
 0x298   :  { %6218 = vmatpush3.msra.mxu1 %v10748_v2  ;;  %2078 = vmatprep.mubr.f32.mxu1 %v1975_v27  ;;  %v1995_v27 = vld [vmem:[%s10593_s3 + $0x438] sm:$0xff] }
 0x299   :  { %6219 = vmatprep.subr.mxu1 %v10749_v37 }
 0x29a   :  { %6220 = vmatpush3.msra.mxu1 %v10750_v18 }
 0x29b   :  { %6221 = vmatprep.subr.mxu1 %v10751_v58  ;;  %2079 = vmatmul.mubr.f32.gmra.mxu1 %v1974_v34  ;;  %v1999_v34 = vld [vmem:[%s10593_s3 + $0x458] sm:$0xff] }
 0x29c   :  { %6222 = vmatpush3.msra.mxu1 %v10752_v45  ;;  %2083 = vmatprep.mubr.f32.mxu1 %v1978_v15  ;;  %v1998_v15 = vld [vmem:[%s10593_s3 + $0x450] sm:$0xff] }
 0x29d   :  { %6223 = vmatprep.subr.mxu1 %v10753_v53 }
 0x29e   :  { %6224 = vmatpush3.msra.mxu1 %v10754_v60 }
 0x29f   :  { %6225 = vmatprep.subr.mxu1 %v10755_v10  ;;  %2084 = vmatmul.mubr.f32.gmra.mxu1 %v1977_v6  ;;  %v2002_v6 = vld [vmem:[%s10593_s3 + $0x470] sm:$0xff] }
 0x2a0   :  { %6226 = vmatpush3.msra.mxu1 %v10756_v35  ;;  %2088 = vmatprep.mubr.f32.mxu1 %v1981_v25  ;;  %v2001_v25 = vld [vmem:[%s10593_s3 + $0x468] sm:$0xff] }
 0x2a1   :  { %6227 = vmatprep.subr.mxu1 %v10757_v28 }
 0x2a2   :  { %6228 = vmatpush3.msra.mxu1 %v10758_v55 }
 0x2a3   :  { %6229 = vmatprep.subr.mxu1 %v10759_v4  ;;  %2089 = vmatmul.mubr.f32.gmra.mxu1 %v1980_v26  ;;  %v2429_v26 = vld [vmem:[%s10593_s3 + $0x488] sm:$0xff] }
 0x2a4   :  { %6230 = vmatpush3.msra.mxu1 %v10760_v21  ;;  %2093 = vmatprep.mubr.f32.mxu1 %v1984_v29  ;;  %v2428_v29 = vld [vmem:[%s10593_s3 + $0x480] sm:$0xff] }
 0x2a5   :  { %6231 = vmatprep.subr.mxu1 %v10761_v7 }
 0x2a6   :  { %6232 = vmatpush3.msra.mxu1 %v10762_v49 }
 0x2a7   :  { %6233 = vmatprep.subr.mxu1 %v10763_v47  ;;  %2094 = vmatmul.mubr.f32.gmra.mxu1 %v1983_v48 }
 0x2a8   :  { %6234 = vmatpush3.msra.mxu1 %v10764_v20  ;;  %2098 = vmatprep.mubr.f32.mxu1 %v1987_v42 }
 0x2a9   :  { %6235 = vmatprep.subr.mxu1 %v10765_v56 }
 0x2aa   :  { %6236 = vmatpush3.msra.mxu1 %v10766_v24 }
 0x2ab   :  { %6237 = vmatprep.subr.mxu1 %v10767_v8  ;;  %2099 = vmatmul.mubr.f32.gmra.mxu1 %v1986_v12 }
 0x2ac   :  { %6238 = vmatpush3.msra.mxu1 %v10768_v32  ;;  %2103 = vmatprep.mubr.f32.mxu1 %v1990_v38 }
 0x2ad   :  { %6239 = vmatprep.subr.mxu1 %v10769_v17 }
 0x2ae   :  { %6240 = vmatpush3.msra.mxu1 %v10770_v19 }
 0x2af   :  { %6241 = vmatprep.subr.mxu1 %v10771_v40  ;;  %2104 = vmatmul.mubr.f32.gmra.mxu1 %v1989_v63 }
 0x2b0   :  { %6242 = vmatpush3.msra.mxu1 %v10772_v57  ;;  %2108 = vmatprep.mubr.f32.mxu1 %v1993_v22 }
 0x2b1   :  { %6243 = vmatprep.subr.mxu1 %v10773_v11 }
 0x2b2   :  { %6244 = vmatpush3.msra.mxu1 %v10774_v50 }
 0x2b3   :  { %2109 = vmatmul.mubr.f32.gmra.mxu1 %v1992_v43  ;;  %7211 = vmatprep.subr.mxu1 %v2714_v36 }
 0x2b4   :  { %2113 = vmatprep.mubr.f32.mxu1 %v1996_v62 }
 0x2b7   :  { %2114 = vmatmul.mubr.f32.gmra.mxu1 %v1995_v27 }
 0x2b8   :  { %2118 = vmatprep.mubr.f32.mxu1 %v1999_v34 }
 0x2bb   :  { %2119 = vmatmul.mubr.f32.gmra.mxu1 %v1998_v15 }
 0x2bc   :  { %2123 = vmatprep.mubr.f32.mxu1 %v2002_v6 }
 0x2bf   :  { %2124 = vmatmul.mubr.f32.gmra.mxu1 %v2001_v25 }
 0x2c0   :  { %2528 = vmatprep.mubr.f32.mxu1 %v2429_v26 }
 0x2c3   :  { %2529 = vmatmul.mubr.f32.vlgmr.msra.gmra.mxu1 %v2428_v29 }
 0x2c4   :  { %7212 = vmatpush3.msra.mxu1 %v2714_v36 }
 0x2c5   :  { %7231 = vmatprep.subr.mxu1 %v8167_v13 }
 0x2e2   :  { %v7005_v48 = vpop.f32.mrf.mxu0 }
 0x2e4   :  { %v8917_v42 = vpop.f32.mrf.mxu0 }
 0x2e5   :  { %10776 = vst [vmem:[#allocation32_spill] sm:$0xff] %v8917_v42 }
 0x2e6   :  { %v7008_v12 = vpop.f32.mrf.mxu0 }
 0x2e8   :  { %v8919_v38 = vpop.f32.mrf.mxu0 }
 0x2e9   :  { %10777 = vst [vmem:[#allocation3_spill] sm:$0xff] %v8919_v38 }
 0x2ea   :  { %v7011_v63 = vpop.f32.mrf.mxu0 }
 0x2ec   :  { %v8921_v43 = vpop.f32.mrf.mxu0 }
 0x2ed   :  { %10778 = vst [vmem:[#allocation4_spill] sm:$0xff] %v8921_v43 }
 0x2ee   :  { %v7014_v34 = vpop.f32.mrf.mxu0 }
 0x2f0   :  { %v8931_v25 = vpop.f32.mrf.mxu0 }
 0x2f1   :  { %10781 = vst [vmem:[#allocation5_spill] sm:$0xff] %v8931_v25 }
 0x2f2   :  { %v7017_v42 = vpop.f32.mrf.mxu0 }
 0x302   :  { %v6985_v22 = vpop.f32.mrf.mxu1 }
 0x303   :  { %v8923_v62 = vadd.f32 %v7005_v48, %v6985_v22  ;;  %v8941_v22 = vpop.f32.mrf.mxu0 }
 0x304   :  { %v8925_v27 = vpop.f32.mrf.mxu1  ;;  %10784 = vst [vmem:[#allocation2_spill] sm:$0xff] %v8941_v22 }
 0x305   :  { %10779 = vst [vmem:[#allocation33_spill] sm:$0xff] %v8925_v27 }
 0x307   :  { %v6988_v15 = vpop.f32.mrf.mxu1 }
 0x308   :  { %v8927_v6 = vadd.f32 %v7008_v12, %v6988_v15 }
 0x309   :  { %v8929_v36 = vpop.f32.mrf.mxu1 }
 0x30a   :  { %10780 = vst [vmem:[#allocation34_spill] sm:$0xff] %v8929_v36  ;;  %v7020_v36 = vpop.f32.mrf.mxu0 }
 0x30b   :  { %v6991_v26 = vpop.f32.mrf.mxu1 }
 0x30c   :  { %v8933_v29 = vadd.f32 %v7011_v63, %v6991_v26  ;;  %v8949_v63 = vpop.f32.mrf.mxu0 }
 0x30d   :  { %v8935_v38 = vpop.f32.mrf.mxu1  ;;  %10786 = vst [vmem:[#allocation36_spill] sm:$0xff] %v8949_v63 }
 0x30e   :  { %10782 = vst [vmem:[#allocation6_spill] sm:$0xff] %v8935_v38  ;;  %v7055_v38 = vpop.f32.mrf.mxu0 }
 0x30f   :  { %v6994_v50 = vpop.f32.mrf.mxu1 }
 0x310   :  { %v8937_v43 = vadd.f32 %v7014_v34, %v6994_v50  ;;  %v1735_v57 = vpop.f32.mrf.mxu0 }
 0x311   :  { %v8939_v48 = vpop.f32.mrf.mxu1 }
 0x312   :  { %10783 = vst [vmem:[#allocation7_spill] sm:$0xff] %v8939_v48 }
 0x313   :  { %v6997_v27 = vpop.f32.mrf.mxu1 }
 0x314   :  { %v8943_v12 = vadd.f32 %v7017_v42, %v6997_v27  ;;  %v7058_v42 = vpop.f32.mrf.mxu0 }
 0x315   :  { %v8945_v15 = vpop.f32.mrf.mxu1 }
 0x316   :  { %10785 = vst [vmem:[#allocation35_spill] sm:$0xff] %v8945_v15 }
 0x317   :  { %v7000_v25 = vpop.f32.mrf.mxu1 }
 0x318   :  { %v8947_v11 = vadd.f32 %v7020_v36, %v7000_v25  ;;  %v1745_v25 = vpop.f32.mrf.mxu0 }
 0x319   :  { %v8951_v26 = vpop.f32.mrf.mxu1 }
 0x31a   :  { %10787 = vst [vmem:[#allocation37_spill] sm:$0xff] %v8951_v26 }
 0x323   :  { %v6027_v50 = vpop.f32.mrf.mxu1 }
 0x325   :  { %v6028_v34 = vpop.f32.mrf.mxu1 }
 0x326   :  { %v6029_v48 = vadd.f32 %v6028_v34, %v6027_v50 }
 0x327   :  { %v6030_v40 = vpop.f32.mrf.mxu1 }
 0x328   :  { %v1736_v22 = vadd.f32 %v6029_v48, %v1735_v57  ;;  %v7061_v48 = vpop.f32.mrf.mxu0 }
 0x329   :  { %v6031_v19 = vpop.f32.mrf.mxu1 }
 0x32a   :  { %v6032_v27 = vadd.f32 %v6031_v19, %v6030_v40  ;;  %7073 = vmatprep.mubr.msk.f32.mxu0 %vm1185_vm2, %v1736_v22  ;;  %v1755_v22 = vpop.f32.mrf.mxu0 }
 0x32b   :  { %v6033_v15 = vpop.f32.mrf.mxu1 }
 0x32c   :  { %v1741_v17 = vadd.f32 %v7055_v38, %v6032_v27 }
 0x32d   :  { %v6034_v36 = vpop.f32.mrf.mxu1 }
 0x32e   :  { %v6035_v32 = vadd.f32 %v6034_v36, %v6033_v15  ;;  %7074 = vmatmul.mubr.msk.f32.vlgmr.msra.gmra.mxu0 %vm1185_vm2, %v1741_v17 }
 0x32f   :  { %7092 = vmatpush3.msra.mxu0 %v8167_v13  ;;  %v6036_v63 = vpop.f32.mrf.mxu1 }
 0x330   :  { %7093 = vmatprep.subr.mxu0 %v8181_v59  ;;  %v1746_v50 = vadd.f32 %v6035_v32, %v1745_v25 }
 0x331   :  { %7094 = vmatpush3.msra.mxu0 %v8181_v59  ;;  %v6037_v57 = vpop.f32.mrf.mxu1 }
 0x332   :  { %v6038_v19 = vadd.f32 %v6037_v57, %v6036_v63  ;;  %7095 = vmatprep.subr.mxu0 %v8188_v9  ;;  %7076 = vmatprep.mubr.msk.f32.mxu0 %vm1185_vm2, %v1746_v50 }
 0x333   :  { %7096 = vmatpush3.msra.mxu0 %v8188_v9  ;;  %v6039_v40 = vpop.f32.mrf.mxu1 }
 0x334   :  { %v1751_v38 = vadd.f32 %v7058_v42, %v6038_v19  ;;  %7097 = vmatprep.subr.mxu0 %v8195_v39  ;;  %v7064_v42 = vpop.f32.mrf.mxu0 }
 0x335   :  { %7098 = vmatpush3.msra.mxu0 %v8195_v39  ;;  %v6040_v17 = vpop.f32.mrf.mxu1 }
 0x336   :  { %v6041_v32 = vadd.f32 %v6040_v17, %v6039_v40  ;;  %7099 = vmatprep.subr.mxu0 %v8205_v44  ;;  %7077 = vmatmul.mubr.msk.f32.gmra.mxu0 %vm1185_vm2, %v1751_v38  ;;  %v1765_v57 = vpop.f32.mrf.mxu0 }
 0x337   :  { %7100 = vmatpush3.msra.mxu0 %v8205_v44  ;;  %v6042_v15 = vpop.f32.mrf.mxu1 }
 0x338   :  { %7101 = vmatprep.subr.mxu0 %v8229_v61  ;;  %v1756_v63 = vadd.f32 %v6041_v32, %v1755_v22  ;;  %v7067_v17 = vpop.f32.mrf.mxu0 }
 0x339   :  { %7102 = vmatpush3.msra.mxu0 %v8229_v61  ;;  %v6043_v34 = vpop.f32.mrf.mxu1 }
 0x33a   :  { %v6044_v27 = vadd.f32 %v6043_v34, %v6042_v15  ;;  %7103 = vmatprep.subr.mxu0 %v8241_v23  ;;  %7079 = vmatprep.mubr.msk.f32.mxu0 %vm1185_vm2, %v1756_v63  ;;  %v1775_v34 = vpop.f32.mrf.mxu0 }
 0x33b   :  { %7104 = vmatpush3.msra.mxu0 %v8241_v23  ;;  %v6045_v36 = vpop.f32.mrf.mxu1 }
 0x33c   :  { %v1761_v25 = vadd.f32 %v7061_v48, %v6044_v27  ;;  %7105 = vmatprep.subr.mxu0 %v8253_v5 }
 0x33d   :  { %7106 = vmatpush3.msra.mxu0 %v8253_v5  ;;  %v6046_v50 = vpop.f32.mrf.mxu1 }
 0x33e   :  { %v6047_v19 = vadd.f32 %v6046_v50, %v6045_v36  ;;  %7107 = vmatprep.subr.mxu0 %v8265_v16  ;;  %7080 = vmatmul.mubr.msk.f32.gmra.mxu0 %vm1185_vm2, %v1761_v25  ;;  %v7070_v50 = vpop.f32.mrf.mxu0 }
 0x33f   :  { %7108 = vmatpush3.msra.mxu0 %v8265_v16  ;;  %v6048_v40 = vpop.f32.mrf.mxu1 }
 0x340   :  { %7109 = vmatprep.subr.mxu0 %v8277_v51  ;;  %v1766_v38 = vadd.f32 %v6047_v19, %v1765_v57 }
 0x341   :  { %7110 = vmatpush3.msra.mxu0 %v8277_v51  ;;  %v6049_v48 = vpop.f32.mrf.mxu1 }
 0x342   :  { %v6050_v22 = vadd.f32 %v6049_v48, %v6048_v40  ;;  %7111 = vmatprep.subr.mxu0 %v8289_v1  ;;  %7082 = vmatprep.mubr.msk.f32.mxu0 %vm1185_vm2, %v1766_v38  ;;  %v2254_v40 = vld [vmem:[%s10595_s4 + $0x18] sm:$0xff] }
 0x343   :  { %7112 = vmatpush3.msra.mxu0 %v8289_v1  ;;  %v6051_v32 = vpop.f32.mrf.mxu1 }
 0x344   :  { %v1771_v15 = vadd.f32 %v7064_v42, %v6050_v22  ;;  %7113 = vmatprep.subr.mxu0 %v8301_v41  ;;  %v1785_v22 = vpop.f32.mrf.mxu0 }
 0x345   :  { %7114 = vmatpush3.msra.mxu0 %v8301_v41  ;;  %v6052_v63 = vpop.f32.mrf.mxu1 }
 0x346   :  { %v6053_v27 = vadd.f32 %v6052_v63, %v6051_v32  ;;  %7115 = vmatprep.subr.mxu0 %v8313_v46  ;;  %7083 = vmatmul.mubr.msk.f32.gmra.mxu0 %vm1185_vm2, %v1771_v15 }
 0x347   :  { %7116 = vmatpush3.msra.mxu0 %v8313_v46  ;;  %v6054_v36 = vpop.f32.mrf.mxu1 }
 0x348   :  { %7117 = vmatprep.subr.mxu0 %v8325_v31  ;;  %v1776_v25 = vadd.f32 %v6053_v27, %v1775_v34 }
 0x349   :  { %7118 = vmatpush3.msra.mxu0 %v8325_v31  ;;  %v6055_v42 = vpop.f32.mrf.mxu1 }
 0x34a   :  { %v6056_v57 = vadd.f32 %v6055_v42, %v6054_v36  ;;  %7119 = vmatprep.subr.mxu0 %v8335_v52  ;;  %7085 = vmatprep.mubr.msk.f32.mxu0 %vm1185_vm2, %v1776_v25  ;;  %v1973_v25 = vld [vmem:[%s10593_s3 + $0x388] sm:$0xff]  ;;  %v1976_v42 = vld [vmem:[%s10593_s3 + $0x3a0] sm:$0xff] }
 0x34b   :  { %7120 = vmatpush3.msra.mxu0 %v8335_v52  ;;  %v6057_v19 = vpop.f32.mrf.mxu1 }
 0x34c   :  { %v1781_v38 = vadd.f32 %v7067_v17, %v6056_v57  ;;  %7121 = vmatprep.subr.mxu0 %v8345_v0  ;;  %v1970_v17 = vld [vmem:[%s10593_s3 + $0x370] sm:$0xff] }
 0x34d   :  { %7122 = vmatpush3.msra.mxu0 %v8345_v0  ;;  %v6058_v48 = vpop.f32.mrf.mxu1  ;;  %v1982_v57 = vld [vmem:[%s10593_s3 + $0x3d0] sm:$0xff] }
 0x34e   :  { %v6059_v32 = vadd.f32 %v6058_v48, %v6057_v19  ;;  %7086 = vmatmul.mubr.msk.f32.gmra.mxu0 %vm1185_vm2, %v1781_v38  ;;  %7141 = vmatprep.subr.mxu0 %v2254_v40  ;;  %v1985_v19 = vld [vmem:[%s10593_s3 + $0x3e8] sm:$0xff]  ;;  %v1991_v38 = vld [vmem:[%s10593_s3 + $0x418] sm:$0xff]  ;;  %v1994_v48 = vld [vmem:[%s10593_s3 + $0x430] sm:$0xff] }
 0x34f   :  { %v6060_v15 = vpop.f32.mrf.mxu1 }
 0x350   :  { %v1786_v63 = vadd.f32 %v6059_v32, %v1785_v22  ;;  %v1997_v22 = vld [vmem:[%s10593_s3 + $0x448] sm:$0xff]  ;;  %v2000_v32 = vld [vmem:[%s10593_s3 + $0x460] sm:$0xff] }
 0x351   :  { %v6061_v34 = vpop.f32.mrf.mxu1 }
 0x352   :  { %v6062_v27 = vadd.f32 %v6061_v34, %v6060_v15  ;;  %7088 = vmatprep.mubr.msk.f32.mxu0 %vm1185_vm2, %v1786_v63  ;;  %v2003_v15 = vld [vmem:[%s10593_s3 + $0x478] sm:$0xff]  ;;  %v2432_v63 = vld [vmem:[%s10593_s3 + $0x4a0] sm:$0xff] }
 0x353   :  { %2533 = vmatprep.mubr.f32.mxu1 %v2432_v63  ;;  %v2431_v34 = vld [vmem:[%s10593_s3 + $0x498] sm:$0xff]  ;;  %v2456_v63 = vld [vmem:[%s10593_s3 + $0x560] sm:$0xff] }
 0x354   :  { %v1791_v36 = vadd.f32 %v7070_v50, %v6062_v27  ;;  %v1979_v50 = vld [vmem:[%s10593_s3 + $0x3b8] sm:$0xff]  ;;  %2534 = vmatmul.mubr.f32.gmra.mxu1 %v2431_v34 }
 0x355   :  { %v2435_v27 = vld [vmem:[%s10593_s3 + $0x4b8] sm:$0xff] }
 0x356   :  { %7089 = vmatmul.mubr.msk.f32.gmra.mxu0 %vm1185_vm2, %v1791_v36  ;;  %2538 = vmatprep.mubr.f32.mxu1 %v2435_v27  ;;  %v2434_v36 = vld [vmem:[%s10593_s3 + $0x4b0] sm:$0xff]  ;;  %v2455_v34 = vld [vmem:[%s10593_s3 + $0x558] sm:$0xff]  ;;  %v6136_v27 = vpop.f32.mrf.mxu1 }
 0x357   :  { %7123 = vmatprep.mubr.f32.mxu0 %v1970_v17  ;;  %v2438_v17 = vld [vmem:[%s10593_s3 + $0x4d0] sm:$0xff] }
 0x358   :  { %2539 = vmatmul.mubr.f32.gmra.mxu1 %v2434_v36  ;;  %v2459_v36 = vld [vmem:[%s10593_s3 + $0x578] sm:$0xff] }
 0x359   :  { %2543 = vmatprep.mubr.f32.mxu1 %v2438_v17  ;;  %v2458_v17 = vld [vmem:[%s10593_s3 + $0x570] sm:$0xff] }
 0x35a   :  { %7124 = vmatmul.mubr.f32.vlgmr.msra.gmra.mxu0 %v1973_v25  ;;  %v2437_v25 = vld [vmem:[%s10593_s3 + $0x4c8] sm:$0xff] }
 0x35b   :  { %7142 = vmatpush3.msra.mxu0 %v2254_v40  ;;  %7126 = vmatprep.mubr.f32.mxu0 %v1976_v42  ;;  %v1988_v40 = vld [vmem:[%s10593_s3 + $0x400] sm:$0xff]  ;;  %v2441_v42 = vld [vmem:[%s10593_s3 + $0x4e8] sm:$0xff] }
 0x35c   :  { %7161 = vmatprep.subr.mxu0 %v8167_v13  ;;  %2544 = vmatmul.mubr.f32.gmra.mxu1 %v2437_v25  ;;  %v6137_v25 = vpop.f32.mrf.mxu1 }
 0x35d   :  { %2548 = vmatprep.mubr.f32.mxu1 %v2441_v42  ;;  %v2462_v42 = vld [vmem:[%s10593_s3 + $0x590] sm:$0xff] }
 0x35e   :  { %7127 = vmatmul.mubr.f32.gmra.mxu0 %v1979_v50  ;;  %v2440_v50 = vld [vmem:[%s10593_s3 + $0x4e0] sm:$0xff] }
 0x35f   :  { %7129 = vmatprep.mubr.f32.mxu0 %v1982_v57  ;;  %v2444_v57 = vld [vmem:[%s10593_s3 + $0x500] sm:$0xff] }
 0x360   :  { %2549 = vmatmul.mubr.f32.gmra.mxu1 %v2440_v50  ;;  %v2461_v50 = vld [vmem:[%s10593_s3 + $0x588] sm:$0xff] }
 0x361   :  { %2553 = vmatprep.mubr.f32.mxu1 %v2444_v57  ;;  %v6139_v57 = vpop.f32.mrf.mxu1 }
 0x362   :  { %7130 = vmatmul.mubr.f32.gmra.mxu0 %v1985_v19  ;;  %v2443_v19 = vld [vmem:[%s10593_s3 + $0x4f8] sm:$0xff] }
 0x363   :  { %7132 = vmatprep.mubr.f32.mxu0 %v1988_v40  ;;  %v2447_v40 = vld [vmem:[%s10593_s3 + $0x518] sm:$0xff] }
 0x364   :  { %2554 = vmatmul.mubr.f32.gmra.mxu1 %v2443_v19  ;;  %v6140_v19 = vpop.f32.mrf.mxu1 }
 0x365   :  { %2558 = vmatprep.mubr.f32.mxu1 %v2447_v40  ;;  %v6141_v4 = vadd.f32 %v6140_v19, %v6139_v57 }
 0x366   :  { %7133 = vmatmul.mubr.f32.gmra.mxu0 %v1991_v38  ;;  %v2446_v38 = vld [vmem:[%s10593_s3 + $0x510] sm:$0xff]  ;;  %v6142_v40 = vpop.f32.mrf.mxu1 }
 0x367   :  { %7135 = vmatprep.mubr.f32.mxu0 %v1994_v48  ;;  %v2450_v48 = vld [vmem:[%s10593_s3 + $0x530] sm:$0xff] }
 0x368   :  { %2559 = vmatmul.mubr.f32.gmra.mxu1 %v2446_v38  ;;  %v6143_v38 = vpop.f32.mrf.mxu1 }
 0x369   :  { %2563 = vmatprep.mubr.f32.mxu1 %v2450_v48 }
 0x36a   :  { %7136 = vmatmul.mubr.f32.gmra.mxu0 %v1997_v22  ;;  %v2449_v22 = vld [vmem:[%s10593_s3 + $0x528] sm:$0xff]  ;;  %v6145_v48 = vpop.f32.mrf.mxu1 }
 0x36b   :  { %7138 = vmatprep.mubr.f32.mxu0 %v2000_v32  ;;  %v2453_v32 = vld [vmem:[%s10593_s3 + $0x548] sm:$0xff] }
 0x36c   :  { %2564 = vmatmul.mubr.f32.gmra.mxu1 %v2449_v22  ;;  %v6146_v22 = vpop.f32.mrf.mxu1 }
 0x36d   :  { %2568 = vmatprep.mubr.f32.mxu1 %v2453_v32 }
 0x36e   :  { %7139 = vmatmul.mubr.f32.gmra.mxu0 %v2003_v15  ;;  %v2452_v15 = vld [vmem:[%s10593_s3 + $0x540] sm:$0xff]  ;;  %v6148_v32 = vpop.f32.mrf.mxu1 }
 0x370   :  { %2569 = vmatmul.mubr.f32.gmra.mxu1 %v2452_v15 }
 0x371   :  { %2573 = vmatprep.mubr.f32.mxu1 %v2456_v63 }
 0x374   :  { %2574 = vmatmul.mubr.f32.gmra.mxu1 %v2455_v34  ;;  %v6149_v34 = vpop.f32.mrf.mxu1 }
 0x375   :  { %2578 = vmatprep.mubr.f32.mxu1 %v2459_v36 }
 0x378   :  { %2579 = vmatmul.mubr.f32.gmra.mxu1 %v2458_v17  ;;  %v6151_v17 = vpop.f32.mrf.mxu1 }
 0x379   :  { %2583 = vmatprep.mubr.f32.mxu1 %v2462_v42 }
 0x37c   :  { %2584 = vmatmul.mubr.f32.gmra.mxu1 %v2461_v50  ;;  %v6152_v50 = vpop.f32.mrf.mxu1 }
 0x37e   :  { %v6154_v24 = vpop.f32.mrf.mxu1 }
 0x380   :  { %v6155_v47 = vpop.f32.mrf.mxu1 }
 0x381   :  { %v6156_v19 = vadd.f32 %v6155_v47, %v6154_v24 }
 0x3ee   :  { %v7075_v15 = vpop.f32.mrf.mxu0 }
 0x3ef   :  { %v9103_v63 = vadd.f32 %v7075_v15, %v8923_v62  ;;  %v6157_v62 = vpop.f32.mrf.mxu1 }
 0x3f0   :  { %v9105_v36 = vpop.f32.mrf.mxu0 }
 0x3f1   :  { %10788 = vst [vmem:[#allocation38_spill] sm:$0xff] %v9103_v63  ;;  %10789 = vst [vmem:[#allocation39_spill] sm:$0xff] %v9105_v36  ;;  %v6158_v63 = vpop.f32.mrf.mxu1 }
 0x3f6   :  { %v7078_v42 = vpop.f32.mrf.mxu0 }
 0x3f7   :  { %v9108_v26 = vadd.f32 %v7078_v42, %v8927_v6  ;;  %v6160_v6 = vpop.f32.mrf.mxu1 }
 0x3f8   :  { %v9110_v8 = vpop.f32.mrf.mxu0 }
 0x3f9   :  { %10790 = vst [vmem:[#allocation40_spill] sm:$0xff] %v9108_v26  ;;  %10791 = vst [vmem:[#allocation41_spill] sm:$0xff] %v9110_v8  ;;  %v6161_v26 = vpop.f32.mrf.mxu1 }
 0x3fe   :  { %v7081_v56 = vpop.f32.mrf.mxu0 }
 0x3ff   :  { %v9113_v20 = vadd.f32 %v7081_v56, %v8933_v29  ;;  %v6163_v56 = vpop.f32.mrf.mxu1 }
 0x400   :  { %v9115_v49 = vpop.f32.mrf.mxu0 }
 0x401   :  { %10792 = vst [vmem:[#allocation42_spill] sm:$0xff] %v9113_v20  ;;  %10793 = vst [vmem:[#allocation43_spill] sm:$0xff] %v9115_v49 }
 0x406   :  { %v7084_v15 = vpop.f32.mrf.mxu0 }
 0x407   :  { %v9118_v36 = vadd.f32 %v7084_v15, %v8937_v43  ;;  %v6164_v43 = vpop.f32.mrf.mxu1 }
 0x408   :  { %v9120_v7 = vpop.f32.mrf.mxu0 }
 0x409   :  { %10794 = vst [vmem:[#allocation44_spill] sm:$0xff] %v9118_v36  ;;  %10795 = vst [vmem:[#allocation45_spill] sm:$0xff] %v9120_v7  ;;  %v6138_v36 = vadd.f32 %v6137_v25, %v6136_v27  ;;  %v6166_v28 = vpop.f32.mrf.mxu1  ;;  %v6150_v25 = vadd.f32 %v6149_v34, %v6148_v32 }
 0x40e   :  { %v7087_v42 = vpop.f32.mrf.mxu0 }
 0x40f   :  { %v9123_v8 = vadd.f32 %v7087_v42, %v8943_v12  ;;  %v6144_v42 = vadd.f32 %v6143_v38, %v6142_v40  ;;  %v6165_v40 = vadd.f32 %v6164_v43, %v6163_v56  ;;  %v2433_v56 = vld [vmem:[%s10593_s3 + $0x4a8] sm:$0xff]  ;;  %v2436_v43 = vld [vmem:[%s10593_s3 + $0x4c0] sm:$0xff] }
 0x410   :  { %v9125_v21 = vpop.f32.mrf.mxu0 }
 0x411   :  { %10796 = vst [vmem:[#allocation46_spill] sm:$0xff] %v9123_v8  ;;  %10797 = vst [vmem:[#allocation47_spill] sm:$0xff] %v9125_v21  ;;  %v6147_v21 = vadd.f32 %v6146_v22, %v6145_v48 }
 0x416   :  { %v7090_v29 = vpop.f32.mrf.mxu0 }
 0x417   :  { %v9128_v49 = vadd.f32 %v7090_v29, %v8947_v11  ;;  %v6167_v29 = vpop.f32.mrf.mxu1 }
 0x418   :  { %v9130_v20 = vpop.f32.mrf.mxu0 }
 0x419   :  { %10798 = vst [vmem:[#allocation48_spill] sm:$0xff] %v9130_v20 }
 0x41a   :  { %v7125_v15 = vpop.f32.mrf.mxu0 }
 0x41b   :  { %v2201_v35 = vadd.f32 %v7125_v15, %v6141_v4  ;;  %v6153_v4 = vadd.f32 %v6152_v50, %v6151_v17  ;;  %v2439_v15 = vld [vmem:[%s10593_s3 + $0x4d8] sm:$0xff] }
 0x41c   :  { %v2195_v7 = vpop.f32.mrf.mxu0 }
 0x41d   :  { %v2196_v55 = vadd.f32 %v6138_v36, %v2195_v7  ;;  %v6169_v7 = vpop.f32.mrf.mxu1  ;;  %v6168_v36 = vadd.f32 %v6167_v29, %v6166_v28  ;;  %v2430_v28 = vld [vmem:[%s10593_s3 + $0x490] sm:$0xff]  ;;  %v2451_v29 = vld [vmem:[%s10593_s3 + $0x538] sm:$0xff] }
 0x41e   :  { %v7128_v12 = vpop.f32.mrf.mxu0 }
 0x41f   :  { %7143 = vmatprep.mubr.msk.f32.mxu0 %vm1185_vm2, %v2196_v55  ;;  %v2211_v20 = vadd.f32 %v7128_v12, %v6147_v21  ;;  %v6170_v48 = vpop.f32.mrf.mxu1  ;;  %v2442_v12 = vld [vmem:[%s10593_s3 + $0x4f0] sm:$0xff] }
 0x420   :  { %v2205_v8 = vpop.f32.mrf.mxu0  ;;  %7144 = vmatmul.mubr.msk.f32.vlgmr.msra.gmra.mxu0 %vm1185_vm2, %v2201_v35  ;;  %v6171_v34 = vadd.f32 %v6170_v48, %v6169_v7  ;;  %v10801_v7 = vld [vmem:[#allocation15_spill] sm:$0xff]  ;;  %v10807_v48 = vld [vmem:[#allocation21_spill] sm:$0xff] }
 0x421   :  { %v2206_v11 = vadd.f32 %v6144_v42, %v2205_v8  ;;  %7162 = vmatpush3.msra.mxu0 %v8167_v13  ;;  %v6159_v8 = vadd.f32 %v6158_v63, %v6157_v62  ;;  %v6162_v63 = vadd.f32 %v6161_v26, %v6160_v6  ;;  %v2445_v42 = vld [vmem:[%s10593_s3 + $0x508] sm:$0xff] }
 0x422   :  { %7163 = vmatprep.subr.mxu0 %v8181_v59  ;;  %v7131_v27 = vpop.f32.mrf.mxu0 }
 0x423   :  { %7164 = vmatpush3.msra.mxu0 %v8181_v59  ;;  %7146 = vmatprep.mubr.msk.f32.mxu0 %vm1185_vm2, %v2206_v11  ;;  %v2221_v21 = vadd.f32 %v7131_v27, %v6153_v4  ;;  %v2448_v11 = vld [vmem:[%s10593_s3 + $0x520] sm:$0xff]  ;;  %v2454_v27 = vld [vmem:[%s10593_s3 + $0x550] sm:$0xff]  ;;  %v2457_v4 = vld [vmem:[%s10593_s3 + $0x568] sm:$0xff] }
 0x424   :  { %7165 = vmatprep.subr.mxu0 %v8188_v9  ;;  %v2215_v55 = vpop.f32.mrf.mxu0  ;;  %7147 = vmatmul.mubr.msk.f32.gmra.mxu0 %vm1185_vm2, %v2211_v20 }
 0x425   :  { %v2216_v35 = vadd.f32 %v6150_v25, %v2215_v55  ;;  %7166 = vmatpush3.msra.mxu0 %v8188_v9  ;;  %v10799_v25 = vld [vmem:[#allocation13_spill] sm:$0xff]  ;;  %v10800_v55 = vld [vmem:[#allocation14_spill] sm:$0xff] }
 0x426   :  { %7167 = vmatprep.subr.mxu0 %v8195_v39  ;;  %v7134_v57 = vpop.f32.mrf.mxu0 }
 0x427   :  { %7168 = vmatpush3.msra.mxu0 %v8195_v39  ;;  %7149 = vmatprep.mubr.msk.f32.mxu0 %vm1185_vm2, %v2216_v35  ;;  %v2231_v22 = vadd.f32 %v7134_v57, %v6159_v8  ;;  %v2460_v35 = vld [vmem:[%s10593_s3 + $0x580] sm:$0xff]  ;;  %v10802_v8 = vld [vmem:[#allocation16_spill] sm:$0xff]  ;;  %v2463_v57 = vld [vmem:[%s10593_s3 + $0x598] sm:$0xff] }
 0x428   :  { %7169 = vmatprep.subr.mxu0 %v8205_v44  ;;  %v2225_v38 = vpop.f32.mrf.mxu0  ;;  %7150 = vmatmul.mubr.msk.f32.gmra.mxu0 %vm1185_vm2, %v2221_v21  ;;  %v10803_v21 = vld [vmem:[#allocation17_spill] sm:$0xff] }
 0x429   :  { %v2226_v20 = vadd.f32 %v6156_v19, %v2225_v38  ;;  %7170 = vmatpush3.msra.mxu0 %v8205_v44  ;;  %v10804_v19 = vld [vmem:[#allocation18_spill] sm:$0xff]  ;;  %v10805_v38 = vld [vmem:[#allocation19_spill] sm:$0xff] }
 0x42a   :  { %7171 = vmatprep.subr.mxu0 %v8229_v61  ;;  %v7137_v32 = vpop.f32.mrf.mxu0 }
 0x42b   :  { %7172 = vmatpush3.msra.mxu0 %v8229_v61  ;;  %7152 = vmatprep.mubr.msk.f32.mxu0 %vm1185_vm2, %v2226_v20  ;;  %v2241_v47 = vadd.f32 %v7137_v32, %v6165_v40  ;;  %v2889_v40 = vld [vmem:[%s10593_s3 + $0x5a8] sm:$0xff]  ;;  %v10806_v20 = vld [vmem:[#allocation20_spill] sm:$0xff] }
 0x42c   :  { %7173 = vmatprep.subr.mxu0 %v8241_v23  ;;  %v2235_v24 = vpop.f32.mrf.mxu0  ;;  %7153 = vmatmul.mubr.msk.f32.gmra.mxu0 %vm1185_vm2, %v2231_v22  ;;  %v10808_v22 = vld [vmem:[#allocation22_spill] sm:$0xff]  ;;  %v10809_v32 = vld [vmem:[#allocation23_spill] sm:$0xff] }
 0x42d   :  { %v2236_v17 = vadd.f32 %v6162_v63, %v2235_v24  ;;  %7174 = vmatpush3.msra.mxu0 %v8241_v23  ;;  %v10810_v63 = vld [vmem:[#allocation24_spill] sm:$0xff]  ;;  %v10812_v24 = vld [vmem:[#allocation26_spill] sm:$0xff] }
 0x42e   :  { %7175 = vmatprep.subr.mxu0 %v8253_v5  ;;  %v7140_v50 = vpop.f32.mrf.mxu0 }
 0x42f   :  { %7176 = vmatpush3.msra.mxu0 %v8253_v5  ;;  %7155 = vmatprep.mubr.msk.f32.mxu0 %vm1185_vm2, %v2236_v17  ;;  %v2251_v26 = vadd.f32 %v7140_v50, %v6171_v34  ;;  %v10813_v34 = vld [vmem:[#allocation27_spill] sm:$0xff]  ;;  %v10815_v17 = vld [vmem:[#allocation29_spill] sm:$0xff]  ;;  %v2888_v50 = vld [vmem:[%s10593_s3 + $0x5a0] sm:$0xff] }
 0x430   :  { %7177 = vmatprep.subr.mxu0 %v8265_v16  ;;  %v2245_v62 = vpop.f32.mrf.mxu0  ;;  %7156 = vmatmul.mubr.msk.f32.gmra.mxu0 %vm1185_vm2, %v2241_v47  ;;  %v10811_v47 = vld [vmem:[#allocation25_spill] sm:$0xff] }
 0x431   :  { %v2246_v6 = vadd.f32 %v6168_v36, %v2245_v62  ;;  %7178 = vmatpush3.msra.mxu0 %v8265_v16  ;;  %v10814_v36 = vld [vmem:[#allocation28_spill] sm:$0xff]  ;;  %v2892_v62 = vld [vmem:[%s10593_s3 + $0x5c0] sm:$0xff] }
 0x432   :  { %7179 = vmatprep.subr.mxu0 %v8277_v51 }
 0x433   :  { %7180 = vmatpush3.msra.mxu0 %v8277_v51  ;;  %7158 = vmatprep.mubr.msk.f32.mxu0 %vm1185_vm2, %v2246_v6  ;;  %v10817_v6 = vld [vmem:[#allocation31_spill] sm:$0xff] }
 0x434   :  { %7181 = vmatprep.subr.mxu0 %v8289_v1  ;;  %7159 = vmatmul.mubr.msk.f32.gmra.mxu0 %vm1185_vm2, %v2251_v26  ;;  %v10816_v26 = vld [vmem:[#allocation30_spill] sm:$0xff] }
 0x435   :  { %7182 = vmatpush3.msra.mxu0 %v8289_v1  ;;  %7193 = vmatprep.mubr.f32.mxu0 %v2430_v28  ;;  %v2891_v28 = vld [vmem:[%s10593_s3 + $0x5b8] sm:$0xff] }
 0x436   :  { %7183 = vmatprep.subr.mxu0 %v8301_v41 }
 0x437   :  { %7184 = vmatpush3.msra.mxu0 %v8301_v41 }
 0x438   :  { %7185 = vmatprep.subr.mxu0 %v8313_v46 }
 0x439   :  { %7186 = vmatpush3.msra.mxu0 %v8313_v46 }
 0x43a   :  { %7187 = vmatprep.subr.mxu0 %v8325_v31 }
 0x43b   :  { %7188 = vmatpush3.msra.mxu0 %v8325_v31 }
 0x43c   :  { %7189 = vmatprep.subr.mxu0 %v8335_v52 }
 0x43d   :  { %7190 = vmatpush3.msra.mxu0 %v8335_v52 }
 0x43e   :  { %7191 = vmatprep.subr.mxu0 %v8345_v0 }
 0x43f   :  { %7192 = vmatpush3.msra.mxu0 %v8345_v0 }
 0x440   :  { %7194 = vmatmul.mubr.f32.vlgmr.msra.gmra.mxu0 %v2433_v56  ;;  %6322 = vmatprep.subr.mxu0 %v10775_v14  ;;  %v2895_v56 = vld [vmem:[%s10593_s3 + $0x5d8] sm:$0xff] }
 0x441   :  { %6323 = vmatpush3.msra.mxu0 %v7974_v30  ;;  %7196 = vmatprep.mubr.f32.mxu0 %v2436_v43  ;;  %v2894_v43 = vld [vmem:[%s10593_s3 + $0x5d0] sm:$0xff] }
 0x442   :  { %6324 = vmatprep.subr.mxu0 %v7979_v33 }
 0x443   :  { %6325 = vmatpush3.msra.mxu0 %v10744_v3 }
 0x444   :  { %7197 = vmatmul.mubr.f32.gmra.mxu0 %v2439_v15  ;;  %6326 = vmatprep.subr.mxu0 %v10745_v54  ;;  %v2898_v15 = vld [vmem:[%s10593_s3 + $0x5f0] sm:$0xff] }
 0x445   :  { %6327 = vmatpush3.msra.mxu0 %v10748_v2  ;;  %7199 = vmatprep.mubr.f32.mxu0 %v2442_v12  ;;  %v2897_v12 = vld [vmem:[%s10593_s3 + $0x5e8] sm:$0xff] }
 0x446   :  { %6328 = vmatprep.subr.mxu0 %v10749_v37 }
 0x447   :  { %6329 = vmatpush3.msra.mxu0 %v10750_v18 }
 0x448   :  { %7200 = vmatmul.mubr.f32.gmra.mxu0 %v2445_v42  ;;  %6330 = vmatprep.subr.mxu0 %v10751_v58  ;;  %v2901_v42 = vld [vmem:[%s10593_s3 + $0x608] sm:$0xff] }
 0x449   :  { %6331 = vmatpush3.msra.mxu0 %v10752_v45  ;;  %7202 = vmatprep.mubr.f32.mxu0 %v2448_v11  ;;  %v2900_v11 = vld [vmem:[%s10593_s3 + $0x600] sm:$0xff] }
 0x44a   :  { %6332 = vmatprep.subr.mxu0 %v10753_v53 }
 0x44b   :  { %6333 = vmatpush3.msra.mxu0 %v10754_v60 }
 0x44c   :  { %7203 = vmatmul.mubr.f32.gmra.mxu0 %v2451_v29  ;;  %6334 = vmatprep.subr.mxu0 %v10755_v10  ;;  %v2904_v29 = vld [vmem:[%s10593_s3 + $0x620] sm:$0xff] }
 0x44d   :  { %6335 = vmatpush3.msra.mxu0 %v10799_v25  ;;  %7205 = vmatprep.mubr.f32.mxu0 %v2454_v27  ;;  %v2903_v27 = vld [vmem:[%s10593_s3 + $0x618] sm:$0xff] }
 0x44e   :  { %6336 = vmatprep.subr.mxu0 %v10800_v55 }
 0x44f   :  { %6337 = vmatpush3.msra.mxu0 %v10801_v7 }
 0x450   :  { %7206 = vmatmul.mubr.f32.gmra.mxu0 %v2457_v4  ;;  %6338 = vmatprep.subr.mxu0 %v10802_v8  ;;  %v2907_v4 = vld [vmem:[%s10593_s3 + $0x638] sm:$0xff] }
 0x451   :  { %6339 = vmatpush3.msra.mxu0 %v10803_v21  ;;  %7208 = vmatprep.mubr.f32.mxu0 %v2460_v35  ;;  %v2906_v35 = vld [vmem:[%s10593_s3 + $0x630] sm:$0xff] }
 0x452   :  { %6340 = vmatprep.subr.mxu0 %v10804_v19 }
 0x453   :  { %6341 = vmatpush3.msra.mxu0 %v10805_v38 }
 0x454   :  { %7209 = vmatmul.mubr.f32.gmra.mxu0 %v2463_v57  ;;  %6342 = vmatprep.subr.mxu0 %v10806_v20  ;;  %v2910_v57 = vld [vmem:[%s10593_s3 + $0x650] sm:$0xff] }
 0x455   :  { %6343 = vmatpush3.msra.mxu0 %v10807_v48  ;;  %2988 = vmatprep.mubr.f32.mxu0 %v2889_v40  ;;  %v2909_v40 = vld [vmem:[%s10593_s3 + $0x648] sm:$0xff] }
 0x456   :  { %6344 = vmatprep.subr.mxu0 %v10808_v22 }
 0x457   :  { %6345 = vmatpush3.msra.mxu0 %v10809_v32 }
 0x458   :  { %6346 = vmatprep.subr.mxu0 %v10810_v63 }
 0x459   :  { %6347 = vmatpush3.msra.mxu0 %v10811_v47 }
 0x45a   :  { %6348 = vmatprep.subr.mxu0 %v10812_v24 }
 0x45b   :  { %6349 = vmatpush3.msra.mxu0 %v10813_v34 }
 0x45c   :  { %6350 = vmatprep.subr.mxu0 %v10814_v36 }
 0x45d   :  { %6351 = vmatpush3.msra.mxu0 %v10815_v17 }
 0x45e   :  { %6352 = vmatprep.subr.mxu0 %v10816_v26 }
 0x45f   :  { %6353 = vmatpush3.msra.mxu0 %v10817_v6 }
 0x460   :  { %2989 = vmatmul.mubr.f32.vlgmr.msra.gmra.mxu0 %v2888_v50  ;;  %6431 = vmatprep.subr.mxu0 %v10775_v14  ;;  %v2913_v50 = vld [vmem:[%s10593_s3 + $0x668] sm:$0xff] }
 0x461   :  { %6432 = vmatpush3.msra.mxu0 %v7974_v30  ;;  %2993 = vmatprep.mubr.f32.mxu0 %v2892_v62  ;;  %v2912_v62 = vld [vmem:[%s10593_s3 + $0x660] sm:$0xff] }
 0x462   :  { %6433 = vmatprep.subr.mxu0 %v7979_v33 }
 0x463   :  { %6434 = vmatpush3.msra.mxu0 %v10744_v3 }
 0x464   :  { %2994 = vmatmul.mubr.f32.gmra.mxu0 %v2891_v28  ;;  %6435 = vmatprep.subr.mxu0 %v10745_v54  ;;  %v3634_v28 = vld [vmem:[%s10595_s4 + $0x30] sm:$0xff] }
 0x465   :  { %6436 = vmatpush3.msra.mxu0 %v10748_v2  ;;  %2998 = vmatprep.mubr.f32.mxu0 %v2895_v56  ;;  %v2916_v56 = vld [vmem:[%s10593_s3 + $0x680] sm:$0xff] }
 0x466   :  { %6437 = vmatprep.subr.mxu0 %v10749_v37 }
 0x467   :  { %6438 = vmatpush3.msra.mxu0 %v10750_v18 }
 0x468   :  { %2999 = vmatmul.mubr.f32.gmra.mxu0 %v2894_v43  ;;  %6439 = vmatprep.subr.mxu0 %v10751_v58  ;;  %v2915_v43 = vld [vmem:[%s10593_s3 + $0x678] sm:$0xff] }
 0x469   :  { %6440 = vmatpush3.msra.mxu0 %v10752_v45  ;;  %3003 = vmatprep.mubr.f32.mxu0 %v2898_v15  ;;  %v2919_v15 = vld [vmem:[%s10593_s3 + $0x698] sm:$0xff] }
 0x46a   :  { %6441 = vmatprep.subr.mxu0 %v10753_v53 }
 0x46b   :  { %6442 = vmatpush3.msra.mxu0 %v10754_v60 }
 0x46c   :  { %3004 = vmatmul.mubr.f32.gmra.mxu0 %v2897_v12  ;;  %6443 = vmatprep.subr.mxu0 %v10755_v10  ;;  %v2918_v12 = vld [vmem:[%s10593_s3 + $0x690] sm:$0xff] }
 0x46d   :  { %6444 = vmatpush3.msra.mxu0 %v10799_v25  ;;  %3008 = vmatprep.mubr.f32.mxu0 %v2901_v42  ;;  %v2922_v42 = vld [vmem:[%s10593_s3 + $0x6b0] sm:$0xff] }
 0x46e   :  { %6445 = vmatprep.subr.mxu0 %v10800_v55 }
 0x46f   :  { %6446 = vmatpush3.msra.mxu0 %v10801_v7 }
 0x470   :  { %3009 = vmatmul.mubr.f32.gmra.mxu0 %v2900_v11  ;;  %6447 = vmatprep.subr.mxu0 %v10802_v8  ;;  %v2921_v11 = vld [vmem:[%s10593_s3 + $0x6a8] sm:$0xff] }
 0x471   :  { %6448 = vmatpush3.msra.mxu0 %v10803_v21  ;;  %3013 = vmatprep.mubr.f32.mxu0 %v2904_v29  ;;  %v3349_v29 = vld [vmem:[%s10593_s3 + $0x6c8] sm:$0xff] }
 0x472   :  { %6449 = vmatprep.subr.mxu0 %v10804_v19 }
 0x473   :  { %6450 = vmatpush3.msra.mxu0 %v10805_v38 }
 0x474   :  { %3014 = vmatmul.mubr.f32.gmra.mxu0 %v2903_v27  ;;  %6451 = vmatprep.subr.mxu0 %v10806_v20  ;;  %v3348_v27 = vld [vmem:[%s10593_s3 + $0x6c0] sm:$0xff] }
 0x475   :  { %6452 = vmatpush3.msra.mxu0 %v10807_v48  ;;  %3018 = vmatprep.mubr.f32.mxu0 %v2907_v4  ;;  %v6245_v4 = vpop.f32.mrf.mxu1 }
 0x476   :  { %6453 = vmatprep.subr.mxu0 %v10808_v22 }
 0x477   :  { %6454 = vmatpush3.msra.mxu0 %v10809_v32  ;;  %v10822_v32 = vld [vmem:[#allocation42_spill] sm:$0xff] }
 0x478   :  { %3019 = vmatmul.mubr.f32.gmra.mxu0 %v2906_v35  ;;  %6455 = vmatprep.subr.mxu0 %v10810_v63  ;;  %v6246_v35 = vpop.f32.mrf.mxu1 }
 0x479   :  { %6456 = vmatpush3.msra.mxu0 %v10811_v47  ;;  %3023 = vmatprep.mubr.f32.mxu0 %v2910_v57  ;;  %v6247_v25 = vadd.f32 %v6246_v35, %v6245_v4 }
 0x47a   :  { %6457 = vmatprep.subr.mxu0 %v10812_v24  ;;  %v6248_v57 = vpop.f32.mrf.mxu1 }
 0x47b   :  { %6458 = vmatpush3.msra.mxu0 %v10813_v34 }
 0x47c   :  { %3024 = vmatmul.mubr.f32.gmra.mxu0 %v2909_v40  ;;  %6459 = vmatprep.subr.mxu0 %v10814_v36  ;;  %v6249_v40 = vpop.f32.mrf.mxu1  ;;  %v10820_v36 = vld [vmem:[#allocation40_spill] sm:$0xff] }
 0x47d   :  { %6460 = vmatpush3.msra.mxu0 %v10815_v17  ;;  %3028 = vmatprep.mubr.f32.mxu0 %v2913_v50 }
 0x47e   :  { %6461 = vmatprep.subr.mxu0 %v10816_v26  ;;  %v6251_v50 = vpop.f32.mrf.mxu1 }
 0x47f   :  { %6462 = vmatpush3.msra.mxu0 %v10817_v6  ;;  %v10818_v6 = vld [vmem:[#allocation38_spill] sm:$0xff] }
 0x480   :  { %3029 = vmatmul.mubr.f32.gmra.mxu0 %v2912_v62  ;;  %7351 = vmatprep.subr.mxu0 %v3634_v28  ;;  %v6252_v62 = vpop.f32.mrf.mxu1 }
 0x481   :  { %3033 = vmatprep.mubr.f32.mxu0 %v2916_v56  ;;  %v6253_v45 = vadd.f32 %v6252_v62, %v6251_v50 }
 0x482   :  { %v6254_v56 = vpop.f32.mrf.mxu1 }
 0x484   :  { %3034 = vmatmul.mubr.f32.gmra.mxu0 %v2915_v43  ;;  %v6255_v43 = vpop.f32.mrf.mxu1 }
 0x485   :  { %3038 = vmatprep.mubr.f32.mxu0 %v2919_v15 }
 0x486   :  { %v6257_v15 = vpop.f32.mrf.mxu1 }
 0x488   :  { %3039 = vmatmul.mubr.f32.gmra.mxu0 %v2918_v12  ;;  %v6258_v12 = vpop.f32.mrf.mxu1 }
 0x489   :  { %3043 = vmatprep.mubr.f32.mxu0 %v2922_v42  ;;  %v6259_v35 = vadd.f32 %v6258_v12, %v6257_v15 }
 0x48a   :  { %v6260_v42 = vpop.f32.mrf.mxu1 }
 0x48c   :  { %3044 = vmatmul.mubr.f32.gmra.mxu0 %v2921_v11  ;;  %v6261_v11 = vpop.f32.mrf.mxu1 }
 0x48d   :  { %3448 = vmatprep.mubr.f32.mxu0 %v3349_v29 }
 0x490   :  { %3449 = vmatmul.mubr.f32.vlgmr.msra.gmra.mxu0 %v3348_v27 }
 0x491   :  { %7352 = vmatpush3.msra.mxu0 %v3634_v28  ;;  %v6263_v28 = vpop.f32.mrf.mxu1 }
 0x492   :  { %7371 = vmatprep.subr.mxu0 %v8167_v13 }
 0x493   :  { %v6264_v47 = vpop.f32.mrf.mxu1 }
 0x495   :  { %v6266_v20 = vpop.f32.mrf.mxu1 }
 0x497   :  { %v6267_v19 = vpop.f32.mrf.mxu1 }
 0x499   :  { %v6269_v8 = vpop.f32.mrf.mxu1 }
 0x4e0   :  { %v7145_v29 = vpop.f32.mrf.mxu0 }
 0x4e1   :  { %v9358_v26 = vadd.f32 %v7145_v29, %v10818_v6  ;;  %v10824_v6 = vld [vmem:[#allocation44_spill] sm:$0xff] }
 0x4e2   :  { %v9360_v27 = vpop.f32.mrf.mxu0 }
 0x4e3   :  { %10819 = vst [vmem:[#allocation38_spill] sm:$0xff] %v9360_v27 }
 0x4e4   :  { %v7148_v17 = vpop.f32.mrf.mxu0 }
 0x4e5   :  { %v9363_v34 = vadd.f32 %v7148_v17, %v10820_v36  ;;  %v10826_v36 = vld [vmem:[#allocation46_spill] sm:$0xff] }
 0x4e6   :  { %v9365_v24 = vpop.f32.mrf.mxu0 }
 0x4e7   :  { %10821 = vst [vmem:[#allocation40_spill] sm:$0xff] %v9365_v24 }
 0x4e8   :  { %v7151_v63 = vpop.f32.mrf.mxu0 }
 0x4e9   :  { %v9368_v22 = vadd.f32 %v7151_v63, %v10822_v32  ;;  %v6270_v63 = vpop.f32.mrf.mxu1 }
 0x4ea   :  { %v9370_v48 = vpop.f32.mrf.mxu0 }
 0x4eb   :  { %10823 = vst [vmem:[#allocation42_spill] sm:$0xff] %v9370_v48  ;;  %v6272_v48 = vpop.f32.mrf.mxu1 }
 0x4ec   :  { %v7154_v38 = vpop.f32.mrf.mxu0 }
 0x4ed   :  { %v9373_v29 = vadd.f32 %v7154_v38, %v10824_v6  ;;  %v6273_v38 = vpop.f32.mrf.mxu1 }
 0x4ee   :  { %v9375_v27 = vpop.f32.mrf.mxu0  ;;  %v6274_v50 = vadd.f32 %v6273_v38, %v6272_v48  ;;  %v3174_v38 = vld [vmem:[%s10595_s4 + $0x28] sm:$0xff] }
 0x4ef   :  { %10825 = vst [vmem:[#allocation44_spill] sm:$0xff] %v9375_v27  ;;  %v6250_v27 = vadd.f32 %v6249_v40, %v6248_v57  ;;  %v6275_v53 = vpop.f32.mrf.mxu1  ;;  %v6265_v40 = vadd.f32 %v6264_v47, %v6263_v28 }
 0x4f0   :  { %v7157_v21 = vpop.f32.mrf.mxu0 }
 0x4f1   :  { %v9378_v17 = vadd.f32 %v7157_v21, %v10826_v36 }
 0x4f2   :  { %v9380_v24 = vpop.f32.mrf.mxu0 }
 0x4f3   :  { %10827 = vst [vmem:[#allocation46_spill] sm:$0xff] %v9380_v24  ;;  %v6256_v24 = vadd.f32 %v6255_v43, %v6254_v56  ;;  %v6271_v43 = vadd.f32 %v6270_v63, %v6269_v8  ;;  %v2893_v63 = vld [vmem:[%s10593_s3 + $0x5c8] sm:$0xff] }
 0x4f4   :  { %v7160_v7 = vpop.f32.mrf.mxu0 }
 0x4f5   :  { %v9383_v32 = vadd.f32 %v7160_v7, %v9128_v49  ;;  %v6276_v7 = vpop.f32.mrf.mxu1 }
 0x4f6   :  { %v9385_v55 = vpop.f32.mrf.mxu0  ;;  %v6277_v12 = vadd.f32 %v6276_v7, %v6275_v53  ;;  %v2890_v53 = vld [vmem:[%s10593_s3 + $0x5b0] sm:$0xff]  ;;  %v2908_v7 = vld [vmem:[%s10593_s3 + $0x640] sm:$0xff] }
 0x4f7   :  { %10828 = vst [vmem:[#allocation49_spill] sm:$0xff] %v9385_v55 }
 0x500   :  { %v7195_v6 = vpop.f32.mrf.mxu0 }
 0x501   :  { %v2661_v21 = vadd.f32 %v7195_v6, %v6250_v27  ;;  %v2896_v6 = vld [vmem:[%s10593_s3 + $0x5e0] sm:$0xff] }
 0x502   :  { %v2655_v10 = vpop.f32.mrf.mxu0 }
 0x503   :  { %v2656_v60 = vadd.f32 %v6247_v25, %v2655_v10  ;;  %v6262_v10 = vadd.f32 %v6261_v11, %v6260_v42 }
 0x504   :  { %v7198_v36 = vpop.f32.mrf.mxu0 }
 0x505   :  { %7213 = vmatprep.mubr.msk.f32.mxu1 %vm1185_vm2, %v2656_v60  ;;  %v2671_v55 = vadd.f32 %v7198_v36, %v6256_v24  ;;  %v2902_v36 = vld [vmem:[%s10593_s3 + $0x610] sm:$0xff] }
 0x506   :  { %v2665_v58 = vpop.f32.mrf.mxu0  ;;  %7214 = vmatmul.mubr.msk.f32.vlgmr.msra.gmra.mxu1 %vm1185_vm2, %v2661_v21  ;;  %v2899_v21 = vld [vmem:[%s10593_s3 + $0x5f8] sm:$0xff] }
 0x507   :  { %v2666_v49 = vadd.f32 %v6253_v45, %v2665_v58  ;;  %7232 = vmatpush3.msra.mxu1 %v8167_v13  ;;  %v6278_v58 = vpop.f32.mrf.mxu1  ;;  %v6268_v45 = vadd.f32 %v6267_v19, %v6266_v20 }
 0x508   :  { %7233 = vmatprep.subr.mxu1 %v8181_v59  ;;  %v7201_v4 = vpop.f32.mrf.mxu0 }
 0x509   :  { %7234 = vmatpush3.msra.mxu1 %v8181_v59  ;;  %7216 = vmatprep.mubr.msk.f32.mxu1 %vm1185_vm2, %v2666_v49  ;;  %v2681_v24 = vadd.f32 %v7201_v4, %v6262_v10  ;;  %v6279_v56 = vpop.f32.mrf.mxu1  ;;  %v2905_v49 = vld [vmem:[%s10593_s3 + $0x628] sm:$0xff]  ;;  %v2911_v4 = vld [vmem:[%s10593_s3 + $0x658] sm:$0xff] }
 0x50a   :  { %7235 = vmatprep.subr.mxu1 %v8188_v9  ;;  %v2675_v60 = vpop.f32.mrf.mxu0  ;;  %7217 = vmatmul.mubr.msk.f32.gmra.mxu1 %vm1185_vm2, %v2671_v55  ;;  %v6280_v15 = vadd.f32 %v6279_v56, %v6278_v58  ;;  %v2917_v10 = vld [vmem:[%s10593_s3 + $0x688] sm:$0xff]  ;;  %v3352_v58 = vld [vmem:[%s10593_s3 + $0x6e0] sm:$0xff] }
 0x50b   :  { %v2676_v25 = vadd.f32 %v6259_v35, %v2675_v60  ;;  %7236 = vmatpush3.msra.mxu1 %v8188_v9  ;;  %v2914_v35 = vld [vmem:[%s10593_s3 + $0x670] sm:$0xff]  ;;  %v2920_v60 = vld [vmem:[%s10593_s3 + $0x6a0] sm:$0xff]  ;;  %3453 = vmatprep.mubr.f32.mxu0 %v3352_v58 }
 0x50c   :  { %7237 = vmatprep.subr.mxu1 %v8195_v39  ;;  %v7204_v57 = vpop.f32.mrf.mxu0  ;;  %v3364_v56 = vld [vmem:[%s10593_s3 + $0x740] sm:$0xff] }
 0x50d   :  { %7238 = vmatpush3.msra.mxu1 %v8195_v39  ;;  %7219 = vmatprep.mubr.msk.f32.mxu1 %vm1185_vm2, %v2676_v25  ;;  %v2691_v19 = vadd.f32 %v7204_v57, %v6268_v45  ;;  %v2923_v25 = vld [vmem:[%s10593_s3 + $0x6b8] sm:$0xff]  ;;  %v3354_v57 = vld [vmem:[%s10593_s3 + $0x6f0] sm:$0xff] }
 0x50e   :  { %7239 = vmatprep.subr.mxu1 %v8205_v44  ;;  %v2685_v62 = vpop.f32.mrf.mxu0  ;;  %7220 = vmatmul.mubr.msk.f32.gmra.mxu1 %vm1185_vm2, %v2681_v24  ;;  %v3351_v45 = vld [vmem:[%s10593_s3 + $0x6d8] sm:$0xff] }
 0x50f   :  { %v2686_v55 = vadd.f32 %v6265_v40, %v2685_v62  ;;  %7240 = vmatpush3.msra.mxu1 %v8205_v44  ;;  %3454 = vmatmul.mubr.f32.gmra.mxu0 %v3351_v45  ;;  %v3355_v24 = vld [vmem:[%s10593_s3 + $0x6f8] sm:$0xff]  ;;  %v3358_v40 = vld [vmem:[%s10593_s3 + $0x710] sm:$0xff]  ;;  %v3361_v62 = vld [vmem:[%s10593_s3 + $0x728] sm:$0xff] }
 0x510   :  { %7241 = vmatprep.subr.mxu1 %v8229_v61  ;;  %v7207_v20 = vpop.f32.mrf.mxu0  ;;  %3458 = vmatprep.mubr.f32.mxu0 %v3355_v24 }
 0x511   :  { %7242 = vmatpush3.msra.mxu1 %v8229_v61  ;;  %7222 = vmatprep.mubr.msk.f32.mxu1 %vm1185_vm2, %v2686_v55  ;;  %v2701_v47 = vadd.f32 %v7207_v20, %v6274_v50  ;;  %v3357_v50 = vld [vmem:[%s10593_s3 + $0x708] sm:$0xff]  ;;  %v3360_v55 = vld [vmem:[%s10593_s3 + $0x720] sm:$0xff]  ;;  %v3367_v20 = vld [vmem:[%s10593_s3 + $0x758] sm:$0xff] }
 0x512   :  { %7243 = vmatprep.subr.mxu1 %v8241_v23  ;;  %v2695_v48 = vpop.f32.mrf.mxu0  ;;  %7223 = vmatmul.mubr.msk.f32.gmra.mxu1 %vm1185_vm2, %v2691_v19  ;;  %v3363_v19 = vld [vmem:[%s10593_s3 + $0x738] sm:$0xff] }
 0x513   :  { %v2696_v42 = vadd.f32 %v6271_v43, %v2695_v48  ;;  %7244 = vmatpush3.msra.mxu1 %v8241_v23  ;;  %3459 = vmatmul.mubr.f32.gmra.mxu0 %v3354_v57  ;;  %v3366_v43 = vld [vmem:[%s10593_s3 + $0x750] sm:$0xff]  ;;  %v3369_v48 = vld [vmem:[%s10593_s3 + $0x768] sm:$0xff] }
 0x514   :  { %7245 = vmatprep.subr.mxu1 %v8253_v5  ;;  %v7210_v11 = vpop.f32.mrf.mxu0  ;;  %3463 = vmatprep.mubr.f32.mxu0 %v3358_v40 }
 0x515   :  { %7246 = vmatpush3.msra.mxu1 %v8253_v5  ;;  %7225 = vmatprep.mubr.msk.f32.mxu1 %vm1185_vm2, %v2696_v42  ;;  %v2711_v8 = vadd.f32 %v7210_v11, %v6280_v15  ;;  %v3373_v15 = vld [vmem:[%s10593_s3 + $0x788] sm:$0xff]  ;;  %v3376_v42 = vld [vmem:[%s10593_s3 + $0x7a0] sm:$0xff]  ;;  %v3375_v11 = vld [vmem:[%s10593_s3 + $0x798] sm:$0xff] }
 0x516   :  { %7247 = vmatprep.subr.mxu1 %v8265_v16  ;;  %v2705_v27 = vpop.f32.mrf.mxu0  ;;  %7226 = vmatmul.mubr.msk.f32.gmra.mxu1 %vm1185_vm2, %v2701_v47  ;;  %v3370_v47 = vld [vmem:[%s10593_s3 + $0x770] sm:$0xff] }
 0x517   :  { %v2706_v28 = vadd.f32 %v6277_v12, %v2705_v27  ;;  %7248 = vmatpush3.msra.mxu1 %v8265_v16  ;;  %3464 = vmatmul.mubr.f32.gmra.mxu0 %v3357_v50  ;;  %v3372_v12 = vld [vmem:[%s10593_s3 + $0x780] sm:$0xff]  ;;  %v3379_v27 = vld [vmem:[%s10593_s3 + $0x7b8] sm:$0xff] }
 0x518   :  { %7249 = vmatprep.subr.mxu1 %v8277_v51  ;;  %3468 = vmatprep.mubr.f32.mxu0 %v3361_v62 }
 0x519   :  { %7250 = vmatpush3.msra.mxu1 %v8277_v51  ;;  %7228 = vmatprep.mubr.msk.f32.mxu1 %vm1185_vm2, %v2706_v28  ;;  %v3378_v28 = vld [vmem:[%s10593_s3 + $0x7b0] sm:$0xff] }
 0x51a   :  { %7251 = vmatprep.subr.mxu1 %v8289_v1  ;;  %7229 = vmatmul.mubr.msk.f32.gmra.mxu1 %vm1185_vm2, %v2711_v8 }
 0x51b   :  { %7252 = vmatpush3.msra.mxu1 %v8289_v1  ;;  %7263 = vmatprep.mubr.f32.mxu1 %v2890_v53 }
 0x51c   :  { %7253 = vmatprep.subr.mxu1 %v8301_v41  ;;  %3469 = vmatmul.mubr.f32.gmra.mxu0 %v3360_v55 }
 0x51d   :  { %7254 = vmatpush3.msra.mxu1 %v8301_v41  ;;  %3473 = vmatprep.mubr.f32.mxu0 %v3364_v56 }
 0x51e   :  { %7255 = vmatprep.subr.mxu1 %v8313_v46 }
 0x51f   :  { %7256 = vmatpush3.msra.mxu1 %v8313_v46 }
 0x520   :  { %7257 = vmatprep.subr.mxu1 %v8325_v31  ;;  %3474 = vmatmul.mubr.f32.gmra.mxu0 %v3363_v19  ;;  %v6354_v8 = vpop.f32.mrf.mxu0 }
 0x521   :  { %7258 = vmatpush3.msra.mxu1 %v8325_v31  ;;  %3478 = vmatprep.mubr.f32.mxu0 %v3367_v20 }
 0x522   :  { %7259 = vmatprep.subr.mxu1 %v8335_v52  ;;  %v6355_v53 = vpop.f32.mrf.mxu0 }
 0x523   :  { %7260 = vmatpush3.msra.mxu1 %v8335_v52 }
 0x524   :  { %7261 = vmatprep.subr.mxu1 %v8345_v0  ;;  %3479 = vmatmul.mubr.f32.gmra.mxu0 %v3366_v43 }
 0x525   :  { %7262 = vmatpush3.msra.mxu1 %v8345_v0  ;;  %3483 = vmatprep.mubr.f32.mxu0 %v3370_v47 }
 0x526   :  { %7264 = vmatmul.mubr.f32.vlgmr.msra.gmra.mxu1 %v2893_v63  ;;  %7281 = vmatprep.subr.mxu1 %v3174_v38  ;;  %v3382_v63 = vld [vmem:[%s10593_s3 + $0x7d0] sm:$0xff] }
 0x527   :  { %7282 = vmatpush3.msra.mxu1 %v3174_v38  ;;  %7266 = vmatprep.mubr.f32.mxu1 %v2896_v6  ;;  %v3381_v38 = vld [vmem:[%s10593_s3 + $0x7c8] sm:$0xff]  ;;  %v6357_v6 = vpop.f32.mrf.mxu0 }
 0x528   :  { %7301 = vmatprep.subr.mxu1 %v8167_v13  ;;  %3484 = vmatmul.mubr.f32.gmra.mxu0 %v3369_v48 }
 0x529   :  { %3488 = vmatprep.mubr.f32.mxu0 %v3373_v15 }
 0x52a   :  { %7267 = vmatmul.mubr.f32.gmra.mxu1 %v2899_v21  ;;  %v6358_v21 = vpop.f32.mrf.mxu0 }
 0x52b   :  { %7269 = vmatprep.mubr.f32.mxu1 %v2902_v36 }
 0x52c   :  { %3489 = vmatmul.mubr.f32.gmra.mxu0 %v3372_v12  ;;  %v6360_v36 = vpop.f32.mrf.mxu0 }
 0x52d   :  { %3493 = vmatprep.mubr.f32.mxu0 %v3376_v42 }
 0x52e   :  { %7270 = vmatmul.mubr.f32.gmra.mxu1 %v2905_v49  ;;  %v6361_v49 = vpop.f32.mrf.mxu0 }
 0x52f   :  { %7272 = vmatprep.mubr.f32.mxu1 %v2908_v7 }
 0x530   :  { %3494 = vmatmul.mubr.f32.gmra.mxu0 %v3375_v11  ;;  %v6363_v7 = vpop.f32.mrf.mxu0 }
 0x531   :  { %3498 = vmatprep.mubr.f32.mxu0 %v3379_v27 }
 0x532   :  { %7273 = vmatmul.mubr.f32.gmra.mxu1 %v2911_v4  ;;  %v6364_v4 = vpop.f32.mrf.mxu0 }
 0x533   :  { %7275 = vmatprep.mubr.f32.mxu1 %v2914_v35 }
 0x534   :  { %3499 = vmatmul.mubr.f32.gmra.mxu0 %v3378_v28  ;;  %v6366_v35 = vpop.f32.mrf.mxu0 }
 0x535   :  { %3503 = vmatprep.mubr.f32.mxu0 %v3382_v63 }
 0x536   :  { %7276 = vmatmul.mubr.f32.gmra.mxu1 %v2917_v10  ;;  %v6367_v10 = vpop.f32.mrf.mxu0 }
 0x537   :  { %7278 = vmatprep.mubr.f32.mxu1 %v2920_v60 }
 0x538   :  { %3504 = vmatmul.mubr.f32.gmra.mxu0 %v3381_v38  ;;  %v6369_v60 = vpop.f32.mrf.mxu0 }
 0x53a   :  { %7279 = vmatmul.mubr.f32.gmra.mxu1 %v2923_v25  ;;  %v6370_v25 = vpop.f32.mrf.mxu0 }
 0x53c   :  { %v6372_v57 = vpop.f32.mrf.mxu0 }
 0x53e   :  { %v6373_v55 = vpop.f32.mrf.mxu0 }
 0x540   :  { %v6375_v43 = vpop.f32.mrf.mxu0 }
 0x542   :  { %v6376_v15 = vpop.f32.mrf.mxu0 }
 0x544   :  { %v6378_v11 = vpop.f32.mrf.mxu0 }
 0x546   :  { %v6379_v28 = vpop.f32.mrf.mxu0 }
 0x548   :  { %v6381_v63 = vpop.f32.mrf.mxu0 }
 0x5c6   :  { %v7215_v58 = vpop.f32.mrf.mxu1 }
 0x5c7   :  { %v9537_v45 = vadd.f32 %v7215_v58, %v9358_v26 }
 0x5c8   :  { %v9539_v24 = vpop.f32.mrf.mxu1 }
 0x5c9   :  { %10829 = vst [vmem:[#allocation50_spill] sm:$0xff] %v9539_v24 }
 0x5ca   :  { %v7218_v40 = vpop.f32.mrf.mxu1 }
 0x5cb   :  { %v9542_v50 = vadd.f32 %v7218_v40, %v9363_v34  ;;  %v6356_v40 = vadd.f32 %v6355_v53, %v6354_v8  ;;  %v6368_v53 = vadd.f32 %v6367_v10, %v6366_v35  ;;  %v6374_v35 = vadd.f32 %v6373_v55, %v6372_v57 }
 0x5cc   :  { %v9544_v62 = vpop.f32.mrf.mxu1 }
 0x5cd   :  { %10830 = vst [vmem:[#allocation51_spill] sm:$0xff] %v9544_v62  ;;  %v6362_v62 = vadd.f32 %v6361_v49, %v6360_v36 }
 0x5ce   :  { %v7221_v56 = vpop.f32.mrf.mxu1 }
 0x5cf   :  { %v9547_v19 = vadd.f32 %v7221_v56, %v9368_v22  ;;  %v6359_v56 = vadd.f32 %v6358_v21, %v6357_v6  ;;  %v6371_v6 = vadd.f32 %v6370_v25, %v6369_v60 }
 0x5d0   :  { %v9549_v20 = vpop.f32.mrf.mxu1 }
 0x5d1   :  { %10831 = vst [vmem:[#allocation52_spill] sm:$0xff] %v9549_v20 }
 0x5d2   :  { %v7224_v47 = vpop.f32.mrf.mxu1 }
 0x5d3   :  { %v9552_v26 = vadd.f32 %v7224_v47, %v9373_v29  ;;  %v6382_v29 = vpop.f32.mrf.mxu0 }
 0x5d4   :  { %v9554_v48 = vpop.f32.mrf.mxu1  ;;  %v6383_v10 = vadd.f32 %v6382_v29, %v6381_v63 }
 0x5d5   :  { %10832 = vst [vmem:[#allocation53_spill] sm:$0xff] %v9554_v48  ;;  %v6384_v20 = vpop.f32.mrf.mxu0 }
 0x5d6   :  { %v7227_v12 = vpop.f32.mrf.mxu1 }
 0x5d7   :  { %v9557_v34 = vadd.f32 %v7227_v12, %v9378_v17 }
 0x5d8   :  { %v9559_v42 = vpop.f32.mrf.mxu1 }
 0x5d9   :  { %10833 = vst [vmem:[#allocation54_spill] sm:$0xff] %v9559_v42  ;;  %v6365_v42 = vadd.f32 %v6364_v4, %v6363_v7  ;;  %v6377_v7 = vadd.f32 %v6376_v15, %v6375_v43  ;;  %v6380_v15 = vadd.f32 %v6379_v28, %v6378_v11 }
 0x5da   :  { %v7230_v27 = vpop.f32.mrf.mxu1 }
 0x5db   :  { %v9562_v22 = vadd.f32 %v7230_v27, %v9383_v32  ;;  %v6385_v27 = vpop.f32.mrf.mxu0 }
 0x5dc   :  { %v9564_v38 = vpop.f32.mrf.mxu1 }
 0x5dd   :  { %10834 = vst [vmem:[#allocation55_spill] sm:$0xff] %v9562_v22  ;;  %v6387_v49 = vpop.f32.mrf.mxu0 }
 0x5e6   :  { %v7265_v58 = vpop.f32.mrf.mxu1 }
 0x5e7   :  { %v3121_v17 = vadd.f32 %v7265_v58, %v6359_v56  ;;  %v3356_v56 = vld [vmem:[%s10593_s3 + $0x700] sm:$0xff] }
 0x5e8   :  { %v3115_v47 = vpop.f32.mrf.mxu1 }
 0x5e9   :  { %v3116_v48 = vadd.f32 %v6356_v40, %v3115_v47  ;;  %v3353_v40 = vld [vmem:[%s10593_s3 + $0x6e8] sm:$0xff]  ;;  %v3359_v47 = vld [vmem:[%s10593_s3 + $0x718] sm:$0xff] }
 0x5ea   :  { %v7268_v12 = vpop.f32.mrf.mxu1 }
 0x5eb   :  { %7283 = vmatprep.mubr.msk.f32.mxu1 %vm1185_vm2, %v3116_v48  ;;  %v3131_v22 = vadd.f32 %v7268_v12, %v6365_v42  ;;  %v3365_v12 = vld [vmem:[%s10593_s3 + $0x748] sm:$0xff] }
 0x5ec   :  { %v3125_v24 = vpop.f32.mrf.mxu1  ;;  %7284 = vmatmul.mubr.msk.f32.vlgmr.msra.gmra.mxu1 %vm1185_vm2, %v3121_v17  ;;  %v3362_v17 = vld [vmem:[%s10593_s3 + $0x730] sm:$0xff] }
 0x5ed   :  { %v3126_v32 = vadd.f32 %v6362_v62, %v3125_v24  ;;  %7302 = vmatpush3.msra.mxu1 %v8167_v13  ;;  %v6388_v62 = vpop.f32.mrf.mxu0 }
 0x5ee   :  { %7303 = vmatprep.subr.mxu1 %v8181_v59  ;;  %v7271_v8 = vpop.f32.mrf.mxu1  ;;  %v6389_v42 = vadd.f32 %v6388_v62, %v6387_v49  ;;  %v10839_v49 = vld [vmem:[#allocation12_spill] sm:$0xff]  ;;  %v3383_v62 = vld [vmem:[%s10593_s3 + $0x7d8] sm:$0xff] }
 0x5ef   :  { %7304 = vmatpush3.msra.mxu1 %v8181_v59  ;;  %7286 = vmatprep.mubr.msk.f32.mxu1 %vm1185_vm2, %v3126_v32  ;;  %v3141_v4 = vadd.f32 %v7271_v8, %v6371_v6  ;;  %v3368_v32 = vld [vmem:[%s10593_s3 + $0x760] sm:$0xff]  ;;  %v10836_v8 = vld [vmem:[#allocation9_spill] sm:$0xff] }
 0x5f0   :  { %7305 = vmatprep.subr.mxu1 %v8188_v9  ;;  %v3135_v21 = vpop.f32.mrf.mxu1  ;;  %7287 = vmatmul.mubr.msk.f32.gmra.mxu1 %vm1185_vm2, %v3131_v22  ;;  %v6386_v22 = vadd.f32 %v6385_v27, %v6384_v20  ;;  %v3350_v20 = vld [vmem:[%s10593_s3 + $0x6d0] sm:$0xff]  ;;  %v10837_v6 = vld [vmem:[#allocation10_spill] sm:$0xff] }
 0x5f1   :  { %v3136_v36 = vadd.f32 %v6368_v53, %v3135_v21  ;;  %7306 = vmatpush3.msra.mxu1 %v8188_v9  ;;  %v10835_v27 = vld [vmem:[#allocation8_spill] sm:$0xff]  ;;  %v3371_v53 = vld [vmem:[%s10593_s3 + $0x778] sm:$0xff] }
 0x5f2   :  { %7307 = vmatprep.subr.mxu1 %v8195_v39  ;;  %v7274_v24 = vpop.f32.mrf.mxu1  ;;  %v3374_v21 = vld [vmem:[%s10593_s3 + $0x790] sm:$0xff] }
 0x5f3   :  { %7308 = vmatpush3.msra.mxu1 %v8195_v39  ;;  %7289 = vmatprep.mubr.msk.f32.mxu1 %vm1185_vm2, %v3136_v36  ;;  %v3151_v43 = vadd.f32 %v7274_v24, %v6377_v7  ;;  %v10838_v36 = vld [vmem:[#allocation11_spill] sm:$0xff]  ;;  %v10840_v7 = vld [vmem:[#allocation13_spill] sm:$0xff]  ;;  %v10841_v24 = vld [vmem:[#allocation14_spill] sm:$0xff] }
 0x5f4   :  { %7309 = vmatprep.subr.mxu1 %v8205_v44  ;;  %v3145_v60 = vpop.f32.mrf.mxu1  ;;  %7290 = vmatmul.mubr.msk.f32.gmra.mxu1 %vm1185_vm2, %v3141_v4  ;;  %v3377_v4 = vld [vmem:[%s10593_s3 + $0x7a8] sm:$0xff] }
 0x5f5   :  { %v3146_v25 = vadd.f32 %v6374_v35, %v3145_v60  ;;  %7310 = vmatpush3.msra.mxu1 %v8205_v44  ;;  %v3380_v35 = vld [vmem:[%s10593_s3 + $0x7c0] sm:$0xff]  ;;  %v10843_v60 = vld [vmem:[#allocation16_spill] sm:$0xff] }
 0x5f6   :  { %7311 = vmatprep.subr.mxu1 %v8229_v61  ;;  %v7277_v48 = vpop.f32.mrf.mxu1 }
 0x5f7   :  { %7312 = vmatpush3.msra.mxu1 %v8229_v61  ;;  %7292 = vmatprep.mubr.msk.f32.mxu1 %vm1185_vm2, %v3146_v25  ;;  %v3161_v57 = vadd.f32 %v7277_v48, %v6383_v10  ;;  %v10842_v10 = vld [vmem:[#allocation15_spill] sm:$0xff]  ;;  %v10844_v25 = vld [vmem:[#allocation17_spill] sm:$0xff] }
 0x5f8   :  { %7313 = vmatprep.subr.mxu1 %v8241_v23  ;;  %v3155_v55 = vpop.f32.mrf.mxu1  ;;  %7293 = vmatmul.mubr.msk.f32.gmra.mxu1 %vm1185_vm2, %v3151_v43  ;;  %v10845_v43 = vld [vmem:[#allocation18_spill] sm:$0xff]  ;;  %v3809_v48 = vld [vmem:[%s10593_s3 + $0x7e8] sm:$0xff] }
 0x5f9   :  { %v3156_v63 = vadd.f32 %v6380_v15, %v3155_v55  ;;  %7314 = vmatpush3.msra.mxu1 %v8241_v23  ;;  %v10846_v15 = vld [vmem:[#allocation19_spill] sm:$0xff]  ;;  %v10848_v55 = vld [vmem:[#allocation21_spill] sm:$0xff] }
 0x5fa   :  { %7315 = vmatprep.subr.mxu1 %v8253_v5  ;;  %v7280_v29 = vpop.f32.mrf.mxu1 }
 0x5fb   :  { %7316 = vmatpush3.msra.mxu1 %v8253_v5  ;;  %7295 = vmatprep.mubr.msk.f32.mxu1 %vm1185_vm2, %v3156_v63  ;;  %v3171_v11 = vadd.f32 %v7280_v29, %v6389_v42  ;;  %v10849_v42 = vld [vmem:[#allocation22_spill] sm:$0xff]  ;;  %v10851_v63 = vld [vmem:[#allocation24_spill] sm:$0xff]  ;;  %v10852_v29 = vld [vmem:[#allocation25_spill] sm:$0xff] }
 0x5fc   :  { %7317 = vmatprep.subr.mxu1 %v8265_v16  ;;  %v3165_v28 = vpop.f32.mrf.mxu1  ;;  %7296 = vmatmul.mubr.msk.f32.gmra.mxu1 %vm1185_vm2, %v3161_v57  ;;  %v10847_v57 = vld [vmem:[#allocation20_spill] sm:$0xff] }
 0x5fd   :  { %v3166_v58 = vadd.f32 %v6386_v22, %v3165_v28  ;;  %7318 = vmatpush3.msra.mxu1 %v8265_v16  ;;  %v10850_v22 = vld [vmem:[#allocation23_spill] sm:$0xff] }
 0x5fe   :  { %7319 = vmatprep.subr.mxu1 %v8277_v51  ;;  %v10854_v28 = vld [vmem:[#allocation27_spill] sm:$0xff] }
 0x5ff   :  { %7320 = vmatpush3.msra.mxu1 %v8277_v51  ;;  %7298 = vmatprep.mubr.msk.f32.mxu1 %vm1185_vm2, %v3166_v58  ;;  %v10855_v58 = vld [vmem:[#allocation28_spill] sm:$0xff] }
 0x600   :  { %7321 = vmatprep.subr.mxu1 %v8289_v1  ;;  %7299 = vmatmul.mubr.msk.f32.gmra.mxu1 %vm1185_vm2, %v3171_v11  ;;  %v10853_v11 = vld [vmem:[#allocation26_spill] sm:$0xff] }
 0x601   :  { %7322 = vmatpush3.msra.mxu1 %v8289_v1  ;;  %7333 = vmatprep.mubr.f32.mxu1 %v3350_v20  ;;  %v10856_v20 = vld [vmem:[#allocation29_spill] sm:$0xff] }
 0x602   :  { %7323 = vmatprep.subr.mxu1 %v8301_v41 }
 0x603   :  { %7324 = vmatpush3.msra.mxu1 %v8301_v41 }
 0x604   :  { %7325 = vmatprep.subr.mxu1 %v8313_v46 }
 0x605   :  { %7326 = vmatpush3.msra.mxu1 %v8313_v46 }
 0x606   :  { %7327 = vmatprep.subr.mxu1 %v8325_v31 }
 0x607   :  { %7328 = vmatpush3.msra.mxu1 %v8325_v31 }
 0x608   :  { %7329 = vmatprep.subr.mxu1 %v8335_v52 }
 0x609   :  { %7330 = vmatpush3.msra.mxu1 %v8335_v52 }
 0x60a   :  { %7331 = vmatprep.subr.mxu1 %v8345_v0 }
 0x60b   :  { %7332 = vmatpush3.msra.mxu1 %v8345_v0 }
 0x60c   :  { %7334 = vmatmul.mubr.f32.vlgmr.msra.gmra.mxu1 %v3353_v40  ;;  %6540 = vmatprep.subr.mxu1 %v10775_v14  ;;  %v3808_v40 = vld [vmem:[%s10593_s3 + $0x7e0] sm:$0xff] }
 0x60d   :  { %6541 = vmatpush3.msra.mxu1 %v7974_v30  ;;  %7336 = vmatprep.mubr.f32.mxu1 %v3356_v56  ;;  %v10857_v56 = vld [vmem:[#allocation30_spill] sm:$0xff] }
 0x60e   :  { %6542 = vmatprep.subr.mxu1 %v7979_v33 }
 0x60f   :  { %6543 = vmatpush3.msra.mxu1 %v10744_v3 }
 0x610   :  { %7337 = vmatmul.mubr.f32.gmra.mxu1 %v3359_v47  ;;  %6544 = vmatprep.subr.mxu1 %v10745_v54  ;;  %v3812_v47 = vld [vmem:[%s10593_s3 + $0x800] sm:$0xff] }
 0x611   :  { %6545 = vmatpush3.msra.mxu1 %v10748_v2  ;;  %7339 = vmatprep.mubr.f32.mxu1 %v3362_v17  ;;  %v10858_v17 = vld [vmem:[#allocation31_spill] sm:$0xff] }
 0x612   :  { %6546 = vmatprep.subr.mxu1 %v10749_v37 }
 0x613   :  { %6547 = vmatpush3.msra.mxu1 %v10750_v18 }
 0x614   :  { %7340 = vmatmul.mubr.f32.gmra.mxu1 %v3365_v12  ;;  %6548 = vmatprep.subr.mxu1 %v10835_v27  ;;  %v3811_v12 = vld [vmem:[%s10593_s3 + $0x7f8] sm:$0xff] }
 0x615   :  { %6549 = vmatpush3.msra.mxu1 %v10836_v8  ;;  %7342 = vmatprep.mubr.f32.mxu1 %v3368_v32  ;;  %v3815_v32 = vld [vmem:[%s10593_s3 + $0x818] sm:$0xff] }
 0x616   :  { %6550 = vmatprep.subr.mxu1 %v10837_v6 }
 0x617   :  { %6551 = vmatpush3.msra.mxu1 %v10838_v36 }
 0x618   :  { %7343 = vmatmul.mubr.f32.gmra.mxu1 %v3371_v53  ;;  %6552 = vmatprep.subr.mxu1 %v10839_v49  ;;  %v3829_v53 = vld [vmem:[%s10593_s3 + $0x888] sm:$0xff] }
 0x619   :  { %6553 = vmatpush3.msra.mxu1 %v10840_v7  ;;  %7345 = vmatprep.mubr.f32.mxu1 %v3374_v21  ;;  %v3832_v21 = vld [vmem:[%s10593_s3 + $0x8a0] sm:$0xff] }
 0x61a   :  { %6554 = vmatprep.subr.mxu1 %v10841_v24 }
 0x61b   :  { %6555 = vmatpush3.msra.mxu1 %v10842_v10 }
 0x61c   :  { %7346 = vmatmul.mubr.f32.gmra.mxu1 %v3377_v4  ;;  %6556 = vmatprep.subr.mxu1 %v10843_v60  ;;  %v3838_v4 = vld [vmem:[%s10593_s3 + $0x8d0] sm:$0xff] }
 0x61d   :  { %6557 = vmatpush3.msra.mxu1 %v10844_v25  ;;  %7348 = vmatprep.mubr.f32.mxu1 %v3380_v35  ;;  %v3841_v35 = vld [vmem:[%s10593_s3 + $0x8e8] sm:$0xff] }
 0x61e   :  { %6558 = vmatprep.subr.mxu1 %v10845_v43 }
 0x61f   :  { %6559 = vmatpush3.msra.mxu1 %v10846_v15 }
 0x620   :  { %7349 = vmatmul.mubr.f32.gmra.mxu1 %v3383_v62  ;;  %6560 = vmatprep.subr.mxu1 %v10847_v57 }
 0x621   :  { %6561 = vmatpush3.msra.mxu1 %v10848_v55  ;;  %3908 = vmatprep.mubr.f32.mxu1 %v3809_v48 }
 0x622   :  { %6562 = vmatprep.subr.mxu1 %v10849_v42 }
 0x623   :  { %6563 = vmatpush3.msra.mxu1 %v10850_v22 }
 0x624   :  { %6564 = vmatprep.subr.mxu1 %v10851_v63 }
 0x625   :  { %6565 = vmatpush3.msra.mxu1 %v10852_v29 }
 0x626   :  { %6566 = vmatprep.subr.mxu1 %v10853_v11 }
 0x627   :  { %6567 = vmatpush3.msra.mxu1 %v10854_v28 }
 0x628   :  { %6568 = vmatprep.subr.mxu1 %v10855_v58 }
 0x629   :  { %6569 = vmatpush3.msra.mxu1 %v10856_v20 }
 0x62a   :  { %6570 = vmatprep.subr.mxu1 %v10857_v56 }
 0x62b   :  { %6571 = vmatpush3.msra.mxu1 %v10858_v17 }
 0x62c   :  { %3909 = vmatmul.mubr.f32.vlgmr.msra.gmra.mxu1 %v3808_v40  ;;  %6649 = vmatprep.subr.mxu1 %v10775_v14  ;;  %v3827_v14 = vld [vmem:[%s10593_s3 + $0x878] sm:$0xff] }
 0x62d   :  { %6650 = vmatpush3.msra.mxu1 %v7974_v30  ;;  %3913 = vmatprep.mubr.f32.mxu1 %v3812_v47  ;;  %v3814_v30 = vld [vmem:[%s10593_s3 + $0x810] sm:$0xff] }
 0x62e   :  { %6651 = vmatprep.subr.mxu1 %v7979_v33  ;;  %v3818_v33 = vld [vmem:[%s10593_s3 + $0x830] sm:$0xff] }
 0x62f   :  { %6652 = vmatpush3.msra.mxu1 %v10744_v3  ;;  %v3817_v3 = vld [vmem:[%s10593_s3 + $0x828] sm:$0xff] }
 0x630   :  { %3914 = vmatmul.mubr.f32.gmra.mxu1 %v3811_v12  ;;  %6653 = vmatprep.subr.mxu1 %v10745_v54  ;;  %v3821_v54 = vld [vmem:[%s10593_s3 + $0x848] sm:$0xff] }
 0x631   :  { %6654 = vmatpush3.msra.mxu1 %v10748_v2  ;;  %3918 = vmatprep.mubr.f32.mxu1 %v3815_v32  ;;  %v3820_v2 = vld [vmem:[%s10593_s3 + $0x840] sm:$0xff] }
 0x632   :  { %6655 = vmatprep.subr.mxu1 %v10749_v37  ;;  %v3824_v37 = vld [vmem:[%s10593_s3 + $0x860] sm:$0xff] }
 0x633   :  { %6656 = vmatpush3.msra.mxu1 %v10750_v18  ;;  %v3823_v18 = vld [vmem:[%s10593_s3 + $0x858] sm:$0xff] }
 0x634   :  { %3919 = vmatmul.mubr.f32.gmra.mxu1 %v3814_v30  ;;  %6657 = vmatprep.subr.mxu1 %v10835_v27  ;;  %v3826_v27 = vld [vmem:[%s10593_s3 + $0x870] sm:$0xff] }
 0x635   :  { %6658 = vmatpush3.msra.mxu1 %v10836_v8  ;;  %3923 = vmatprep.mubr.f32.mxu1 %v3818_v33  ;;  %v3830_v8 = vld [vmem:[%s10593_s3 + $0x890] sm:$0xff] }
 0x636   :  { %6659 = vmatprep.subr.mxu1 %v10837_v6  ;;  %v3833_v6 = vld [vmem:[%s10593_s3 + $0x8a8] sm:$0xff] }
 0x637   :  { %6660 = vmatpush3.msra.mxu1 %v10838_v36  ;;  %v3836_v36 = vld [vmem:[%s10593_s3 + $0x8c0] sm:$0xff] }
 0x638   :  { %3924 = vmatmul.mubr.f32.gmra.mxu1 %v3817_v3  ;;  %6661 = vmatprep.subr.mxu1 %v10839_v49  ;;  %v3835_v49 = vld [vmem:[%s10593_s3 + $0x8b8] sm:$0xff] }
 0x639   :  { %6662 = vmatpush3.msra.mxu1 %v10840_v7  ;;  %3928 = vmatprep.mubr.f32.mxu1 %v3821_v54  ;;  %v3839_v7 = vld [vmem:[%s10593_s3 + $0x8d8] sm:$0xff] }
 0x63a   :  { %6663 = vmatprep.subr.mxu1 %v10841_v24  ;;  %v3842_v24 = vld [vmem:[%s10593_s3 + $0x8f0] sm:$0xff] }
 0x63b   :  { %6664 = vmatpush3.msra.mxu1 %v10842_v10  ;;  %v4269_v10 = vld [vmem:[%s10593_s3 + $0x908] sm:$0xff] }
 0x63c   :  { %3929 = vmatmul.mubr.f32.gmra.mxu1 %v3820_v2  ;;  %6665 = vmatprep.subr.mxu1 %v10843_v60  ;;  %v4268_v60 = vld [vmem:[%s10593_s3 + $0x900] sm:$0xff] }
 0x63d   :  { %6666 = vmatpush3.msra.mxu1 %v10844_v25  ;;  %3933 = vmatprep.mubr.f32.mxu1 %v3824_v37  ;;  %v6463_v25 = vpop.f32.mrf.mxu0  ;;  %v10859_v37 = vld [vmem:[#allocation37_spill] sm:$0xff] }
 0x63e   :  { %6667 = vmatprep.subr.mxu1 %v10845_v43 }
 0x63f   :  { %6668 = vmatpush3.msra.mxu1 %v10846_v15  ;;  %v6464_v62 = vpop.f32.mrf.mxu0 }
 0x640   :  { %3934 = vmatmul.mubr.f32.gmra.mxu1 %v3823_v18  ;;  %6669 = vmatprep.subr.mxu1 %v10847_v57  ;;  %v10860_v18 = vld [vmem:[#allocation36_spill] sm:$0xff] }
 0x641   :  { %6670 = vmatpush3.msra.mxu1 %v10848_v55  ;;  %3938 = vmatprep.mubr.f32.mxu1 %v3827_v14  ;;  %v6466_v43 = vpop.f32.mrf.mxu0 }
 0x642   :  { %6671 = vmatprep.subr.mxu1 %v10849_v42 }
 0x643   :  { %6672 = vmatpush3.msra.mxu1 %v10850_v22  ;;  %v6467_v48 = vpop.f32.mrf.mxu0 }
 0x644   :  { %3939 = vmatmul.mubr.f32.gmra.mxu1 %v3826_v27  ;;  %6673 = vmatprep.subr.mxu1 %v10851_v63 }
 0x645   :  { %6674 = vmatpush3.msra.mxu1 %v10852_v29  ;;  %3943 = vmatprep.mubr.f32.mxu1 %v3830_v8  ;;  %v6469_v15 = vpop.f32.mrf.mxu0  ;;  %v10861_v8 = vld [vmem:[#allocation48_spill] sm:$0xff] }
 0x646   :  { %6675 = vmatprep.subr.mxu1 %v10853_v11 }
 0x647   :  { %6676 = vmatpush3.msra.mxu1 %v10854_v28  ;;  %v6470_v57 = vpop.f32.mrf.mxu0 }
 0x648   :  { %3944 = vmatmul.mubr.f32.gmra.mxu1 %v3829_v53  ;;  %6677 = vmatprep.subr.mxu1 %v10855_v58 }
 0x649   :  { %6678 = vmatpush3.msra.mxu1 %v10856_v20  ;;  %3948 = vmatprep.mubr.f32.mxu1 %v3833_v6  ;;  %v6472_v55 = vpop.f32.mrf.mxu0 }
 0x64a   :  { %6679 = vmatprep.subr.mxu1 %v10857_v56 }
 0x64b   :  { %6680 = vmatpush3.msra.mxu1 %v10858_v17  ;;  %v6473_v42 = vpop.f32.mrf.mxu0 }
 0x64c   :  { %3949 = vmatmul.mubr.f32.gmra.mxu1 %v3832_v21  ;;  %7579 = vmatprep.subr.mxu1 %v8167_v13  ;;  %v10862_v21 = vld [vmem:[#allocation49_spill] sm:$0xff] }
 0x64d   :  { %3953 = vmatprep.mubr.f32.mxu1 %v3836_v36  ;;  %v6475_v22 = vpop.f32.mrf.mxu0 }
 0x64f   :  { %v6476_v63 = vpop.f32.mrf.mxu0 }
 0x650   :  { %3954 = vmatmul.mubr.f32.gmra.mxu1 %v3835_v49 }
 0x651   :  { %3958 = vmatprep.mubr.f32.mxu1 %v3839_v7  ;;  %v6478_v29 = vpop.f32.mrf.mxu0 }
 0x653   :  { %v6479_v11 = vpop.f32.mrf.mxu0 }
 0x654   :  { %3959 = vmatmul.mubr.f32.gmra.mxu1 %v3838_v4  ;;  %v10863_v4 = vld [vmem:[#allocation55_spill] sm:$0xff] }
 0x655   :  { %3963 = vmatprep.mubr.f32.mxu1 %v3842_v24  ;;  %v6481_v40 = vpop.f32.mrf.mxu0 }
 0x657   :  { %v6482_v12 = vpop.f32.mrf.mxu0 }
 0x658   :  { %3964 = vmatmul.mubr.f32.gmra.mxu1 %v3841_v35 }
 0x659   :  { %4368 = vmatprep.mubr.f32.mxu1 %v4269_v10  ;;  %v6484_v3 = vpop.f32.mrf.mxu0 }
 0x65b   :  { %v6485_v14 = vpop.f32.mrf.mxu0 }
 0x65c   :  { %4369 = vmatmul.mubr.f32.vlgmr.msra.gmra.mxu1 %v4268_v60 }
 0x65d   :  { %7595 = vmatpush3.msra.mxu1 %v8167_v13  ;;  %v6487_v49 = vpop.f32.mrf.mxu0 }
 0x65e   :  { %7580 = vmatprep.subr.mxu1 %v8181_v59 }
 0x65f   :  { %7596 = vmatpush3.msra.mxu1 %v8181_v59  ;;  %v6488_v60 = vpop.f32.mrf.mxu0 }
 0x660   :  { %7581 = vmatprep.subr.mxu1 %v8188_v9 }
 0x661   :  { %7597 = vmatpush3.msra.mxu1 %v8188_v9 }
 0x662   :  { %7582 = vmatprep.subr.mxu1 %v8195_v39 }
 0x663   :  { %7598 = vmatpush3.msra.mxu1 %v8195_v39 }
 0x664   :  { %7583 = vmatprep.subr.mxu1 %v8205_v44 }
 0x665   :  { %7599 = vmatpush3.msra.mxu1 %v8205_v44 }
 0x666   :  { %7584 = vmatprep.subr.mxu1 %v8229_v61 }
 0x667   :  { %7600 = vmatpush3.msra.mxu1 %v8229_v61 }
 0x668   :  { %7585 = vmatprep.subr.mxu1 %v8241_v23 }
 0x669   :  { %7601 = vmatpush3.msra.mxu1 %v8241_v23 }
 0x66a   :  { %7586 = vmatprep.subr.mxu1 %v8253_v5 }
 0x66b   :  { %7602 = vmatpush3.msra.mxu1 %v8253_v5 }
 0x66c   :  { %7587 = vmatprep.subr.mxu1 %v8265_v16 }
 0x66d   :  { %7603 = vmatpush3.msra.mxu1 %v8265_v16 }
 0x66e   :  { %7588 = vmatprep.subr.mxu1 %v8277_v51 }
 0x66f   :  { %7604 = vmatpush3.msra.mxu1 %v8277_v51 }
 0x670   :  { %7589 = vmatprep.subr.mxu1 %v8289_v1 }
 0x671   :  { %7605 = vmatpush3.msra.mxu1 %v8289_v1 }
 0x672   :  { %7590 = vmatprep.subr.mxu1 %v8301_v41 }
 0x673   :  { %7606 = vmatpush3.msra.mxu1 %v8301_v41 }
 0x674   :  { %7591 = vmatprep.subr.mxu1 %v8313_v46 }
 0x675   :  { %7607 = vmatpush3.msra.mxu1 %v8313_v46 }
 0x676   :  { %7592 = vmatprep.subr.mxu1 %v8325_v31 }
 0x677   :  { %7608 = vmatpush3.msra.mxu1 %v8325_v31 }
 0x678   :  { %7593 = vmatprep.subr.mxu1 %v8335_v52 }
 0x679   :  { %7609 = vmatpush3.msra.mxu1 %v8335_v52 }
 0x67a   :  { %7594 = vmatprep.subr.mxu1 %v8345_v0 }
 0x67b   :  { %7610 = vmatpush3.msra.mxu1 %v8345_v0 }
 0x6ac   :  { %v7285_v28 = vpop.f32.mrf.mxu1 }
 0x6ad   :  { %v9820_v58 = vadd.f32 %v7285_v28, %v9537_v45  ;;  %v6490_v28 = vpop.f32.mrf.mxu0 }
 0x6ae   :  { %v9822_v20 = vpop.f32.mrf.mxu1 }
 0x6b0   :  { %v7288_v56 = vpop.f32.mrf.mxu1 }
 0x6b1   :  { %v9825_v47 = vadd.f32 %v7288_v56, %v9542_v50  ;;  %v1500_v50 = vadd.f32 %v10860_v18, %v10859_v37  ;;  %v6491_v56 = vpop.f32.mrf.mxu0 }
 0x6b2   :  { %v9827_v17 = vpop.f32.mrf.mxu1 }
 0x6b3   :  { %v1966_v53 = vadd.f32 %v10861_v8, %v1500_v50  ;;  %v6493_v50 = vpop.f32.mrf.mxu0 }
 0x6b4   :  { %v7291_v32 = vpop.f32.mrf.mxu1 }
 0x6b5   :  { %v9830_v30 = vadd.f32 %v7291_v32, %v9547_v19  ;;  %v2426_v36 = vadd.f32 %v10862_v21, %v1966_v53  ;;  %v6471_v53 = vadd.f32 %v6470_v57, %v6469_v15 }
 0x6b6   :  { %v9832_v33 = vpop.f32.mrf.mxu1 }
 0x6b8   :  { %v7294_v54 = vpop.f32.mrf.mxu1 }
 0x6b9   :  { %v9835_v45 = vadd.f32 %v7294_v54, %v9552_v26  ;;  %v2886_v26 = vadd.f32 %v9564_v38, %v2426_v36  ;;  %v6468_v54 = vadd.f32 %v6467_v48, %v6466_v43  ;;  %v6474_v38 = vadd.f32 %v6473_v42, %v6472_v55 }
 0x6ba   :  { %v9837_v2 = vpop.f32.mrf.mxu1  ;;  %v6480_v43 = vadd.f32 %v6479_v11, %v6478_v29  ;;  %v6486_v55 = vadd.f32 %v6485_v14, %v6484_v3 }
 0x6bc   :  { %v7297_v27 = vpop.f32.mrf.mxu1 }
 0x6bd   :  { %v9843_v6 = vadd.f32 %v7297_v27, %v9557_v34  ;;  %v6465_v34 = vadd.f32 %v6464_v62, %v6463_v25  ;;  %v6477_v62 = vadd.f32 %v6476_v63, %v6475_v22  ;;  %v6483_v22 = vadd.f32 %v6482_v12, %v6481_v40 }
 0x6be   :  { %v9845_v19 = vpop.f32.mrf.mxu1  ;;  %v6492_v63 = vadd.f32 %v6491_v56, %v6490_v28 }
 0x6c0   :  { %v7300_v7 = vpop.f32.mrf.mxu1 }
 0x6c1   :  { %v9850_v24 = vadd.f32 %v7300_v7, %v10863_v4  ;;  %v6494_v7 = vpop.f32.mrf.mxu0 }
 0x6c2   :  { %v3327_v35 = vpop.f32.mrf.mxu1  ;;  %v6495_v56 = vadd.f32 %v6494_v7, %v6493_v50  ;;  %v3813_v50 = vld [vmem:[%s10593_s3 + $0x808] sm:$0xff]  ;;  %v3831_v7 = vld [vmem:[%s10593_s3 + $0x898] sm:$0xff] }
 0x6c3   :  { %v9852_v10 = vadd.f32 %v3327_v35, %v2886_v26  ;;  %v6496_v57 = vpop.f32.mrf.mxu0 }
 0x6c5   :  { %v6497_v35 = vpop.f32.mrf.mxu0 }
 0x6c6   :  { %v6498_v28 = vadd.f32 %v6497_v35, %v6496_v57  ;;  %v4275_v57 = vld [vmem:[%s10593_s3 + $0x938] sm:$0xff] }
 0x6c7   :  { %v4287_v35 = vld [vmem:[%s10593_s3 + $0x998] sm:$0xff] }
 0x6cc   :  { %v7335_v32 = vpop.f32.mrf.mxu1 }
 0x6cd   :  { %v3581_v27 = vadd.f32 %v7335_v32, %v6468_v54  ;;  %v6489_v32 = vadd.f32 %v6488_v60, %v6487_v49 }
 0x6ce   :  { %v3575_v37 = vpop.f32.mrf.mxu1 }
 0x6cf   :  { %v3576_v18 = vadd.f32 %v6465_v34, %v3575_v37 }
 0x6d0   :  { %v7338_v8 = vpop.f32.mrf.mxu1 }
 0x6d1   :  { %7353 = vmatprep.mubr.msk.f32.mxu0 %vm1185_vm2, %v3576_v18  ;;  %v3591_v26 = vadd.f32 %v7338_v8, %v6474_v38  ;;  %v3810_v18 = vld [vmem:[%s10593_s3 + $0x7f0] sm:$0xff]  ;;  %v3816_v8 = vld [vmem:[%s10593_s3 + $0x820] sm:$0xff] }
 0x6d2   :  { %v3585_v21 = vpop.f32.mrf.mxu1  ;;  %7354 = vmatmul.mubr.msk.f32.vlgmr.msra.gmra.mxu0 %vm1185_vm2, %v3581_v27  ;;  %v4094_v27 = vld [vmem:[%s10595_s4 + $0x38] sm:$0xff]  ;;  %v3822_v38 = vld [vmem:[%s10593_s3 + $0x850] sm:$0xff] }
 0x6d3   :  { %v3586_v36 = vadd.f32 %v6471_v53, %v3585_v21  ;;  %7372 = vmatpush3.msra.mxu0 %v8167_v13  ;;  %v3819_v53 = vld [vmem:[%s10593_s3 + $0x838] sm:$0xff]  ;;  %v3825_v21 = vld [vmem:[%s10593_s3 + $0x868] sm:$0xff] }
 0x6d4   :  { %7373 = vmatprep.subr.mxu0 %v8181_v59  ;;  %v7341_v25 = vpop.f32.mrf.mxu1 }
 0x6d5   :  { %7374 = vmatpush3.msra.mxu0 %v8181_v59  ;;  %7356 = vmatprep.mubr.msk.f32.mxu0 %vm1185_vm2, %v3586_v36  ;;  %v3601_v42 = vadd.f32 %v7341_v25, %v6480_v43  ;;  %v3828_v36 = vld [vmem:[%s10593_s3 + $0x880] sm:$0xff]  ;;  %v3837_v25 = vld [vmem:[%s10593_s3 + $0x8c8] sm:$0xff]  ;;  %v3843_v43 = vld [vmem:[%s10593_s3 + $0x8f8] sm:$0xff] }
 0x6d6   :  { %7375 = vmatprep.subr.mxu0 %v8188_v9  ;;  %v3595_v48 = vpop.f32.mrf.mxu1  ;;  %7357 = vmatmul.mubr.msk.f32.gmra.mxu0 %vm1185_vm2, %v3591_v26  ;;  %v3834_v26 = vld [vmem:[%s10593_s3 + $0x8b0] sm:$0xff] }
 0x6d7   :  { %v3596_v15 = vadd.f32 %v6477_v62, %v3595_v48  ;;  %7376 = vmatpush3.msra.mxu0 %v8188_v9  ;;  %v3840_v62 = vld [vmem:[%s10593_s3 + $0x8e0] sm:$0xff] }
 0x6d8   :  { %7377 = vmatprep.subr.mxu0 %v8195_v39  ;;  %v7344_v4 = vpop.f32.mrf.mxu1  ;;  %v4272_v48 = vld [vmem:[%s10593_s3 + $0x920] sm:$0xff] }
 0x6d9   :  { %7378 = vmatpush3.msra.mxu0 %v8195_v39  ;;  %7359 = vmatprep.mubr.msk.f32.mxu0 %vm1185_vm2, %v3596_v15  ;;  %v3611_v3 = vadd.f32 %v7344_v4, %v6486_v55  ;;  %v4271_v15 = vld [vmem:[%s10593_s3 + $0x918] sm:$0xff]  ;;  %v4274_v55 = vld [vmem:[%s10593_s3 + $0x930] sm:$0xff]  ;;  %v4277_v4 = vld [vmem:[%s10593_s3 + $0x948] sm:$0xff] }
 0x6da   :  { %7379 = vmatprep.subr.mxu0 %v8205_v44  ;;  %v3605_v29 = vpop.f32.mrf.mxu1  ;;  %7360 = vmatmul.mubr.msk.f32.gmra.mxu0 %vm1185_vm2, %v3601_v42  ;;  %v4278_v42 = vld [vmem:[%s10593_s3 + $0x950] sm:$0xff] }
 0x6db   :  { %v3606_v11 = vadd.f32 %v6483_v22, %v3605_v29  ;;  %7380 = vmatpush3.msra.mxu0 %v8205_v44  ;;  %4373 = vmatprep.mubr.f32.mxu1 %v4272_v48  ;;  %v4281_v22 = vld [vmem:[%s10593_s3 + $0x968] sm:$0xff]  ;;  %v4284_v29 = vld [vmem:[%s10593_s3 + $0x980] sm:$0xff] }
 0x6dc   :  { %7381 = vmatprep.subr.mxu0 %v8229_v61  ;;  %v7347_v14 = vpop.f32.mrf.mxu1  ;;  %4374 = vmatmul.mubr.f32.gmra.mxu1 %v4271_v15  ;;  %v10866_v15 = vld [vmem:[#allocation39_spill] sm:$0xff] }
 0x6dd   :  { %7382 = vmatpush3.msra.mxu0 %v8229_v61  ;;  %7362 = vmatprep.mubr.msk.f32.mxu0 %vm1185_vm2, %v3606_v11  ;;  %v3621_v40 = vadd.f32 %v7347_v14, %v6492_v63  ;;  %v4280_v63 = vld [vmem:[%s10593_s3 + $0x960] sm:$0xff]  ;;  %v4283_v11 = vld [vmem:[%s10593_s3 + $0x978] sm:$0xff]  ;;  %v4290_v14 = vld [vmem:[%s10593_s3 + $0x9b0] sm:$0xff] }
 0x6de   :  { %7383 = vmatprep.subr.mxu0 %v8241_v23  ;;  %v3615_v12 = vpop.f32.mrf.mxu1  ;;  %7363 = vmatmul.mubr.msk.f32.gmra.mxu0 %vm1185_vm2, %v3611_v3  ;;  %v4286_v3 = vld [vmem:[%s10593_s3 + $0x990] sm:$0xff] }
 0x6df   :  { %v3616_v34 = vadd.f32 %v6489_v32, %v3615_v12  ;;  %7384 = vmatpush3.msra.mxu0 %v8241_v23  ;;  %4378 = vmatprep.mubr.f32.mxu1 %v4275_v57  ;;  %v4289_v32 = vld [vmem:[%s10593_s3 + $0x9a8] sm:$0xff]  ;;  %v4292_v12 = vld [vmem:[%s10593_s3 + $0x9c0] sm:$0xff] }
 0x6e0   :  { %7385 = vmatprep.subr.mxu0 %v8253_v5  ;;  %v7350_v54 = vpop.f32.mrf.mxu1  ;;  %4379 = vmatmul.mubr.f32.gmra.mxu1 %v4274_v55 }
 0x6e1   :  { %7386 = vmatpush3.msra.mxu0 %v8253_v5  ;;  %7365 = vmatprep.mubr.msk.f32.mxu0 %vm1185_vm2, %v3616_v34  ;;  %v3631_v49 = vadd.f32 %v7350_v54, %v6498_v28  ;;  %v4296_v28 = vld [vmem:[%s10593_s3 + $0x9e0] sm:$0xff]  ;;  %v4299_v34 = vld [vmem:[%s10593_s3 + $0x9f8] sm:$0xff]  ;;  %v4298_v54 = vld [vmem:[%s10593_s3 + $0x9f0] sm:$0xff] }
 0x6e2   :  { %7387 = vmatprep.subr.mxu0 %v8265_v16  ;;  %v3625_v60 = vpop.f32.mrf.mxu1  ;;  %7366 = vmatmul.mubr.msk.f32.gmra.mxu0 %vm1185_vm2, %v3621_v40  ;;  %v4293_v40 = vld [vmem:[%s10593_s3 + $0x9c8] sm:$0xff] }
 0x6e3   :  { %v3626_v37 = vadd.f32 %v6495_v56, %v3625_v60  ;;  %7388 = vmatpush3.msra.mxu0 %v8265_v16  ;;  %4383 = vmatprep.mubr.f32.mxu1 %v4278_v42  ;;  %v4295_v56 = vld [vmem:[%s10593_s3 + $0x9d8] sm:$0xff]  ;;  %v4301_v60 = vld [vmem:[%s10593_s3 + $0xa08] sm:$0xff]  ;;  %v10867_v42 = vld [vmem:[#allocation34_spill] sm:$0xff] }
 0x6e4   :  { %7389 = vmatprep.subr.mxu0 %v8277_v51  ;;  %4384 = vmatmul.mubr.f32.gmra.mxu1 %v4277_v4  ;;  %v10868_v4 = vld [vmem:[#allocation3_spill] sm:$0xff] }
 0x6e5   :  { %7390 = vmatpush3.msra.mxu0 %v8277_v51  ;;  %7368 = vmatprep.mubr.msk.f32.mxu0 %vm1185_vm2, %v3626_v37 }
 0x6e6   :  { %7391 = vmatprep.subr.mxu0 %v8289_v1  ;;  %7369 = vmatmul.mubr.msk.f32.gmra.mxu0 %vm1185_vm2, %v3631_v49  ;;  %v4302_v49 = vld [vmem:[%s10593_s3 + $0xa10] sm:$0xff] }
 0x6e7   :  { %7392 = vmatpush3.msra.mxu0 %v8289_v1  ;;  %7403 = vmatprep.mubr.f32.mxu0 %v3810_v18  ;;  %v4300_v18 = vld [vmem:[%s10593_s3 + $0xa00] sm:$0xff] }
 0x6e8   :  { %7393 = vmatprep.subr.mxu0 %v8301_v41  ;;  %4388 = vmatprep.mubr.f32.mxu1 %v4281_v22  ;;  %v1460_v22 = vadd.f32 %v10868_v4, %v10867_v42  ;;  %v10877_v4 = vld [vmem:[#allocation7_spill] sm:$0xff] }
 0x6e9   :  { %7394 = vmatpush3.msra.mxu0 %v8301_v41  ;;  %4389 = vmatmul.mubr.f32.gmra.mxu1 %v4280_v63  ;;  %v10869_v63 = vld [vmem:[#allocation38_spill] sm:$0xff] }
 0x6ea   :  { %7395 = vmatprep.subr.mxu0 %v8313_v46  ;;  %4393 = vmatprep.mubr.f32.mxu1 %v4284_v29 }
 0x6eb   :  { %7396 = vmatpush3.msra.mxu0 %v8313_v46 }
 0x6ec   :  { %7397 = vmatprep.subr.mxu0 %v8325_v31  ;;  %v10003_v37 = vpop.f32.mrf.mxu1 }
 0x6ed   :  { %7398 = vmatpush3.msra.mxu0 %v8325_v31  ;;  %4394 = vmatmul.mubr.f32.gmra.mxu1 %v4283_v11  ;;  %v10870_v11 = vld [vmem:[#allocation41_spill] sm:$0xff] }
 0x6ee   :  { %7399 = vmatprep.subr.mxu0 %v8335_v52  ;;  %4398 = vmatprep.mubr.f32.mxu1 %v4287_v35  ;;  %v1958_v35 = vadd.f32 %v10870_v11, %v1460_v22  ;;  %v10878_v22 = vld [vmem:[#allocation5_spill] sm:$0xff] }
 0x6ef   :  { %7400 = vmatpush3.msra.mxu0 %v8335_v52 }
 0x6f0   :  { %7401 = vmatprep.subr.mxu0 %v8345_v0 }
 0x6f1   :  { %7402 = vmatpush3.msra.mxu0 %v8345_v0  ;;  %4399 = vmatmul.mubr.f32.gmra.mxu1 %v4286_v3  ;;  %v10871_v3 = vld [vmem:[#allocation50_spill] sm:$0xff] }
 0x6f2   :  { %7404 = vmatmul.mubr.f32.vlgmr.msra.gmra.mxu0 %v3813_v50  ;;  %7421 = vmatprep.subr.mxu0 %v4094_v27  ;;  %v4303_v50 = vld [vmem:[%s10593_s3 + $0xa18] sm:$0xff] }
 0x6f3   :  { %7422 = vmatpush3.msra.mxu0 %v4094_v27  ;;  %7406 = vmatprep.mubr.f32.mxu0 %v3816_v8  ;;  %v10011_v27 = vpop.f32.mrf.mxu1 }
 0x6f4   :  { %7441 = vmatprep.subr.mxu0 %v8167_v13  ;;  %4403 = vmatprep.mubr.f32.mxu1 %v4290_v14 }
 0x6f5   :  { %4404 = vmatmul.mubr.f32.gmra.mxu1 %v4289_v32  ;;  %v10013_v8 = vpop.f32.mrf.mxu1 }
 0x6f6   :  { %7407 = vmatmul.mubr.f32.gmra.mxu0 %v3819_v53  ;;  %4408 = vmatprep.mubr.f32.mxu1 %v4293_v40 }
 0x6f7   :  { %7409 = vmatprep.mubr.f32.mxu0 %v3822_v38  ;;  %v10015_v53 = vpop.f32.mrf.mxu1 }
 0x6f9   :  { %4409 = vmatmul.mubr.f32.gmra.mxu1 %v4292_v12  ;;  %v10017_v38 = vpop.f32.mrf.mxu1  ;;  %v10872_v12 = vld [vmem:[#allocation6_spill] sm:$0xff] }
 0x6fa   :  { %7410 = vmatmul.mubr.f32.gmra.mxu0 %v3825_v21  ;;  %4413 = vmatprep.mubr.f32.mxu1 %v4296_v28  ;;  %v10873_v28 = vld [vmem:[#allocation4_spill] sm:$0xff] }
 0x6fb   :  { %7412 = vmatprep.mubr.f32.mxu0 %v3828_v36  ;;  %v10019_v21 = vpop.f32.mrf.mxu1 }
 0x6fd   :  { %4414 = vmatmul.mubr.f32.gmra.mxu1 %v4295_v56  ;;  %v10021_v36 = vpop.f32.mrf.mxu1  ;;  %v1470_v56 = vadd.f32 %v10873_v28, %v10872_v12 }
 0x6fe   :  { %7413 = vmatmul.mubr.f32.gmra.mxu0 %v3831_v7  ;;  %4418 = vmatprep.mubr.f32.mxu1 %v4299_v34  ;;  %v10874_v34 = vld [vmem:[#allocation40_spill] sm:$0xff] }
 0x6ff   :  { %7415 = vmatprep.mubr.f32.mxu0 %v3834_v26  ;;  %v10023_v7 = vpop.f32.mrf.mxu1 }
 0x701   :  { %4419 = vmatmul.mubr.f32.gmra.mxu1 %v4298_v54  ;;  %v10025_v26 = vpop.f32.mrf.mxu1  ;;  %v2418_v54 = vadd.f32 %v10874_v34, %v1958_v35 }
 0x702   :  { %7416 = vmatmul.mubr.f32.gmra.mxu0 %v3837_v25  ;;  %4423 = vmatprep.mubr.f32.mxu1 %v4302_v49 }
 0x703   :  { %7418 = vmatprep.mubr.f32.mxu0 %v3840_v62  ;;  %v10027_v25 = vpop.f32.mrf.mxu1  ;;  %v10864_v62 = vld [vmem:[#allocation33_spill] sm:$0xff] }
 0x705   :  { %4424 = vmatmul.mubr.f32.gmra.mxu1 %v4301_v60  ;;  %v10032_v55 = vpop.f32.mrf.mxu1 }
 0x706   :  { %7419 = vmatmul.mubr.f32.gmra.mxu0 %v3843_v43  ;;  %7488 = vmatprep.mubr.f32.mxu1 %v4300_v18  ;;  %v10865_v43 = vld [vmem:[#allocation32_spill] sm:$0xff] }
 0x707   :  { %v1450_v48 = vadd.f32 %v10865_v43, %v10864_v62  ;;  %v10039_v32 = vpop.f32.mrf.mxu1  ;;  %v10876_v43 = vld [vmem:[#allocation51_spill] sm:$0xff] }
 0x709   :  { %7489 = vmatmul.mubr.f32.vlgmr.msra.gmra.mxu1 %v4303_v50  ;;  %v1956_v57 = vadd.f32 %v10866_v15, %v1450_v48  ;;  %v10875_v50 = vld [vmem:[#allocation43_spill] sm:$0xff]  ;;  %v2878_v48 = vadd.f32 %v10876_v43, %v2418_v54 }
 0x70a   :  { %v1960_v62 = vadd.f32 %v10875_v50, %v1470_v56  ;;  %v10882_v54 = vld [vmem:[#allocation35_spill] sm:$0xff]  ;;  %v10884_v50 = vld [vmem:[#allocation44_spill] sm:$0xff] }
 0x70b   :  { %v2416_v29 = vadd.f32 %v10869_v63, %v1956_v57  ;;  %v10052_v57 = vpop.f32.mrf.mxu1  ;;  %v1480_v63 = vadd.f32 %v10878_v22, %v10877_v4  ;;  %v10886_v4 = vld [vmem:[#allocation53_spill] sm:$0xff] }
 0x70d   :  { %v2876_v14 = vadd.f32 %v10871_v3, %v2416_v29  ;;  %v10879_v29 = vld [vmem:[#allocation42_spill] sm:$0xff]  ;;  %v10880_v3 = vld [vmem:[#allocation45_spill] sm:$0xff]  ;;  %v10065_v56 = vpop.f32.mrf.mxu1 }
 0x70e   :  { %v2420_v11 = vadd.f32 %v10879_v29, %v1960_v62 }
 0x70f   :  { %v3336_v49 = vadd.f32 %v9822_v20, %v2876_v14  ;;  %v3338_v20 = vadd.f32 %v9827_v17, %v2878_v48  ;;  %v1962_v14 = vadd.f32 %v10880_v3, %v1480_v63  ;;  %v10885_v48 = vld [vmem:[#allocation47_spill] sm:$0xff]  ;;  %v6593_v29 = vpop.f32.mrf.mxu1 }
 0x711   :  { %v2422_v62 = vadd.f32 %v10884_v50, %v1962_v14 }
 0x713   :  { %v2882_v22 = vadd.f32 %v10886_v4, %v2422_v62 }
 0x715   :  { %v3342_v3 = vadd.f32 %v9837_v2, %v2882_v22 }
 0x792   :  { %v7355_v40 = vpop.f32.mrf.mxu0 }
 0x793   :  { %v10046_v60 = vadd.f32 %v7355_v40, %v9820_v58  ;;  %v10881_v40 = vld [vmem:[#allocation52_spill] sm:$0xff] }
 0x794   :  { %v3737_v18 = vpop.f32.mrf.mxu0  ;;  %v2880_v12 = vadd.f32 %v10881_v40, %v2420_v11  ;;  %v10888_v40 = vld [vmem:[#allocation54_spill] sm:$0xff] }
 0x795   :  { %v10050_v15 = vadd.f32 %v3737_v18, %v3336_v49  ;;  %v10883_v49 = vld [vmem:[#allocation2_spill] sm:$0xff] }
 0x796   :  { %v7358_v42 = vpop.f32.mrf.mxu0  ;;  %v1490_v18 = vadd.f32 %v10883_v49, %v10882_v54  ;;  %v3340_v17 = vadd.f32 %v9832_v33, %v2880_v12 }
 0x797   :  { %v10059_v58 = vadd.f32 %v7358_v42, %v9825_v47 }
 0x798   :  { %v3747_v35 = vpop.f32.mrf.mxu0  ;;  %v1964_v42 = vadd.f32 %v10885_v48, %v1490_v18 }
 0x799   :  { %v10063_v28 = vadd.f32 %v3747_v35, %v3338_v20  ;;  %v10887_v20 = vld [vmem:[#allocation46_spill] sm:$0xff] }
 0x79a   :  { %v7361_v34 = vpop.f32.mrf.mxu0  ;;  %v2424_v35 = vadd.f32 %v10887_v20, %v1964_v42 }
 0x79b   :  { %v10072_v47 = vadd.f32 %v7361_v34, %v9830_v30  ;;  %v6594_v34 = vpop.f32.mrf.mxu1 }
 0x79c   :  { %v3757_v43 = vpop.f32.mrf.mxu0  ;;  %v2884_v30 = vadd.f32 %v10888_v40, %v2424_v35  ;;  %v6580_v40 = vadd.f32 %v10019_v21, %v10017_v38  ;;  %v6589_v38 = vadd.f32 %v10039_v32, %v10032_v55 }
 0x79d   :  { %v10076_v63 = vadd.f32 %v3757_v43, %v3340_v17  ;;  %v6596_v17 = vpop.f32.mrf.mxu1 }
 0x79e   :  { %v7364_v11 = vpop.f32.mrf.mxu0  ;;  %v3344_v49 = vadd.f32 %v9845_v19, %v2884_v30  ;;  %v6577_v19 = vadd.f32 %v10015_v53, %v10013_v8 }
 0x79f   :  { %v10081_v14 = vadd.f32 %v7364_v11, %v9835_v45  ;;  %v6597_v42 = vpop.f32.mrf.mxu1 }
 0x7a0   :  { %v3767_v33 = vpop.f32.mrf.mxu0 }
 0x7a1   :  { %v10084_v12 = vadd.f32 %v3767_v33, %v3342_v3  ;;  %v6599_v4 = vpop.f32.mrf.mxu1 }
 0x7a2   :  { %v7367_v54 = vpop.f32.mrf.mxu0 }
 0x7a3   :  { %v10088_v18 = vadd.f32 %v7367_v54, %v9843_v6  ;;  %v6600_v22 = vpop.f32.mrf.mxu1  ;;  %v6574_v6 = vadd.f32 %v10011_v27, %v10003_v37  ;;  %v6586_v54 = vadd.f32 %v10027_v25, %v10025_v26 }
 0x7a4   :  { %v3777_v50 = vpop.f32.mrf.mxu0  ;;  %v6601_v25 = vadd.f32 %v6600_v22, %v6599_v4  ;;  %v4771_v4 = vld [vmem:[%s10596_s7] sm:$0xf] }
 0x7a5   :  { %v10090_v62 = vadd.f32 %v3777_v50, %v3344_v49  ;;  %v6602_v3 = vpop.f32.mrf.mxu1  ;;  %v6598_v50 = vadd.f32 %v6597_v42, %v6596_v17  ;;  %v4554_v22 = vld [vmem:[%s10595_s4 + $0x40] sm:$0xff] }
 0x7a6   :  { %v7370_v2 = vpop.f32.mrf.mxu0  ;;  %7491 = vmatprep.subr.mxu1 %v4554_v22 }
 0x7a7   :  { %v10093_v45 = vadd.f32 %v7370_v2, %v9850_v24  ;;  %v6603_v27 = vpop.f32.mrf.mxu1  ;;  %7492 = vmatpush3.msra.mxu1 %v4554_v22 }
 0x7a8   :  { %v3787_v43 = vpop.f32.mrf.mxu0  ;;  %v6604_v2 = vadd.f32 %v6603_v27, %v6602_v3  ;;  %v4764_v3 = vld [vmem:[%s10597_s6 + $0x28] sm:$0xff] }
 0x7a9   :  { %v10096_v48 = vadd.f32 %v3787_v43, %v9852_v10  ;;  %v6583_v10 = vadd.f32 %v10023_v7, %v10021_v36  ;;  %v6605_v36 = vpop.f32.mrf.mxu1  ;;  %v6595_v7 = vadd.f32 %v6594_v34, %v6593_v29 }
 0x7ab   :  { %v6606_v32 = vpop.f32.mrf.mxu1 }
 0x7ad   :  { %v6681_v27 = vpop.f32.mrf.mxu1 }
 0x7b2   :  { %v7405_v11 = vpop.f32.mrf.mxu0 }
 0x7b3   :  { %v4041_v33 = vadd.f32 %v7405_v11, %v6577_v19  ;;  %v4759_v11 = vld [vmem:[%s10597_s6] sm:$0xff]  ;;  %v4761_v19 = vld [vmem:[%s10597_s6 + $0x10] sm:$0xff] }
 0x7b4   :  { %v4035_v20 = vpop.f32.mrf.mxu0 }
 0x7b5   :  { %v4036_v35 = vadd.f32 %v6574_v6, %v4035_v20  ;;  %v4760_v6 = vld [vmem:[%s10597_s6 + $0x8] sm:$0xff]  ;;  %v4762_v20 = vld [vmem:[%s10597_s6 + $0x18] sm:$0xff] }
 0x7b6   :  { %v7408_v24 = vpop.f32.mrf.mxu0 }
 0x7b7   :  { %7423 = vmatprep.mubr.msk.f32.mxu0 %vm1185_vm2, %v4036_v35  ;;  %v4051_v8 = vadd.f32 %v7408_v24, %v6583_v10  ;;  %v4763_v35 = vld [vmem:[%s10597_s6 + $0x20] sm:$0xff]  ;;  %v4766_v24 = vld [vmem:[%s10597_s6 + $0x38] sm:$0xff]  ;;  %v4768_v10 = vld [vmem:[%s10597_s6 + $0x48] sm:$0xff] }
 0x7b8   :  { %v4045_v30 = vpop.f32.mrf.mxu0  ;;  %7424 = vmatmul.mubr.msk.f32.vlgmr.msra.gmra.mxu0 %vm1185_vm2, %v4041_v33  ;;  %v4765_v33 = vld [vmem:[%s10597_s6 + $0x30] sm:$0xff] }
 0x7b9   :  { %v4046_v37 = vadd.f32 %v6580_v40, %v4045_v30  ;;  %7442 = vmatpush3.msra.mxu0 %v8167_v13  ;;  %v4767_v40 = vld [vmem:[%s10597_s6 + $0x40] sm:$0xff]  ;;  %v4769_v30 = vld [vmem:[%s10597_s6 + $0x50] sm:$0xff] }
 0x7ba   :  { %7443 = vmatprep.subr.mxu0 %v8181_v59  ;;  %v7411_v53 = vpop.f32.mrf.mxu0 }
 0x7bb   :  { %7444 = vmatpush3.msra.mxu0 %v8181_v59  ;;  %7426 = vmatprep.mubr.msk.f32.mxu0 %vm1185_vm2, %v4046_v37  ;;  %v4061_v49 = vadd.f32 %v7411_v53, %v6589_v38  ;;  %v6592_v59 = vadd.f32 %v10065_v56, %v10052_v57  ;;  %v6607_v56 = vadd.f32 %v6606_v32, %v6605_v36  ;;  %v4770_v37 = vld [vmem:[%s10597_s6 + $0x58] sm:$0xff] }
 0x7bc   :  { %7445 = vmatprep.subr.mxu0 %v8188_v9  ;;  %v4055_v21 = vpop.f32.mrf.mxu0  ;;  %7427 = vmatmul.mubr.msk.f32.gmra.mxu0 %vm1185_vm2, %v4051_v8  ;;  %v6682_v8 = vpop.f32.mrf.mxu1 }
 0x7bd   :  { %v4056_v13 = vadd.f32 %v6586_v54, %v4055_v21  ;;  %7446 = vmatpush3.msra.mxu0 %v8188_v9 }
 0x7be   :  { %7447 = vmatprep.subr.mxu0 %v8195_v39  ;;  %v7414_v26 = vpop.f32.mrf.mxu0  ;;  %v6684_v53 = vpop.f32.mrf.mxu1 }
 0x7bf   :  { %7448 = vmatpush3.msra.mxu0 %v8195_v39  ;;  %7429 = vmatprep.mubr.msk.f32.mxu0 %vm1185_vm2, %v4056_v13  ;;  %v4071_v29 = vadd.f32 %v7414_v26, %v6595_v7 }
 0x7c0   :  { %7449 = vmatprep.subr.mxu0 %v8205_v44  ;;  %v4065_v55 = vpop.f32.mrf.mxu0  ;;  %7430 = vmatmul.mubr.msk.f32.gmra.mxu0 %vm1185_vm2, %v4061_v49  ;;  %v6685_v54 = vpop.f32.mrf.mxu1 }
 0x7c1   :  { %v4066_v9 = vadd.f32 %v6592_v59, %v4065_v55  ;;  %7450 = vmatpush3.msra.mxu0 %v8205_v44 }
 0x7c2   :  { %7451 = vmatprep.subr.mxu0 %v8229_v61  ;;  %v7417_v34 = vpop.f32.mrf.mxu0  ;;  %v6687_v38 = vpop.f32.mrf.mxu1 }
 0x7c3   :  { %7452 = vmatpush3.msra.mxu0 %v8229_v61  ;;  %7432 = vmatprep.mubr.msk.f32.mxu0 %vm1185_vm2, %v4066_v9  ;;  %v4081_v39 = vadd.f32 %v7417_v34, %v6601_v25 }
 0x7c4   :  { %7453 = vmatprep.subr.mxu0 %v8241_v23  ;;  %v4075_v57 = vpop.f32.mrf.mxu0  ;;  %7433 = vmatmul.mubr.msk.f32.gmra.mxu0 %vm1185_vm2, %v4071_v29  ;;  %v6688_v21 = vpop.f32.mrf.mxu1 }
 0x7c5   :  { %v4076_v43 = vadd.f32 %v6598_v50, %v4075_v57  ;;  %7454 = vmatpush3.msra.mxu0 %v8241_v23  ;;  %v4270_v23 = vld [vmem:[%s10593_s3 + $0x910] sm:$0xff] }
 0x7c6   :  { %7455 = vmatprep.subr.mxu0 %v8253_v5  ;;  %v7420_v44 = vpop.f32.mrf.mxu0  ;;  %v6690_v13 = vpop.f32.mrf.mxu1 }
 0x7c7   :  { %7456 = vmatpush3.msra.mxu0 %v8253_v5  ;;  %7435 = vmatprep.mubr.msk.f32.mxu0 %vm1185_vm2, %v4076_v43  ;;  %v4091_v61 = vadd.f32 %v7420_v44, %v6607_v56  ;;  %v4273_v5 = vld [vmem:[%s10593_s3 + $0x928] sm:$0xff] }
 0x7c8   :  { %7457 = vmatprep.subr.mxu0 %v8265_v16  ;;  %v4085_v17 = vpop.f32.mrf.mxu0  ;;  %7436 = vmatmul.mubr.msk.f32.gmra.mxu0 %vm1185_vm2, %v4081_v39  ;;  %v6691_v36 = vpop.f32.mrf.mxu1 }
 0x7c9   :  { %v4086_v42 = vadd.f32 %v6604_v2, %v4085_v17  ;;  %7458 = vmatpush3.msra.mxu0 %v8265_v16  ;;  %v4276_v16 = vld [vmem:[%s10593_s3 + $0x940] sm:$0xff] }
 0x7ca   :  { %7459 = vmatprep.subr.mxu0 %v8277_v51  ;;  %v6693_v7 = vpop.f32.mrf.mxu1 }
 0x7cb   :  { %7460 = vmatpush3.msra.mxu0 %v8277_v51  ;;  %7438 = vmatprep.mubr.msk.f32.mxu0 %vm1185_vm2, %v4086_v42  ;;  %v4279_v51 = vld [vmem:[%s10593_s3 + $0x958] sm:$0xff] }
 0x7cc   :  { %7461 = vmatprep.subr.mxu0 %v8289_v1  ;;  %7439 = vmatmul.mubr.msk.f32.gmra.mxu0 %vm1185_vm2, %v4091_v61  ;;  %v6694_v49 = vpop.f32.mrf.mxu1 }
 0x7cd   :  { %7462 = vmatpush3.msra.mxu0 %v8289_v1  ;;  %7473 = vmatprep.mubr.f32.mxu0 %v4270_v23  ;;  %v4282_v1 = vld [vmem:[%s10593_s3 + $0x970] sm:$0xff] }
 0x7ce   :  { %7463 = vmatprep.subr.mxu0 %v8301_v41  ;;  %v6696_v26 = vpop.f32.mrf.mxu1 }
 0x7cf   :  { %7464 = vmatpush3.msra.mxu0 %v8301_v41  ;;  %v4285_v41 = vld [vmem:[%s10593_s3 + $0x988] sm:$0xff] }
 0x7d0   :  { %7465 = vmatprep.subr.mxu0 %v8313_v46  ;;  %v6697_v59 = vpop.f32.mrf.mxu1 }
 0x7d1   :  { %7466 = vmatpush3.msra.mxu0 %v8313_v46  ;;  %v4288_v46 = vld [vmem:[%s10593_s3 + $0x9a0] sm:$0xff] }
 0x7d2   :  { %7467 = vmatprep.subr.mxu0 %v8325_v31  ;;  %v6699_v25 = vpop.f32.mrf.mxu1 }
 0x7d3   :  { %7468 = vmatpush3.msra.mxu0 %v8325_v31  ;;  %v4291_v31 = vld [vmem:[%s10593_s3 + $0x9b8] sm:$0xff] }
 0x7d4   :  { %7469 = vmatprep.subr.mxu0 %v8335_v52  ;;  %v6700_v29 = vpop.f32.mrf.mxu1 }
 0x7d5   :  { %7470 = vmatpush3.msra.mxu0 %v8335_v52  ;;  %v4294_v52 = vld [vmem:[%s10593_s3 + $0x9d0] sm:$0xff] }
 0x7d6   :  { %7471 = vmatprep.subr.mxu0 %v8345_v0  ;;  %v6702_v56 = vpop.f32.mrf.mxu1 }
 0x7d7   :  { %7472 = vmatpush3.msra.mxu0 %v8345_v0  ;;  %v4297_v0 = vld [vmem:[%s10593_s3 + $0x9e8] sm:$0xff] }
 0x7d8   :  { %7474 = vmatmul.mubr.f32.vlgmr.msra.gmra.mxu0 %v4273_v5  ;;  %7511 = vmatprep.subr.msk.mxu0 %vm4816_vm3, %v4771_v4  ;;  %v6703_v61 = vpop.f32.mrf.mxu1 }
 0x7d9   :  { %7476 = vmatprep.mubr.f32.mxu0 %v4276_v16  ;;  %7512 = vmatpush3.msk.msra.mxu0 %vm4816_vm3, %v4771_v4  ;;  %v6683_v4 = vadd.f32 %v6682_v8, %v6681_v27 }
 0x7da   :  { %v6705_v23 = vpop.f32.mrf.mxu1 }
 0x7dc   :  { %7477 = vmatmul.mubr.f32.gmra.mxu0 %v4279_v51  ;;  %v6706_v51 = vpop.f32.mrf.mxu1 }
 0x7dd   :  { %7479 = vmatprep.mubr.f32.mxu0 %v4282_v1 }
 0x7e0   :  { %7480 = vmatmul.mubr.f32.gmra.mxu0 %v4285_v41 }
 0x7e1   :  { %7482 = vmatprep.mubr.f32.mxu0 %v4288_v46  ;;  %v6708_v46 = vpop.f32.mrf.mxu1 }
 0x7e4   :  { %7483 = vmatmul.mubr.f32.gmra.mxu0 %v4291_v31 }
 0x7e5   :  { %7485 = vmatprep.mubr.f32.mxu0 %v4294_v52 }
 0x7e8   :  { %7486 = vmatmul.mubr.f32.gmra.mxu0 %v4297_v0 }
 0x7e9   :  { %7513 = vmatprep.mubr.msk.f32.mxu0 %vm4779_vm4, %v4759_v11 }
 0x7ec   :  { %7514 = vmatmul.mubr.msk.f32.vlgmr.msra.gmra.mxu0 %vm4779_vm4, %v4760_v6 }
 0x7ed   :  { %7516 = vmatprep.mubr.msk.f32.mxu0 %vm4779_vm4, %v4761_v19 }
 0x7f0   :  { %7517 = vmatmul.mubr.msk.f32.gmra.mxu0 %vm4779_vm4, %v4762_v20  ;;  %v6689_v20 = vadd.f32 %v6688_v21, %v6687_v38  ;;  %v6704_v38 = vadd.f32 %v6703_v61, %v6702_v56 }
 0x7f1   :  { %7519 = vmatprep.mubr.msk.f32.mxu0 %vm4779_vm4, %v4763_v35 }
 0x7f4   :  { %7520 = vmatmul.mubr.msk.f32.gmra.mxu0 %vm4779_vm4, %v4764_v3 }
 0x7f5   :  { %7522 = vmatprep.mubr.msk.f32.mxu0 %vm4779_vm4, %v4765_v33 }
 0x7f8   :  { %7523 = vmatmul.mubr.msk.f32.gmra.mxu0 %vm4779_vm4, %v4766_v24 }
 0x7f9   :  { %7525 = vmatprep.mubr.msk.f32.mxu0 %vm4779_vm4, %v4767_v40  ;;  %v6695_v40 = vadd.f32 %v6694_v49, %v6693_v7 }
 0x7fc   :  { %7526 = vmatmul.mubr.msk.f32.gmra.mxu0 %vm4779_vm4, %v4768_v10  ;;  %v6698_v10 = vadd.f32 %v6697_v59, %v6696_v26 }
 0x7fd   :  { %7528 = vmatprep.mubr.msk.f32.mxu0 %vm4779_vm4, %v4769_v30 }
 0x800   :  { %7529 = vmatmul.mubr.msk.f32.gmra.mxu0 %vm4779_vm4, %v4770_v37 }
 0x878   :  { %v7425_v55 = vpop.f32.mrf.mxu0 }
 0x879   :  { %v10240_v9 = vadd.f32 %v7425_v55, %v10046_v60  ;;  %v6707_v55 = vadd.f32 %v6706_v51, %v6705_v23  ;;  %v10290_v51 = vld [vmem:[%s10598_s5] ss:$0 sm:$0xff] }
 0x87a   :  { %v4197_v32 = vpop.f32.mrf.mxu0 }
 0x87b   :  { %v10243_v34 = vadd.f32 %v4197_v32, %v10050_v15 }
 0x87c   :  { %v7428_v50 = vpop.f32.mrf.mxu0 }
 0x87d   :  { %v10246_v39 = vadd.f32 %v7428_v50, %v10059_v58 }
 0x87e   :  { %v4207_v57 = vpop.f32.mrf.mxu0 }
 0x87f   :  { %v10249_v2 = vadd.f32 %v4207_v57, %v10063_v28 }
 0x880   :  { %v7431_v43 = vpop.f32.mrf.mxu0 }
 0x881   :  { %v10252_v44 = vadd.f32 %v7431_v43, %v10072_v47 }
 0x882   :  { %v4217_v60 = vpop.f32.mrf.mxu0 }
 0x883   :  { %v10255_v17 = vadd.f32 %v4217_v60, %v10076_v63 }
 0x884   :  { %v7434_v15 = vpop.f32.mrf.mxu0 }
 0x885   :  { %v10258_v42 = vadd.f32 %v7434_v15, %v10081_v14 }
 0x886   :  { %v4227_v58 = vpop.f32.mrf.mxu0 }
 0x887   :  { %v10261_v5 = vadd.f32 %v4227_v58, %v10084_v12  ;;  %v6709_v12 = vpop.f32.mrf.mxu1 }
 0x888   :  { %v7437_v28 = vpop.f32.mrf.mxu0  ;;  %v6710_v59 = vadd.f32 %v6709_v12, %v6708_v46 }
 0x889   :  { %v10264_v16 = vadd.f32 %v7437_v28, %v10088_v18  ;;  %v6711_v52 = vpop.f32.mrf.mxu1  ;;  %v6686_v18 = vadd.f32 %v6685_v54, %v6684_v53  ;;  %v6701_v54 = vadd.f32 %v6700_v29, %v6699_v25 }
 0x88a   :  { %v4237_v47 = vpop.f32.mrf.mxu0 }
 0x88b   :  { %v10267_v1 = vadd.f32 %v4237_v47, %v10090_v62  ;;  %v6712_v11 = vpop.f32.mrf.mxu1 }
 0x88c   :  { %v7440_v63 = vpop.f32.mrf.mxu0  ;;  %v6713_v26 = vadd.f32 %v6712_v11, %v6711_v52 }
 0x88d   :  { %v10270_v41 = vadd.f32 %v7440_v63, %v10093_v45  ;;  %v6692_v45 = vadd.f32 %v6691_v36, %v6690_v13  ;;  %v6714_v3 = vpop.f32.mrf.mxu1 }
 0x88e   :  { %v4247_v14 = vpop.f32.mrf.mxu0 }
 0x88f   :  { %v10273_v31 = vadd.f32 %v4247_v14, %v10096_v48  ;;  %v6715_v37 = vpop.f32.mrf.mxu1 }
 0x890   :  { %v6716_v57 = vadd.f32 %v6715_v37, %v6714_v3 }
 0x891   :  { %v7490_v13 = vpop.f32.mrf.mxu1 }
 0x892   :  { %v4551_v43 = vadd.f32 %v7490_v13, %v6716_v57 }
 0x893   :  { %v4545_v50 = vpop.f32.mrf.mxu1 }
 0x894   :  { %v4546_v56 = vadd.f32 %v6713_v26, %v4545_v50 }
 0x898   :  { %v7475_v0 = vpop.f32.mrf.mxu0 }
 0x899   :  { %v4501_v19 = vadd.f32 %v7475_v0, %v6686_v18  ;;  %v10298_v0 = vld [vmem:[%s10599_s8] ss:$0 sm:$0xff] }
 0x89a   :  { %v4495_v22 = vpop.f32.mrf.mxu0 }
 0x89b   :  { %v4496_v6 = vadd.f32 %v6683_v4, %v4495_v22 }
 0x89c   :  { %v7478_v62 = vpop.f32.mrf.mxu0 }
 0x89d   :  { %7493 = vmatprep.mubr.msk.f32.mxu1 %vm1185_vm2, %v4496_v6  ;;  %v4511_v33 = vadd.f32 %v7478_v62, %v6692_v45 }
 0x89e   :  { %v4505_v35 = vpop.f32.mrf.mxu0  ;;  %7494 = vmatmul.mubr.msk.f32.vlgmr.msra.gmra.mxu1 %vm1185_vm2, %v4501_v19 }
 0x89f   :  { %v4506_v48 = vadd.f32 %v6689_v20, %v4505_v35 }
 0x8a0   :  { %v7481_v24 = vpop.f32.mrf.mxu0 }
 0x8a1   :  { %7496 = vmatprep.mubr.msk.f32.mxu1 %vm1185_vm2, %v4506_v48  ;;  %v4521_v8 = vadd.f32 %v7481_v24, %v6698_v10 }
 0x8a2   :  { %v4515_v30 = vpop.f32.mrf.mxu0  ;;  %7497 = vmatmul.mubr.msk.f32.gmra.mxu1 %vm1185_vm2, %v4511_v33 }
 0x8a3   :  { %v4516_v27 = vadd.f32 %v6695_v40, %v4515_v30 }
 0x8a4   :  { %v7484_v53 = vpop.f32.mrf.mxu0 }
 0x8a5   :  { %7499 = vmatprep.mubr.msk.f32.mxu1 %vm1185_vm2, %v4516_v27  ;;  %v4531_v7 = vadd.f32 %v7484_v53, %v6704_v38 }
 0x8a6   :  { %v4525_v21 = vpop.f32.mrf.mxu0  ;;  %7500 = vmatmul.mubr.msk.f32.gmra.mxu1 %vm1185_vm2, %v4521_v8 }
 0x8a7   :  { %v4526_v36 = vadd.f32 %v6701_v54, %v4525_v21 }
 0x8a8   :  { %v7487_v49 = vpop.f32.mrf.mxu0 }
 0x8a9   :  { %7502 = vmatprep.mubr.msk.f32.mxu1 %vm1185_vm2, %v4526_v36  ;;  %v4541_v29 = vadd.f32 %v7487_v49, %v6710_v59 }
 0x8aa   :  { %v4535_v32 = vpop.f32.mrf.mxu0  ;;  %7503 = vmatmul.mubr.msk.f32.gmra.mxu1 %vm1185_vm2, %v4531_v7 }
 0x8ab   :  { %v4536_v25 = vadd.f32 %v6707_v55, %v4535_v32 }
 0x8ac   :  { %v7515_v60 = vpop.f32.mrf.mxu0 }
 0x8ad   :  { %7505 = vmatprep.mubr.msk.f32.mxu1 %vm1185_vm2, %v4536_v25  ;;  %v4892_v6 = vadd.f32 %v7515_v60, %v10298_v0 }
 0x8ae   :  { %7506 = vmatmul.mubr.msk.f32.gmra.mxu1 %vm1185_vm2, %v4541_v29  ;;  %v4886_v61 = vpop.f32.mrf.mxu0 }
 0x8af   :  { %7508 = vmatprep.mubr.msk.f32.mxu1 %vm1185_vm2, %v4546_v56  ;;  %v4887_v45 = vadd.f32 %v10298_v0, %v4886_v61 }
 0x8b0   :  { %v7518_v15 = vpop.f32.mrf.mxu0 }
 0x8b1   :  { %v4902_v24 = vadd.f32 %v7518_v15, %v10298_v0 }
 0x8b2   :  { %7509 = vmatmul.mubr.msk.f32.gmra.mxu1 %vm1185_vm2, %v4551_v43  ;;  %v4896_v58 = vpop.f32.mrf.mxu0 }
 0x8b3   :  { %v4897_v10 = vadd.f32 %v10298_v0, %v4896_v58 }
 0x8b4   :  { %v7521_v23 = vpop.f32.mrf.mxu0 }
 0x8b5   :  { %v4912_v7 = vadd.f32 %v7521_v23, %v10298_v0 }
 0x8b6   :  { %v4906_v28 = vpop.f32.mrf.mxu0 }
 0x8b7   :  { %v4907_v21 = vadd.f32 %v10298_v0, %v4906_v28 }
 0x8b8   :  { %v7524_v46 = vpop.f32.mrf.mxu0 }
 0x8b9   :  { %v4922_v61 = vadd.f32 %v7524_v46, %v10298_v0 }
 0x8ba   :  { %v4916_v19 = vpop.f32.mrf.mxu0 }
 0x8bb   :  { %v4917_v56 = vadd.f32 %v10298_v0, %v4916_v19 }
 0x8bc   :  { %v7527_v37 = vpop.f32.mrf.mxu0 }
 0x8be   :  { %v4926_v26 = vpop.f32.mrf.mxu0 }
 0x8c0   :  { %v7530_v58 = vpop.f32.mrf.mxu0 }
 0x95e   :  { %v7495_v47 = vpop.f32.mrf.mxu1 }
 0x95f   :  { %v4717_v63 = vadd.f32 %v7495_v47, %v10240_v9 }
 0x960   :  { %v4657_v14 = vpop.f32.mrf.mxu1 }
 0x961   :  { %v4736_v12 = vadd.f32 %v10290_v51, %v4717_v63  ;;  %v4716_v52 = vadd.f32 %v4657_v14, %v10243_v34 }
 0x962   :  { %v7498_v4 = vpop.f32.mrf.mxu1 }
 0x963   :  { %v4735_v18 = vadd.f32 %v10290_v51, %v4716_v52  ;;  %v4719_v22 = vadd.f32 %v7498_v4, %v10246_v39  ;;  %v4748_v11 = vmax.f32 %v4736_v12, 0.0  ;;  %v4927_v52 = vadd.f32 %v10298_v0, %v4926_v26 }
 0x964   :  { %v4667_v9 = vpop.f32.mrf.mxu1 }
 0x965   :  { %v4747_v62 = vmax.f32 %v4735_v18, 0.0  ;;  %v4738_v20 = vadd.f32 %v10290_v51, %v4719_v22  ;;  %v4718_v34 = vadd.f32 %v4667_v9, %v10249_v2  ;;  %v10312_v30 = vadd.f32 %v4892_v6, %v4748_v11  ;;  %v4936_v6 = vpop.f32.mrf.mxu0 }
 0x966   :  { %v7501_v35 = vpop.f32.mrf.mxu1  ;;  %v4932_v22 = vadd.f32 %v7527_v37, %v10298_v0 }
 0x967   :  { %v4737_v3 = vadd.f32 %v10290_v51, %v4718_v34  ;;  %v4721_v48 = vadd.f32 %v7501_v35, %v10252_v44  ;;  %v10308_v33 = vadd.f32 %v4887_v45, %v4747_v62  ;;  %v4750_v39 = vmax.f32 %v4738_v20, 0.0 }
 0x968   :  { %v4677_v40 = vpop.f32.mrf.mxu1  ;;  %v4937_v45 = vadd.f32 %v10298_v0, %v4936_v6 }
 0x969   :  { %v4749_v2 = vmax.f32 %v4737_v3, 0.0  ;;  %v4740_v27 = vadd.f32 %v10290_v51, %v4721_v48  ;;  %v4720_v8 = vadd.f32 %v4677_v40, %v10255_v17  ;;  %v4960_v44 = vsel %vm4959_vm5, %v10308_v33, 0.0 }
 0x96a   :  { %v7504_v53 = vpop.f32.mrf.mxu1  ;;  %4961 = vadd.xlane.f32.xlu0 %v4960_v44  ;;  %v4963_v17 = vsel %vm4959_vm5, %v10312_v30, 0.0  ;;  %v10326_v55 = vadd.f32 %v4902_v24, %v4750_v39  ;;  %v4942_v3 = vadd.f32 %v7530_v58, %v10298_v0 }
 0x96b   :  { %v4739_v54 = vadd.f32 %v10290_v51, %v4720_v8  ;;  %v4723_v38 = vadd.f32 %v7504_v53, %v10258_v42  ;;  %v10321_v13 = vadd.f32 %v4897_v10, %v4749_v2  ;;  %v4752_v36 = vmax.f32 %v4740_v27, 0.0 }
 0x96c   :  { %v4687_v49 = vpop.f32.mrf.mxu1 }
 0x96d   :  { %v4751_v59 = vmax.f32 %v4739_v54, 0.0  ;;  %v4742_v32 = vadd.f32 %v10290_v51, %v4723_v38  ;;  %v4722_v50 = vadd.f32 %v4687_v49, %v10261_v5  ;;  %v4966_v42 = vsel %vm4959_vm5, %v10321_v13, 0.0 }
 0x96e   :  { %v7507_v25 = vpop.f32.mrf.mxu1  ;;  %4967 = vadd.xlane.f32.xlu1 %v4966_v42  ;;  %4964 = vadd.xlane.f32.xlu0 %v4963_v17  ;;  %v4969_v5 = vsel %vm4959_vm5, %v10326_v55, 0.0  ;;  %v10340_v23 = vadd.f32 %v4912_v7, %v4752_v36 }
 0x96f   :  { %v4741_v29 = vadd.f32 %v10290_v51, %v4722_v50  ;;  %v4725_v57 = vadd.f32 %v7507_v25, %v10264_v16  ;;  %v10335_v43 = vadd.f32 %v4907_v21, %v4751_v59  ;;  %v4754_v60 = vmax.f32 %v4742_v32, 0.0 }
 0x970   :  { %v4697_v15 = vpop.f32.mrf.mxu1 }
 0x971   :  { %v4753_v28 = vmax.f32 %v4741_v29, 0.0  ;;  %v4744_v47 = vadd.f32 %v10290_v51, %v4725_v57  ;;  %v4724_v63 = vadd.f32 %v4697_v15, %v10267_v1  ;;  %v4972_v16 = vsel %vm4959_vm5, %v10335_v43, 0.0 }
 0x972   :  { %v7510_v14 = vpop.f32.mrf.mxu1  ;;  %4970 = vadd.xlane.f32.xlu1 %v4969_v5  ;;  %4973 = vadd.xlane.f32.xlu0 %v4972_v16  ;;  %v4975_v1 = vsel %vm4959_vm5, %v10340_v23, 0.0  ;;  %v10354_v9 = vadd.f32 %v4922_v61, %v4754_v60 }
 0x973   :  { %v4743_v46 = vadd.f32 %v10290_v51, %v4724_v63  ;;  %v4727_v12 = vadd.f32 %v7510_v14, %v10270_v41  ;;  %v10349_v4 = vadd.f32 %v4917_v56, %v4753_v28  ;;  %v4756_v18 = vmax.f32 %v4744_v47, 0.0 }
 0x974   :  { %v4707_v11 = vpop.f32.mrf.mxu1  ;;  %v4981_v48 = vsel %vm4959_vm5, %v10354_v9, 0.0 }
 0x975   :  { %v4755_v19 = vmax.f32 %v4743_v46, 0.0  ;;  %v4746_v62 = vadd.f32 %v10290_v51, %v4727_v12  ;;  %v4726_v20 = vadd.f32 %v4707_v11, %v10273_v31  ;;  %v4978_v41 = vsel %vm4959_vm5, %v10349_v4, 0.0 }
 0x976   :  { %4976 = vadd.xlane.f32.xlu1 %v4975_v1  ;;  %4979 = vadd.xlane.f32.xlu0 %v4978_v41  ;;  %v10366_v31 = vadd.f32 %v4932_v22, %v4756_v18 }
 0x977   :  { %v4745_v34 = vadd.f32 %v10290_v51, %v4726_v20  ;;  %v4953_v35 = vadd.f32 %v4927_v52, %v4755_v19  ;;  %v4758_v39 = vmax.f32 %v4746_v62, 0.0 }
 0x978   :  { %v4987_v51 = vsel %vm4959_vm5, %v10366_v31, 0.0 }
 0x979   :  { %v4757_v24 = vmax.f32 %v4745_v34, 0.0  ;;  %v4984_v40 = vsel %vm4959_vm5, %v4953_v35, 0.0  ;;  %v10374_v0 = vadd.f32 %v4942_v3, %v4758_v39 }
 0x97a   :  { %4982 = vadd.xlane.f32.xlu1 %v4981_v48  ;;  %4985 = vadd.xlane.f32.xlu0 %v4984_v40 }
 0x97b   :  { %v10368_v10 = vadd.f32 %v4937_v45, %v4757_v24  ;;  %v4993_v2 = vsel %vm4959_vm5, %v10374_v0, 0.0 }
 0x97d   :  { %v4990_v37 = vsel %vm4959_vm5, %v10368_v10, 0.0 }
 0x97e   :  { %4988 = vadd.xlane.f32.xlu1 %v4987_v51  ;;  %4991 = vadd.xlane.f32.xlu0 %v4990_v37  ;;  %v5154_v51 = vld [vmem:[%s10600_s11 + $0x8] sm:$0xff]  ;;  %v5153_v37 = vld [vmem:[%s10600_s11] sm:$0xff] }
 0x97f   :  { %7531 = vmatprep.subr.mxu1 %v5154_v51 }
 0x980   :  { %7532 = vmatpush3.msra.mxu1 %v5154_v51 }
 0x981   :  { %7533 = vmatprep.subr.mxu1 %v5153_v37 }
 0x982   :  { %4994 = vadd.xlane.f32.xlu1 %v4993_v2  ;;  %7534 = vmatpush3.msra.mxu1 %v5153_v37  ;;  %v5337_v2 = vld [vmem:[%s10601_s13 + $0x10] sm:$0xff] }
 0x9f3   :  { %v4962_v27 = vpop.xlane.xlu0 %4961 }
 0x9f4   :  { %v4997_v8 = vmul.f32 0.0625, %v4962_v27  ;;  %v5336_v27 = vld [vmem:[%s10601_s13 + $0x8] sm:$0xff] }
 0x9f6   :  { %v10379_v44 = vsub.f32 %v10308_v33, %v4997_v8 }
 0x9f7   :  { %v4968_v53 = vpop.xlane.xlu1 %4967  ;;  %v4965_v54 = vpop.xlane.xlu0 %4964 }
 0x9f8   :  { %v4999_v38 = vmul.f32 0.0625, %v4968_v53  ;;  %v4998_v21 = vmul.f32 0.0625, %v4965_v54  ;;  %v5021_v36 = vmul.f32 %v10379_v44, %v10379_v44 }
 0x9fa   :  { %v10384_v7 = vsub.f32 %v10321_v13, %v4999_v38  ;;  %v10387_v49 = vsub.f32 %v10312_v30, %v4998_v21  ;;  %v5033_v17 = vsel %vm4959_vm5, %v5021_v36, 0.0 }
 0x9fb   :  { %v4971_v26 = vpop.xlane.xlu1 %4970  ;;  %5034 = vadd.xlane.f32.xlu0 %v5033_v17  ;;  %v4974_v59 = vpop.xlane.xlu0 %4973 }
 0x9fc   :  { %v5000_v33 = vmul.f32 0.0625, %v4971_v26  ;;  %v5001_v32 = vmul.f32 0.0625, %v4974_v59  ;;  %v5023_v50 = vmul.f32 %v10384_v7, %v10384_v7  ;;  %v5022_v42 = vmul.f32 %v10387_v49, %v10387_v49 }
 0x9fe   :  { %v10395_v25 = vsub.f32 %v10326_v55, %v5000_v33  ;;  %v10398_v13 = vsub.f32 %v10335_v43, %v5001_v32  ;;  %v5039_v30 = vsel %vm4959_vm5, %v5023_v50, 0.0  ;;  %v5036_v29 = vsel %vm4959_vm5, %v5022_v42, 0.0 }
 0x9ff   :  { %v4977_v57 = vpop.xlane.xlu1 %4976  ;;  %5040 = vadd.xlane.f32.xlu0 %v5039_v30  ;;  %5037 = vadd.xlane.f32.xlu1 %v5036_v29  ;;  %v4980_v56 = vpop.xlane.xlu0 %4979 }
 0xa00   :  { %v5002_v60 = vmul.f32 0.0625, %v4977_v57  ;;  %v5003_v61 = vmul.f32 0.0625, %v4980_v56  ;;  %v5024_v15 = vmul.f32 %v10395_v25, %v10395_v25  ;;  %v5025_v55 = vmul.f32 %v10398_v13, %v10398_v13 }
 0xa02   :  { %v10407_v5 = vsub.f32 %v10340_v23, %v5002_v60  ;;  %v10410_v43 = vsub.f32 %v10349_v4, %v5003_v61  ;;  %v5042_v58 = vsel %vm4959_vm5, %v5024_v15, 0.0  ;;  %v5045_v28 = vsel %vm4959_vm5, %v5025_v55, 0.0 }
 0xa03   :  { %v4983_v47 = vpop.xlane.xlu1 %4982  ;;  %5043 = vadd.xlane.f32.xlu1 %v5042_v58  ;;  %5046 = vadd.xlane.f32.xlu0 %v5045_v28  ;;  %v4986_v63 = vpop.xlane.xlu0 %4985 }
 0xa04   :  { %v5004_v16 = vmul.f32 0.0625, %v4983_v47  ;;  %v5005_v14 = vmul.f32 0.0625, %v4986_v63  ;;  %v5026_v46 = vmul.f32 %v10407_v5, %v10407_v5  ;;  %v5027_v23 = vmul.f32 %v10410_v43, %v10410_v43 }
 0xa06   :  { %v10419_v12 = vsub.f32 %v10354_v9, %v5004_v16  ;;  %v10421_v52 = vsub.f32 %v4953_v35, %v5005_v14  ;;  %v5048_v4 = vsel %vm4959_vm5, %v5026_v46, 0.0  ;;  %v5051_v18 = vsel %vm4959_vm5, %v5027_v23, 0.0  ;;  %v10467_v14 = vld [vmem:[%s10602_s9] ss:$0 sm:$0xff] }
 0xa07   :  { %v4989_v22 = vpop.xlane.xlu1 %4988  ;;  %5049 = vadd.xlane.f32.xlu1 %v5048_v4  ;;  %5052 = vadd.xlane.f32.xlu0 %v5051_v18  ;;  %v4992_v11 = vpop.xlane.xlu0 %4991  ;;  %v10473_v18 = vld [vmem:[%s10603_s10] ss:$0 sm:$0xff] }
 0xa08   :  { %v5006_v1 = vmul.f32 0.0625, %v4989_v22  ;;  %v5007_v6 = vmul.f32 0.0625, %v4992_v11  ;;  %v5028_v19 = vmul.f32 %v10419_v12, %v10419_v12  ;;  %v5029_v62 = vmul.f32 %v10421_v52, %v10421_v52 }
 0xa0a   :  { %v10430_v9 = vsub.f32 %v10366_v31, %v5006_v1  ;;  %v10433_v20 = vsub.f32 %v10368_v10, %v5007_v6  ;;  %v5054_v41 = vsel %vm4959_vm5, %v5028_v19, 0.0  ;;  %v5057_v34 = vsel %vm4959_vm5, %v5029_v62, 0.0 }
 0xa0b   :  { %v4995_v45 = vpop.xlane.xlu1 %4994  ;;  %5055 = vadd.xlane.f32.xlu1 %v5054_v41  ;;  %5058 = vadd.xlane.f32.xlu0 %v5057_v34 }
 0xa0c   :  { %v5008_v35 = vmul.f32 0.0625, %v4995_v45  ;;  %v5030_v3 = vmul.f32 %v10430_v9, %v10430_v9  ;;  %v5031_v48 = vmul.f32 %v10433_v20, %v10433_v20 }
 0xa0e   :  { %v10442_v39 = vsub.f32 %v10374_v0, %v5008_v35  ;;  %v5060_v24 = vsel %vm4959_vm5, %v5030_v3, 0.0  ;;  %v5063_v40 = vsel %vm4959_vm5, %v5031_v48, 0.0  ;;  %v5338_v0 = vld [vmem:[%s10601_s13 + $0x18] sm:$0xff] }
 0xa0f   :  { %5061 = vadd.xlane.f32.xlu1 %v5060_v24  ;;  %5064 = vadd.xlane.f32.xlu0 %v5063_v40 }
 0xa10   :  { %v5032_v31 = vmul.f32 %v10442_v39, %v10442_v39  ;;  %7553 = vmatprep.subr.mxu0 %v5338_v0 }
 0xa11   :  { %7554 = vmatpush3.msra.mxu0 %v5338_v0 }
 0xa12   :  { %v5066_v10 = vsel %vm4959_vm5, %v5032_v31, 0.0  ;;  %7555 = vmatprep.subr.mxu0 %v5337_v2 }
 0xa13   :  { %5067 = vadd.xlane.f32.xlu1 %v5066_v10  ;;  %7556 = vmatpush3.msra.mxu0 %v5337_v2 }
 0xa14   :  { %7557 = vmatprep.subr.mxu0 %v5336_v27 }
 0xa15   :  { %7558 = vmatpush3.msra.mxu0 %v5336_v27 }
 0xa84   :  { %v5035_v8 = vpop.xlane.xlu0 %5034 }
 0xa85   :  { %v5069_v53 = vmul.f32 0.0625, %v5035_v8 }
 0xa87   :  { %v5081_v54 = vadd.f32 1e-05, %v5069_v53 }
 0xa88   :  { %v5038_v38 = vpop.xlane.xlu1 %5037  ;;  %v5041_v21 = vpop.xlane.xlu0 %5040 }
 0xa89   :  { %7611 = vrsqrt.f32 %v5081_v54  ;;  %v5070_v36 = vmul.f32 0.0625, %v5038_v38  ;;  %v5071_v17 = vmul.f32 0.0625, %v5041_v21 }
 0xa8b   :  { %v5082_v26 = vadd.f32 1e-05, %v5070_v36  ;;  %v5083_v59 = vadd.f32 1e-05, %v5071_v17 }
 0xa8c   :  { %v5044_v33 = vpop.xlane.xlu1 %5043  ;;  %v5047_v32 = vpop.xlane.xlu0 %5046 }
 0xa8d   :  { %7613 = vrsqrt.f32 %v5082_v26  ;;  %v5072_v50 = vmul.f32 0.0625, %v5044_v33  ;;  %v5073_v42 = vmul.f32 0.0625, %v5047_v32 }
 0xa8e   :  { %7615 = vrsqrt.f32 %v5083_v59 }
 0xa8f   :  { %v5084_v30 = vadd.f32 1e-05, %v5072_v50  ;;  %v5085_v29 = vadd.f32 1e-05, %v5073_v42 }
 0xa90   :  { %v5050_v57 = vpop.xlane.xlu1 %5049  ;;  %v5053_v56 = vpop.xlane.xlu0 %5052 }
 0xa91   :  { %7617 = vrsqrt.f32 %v5084_v30  ;;  %v5074_v60 = vmul.f32 0.0625, %v5050_v57  ;;  %v5075_v61 = vmul.f32 0.0625, %v5053_v56 }
 0xa92   :  { %7619 = vrsqrt.f32 %v5085_v29 }
 0xa93   :  { %v5086_v15 = vadd.f32 1e-05, %v5074_v60  ;;  %v5087_v55 = vadd.f32 1e-05, %v5075_v61 }
 0xa94   :  { %v5056_v58 = vpop.xlane.xlu1 %5055  ;;  %v5059_v28 = vpop.xlane.xlu0 %5058 }
 0xa95   :  { %7621 = vrsqrt.f32 %v5086_v15  ;;  %v5076_v47 = vmul.f32 0.0625, %v5056_v58  ;;  %v5077_v63 = vmul.f32 0.0625, %v5059_v28 }
 0xa96   :  { %v7612_v16 = vpop.eup %7611  ;;  %7623 = vrsqrt.f32 %v5087_v55 }
 0xa97   :  { %v5088_v46 = vadd.f32 1e-05, %v5076_v47  ;;  %v5089_v23 = vadd.f32 1e-05, %v5077_v63  ;;  %v5105_v4 = vmul.f32 %v7612_v16, %v10379_v44  ;;  %v5335_v47 = vld [vmem:[%s10601_s13] sm:$0xff] }
 0xa98   :  { %v5062_v22 = vpop.xlane.xlu1 %5061  ;;  %v5065_v11 = vpop.xlane.xlu0 %5064  ;;  %7559 = vmatprep.subr.mxu0 %v5335_v47 }
 0xa99   :  { %7625 = vrsqrt.f32 %v5088_v46  ;;  %v5078_v1 = vmul.f32 0.0625, %v5062_v22  ;;  %v5079_v6 = vmul.f32 0.0625, %v5065_v11  ;;  %v5123_v19 = vmul.f32 %v10467_v14, %v5105_v4  ;;  %7560 = vmatpush3.msra.mxu0 %v5335_v47 }
 0xa9a   :  { %v7614_v62 = vpop.eup %7613  ;;  %7627 = vrsqrt.f32 %v5089_v23 }
 0xa9b   :  { %v7616_v41 = vpop.eup %7615  ;;  %v5106_v34 = vmul.f32 %v7614_v62, %v10387_v49  ;;  %v5090_v45 = vadd.f32 1e-05, %v5078_v1  ;;  %v5091_v35 = vadd.f32 1e-05, %v5079_v6  ;;  %v5141_v44 = vadd.f32 %v10473_v18, %v5123_v19 }
 0xa9c   :  { %v5068_v3 = vpop.xlane.xlu1 %5067  ;;  %v5107_v48 = vmul.f32 %v7616_v41, %v10384_v7 }
 0xa9d   :  { %v5124_v24 = vmul.f32 %v10467_v14, %v5106_v34  ;;  %7629 = vrsqrt.f32 %v5090_v45  ;;  %v5080_v40 = vmul.f32 0.0625, %v5068_v3  ;;  %7535 = vmatprep.mubr.msk.f32.mxu1 %vm4959_vm5, %v5141_v44 }
 0xa9e   :  { %v7618_v31 = vpop.eup %7617  ;;  %7631 = vrsqrt.f32 %v5091_v35  ;;  %v5125_v10 = vmul.f32 %v10467_v14, %v5107_v48 }
 0xa9f   :  { %v7620_v51 = vpop.eup %7619  ;;  %v5142_v49 = vadd.f32 %v10473_v18, %v5124_v24  ;;  %v5108_v37 = vmul.f32 %v7618_v31, %v10395_v25  ;;  %v5092_v0 = vadd.f32 1e-05, %v5080_v40 }
 0xaa0   :  { %v5143_v2 = vadd.f32 %v10473_v18, %v5125_v10  ;;  %v5109_v7 = vmul.f32 %v7620_v51, %v10398_v13 }
 0xaa1   :  { %7633 = vrsqrt.f32 %v5092_v0  ;;  %7536 = vmatmul.mubr.msk.f32.vlgmr.msra.gmra.mxu1 %vm4959_vm5, %v5142_v49  ;;  %v5126_v27 = vmul.f32 %v10467_v14, %v5108_v37 }
 0xaa2   :  { %v7622_v8 = vpop.eup %7621  ;;  %7538 = vmatprep.mubr.msk.f32.mxu1 %vm4959_vm5, %v5143_v2  ;;  %v5127_v53 = vmul.f32 %v10467_v14, %v5109_v7 }
 0xaa3   :  { %v7624_v54 = vpop.eup %7623  ;;  %v5110_v38 = vmul.f32 %v7622_v8, %v10407_v5  ;;  %v5144_v25 = vadd.f32 %v10473_v18, %v5126_v27 }
 0xaa4   :  { %v5145_v21 = vadd.f32 %v10473_v18, %v5127_v53  ;;  %v5111_v36 = vmul.f32 %v7624_v54, %v10410_v43 }
 0xaa5   :  { %7539 = vmatmul.mubr.msk.f32.gmra.mxu1 %vm4959_vm5, %v5144_v25  ;;  %v5128_v13 = vmul.f32 %v10467_v14, %v5110_v38 }
 0xaa6   :  { %v7626_v17 = vpop.eup %7625  ;;  %7541 = vmatprep.mubr.msk.f32.mxu1 %vm4959_vm5, %v5145_v21  ;;  %v5129_v26 = vmul.f32 %v10467_v14, %v5111_v36  ;;  %v5712_v21 = vld [vmem:[%s10605_s14] ss:$0 sm:$0xff] }
 0xaa7   :  { %v7628_v59 = vpop.eup %7627  ;;  %v5112_v33 = vmul.f32 %v7626_v17, %v10419_v12  ;;  %v5146_v5 = vadd.f32 %v10473_v18, %v5128_v13 }
 0xaa8   :  { %v5147_v32 = vadd.f32 %v10473_v18, %v5129_v26  ;;  %v5113_v50 = vmul.f32 %v7628_v59, %v10421_v52 }
 0xaa9   :  { %7542 = vmatmul.mubr.msk.f32.gmra.mxu1 %vm4959_vm5, %v5146_v5  ;;  %v5130_v43 = vmul.f32 %v10467_v14, %v5112_v33 }
 0xaaa   :  { %v7630_v42 = vpop.eup %7629  ;;  %7544 = vmatprep.mubr.msk.f32.mxu1 %vm4959_vm5, %v5147_v32  ;;  %v5131_v30 = vmul.f32 %v10467_v14, %v5113_v50 }
 0xaab   :  { %v7632_v29 = vpop.eup %7631  ;;  %v5114_v57 = vmul.f32 %v7630_v42, %v10430_v9  ;;  %v5148_v12 = vadd.f32 %v10473_v18, %v5130_v43 }
 0xaac   :  { %v5149_v56 = vadd.f32 %v10473_v18, %v5131_v30  ;;  %v5115_v60 = vmul.f32 %v7632_v29, %v10433_v20 }
 0xaad   :  { %7545 = vmatmul.mubr.msk.f32.gmra.mxu1 %vm4959_vm5, %v5148_v12  ;;  %v5132_v52 = vmul.f32 %v10467_v14, %v5114_v57 }
 0xaae   :  { %v7634_v61 = vpop.eup %7633  ;;  %7547 = vmatprep.mubr.msk.f32.mxu1 %vm4959_vm5, %v5149_v56  ;;  %v5133_v15 = vmul.f32 %v10467_v14, %v5115_v60 }
 0xaaf   :  { %v5116_v55 = vmul.f32 %v7634_v61, %v10442_v39  ;;  %v5150_v58 = vadd.f32 %v10473_v18, %v5132_v52  ;;  %v5699_v39 = vld [vmem:[%s10604_s12] ss:$0 sm:$0xff] }
 0xab0   :  { %v5151_v9 = vadd.f32 %v10473_v18, %v5133_v15 }
 0xab1   :  { %7548 = vmatmul.mubr.msk.f32.gmra.mxu1 %vm4959_vm5, %v5150_v58  ;;  %v5134_v28 = vmul.f32 %v10467_v14, %v5116_v55 }
 0xab2   :  { %7550 = vmatprep.mubr.msk.f32.mxu1 %vm4959_vm5, %v5151_v9 }
 0xab3   :  { %v5152_v20 = vadd.f32 %v10473_v18, %v5134_v28 }
 0xab5   :  { %7551 = vmatmul.mubr.msk.f32.gmra.mxu1 %vm4959_vm5, %v5152_v20 }
 0xb61   :  { %v7537_v63 = vpop.f32.mrf.mxu1 }
 0xb62   :  { %v5270_v16 = vadd.f32 %v7537_v63, %v5699_v39 }
 0xb63   :  { %v5264_v46 = vpop.f32.mrf.mxu1 }
 0xb64   :  { %v5265_v14 = vadd.f32 %v5699_v39, %v5264_v46  ;;  %v5324_v18 = vmax.f32 %v5270_v16, 0.0 }
 0xb65   :  { %v7540_v23 = vpop.f32.mrf.mxu1 }
 0xb66   :  { %v5323_v4 = vmax.f32 %v5265_v14, 0.0  ;;  %v5280_v22 = vadd.f32 %v7540_v23, %v5699_v39 }
 0xb67   :  { %v5274_v11 = vpop.f32.mrf.mxu1 }
 0xb68   :  { %v5275_v1 = vadd.f32 %v5699_v39, %v5274_v11  ;;  %7561 = vmatprep.mubr.msk.f32.mxu0 %vm5346_vm6, %v5323_v4  ;;  %v5326_v62 = vmax.f32 %v5280_v22, 0.0 }
 0xb69   :  { %v7543_v6 = vpop.f32.mrf.mxu1  ;;  %7562 = vmatmul.mubr.msk.f32.vlgmr.msra.gmra.mxu0 %vm5346_vm6, %v5324_v18 }
 0xb6a   :  { %v5325_v19 = vmax.f32 %v5275_v1, 0.0  ;;  %v5290_v41 = vadd.f32 %v7543_v6, %v5699_v39 }
 0xb6b   :  { %v5284_v34 = vpop.f32.mrf.mxu1 }
 0xb6c   :  { %v5285_v45 = vadd.f32 %v5699_v39, %v5284_v34  ;;  %7564 = vmatprep.mubr.msk.f32.mxu0 %vm5346_vm6, %v5325_v19  ;;  %v5328_v3 = vmax.f32 %v5290_v41, 0.0 }
 0xb6d   :  { %v7546_v35 = vpop.f32.mrf.mxu1  ;;  %7565 = vmatmul.mubr.msk.f32.gmra.mxu0 %vm5346_vm6, %v5326_v62 }
 0xb6e   :  { %v5327_v44 = vmax.f32 %v5285_v45, 0.0  ;;  %v5300_v48 = vadd.f32 %v7546_v35, %v5699_v39 }
 0xb6f   :  { %v5294_v24 = vpop.f32.mrf.mxu1 }
 0xb70   :  { %v5295_v40 = vadd.f32 %v5699_v39, %v5294_v24  ;;  %7567 = vmatprep.mubr.msk.f32.mxu0 %vm5346_vm6, %v5327_v44  ;;  %v5330_v51 = vmax.f32 %v5300_v48, 0.0 }
 0xb71   :  { %v7549_v31 = vpop.f32.mrf.mxu1  ;;  %7568 = vmatmul.mubr.msk.f32.gmra.mxu0 %vm5346_vm6, %v5328_v3 }
 0xb72   :  { %v5329_v10 = vmax.f32 %v5295_v40, 0.0  ;;  %v5310_v49 = vadd.f32 %v7549_v31, %v5699_v39 }
 0xb73   :  { %v5304_v37 = vpop.f32.mrf.mxu1 }
 0xb74   :  { %v5305_v0 = vadd.f32 %v5699_v39, %v5304_v37  ;;  %7570 = vmatprep.mubr.msk.f32.mxu0 %vm5346_vm6, %v5329_v10  ;;  %v5332_v27 = vmax.f32 %v5310_v49, 0.0 }
 0xb75   :  { %v7552_v2 = vpop.f32.mrf.mxu1  ;;  %7571 = vmatmul.mubr.msk.f32.gmra.mxu0 %vm5346_vm6, %v5330_v51 }
 0xb76   :  { %v5331_v7 = vmax.f32 %v5305_v0, 0.0  ;;  %v5320_v8 = vadd.f32 %v7552_v2, %v5699_v39 }
 0xb77   :  { %v5314_v53 = vpop.f32.mrf.mxu1 }
 0xb78   :  { %v5315_v54 = vadd.f32 %v5699_v39, %v5314_v53  ;;  %7573 = vmatprep.mubr.msk.f32.mxu0 %vm5346_vm6, %v5331_v7  ;;  %v5334_v25 = vmax.f32 %v5320_v8, 0.0 }
 0xb79   :  { %7574 = vmatmul.mubr.msk.f32.gmra.mxu0 %vm5346_vm6, %v5332_v27 }
 0xb7a   :  { %v5333_v38 = vmax.f32 %v5315_v54, 0.0 }
 0xb7c   :  { %7576 = vmatprep.mubr.msk.f32.mxu0 %vm5346_vm6, %v5333_v38 }
 0xb7d   :  { %7577 = vmatmul.mubr.msk.f32.gmra.mxu0 %vm5346_vm6, %v5334_v25 }
 0xc29   :  { %v7563_v36 = vpop.f32.mrf.mxu0 }
 0xc2a   :  { %v5455_v13 = vadd.f32 %v7563_v36, %v5712_v21 }
 0xc2b   :  { %v5449_v17 = vpop.f32.mrf.mxu0 }
 0xc2c   :  { %5509 = vst.msk [vmem:[%s10606_s15 + $0x8] sm:$0xff] %vm5346_vm6, %v5455_v13  ;;  %v5450_v26 = vadd.f32 %v5712_v21, %v5449_v17 }
 0xc2d   :  { %v7566_v59 = vpop.f32.mrf.mxu0 }
 0xc2e   :  { %5508 = vst.msk [vmem:[%s10606_s15] sm:$0xff] %vm5346_vm6, %v5450_v26  ;;  %v5465_v33 = vadd.f32 %v7566_v59, %v5712_v21 }
 0xc2f   :  { %v5459_v5 = vpop.f32.mrf.mxu0 }
 0xc30   :  { %5511 = vst.msk [vmem:[%s10606_s15 + $0x18] sm:$0xff] %vm5346_vm6, %v5465_v33  ;;  %v5460_v32 = vadd.f32 %v5712_v21, %v5459_v5 }
 0xc31   :  { %v7569_v50 = vpop.f32.mrf.mxu0 }
 0xc32   :  { %5510 = vst.msk [vmem:[%s10606_s15 + $0x10] sm:$0xff] %vm5346_vm6, %v5460_v32  ;;  %v5475_v43 = vadd.f32 %v7569_v50, %v5712_v21 }
 0xc33   :  { %v5469_v42 = vpop.f32.mrf.mxu0 }
 0xc34   :  { %5513 = vst.msk [vmem:[%s10606_s15 + $0x28] sm:$0xff] %vm5346_vm6, %v5475_v43  ;;  %v5470_v30 = vadd.f32 %v5712_v21, %v5469_v42 }
 0xc35   :  { %v7572_v29 = vpop.f32.mrf.mxu0 }
 0xc36   :  { %5512 = vst.msk [vmem:[%s10606_s15 + $0x20] sm:$0xff] %vm5346_vm6, %v5470_v30  ;;  %v5485_v57 = vadd.f32 %v7572_v29, %v5712_v21 }
 0xc37   :  { %v5479_v12 = vpop.f32.mrf.mxu0 }
 0xc38   :  { %5515 = vst.msk [vmem:[%s10606_s15 + $0x38] sm:$0xff] %vm5346_vm6, %v5485_v57  ;;  %v5480_v56 = vadd.f32 %v5712_v21, %v5479_v12 }
 0xc39   :  { %v7575_v60 = vpop.f32.mrf.mxu0 }
 0xc3a   :  { %5514 = vst.msk [vmem:[%s10606_s15 + $0x30] sm:$0xff] %vm5346_vm6, %v5480_v56  ;;  %v5495_v52 = vadd.f32 %v7575_v60, %v5712_v21 }
 0xc3b   :  { %v5489_v61 = vpop.f32.mrf.mxu0 }
 0xc3c   :  { %5517 = vst.msk [vmem:[%s10606_s15 + $0x48] sm:$0xff] %vm5346_vm6, %v5495_v52  ;;  %v5490_v15 = vadd.f32 %v5712_v21, %v5489_v61 }
 0xc3d   :  { %v7578_v55 = vpop.f32.mrf.mxu0 }
 0xc3e   :  { %5516 = vst.msk [vmem:[%s10606_s15 + $0x40] sm:$0xff] %vm5346_vm6, %v5490_v15  ;;  %v5505_v58 = vadd.f32 %v7578_v55, %v5712_v21 }
 0xc3f   :  { %v5499_v9 = vpop.f32.mrf.mxu0 }
 0xc40   :  { %5519 = vst.msk [vmem:[%s10606_s15 + $0x58] sm:$0xff] %vm5346_vm6, %v5505_v58  ;;  %v5500_v28 = vadd.f32 %v5712_v21, %v5499_v9 }
 0xc42   :  { %5518 = vst.msk [vmem:[%s10606_s15 + $0x50] sm:$0xff] %vm5346_vm6, %v5500_v28 }

// kernel: encoder_forward.6
= control target key start
LH: loop header
LB: loop body
LE: loop exit
PB: predicated region body
PF: predicated region fallthrough
CT: control target
= control target key end

     0   :  { %s6072_s6 = smov 1   ;;  %s6073_s10 = smov 2   ;;  %s7144_s0 = inlined_call_operand.smem [shape: u32[32], index: -1, kind: input, shape index: {}] }
   0x1   :  { %s6120_s5 = sld [smem:[%s7144_s0]]   ;;  %s6074_s14 = smov 3  }
   0x2   :  { %s6125_s9 = sld [smem:[%s7144_s0 + %s6072_s6]]   ;;  %s6075_s18 = smov 4  }
   0x3   :  { %s6130_s13 = sld [smem:[%s7144_s0 + %s6073_s10]]   ;;  %s6076_s22 = smov 5  }
   0x4   :  { %s6135_s17 = sld [smem:[%s7144_s0 + %s6074_s14]]   ;;  %s6077_s26 = smov 6  }
   0x5   :  { %s6140_s21 = sld [smem:[%s7144_s0 + %s6075_s18]]   ;;  %s6078_s30 = smov 7  }
   0x6   :  { %s6145_s25 = sld [smem:[%s7144_s0 + %s6076_s22]]   ;;  %s6079_s4 = smov 8  }
   0x7   :  { %s6150_s29 = sld [smem:[%s7144_s0 + %s6077_s26]]   ;;  %s6080_s10 = smov 9  }
   0x8   :  { %s6155_s3 = sld [smem:[%s7144_s0 + %s6078_s30]]   ;;  %s6081_s15 = smov 10  }
   0x9   :  { %s6160_s8 = sld [smem:[%s7144_s0 + %s6079_s4]]   ;;  %s6082_s20 = smov 11  }
   0xa   :  { %s6165_s14 = sld [smem:[%s7144_s0 + %s6080_s10]]   ;;  %s6083_s26 = smov 12  }
   0xb   :  { %s6170_s19 = sld [smem:[%s7144_s0 + %s6081_s15]]   ;;  %s6084_s1 = smov 13  }
   0xc   :  { %s6175_s24 = sld [smem:[%s7144_s0 + %s6082_s20]]   ;;  %s6085_s7 = smov 14  }
   0xd   :  { %s6180_s30 = sld [smem:[%s7144_s0 + %s6083_s26]]   ;;  %s6086_s15 = smov 15  }
   0xe   :  { %s6185_s6 = sld [smem:[%s7144_s0 + %s6084_s1]]   ;;  %s6087_s22 = smov 16  }
   0xf   :  { %s6190_s12 = sld [smem:[%s7144_s0 + %s6085_s7]]   ;;  %s6088_s28 = smov 17  }
  0x10   :  { %7159 = sst [smem:[#allocation16_spill]] %s6165_s14  ;;  %s6089_s7 = smov 18  }
  0x11   :  { %7160 = sst [smem:[#allocation17_spill]] %s6170_s19 }
  0x12   :  { %7161 = sst [smem:[#allocation18_spill]] %s6175_s24 }
  0x13   :  { %7162 = sst [smem:[#allocation19_spill]] %s6180_s30 }
  0x14   :  { %7163 = sst [smem:[#allocation20_spill]] %s6185_s6 }
  0x15   :  { %s6195_s20 = sld [smem:[%s7144_s0 + %s6086_s15]]   ;;  %s6090_s15 = smov 19  }
  0x16   :  { %s6200_s27 = sld [smem:[%s7144_s0 + %s6087_s22]]   ;;  %s6091_s22 = smov 20  }
  0x17   :  { %s6205_s4 = sld [smem:[%s7144_s0 + %s6088_s28]]   ;;  %s6092_s28 = smov 21  }
  0x18   :  { %s6210_s24 = sld [smem:[%s7144_s0 + %s6089_s7]]   ;;  %s6093_s7 = smov 22  }
  0x19   :  { %s6215_s30 = sld [smem:[%s7144_s0 + %s6090_s15]]   ;;  %s6094_s15 = smov 23  }
  0x1a   :  { %s6220_s6 = sld [smem:[%s7144_s0 + %s6091_s22]]   ;;  %s6095_s22 = smov 24  }
  0x1c   :  { %7164 = sst [smem:[#allocation21_spill]] %s6200_s27 }
  0x1d   :  { %7165 = sst [smem:[#allocation22_spill]] %s6205_s4 }
  0x1e   :  { %7166 = sst [smem:[#allocation23_spill]] %s6210_s24 }
  0x1f   :  { %7167 = sst [smem:[#allocation24_spill]] %s6215_s30 }
  0x20   :  { %7168 = sst [smem:[#allocation25_spill]] %s6220_s6 }
  0x21   :  { %s6225_s4 = sld [smem:[%s7144_s0 + %s6092_s28]]   ;;  %s6096_s28 = smov 25  }
  0x22   :  { %s6230_s24 = sld [smem:[%s7144_s0 + %s6093_s7]]   ;;  %s6097_s7 = smov 26  }
  0x23   :  { %s6235_s30 = sld [smem:[%s7144_s0 + %s6094_s15]]   ;;  %s6098_s15 = smov 27  }
  0x24   :  { %s6240_s6 = sld [smem:[%s7144_s0 + %s6095_s22]]   ;;  %s6099_s22 = smov 28  }
  0x25   :  { %s6260_s27 = sld [smem:[%s7144_s0 + %s6099_s22]]  }
  0x27   :  { %7169 = sst [smem:[#allocation26_spill]] %s6225_s4 }
  0x28   :  { %7170 = sst [smem:[#allocation27_spill]] %s6230_s24 }
  0x29   :  { %7171 = sst [smem:[#allocation28_spill]] %s6235_s30 }
  0x2a   :  { %s6245_s4 = sld [smem:[%s7144_s0 + %s6096_s28]]   ;;  %s6100_s28 = smov 29  }
  0x2b   :  { %s6250_s24 = sld [smem:[%s7144_s0 + %s6097_s7]]   ;;  %s6101_s7 = smov 30  }
  0x2c   :  { %s6255_s30 = sld [smem:[%s7144_s0 + %s6098_s15]]   ;;  %s6102_s15 = smov 31  }
  0x2d   :  { %s6265_s14 = sld [smem:[%s7144_s0 + %s6100_s28]]  }
  0x2e   :  { %s6275_s19 = sld [smem:[%s7144_s0 + %s6102_s15]]  }
  0x31   :  { %7172 = sst [smem:[#allocation29_spill]] %s6250_s24 }
  0x32   :  { %s6270_s24 = sld [smem:[%s7144_s0 + %s6101_s7]]  }
  0x33   :  { %69 = vsyncpa [#allocation3], 0 }
  0x34   :  { %70 = vsyncpa [#allocation5], 0 }
  0x35   :  { %71 = vsyncpa [#allocation8], 0 }
  0x36   :  { %72 = vsyncpa [#allocation11], 0  ;;  %s6103_s22 = smov [#allocation4]   ;;  %s6104_s26 = smov [#allocation7]  }
  0x37   :  { %s117_s23 = sshll.u32 %s6103_s22, 4  ;;  %s153_s28 = sshll.u32 %s6104_s26, 4  ;;  %s118_s23 = int_to_ptr.vmem [resolvable:$true] %s117_s23  ;;  %s154_s28 = int_to_ptr.vmem [resolvable:$true] %s153_s28 }
  0x38   :  { %s5952_s1 = scalar_lea.vmem %s118_s23, 16  ;;  %s5956_s2 = scalar_lea.vmem %s118_s23, 32 }
  0x39   :  { %p5953_p0 = scmp.ne.s32.totalorder %s118_s23, %s5952_s1  ;;  %p5957_p1 = scmp.lt.s32.totalorder %s118_s23, %s118_s23 }
  0x3a   :  { %p5958_p2 = scmp.lt.s32.totalorder %s5956_s2, %s5952_s1 }
  0x3c   :  { %p5959_p3 = por %p5958_p2, %p5957_p1 }
  0x3e   :  { %p5960_p4 = pnand %p5959_p3, %p5953_p0 }
  0x40   :  { %5963 = shalt.err (!%p5960_p4)
}
  0x41   :  { %120 = dma.hbm_to_vmem [thread:$0]  %s6195_s20, 16, %s118_s23, [#allocation5]  }
  0x42   :  { %s5972_s0 = scalar_lea.vmem %s154_s28, 16  ;;  %s5976_s7 = scalar_lea.vmem %s154_s28, 32 }
  0x43   :  { %p5973_p5 = scmp.ne.s32.totalorder %s154_s28, %s5972_s0  ;;  %p5977_p6 = scmp.lt.s32.totalorder %s154_s28, %s154_s28 }
  0x44   :  { %p5978_p7 = scmp.lt.s32.totalorder %s5976_s7, %s5972_s0 }
  0x46   :  { %p5979_p8 = por %p5978_p7, %p5977_p6 }
  0x48   :  { %p5980_p9 = pnand %p5979_p8, %p5973_p5 }
  0x4a   :  { %5983 = shalt.err (!%p5980_p9)
}
  0x4b   :  { %156 = dma.hbm_to_vmem [thread:$0]  %s6245_s4, 16, %s154_s28, [#allocation8]  }
  0x4c   :  { %s6105_s10 = smov [#allocation2]   ;;  %s6106_s15 = smov [#allocation6]  }
  0x4d   :  { %s107_s11 = sshll.u32 %s6105_s10, 4  ;;  %s143_s16 = sshll.u32 %s6106_s15, 4  ;;  %s108_s11 = int_to_ptr.vmem [resolvable:$true] %s107_s11  ;;  %s144_s16 = int_to_ptr.vmem [resolvable:$true] %s143_s16 }
  0x4e   :  { %s5992_s18 = scalar_lea.vmem %s108_s11, 16  ;;  %s5996_s22 = scalar_lea.vmem %s108_s11, 32 }
  0x4f   :  { %p5993_p10 = scmp.ne.s32.totalorder %s108_s11, %s5992_s18  ;;  %p5997_p11 = scmp.lt.s32.totalorder %s108_s11, %s108_s11 }
  0x50   :  { %p5998_p12 = scmp.lt.s32.totalorder %s5996_s22, %s5992_s18 }
  0x52   :  { %p5999_p13 = por %p5998_p12, %p5997_p11 }
  0x54   :  { %p6000_p0 = pnand %p5999_p13, %p5993_p10 }
  0x56   :  { %6003 = shalt.err (!%p6000_p0)
}
  0x57   :  { %110 = dma.hbm_to_vmem [thread:$0]  %s6190_s12, 16, %s108_s11, [#allocation3]  }
  0x58   :  { %s6012_s20 = scalar_lea.vmem %s144_s16, 16  ;;  %s6016_s23 = scalar_lea.vmem %s144_s16, 32 }
  0x59   :  { %p6013_p1 = scmp.ne.s32.totalorder %s144_s16, %s6012_s20  ;;  %p6017_p2 = scmp.lt.s32.totalorder %s144_s16, %s144_s16 }
  0x5a   :  { %p6018_p3 = scmp.lt.s32.totalorder %s6016_s23, %s6012_s20 }
  0x5c   :  { %p6019_p4 = por %p6018_p3, %p6017_p2 }
  0x5e   :  { %p6020_p5 = pnand %p6019_p4, %p6013_p1 }
  0x60   :  { %6023 = shalt.err (!%p6020_p5)
}
  0x61   :  { %146 = dma.hbm_to_vmem [thread:$0]  %s6240_s6, 16, %s144_s16, [#allocation5]  }
  0x62   :  { %s6107_s4 = smov [#allocation9]   ;;  %s6108_s28 = smov [#allocation10]  }
  0x63   :  { %s165_s26 = sshll.u32 %s6107_s4, 4  ;;  %s177_s1 = sshll.u32 %s6108_s28, 4  ;;  %s166_s26 = int_to_ptr.vmem [resolvable:$true] %s165_s26  ;;  %s178_s1 = int_to_ptr.vmem [resolvable:$true] %s177_s1 }
  0x64   :  { %s6032_s2 = scalar_lea.vmem %s166_s26, 16  ;;  %s6036_s0 = scalar_lea.vmem %s166_s26, 32 }
  0x65   :  { %p6033_p6 = scmp.ne.s32.totalorder %s166_s26, %s6032_s2  ;;  %p6037_p7 = scmp.lt.s32.totalorder %s166_s26, %s166_s26 }
  0x66   :  { %p6038_p8 = scmp.lt.s32.totalorder %s6036_s0, %s6032_s2 }
  0x68   :  { %p6039_p9 = por %p6038_p8, %p6037_p7 }
  0x6a   :  { %p6040_p10 = pnand %p6039_p9, %p6033_p6 }
  0x6c   :  { %6043 = shalt.err (!%p6040_p10)
}
  0x6d   :  { %168 = dma.hbm_to_vmem [thread:$0]  %s6255_s30, 16, %s166_s26, [#allocation8]  }
  0x6e   :  { %s6052_s12 = scalar_lea.vmem %s178_s1, 16  ;;  %s6056_s7 = scalar_lea.vmem %s178_s1, 32 }
  0x6f   :  { %p6053_p11 = scmp.ne.s32.totalorder %s178_s1, %s6052_s12  ;;  %p6057_p12 = scmp.lt.s32.totalorder %s178_s1, %s178_s1 }
  0x70   :  { %p6058_p13 = scmp.lt.s32.totalorder %s6056_s7, %s6052_s12 }
  0x72   :  { %p6059_p0 = por %p6058_p13, %p6057_p12 }
  0x74   :  { %p6060_p1 = pnand %p6059_p0, %p6053_p11 }
  0x76   :  { %6063 = shalt.err (!%p6060_p1)
}
  0x77   :  { %180 = dma.hbm_to_vmem [thread:$0]  %s6265_s14, 16, %s178_s1, [#allocation11]  }
  0x78   :  { %6064 = dma.done.wait [#allocation3], 16  }
  0x79   :  { %6065 = vsyncadd [#allocation3], 4294967280 }
  0x7a   :  { %6066 = dma.done.wait [#allocation5], 32  }
  0x7b   :  { %6067 = vsyncadd [#allocation5], 4294967264 }
  0x7c   :  { %6068 = dma.done.wait [#allocation8], 32  }
  0x7d   :  { %6069 = vsyncadd [#allocation8], 4294967264 }
  0x7e   :  { %6070 = dma.done.wait [#allocation11], 16  }
  0x7f   :  { %6071 = vsyncadd [#allocation11], 4294967280  ;;  %vm213_vm0 = vcmask 261120   ;;  %v199_v0 = vld [vmem:[%s6120_s5] sm:$0xff]  ;;  %v201_v1 = vld [vmem:[%s6120_s5 + $0x10] sm:$0xff]  ;;  %vm751_vm1 = vcmask 1045504  }
  0x80   :  { %v200_v2 = vld [vmem:[%s6120_s5 + $0x8] sm:$0xff]  ;;  %v214_v3 = vsel %vm213_vm0, %v199_v0, 0.0  ;;  %v220_v4 = vsel %vm213_vm0, %v201_v1, 0.0  ;;  %v202_v5 = vld [vmem:[%s6120_s5 + $0x18] sm:$0xff]  ;;  %v203_v8 = vld [vmem:[%s6120_s5 + $0x20] sm:$0xff]  ;;  %vm853_vm2 = vcmask 1041408  }
  0x81   :  { %215 = vadd.xlane.f32.xlu0 %v214_v3  ;;  %221 = vadd.xlane.f32.xlu1 %v220_v4  ;;  %v217_v6 = vsel %vm213_vm0, %v200_v2, 0.0  ;;  %v223_v7 = vsel %vm213_vm0, %v202_v5, 0.0  ;;  %v204_v9 = vld [vmem:[%s6120_s5 + $0x28] sm:$0xff]  ;;  %v226_v10 = vsel %vm213_vm0, %v203_v8, 0.0  ;;  %v205_v12 = vld [vmem:[%s6120_s5 + $0x30] sm:$0xff]  ;;  %v206_v13 = vld [vmem:[%s6120_s5 + $0x38] sm:$0xff] }
  0x82   :  { %v229_v11 = vsel %vm213_vm0, %v204_v9, 0.0  ;;  %v232_v14 = vsel %vm213_vm0, %v205_v12, 0.0  ;;  %v235_v15 = vsel %vm213_vm0, %v206_v13, 0.0  ;;  %v207_v16 = vld [vmem:[%s6120_s5 + $0x40] sm:$0xff]  ;;  %v208_v17 = vld [vmem:[%s6120_s5 + $0x48] sm:$0xff]  ;;  %v6304_v20 = vld [vmem:[%s6120_s5 + $0x50] sm:$0xff] }
  0x83   :  { %v238_v18 = vsel %vm213_vm0, %v207_v16, 0.0  ;;  %v241_v19 = vsel %vm213_vm0, %v208_v17, 0.0  ;;  %v6307_v21 = vld [vmem:[%s6120_s5 + $0x58] sm:$0xff]  ;;  %v244_v22 = vsel %vm213_vm0, %v6304_v20, 0.0  ;;  %vm738_vm3 = vcmask 48128   ;;  %s7173_s5 = sld [smem:[#allocation17_spill]] }
  0x84   :  { %v247_v23 = vsel %vm213_vm0, %v6307_v21, 0.0  ;;  %vm840_vm4 = vcmask 80896   ;;  %vm942_vm5 = vcmask 130048   ;;  %vm1040_vm6 = vcmask 64512   ;;  %s7180_s14 = sld [smem:[#allocation26_spill]]  ;;  %s6111_s16 = smov 120  }
  0x85   :  { %218 = vadd.xlane.f32.xlu0 %v217_v6  ;;  %224 = vadd.xlane.f32.xlu1 %v223_v7  ;;  %vm1140_vm7 = vcmask 195584   ;;  %vm1150_vm8 = vcmask 193536   ;;  %vm1448_vm9 = vcmask 785408   ;;  %vm1452_vm10 = vcmask 783360   ;;  %s7181_s30 = sld [smem:[#allocation27_spill]] }
  0x86   :  { %s7182_s6 = sld [smem:[#allocation24_spill]]  ;;  %vm6110_vm11 = vmmov 0   ;;  %vm2584_vm12 = vcmask 244736   ;;  %vm4611_vm13 = vcmask 62464   ;;  %vm4614_vm14 = vcmask 123904  }
  0x87   :  { %s7183_s10 = sld [smem:[#allocation28_spill]] }
  0x88   :  { %s7184_s11 = sld [smem:[#allocation29_spill]] }
  0x89   :  { %227 = vadd.xlane.f32.xlu0 %v226_v10  ;;  %230 = vadd.xlane.f32.xlu1 %v229_v11  ;;  %s7186_s15 = sld [smem:[#allocation18_spill]] }
  0x8d   :  { %233 = vadd.xlane.f32.xlu0 %v232_v14  ;;  %236 = vadd.xlane.f32.xlu1 %v235_v15 }
  0x91   :  { %239 = vadd.xlane.f32.xlu0 %v238_v18  ;;  %242 = vadd.xlane.f32.xlu1 %v241_v19 }
  0x95   :  { %245 = vadd.xlane.f32.xlu0 %v244_v22  ;;  %248 = vadd.xlane.f32.xlu1 %v247_v23  ;;  %v409_v22 = vld [vmem:[%s6135_s17 + $0x10] sm:$0xff] }
  0x96   :  { %v586_v23 = vld [vmem:[%s6140_s21 + $0x10] sm:$0xff] }
 0x10a   :  { %v216_v24 = vpop.xlane.xlu0 %215  ;;  %v222_v25 = vpop.xlane.xlu1 %221 }
 0x10b   :  { %v251_v26 = vmul.f32 0.03125, %v216_v24  ;;  %v253_v27 = vmul.f32 0.03125, %v222_v25  ;;  %v408_v24 = vld [vmem:[%s6135_s17 + $0x8] sm:$0xff] }
 0x10c   :  { %v585_v25 = vld [vmem:[%s6140_s21 + $0x8] sm:$0xff] }
 0x10d   :  { %v6313_v28 = vsub.f32 %v199_v0, %v251_v26  ;;  %v6315_v29 = vsub.f32 %v201_v1, %v253_v27  ;;  %v407_v26 = vld [vmem:[%s6135_s17] sm:$0xff] }
 0x10e   :  { %v219_v30 = vpop.xlane.xlu0 %218  ;;  %v225_v31 = vpop.xlane.xlu1 %224  ;;  %v584_v27 = vld [vmem:[%s6140_s21] sm:$0xff] }
 0x10f   :  { %v252_v32 = vmul.f32 0.03125, %v219_v30  ;;  %v254_v33 = vmul.f32 0.03125, %v225_v31  ;;  %v275_v34 = vmul.f32 %v6313_v28, %v6313_v28  ;;  %v277_v35 = vmul.f32 %v6315_v29, %v6315_v29  ;;  %v6384_v30 = vld [vmem:[%s6145_s25] sm:$0x3f]  ;;  %v6387_v31 = vld [vmem:[%s6150_s29 + $0x8] sm:$0x3] }
 0x110   :  { %s7178_s25 = sld [smem:[#allocation23_spill]] }
 0x111   :  { %v6321_v36 = vsub.f32 %v200_v2, %v252_v32  ;;  %v6323_v37 = vsub.f32 %v202_v5, %v254_v33  ;;  %v287_v38 = vsel %vm213_vm0, %v275_v34, 0.0  ;;  %v293_v41 = vsel %vm213_vm0, %v277_v35, 0.0 }
 0x112   :  { %288 = vadd.xlane.f32.xlu0 %v287_v38  ;;  %v228_v39 = vpop.xlane.xlu0 %227  ;;  %v231_v40 = vpop.xlane.xlu1 %230 }
 0x113   :  { %v255_v42 = vmul.f32 0.03125, %v228_v39  ;;  %v256_v43 = vmul.f32 0.03125, %v231_v40  ;;  %v276_v44 = vmul.f32 %v6321_v36, %v6321_v36  ;;  %v278_v45 = vmul.f32 %v6323_v37, %v6323_v37 }
 0x115   :  { %v6331_v46 = vsub.f32 %v203_v8, %v255_v42  ;;  %v6333_v47 = vsub.f32 %v204_v9, %v256_v43  ;;  %v290_v48 = vsel %vm213_vm0, %v276_v44, 0.0  ;;  %v296_v51 = vsel %vm213_vm0, %v278_v45, 0.0 }
 0x116   :  { %294 = vadd.xlane.f32.xlu0 %v293_v41  ;;  %291 = vadd.xlane.f32.xlu1 %v290_v48  ;;  %v234_v49 = vpop.xlane.xlu0 %233  ;;  %v237_v50 = vpop.xlane.xlu1 %236 }
 0x117   :  { %v257_v52 = vmul.f32 0.03125, %v234_v49  ;;  %v258_v53 = vmul.f32 0.03125, %v237_v50  ;;  %v279_v54 = vmul.f32 %v6331_v46, %v6331_v46  ;;  %v280_v55 = vmul.f32 %v6333_v47, %v6333_v47 }
 0x119   :  { %v6341_v56 = vsub.f32 %v205_v12, %v257_v52  ;;  %v6343_v57 = vsub.f32 %v206_v13, %v258_v53  ;;  %v299_v58 = vsel %vm213_vm0, %v279_v54, 0.0  ;;  %v302_v61 = vsel %vm213_vm0, %v280_v55, 0.0 }
 0x11a   :  { %297 = vadd.xlane.f32.xlu1 %v296_v51  ;;  %300 = vadd.xlane.f32.xlu0 %v299_v58  ;;  %v240_v59 = vpop.xlane.xlu0 %239  ;;  %v243_v60 = vpop.xlane.xlu1 %242 }
 0x11b   :  { %v259_v62 = vmul.f32 0.03125, %v240_v59  ;;  %v260_v63 = vmul.f32 0.03125, %v243_v60  ;;  %v281_v0 = vmul.f32 %v6341_v56, %v6341_v56  ;;  %v282_v1 = vmul.f32 %v6343_v57, %v6343_v57 }
 0x11d   :  { %v6351_v2 = vsub.f32 %v207_v16, %v259_v62  ;;  %v6353_v3 = vsub.f32 %v208_v17, %v260_v63  ;;  %v305_v4 = vsel %vm213_vm0, %v281_v0, 0.0  ;;  %v308_v7 = vsel %vm213_vm0, %v282_v1, 0.0  ;;  %v6394_v0 = vld [vmem:[%s6125_s9] ss:$0 sm:$0xff]  ;;  %s7174_s9 = sld [smem:[#allocation16_spill]] }
 0x11e   :  { %303 = vadd.xlane.f32.xlu1 %v302_v61  ;;  %306 = vadd.xlane.f32.xlu0 %v305_v4  ;;  %v246_v5 = vpop.xlane.xlu0 %245  ;;  %v249_v6 = vpop.xlane.xlu1 %248 }
 0x11f   :  { %v261_v8 = vmul.f32 0.03125, %v246_v5  ;;  %v262_v9 = vmul.f32 0.03125, %v249_v6  ;;  %v283_v10 = vmul.f32 %v6351_v2, %v6351_v2  ;;  %v284_v11 = vmul.f32 %v6353_v3, %v6353_v3 }
 0x121   :  { %v6362_v12 = vsub.f32 %v6304_v20, %v261_v8  ;;  %v6365_v13 = vsub.f32 %v6307_v21, %v262_v9  ;;  %v311_v14 = vsel %vm213_vm0, %v283_v10, 0.0  ;;  %v314_v15 = vsel %vm213_vm0, %v284_v11, 0.0  ;;  %v410_v20 = vld [vmem:[%s6135_s17 + $0x18] sm:$0xff]  ;;  %v6398_v8 = vld [vmem:[%s6130_s13] ss:$0 sm:$0xff]  ;;  %s7175_s13 = sld [smem:[#allocation21_spill]] }
 0x122   :  { %309 = vadd.xlane.f32.xlu1 %v308_v7  ;;  %312 = vadd.xlane.f32.xlu0 %v311_v14  ;;  %v587_v21 = vld [vmem:[%s6140_s21 + $0x18] sm:$0xff]  ;;  %s7176_s17 = sld [smem:[#allocation20_spill]] }
 0x123   :  { %v285_v16 = vmul.f32 %v6362_v12, %v6362_v12  ;;  %v286_v17 = vmul.f32 %v6365_v13, %v6365_v13  ;;  %5159 = vmatprep.subr.mxu0 %v410_v20  ;;  %5185 = vmatprep.subr.mxu1 %v587_v21  ;;  %s7177_s21 = sld [smem:[#allocation25_spill]] }
 0x124   :  { %5160 = vmatpush3.msra.mxu0 %v410_v20  ;;  %5186 = vmatpush3.msra.mxu1 %v587_v21 }
 0x125   :  { %v317_v18 = vsel %vm213_vm0, %v285_v16, 0.0  ;;  %v320_v19 = vsel %vm213_vm0, %v286_v17, 0.0  ;;  %5161 = vmatprep.subr.mxu0 %v409_v22  ;;  %5187 = vmatprep.subr.mxu1 %v586_v23 }
 0x126   :  { %315 = vadd.xlane.f32.xlu1 %v314_v15  ;;  %318 = vadd.xlane.f32.xlu0 %v317_v18 }
 0x127   :  { %5162 = vmatpush3.msra.mxu0 %v409_v22  ;;  %5188 = vmatpush3.msra.mxu1 %v586_v23 }
 0x128   :  { %5163 = vmatprep.subr.mxu0 %v408_v24  ;;  %5189 = vmatprep.subr.mxu1 %v585_v25 }
 0x129   :  { %5164 = vmatpush3.msra.mxu0 %v408_v24  ;;  %5190 = vmatpush3.msra.mxu1 %v585_v25 }
 0x12a   :  { %321 = vadd.xlane.f32.xlu1 %v320_v19  ;;  %5165 = vmatprep.subr.mxu0 %v407_v26 }
 0x12b   :  { %5191 = vmatprep.subr.mxu1 %v584_v27  ;;  %5166 = vmatpush3.msra.mxu0 %v407_v26 }
 0x12c   :  { %5192 = vmatpush3.msra.mxu1 %v584_v27  ;;  %5211 = vmatprep.subr.msk.mxu0 %vm751_vm1, %v6384_v30 }
 0x12d   :  { %5219 = vmatprep.subr.msk.mxu1 %vm853_vm2, %v6387_v31 }
 0x19b   :  { %v289_v32 = vpop.xlane.xlu0 %288 }
 0x19c   :  { %v323_v33 = vmul.f32 0.03125, %v289_v32 }
 0x19e   :  { %v335_v34 = vadd.f32 1e-05, %v323_v33 }
 0x19f   :  { %v292_v35 = vpop.xlane.xlu1 %291  ;;  %v295_v38 = vpop.xlane.xlu0 %294 }
 0x1a0   :  { %5707 = vrsqrt.f32 %v335_v34  ;;  %v324_v39 = vmul.f32 0.03125, %v292_v35  ;;  %v325_v40 = vmul.f32 0.03125, %v295_v38  ;;  %v736_v34 = vld [vmem:[%s6150_s29] sm:$0xff]  ;;  %s7179_s29 = sld [smem:[#allocation22_spill]] }
 0x1a2   :  { %v336_v41 = vadd.f32 1e-05, %v324_v39  ;;  %v337_v42 = vadd.f32 1e-05, %v325_v40 }
 0x1a3   :  { %v298_v43 = vpop.xlane.xlu1 %297  ;;  %v301_v44 = vpop.xlane.xlu0 %300 }
 0x1a4   :  { %5709 = vrsqrt.f32 %v336_v41  ;;  %v326_v45 = vmul.f32 0.03125, %v298_v43  ;;  %v327_v48 = vmul.f32 0.03125, %v301_v44 }
 0x1a5   :  { %5711 = vrsqrt.f32 %v337_v42 }
 0x1a6   :  { %v338_v49 = vadd.f32 1e-05, %v326_v45  ;;  %v339_v50 = vadd.f32 1e-05, %v327_v48 }
 0x1a7   :  { %v304_v51 = vpop.xlane.xlu1 %303  ;;  %v307_v52 = vpop.xlane.xlu0 %306 }
 0x1a8   :  { %5713 = vrsqrt.f32 %v338_v49  ;;  %v328_v53 = vmul.f32 0.03125, %v304_v51  ;;  %v329_v54 = vmul.f32 0.03125, %v307_v52 }
 0x1a9   :  { %5715 = vrsqrt.f32 %v339_v50 }
 0x1aa   :  { %v340_v55 = vadd.f32 1e-05, %v328_v53  ;;  %v341_v58 = vadd.f32 1e-05, %v329_v54 }
 0x1ab   :  { %v310_v59 = vpop.xlane.xlu1 %309  ;;  %v313_v60 = vpop.xlane.xlu0 %312 }
 0x1ac   :  { %5717 = vrsqrt.f32 %v340_v55  ;;  %v330_v61 = vmul.f32 0.03125, %v310_v59  ;;  %v331_v62 = vmul.f32 0.03125, %v313_v60 }
 0x1ad   :  { %v5708_v63 = vpop.eup %5707  ;;  %5719 = vrsqrt.f32 %v341_v58 }
 0x1ae   :  { %v342_v1 = vadd.f32 1e-05, %v330_v61  ;;  %v343_v4 = vadd.f32 1e-05, %v331_v62  ;;  %v359_v5 = vmul.f32 %v5708_v63, %v6313_v28  ;;  %v717_v62 = vld [vmem:[%s6155_s3] sm:$0xff]  ;;  %v718_v63 = vld [vmem:[%s6155_s3 + $0x8] sm:$0xff] }
 0x1af   :  { %v316_v6 = vpop.xlane.xlu1 %315  ;;  %v319_v7 = vpop.xlane.xlu0 %318 }
 0x1b0   :  { %5721 = vrsqrt.f32 %v342_v1  ;;  %v332_v9 = vmul.f32 0.03125, %v316_v6  ;;  %v333_v10 = vmul.f32 0.03125, %v319_v7  ;;  %v377_v11 = vmul.f32 %v6394_v0, %v359_v5  ;;  %v719_v1 = vld [vmem:[%s6155_s3 + $0x10] sm:$0xff]  ;;  %v720_v5 = vld [vmem:[%s6155_s3 + $0x18] sm:$0x3f]  ;;  %v727_v7 = vld [vmem:[%s7173_s5 + $0x8] sm:$0xff] }
 0x1b1   :  { %v5710_v14 = vpop.eup %5709  ;;  %5723 = vrsqrt.f32 %v343_v4  ;;  %v723_v4 = vld [vmem:[%s6160_s8 + $0x10] sm:$0xff]  ;;  %v724_v6 = vld [vmem:[%s6160_s8 + $0x18] sm:$0x3f] }
 0x1b2   :  { %v5712_v15 = vpop.eup %5711  ;;  %v344_v16 = vadd.f32 1e-05, %v332_v9  ;;  %v345_v17 = vadd.f32 1e-05, %v333_v10  ;;  %v395_v18 = vadd.f32 %v6398_v8, %v377_v11  ;;  %v360_v19 = vmul.f32 %v5710_v14, %v6321_v36  ;;  %v726_v9 = vld [vmem:[%s7173_s5] sm:$0xff]  ;;  %v1217_v10 = vld [vmem:[%s7175_s13 + $0x10] sm:$0xff] }
 0x1b3   :  { %v322_v20 = vpop.xlane.xlu1 %321  ;;  %v361_v28 = vmul.f32 %v5712_v15, %v6315_v29 }
 0x1b4   :  { %5725 = vrsqrt.f32 %v344_v16  ;;  %v334_v21 = vmul.f32 0.03125, %v322_v20  ;;  %5167 = vmatprep.mubr.msk.f32.mxu0 %vm213_vm0, %v395_v18  ;;  %5193 = vmatprep.mubr.msk.f32.mxu1 %vm213_vm0, %v395_v18  ;;  %v378_v22 = vmul.f32 %v6394_v0, %v360_v19 }
 0x1b5   :  { %v5714_v23 = vpop.eup %5713  ;;  %5727 = vrsqrt.f32 %v345_v17  ;;  %v379_v24 = vmul.f32 %v6394_v0, %v361_v28 }
 0x1b6   :  { %v5716_v25 = vpop.eup %5715  ;;  %v346_v26 = vadd.f32 1e-05, %v334_v21  ;;  %v396_v36 = vadd.f32 %v6398_v8, %v378_v22  ;;  %v362_v27 = vmul.f32 %v5714_v23, %v6323_v37 }
 0x1b7   :  { %v397_v29 = vadd.f32 %v6398_v8, %v379_v24  ;;  %v363_v32 = vmul.f32 %v5716_v25, %v6331_v46 }
 0x1b8   :  { %5729 = vrsqrt.f32 %v346_v26  ;;  %5168 = vmatmul.mubr.msk.f32.vlgmr.msra.gmra.mxu0 %vm213_vm0, %v396_v36  ;;  %5194 = vmatmul.mubr.msk.f32.vlgmr.msra.gmra.mxu1 %vm213_vm0, %v396_v36  ;;  %v380_v33 = vmul.f32 %v6394_v0, %v362_v27 }
 0x1b9   :  { %v5718_v35 = vpop.eup %5717  ;;  %5170 = vmatprep.mubr.msk.f32.mxu0 %vm213_vm0, %v397_v29  ;;  %5196 = vmatprep.mubr.msk.f32.mxu1 %vm213_vm0, %v397_v29  ;;  %v381_v38 = vmul.f32 %v6394_v0, %v363_v32 }
 0x1ba   :  { %v5720_v37 = vpop.eup %5719  ;;  %5212 = vmatpush3.msk.msra.mxu0 %vm751_vm1, %v6384_v30  ;;  %5220 = vmatpush3.msk.msra.mxu1 %vm853_vm2, %v6387_v31  ;;  %v398_v46 = vadd.f32 %v6398_v8, %v380_v33  ;;  %v364_v39 = vmul.f32 %v5718_v35, %v6333_v47 }
 0x1bb   :  { %v399_v40 = vadd.f32 %v6398_v8, %v381_v38  ;;  %v365_v41 = vmul.f32 %v5720_v37, %v6341_v56  ;;  %5221 = vmatprep.subr.mxu1 %v736_v34  ;;  %5229 = vmatprep.subr.mxu0 %v727_v7 }
 0x1bc   :  { %5171 = vmatmul.mubr.msk.f32.gmra.mxu0 %vm213_vm0, %v398_v46  ;;  %5197 = vmatmul.mubr.msk.f32.gmra.mxu1 %vm213_vm0, %v398_v46  ;;  %v382_v42 = vmul.f32 %v6394_v0, %v364_v39 }
 0x1bd   :  { %v5722_v43 = vpop.eup %5721  ;;  %5173 = vmatprep.mubr.msk.f32.mxu0 %vm213_vm0, %v399_v40  ;;  %5199 = vmatprep.mubr.msk.f32.mxu1 %vm213_vm0, %v399_v40  ;;  %v383_v30 = vmul.f32 %v6394_v0, %v365_v41 }
 0x1be   :  { %v5724_v31 = vpop.eup %5723  ;;  %v400_v47 = vadd.f32 %v6398_v8, %v382_v42  ;;  %v366_v44 = vmul.f32 %v5722_v43, %v6343_v57  ;;  %5222 = vmatpush3.msra.mxu1 %v736_v34  ;;  %v1216_v43 = vld [vmem:[%s7175_s13 + $0x8] sm:$0xff] }
 0x1bf   :  { %v401_v56 = vadd.f32 %v6398_v8, %v383_v30  ;;  %v367_v45 = vmul.f32 %v5724_v31, %v6351_v2 }
 0x1c0   :  { %5174 = vmatmul.mubr.msk.f32.gmra.mxu0 %vm213_vm0, %v400_v47  ;;  %5200 = vmatmul.mubr.msk.f32.gmra.mxu1 %vm213_vm0, %v400_v47  ;;  %v384_v48 = vmul.f32 %v6394_v0, %v366_v44  ;;  %v1215_v44 = vld [vmem:[%s7175_s13] sm:$0xff] }
 0x1c1   :  { %v5726_v49 = vpop.eup %5725  ;;  %5176 = vmatprep.mubr.msk.f32.mxu0 %vm213_vm0, %v401_v56  ;;  %5202 = vmatprep.mubr.msk.f32.mxu1 %vm213_vm0, %v401_v56  ;;  %v385_v50 = vmul.f32 %v6394_v0, %v367_v45 }
 0x1c2   :  { %v5728_v51 = vpop.eup %5727  ;;  %v402_v57 = vadd.f32 %v6398_v8, %v384_v48  ;;  %v368_v52 = vmul.f32 %v5726_v49, %v6353_v3 }
 0x1c3   :  { %v403_v2 = vadd.f32 %v6398_v8, %v385_v50  ;;  %v369_v53 = vmul.f32 %v5728_v51, %v6362_v12 }
 0x1c4   :  { %5177 = vmatmul.mubr.msk.f32.gmra.mxu0 %vm213_vm0, %v402_v57  ;;  %5203 = vmatmul.mubr.msk.f32.gmra.mxu1 %vm213_vm0, %v402_v57  ;;  %v386_v54 = vmul.f32 %v6394_v0, %v368_v52 }
 0x1c5   :  { %v5730_v55 = vpop.eup %5729  ;;  %5179 = vmatprep.mubr.msk.f32.mxu0 %vm213_vm0, %v403_v2  ;;  %5205 = vmatprep.mubr.msk.f32.mxu1 %vm213_vm0, %v403_v2  ;;  %v387_v58 = vmul.f32 %v6394_v0, %v369_v53 }
 0x1c6   :  { %v404_v3 = vadd.f32 %v6398_v8, %v386_v54  ;;  %v370_v59 = vmul.f32 %v5730_v55, %v6365_v13  ;;  %v721_v13 = vld [vmem:[%s6160_s8] sm:$0xff] }
 0x1c7   :  { %v405_v12 = vadd.f32 %v6398_v8, %v387_v58 }
 0x1c8   :  { %5180 = vmatmul.mubr.msk.f32.gmra.mxu0 %vm213_vm0, %v404_v3  ;;  %5206 = vmatmul.mubr.msk.f32.gmra.mxu1 %vm213_vm0, %v404_v3  ;;  %v388_v60 = vmul.f32 %v6394_v0, %v370_v59  ;;  %v722_v0 = vld [vmem:[%s6160_s8 + $0x8] sm:$0xff] }
 0x1c9   :  { %5182 = vmatprep.mubr.msk.f32.mxu0 %vm213_vm0, %v405_v12  ;;  %5208 = vmatprep.mubr.msk.f32.mxu1 %vm213_vm0, %v405_v12 }
 0x1ca   :  { %v406_v61 = vadd.f32 %v6398_v8, %v388_v60  ;;  %v725_v8 = vld [vmem:[%s7174_s9] sm:$0xff] }
 0x1cb   :  { %5239 = vmatprep.subr.mxu1 %v725_v8 }
 0x1cc   :  { %5183 = vmatmul.mubr.msk.f32.gmra.mxu0 %vm213_vm0, %v406_v61  ;;  %5209 = vmatmul.mubr.msk.f32.gmra.mxu1 %vm213_vm0, %v406_v61 }
 0x1cd   :  { %5213 = vmatprep.mubr.msk.f32.mxu0 %vm738_vm3, %v717_v62  ;;  %5223 = vmatprep.mubr.msk.f32.mxu1 %vm840_vm4, %v721_v13 }
 0x1d0   :  { %5214 = vmatmul.mubr.msk.f32.vlgmr.msra.gmra.mxu0 %vm738_vm3, %v718_v63  ;;  %5224 = vmatmul.mubr.msk.f32.vlgmr.msra.gmra.mxu1 %vm840_vm4, %v722_v0 }
 0x1d1   :  { %5216 = vmatprep.mubr.msk.f32.mxu0 %vm738_vm3, %v719_v1  ;;  %5226 = vmatprep.mubr.msk.f32.mxu1 %vm840_vm4, %v723_v4 }
 0x1d2   :  { %5230 = vmatpush3.msra.mxu0 %v727_v7  ;;  %5240 = vmatpush3.msra.mxu1 %v725_v8 }
 0x1d3   :  { %5231 = vmatprep.subr.mxu0 %v726_v9 }
 0x1d4   :  { %5217 = vmatmul.mubr.msk.f32.gmra.mxu0 %vm738_vm3, %v720_v5  ;;  %5227 = vmatmul.mubr.msk.f32.gmra.mxu1 %vm840_vm4, %v724_v6 }
 0x1d5   :  { %5232 = vmatpush3.msra.mxu0 %v726_v9 }
 0x1d6   :  { %5247 = vmatprep.subr.mxu0 %v1217_v10 }
 0x278   :  { %v6484_v11 = vpop.f32.mrf.mxu0  ;;  %v6486_v14 = vpop.f32.mrf.mxu1 }
 0x279   :  { %v6588_v54 = vmul.f32 0.25, %v6484_v11 }
 0x27a   :  { %v6488_v15 = vpop.f32.mrf.mxu0  ;;  %v6490_v16 = vpop.f32.mrf.mxu1 }
 0x27b   :  { %v6595_v55 = vmul.f32 0.25, %v6488_v15 }
 0x27c   :  { %v6492_v17 = vpop.f32.mrf.mxu0  ;;  %v6494_v18 = vpop.f32.mrf.mxu1 }
 0x27d   :  { %v6574_v2 = vmul.f32 0.25, %v6492_v17 }
 0x27e   :  { %v6496_v19 = vpop.f32.mrf.mxu0  ;;  %v6498_v20 = vpop.f32.mrf.mxu1 }
 0x27f   :  { %v6581_v53 = vmul.f32 0.25, %v6496_v19 }
 0x280   :  { %v5175_v28 = vpop.f32.mrf.mxu0  ;;  %v6500_v21 = vpop.f32.mrf.mxu1 }
 0x281   :  { %v6561_v57 = vmul.f32 0.25, %v5175_v28 }
 0x282   :  { %v533_v22 = vpop.f32.mrf.mxu0  ;;  %v6502_v23 = vpop.f32.mrf.mxu1 }
 0x283   :  { %v6567_v52 = vmul.f32 0.25, %v533_v22 }
 0x284   :  { %v5178_v24 = vpop.f32.mrf.mxu0  ;;  %v6504_v25 = vpop.f32.mrf.mxu1 }
 0x285   :  { %v6549_v50 = vmul.f32 0.25, %v5178_v24 }
 0x286   :  { %v543_v26 = vpop.f32.mrf.mxu0  ;;  %v6506_v36 = vpop.f32.mrf.mxu1 }
 0x287   :  { %v6555_v51 = vmul.f32 0.25, %v543_v26 }
 0x288   :  { %v5181_v27 = vpop.f32.mrf.mxu0  ;;  %v6508_v29 = vpop.f32.mrf.mxu1 }
 0x289   :  { %v6534_v48 = vmul.f32 0.25, %v5181_v27 }
 0x28a   :  { %v553_v32 = vpop.f32.mrf.mxu0  ;;  %v6510_v33 = vpop.f32.mrf.mxu1 }
 0x28b   :  { %v6543_v49 = vmul.f32 0.25, %v553_v32 }
 0x28c   :  { %v5184_v34 = vpop.f32.mrf.mxu0  ;;  %v6512_v35 = vpop.f32.mrf.mxu1 }
 0x28d   :  { %v6514_v38 = vmul.f32 0.25, %v5184_v34 }
 0x28e   :  { %v563_v37 = vpop.f32.mrf.mxu0  ;;  %v6516_v46 = vpop.f32.mrf.mxu1 }
 0x28f   :  { %5259 = vmatprep.subr.msk.mxu1 %vm942_vm5, %v6514_v38  ;;  %v6523_v30 = vmul.f32 0.25, %v563_v37 }
 0x290   :  { %v5215_v39 = vpop.f32.mrf.mxu0  ;;  %v5225_v40 = vpop.f32.mrf.mxu1 }
 0x292   :  { %v821_v41 = vpop.f32.mrf.mxu0  ;;  %v923_v42 = vpop.f32.mrf.mxu1 }
 0x293   :  { %5233 = vmatprep.mubr.msk.f32.mxu0 %vm942_vm5, %v923_v42  ;;  %5241 = vmatprep.mubr.msk.f32.mxu1 %vm1040_vm6, %v821_v41 }
 0x294   :  { %v5218_v31 = vpop.f32.mrf.mxu0  ;;  %v5228_v47 = vpop.f32.mrf.mxu1  ;;  %5234 = vmatmul.mubr.msk.f32.vlgmr.msra.gmra.mxu0 %vm942_vm5, %v5225_v40  ;;  %5242 = vmatmul.mubr.msk.f32.vlgmr.msra.gmra.mxu1 %vm1040_vm6, %v5215_v39 }
 0x295   :  { %5248 = vmatpush3.msra.mxu0 %v1217_v10  ;;  %5260 = vmatpush3.xpose.msk.msra.mxu1 %vm942_vm5, %v6514_v38 }
 0x296   :  { %5249 = vmatprep.subr.mxu0 %v1216_v43  ;;  %5261 = vmatprep.subr.msk.mxu1 %vm942_vm5, %v6523_v30  ;;  %v831_v56 = vpop.f32.mrf.mxu0  ;;  %v933_v45 = vpop.f32.mrf.mxu1 }
 0x297   :  { %5250 = vmatpush3.msra.mxu0 %v1216_v43  ;;  %5236 = vmatprep.mubr.msk.f32.mxu0 %vm942_vm5, %v933_v45 }
 0x298   :  { %5244 = vmatprep.mubr.msk.f32.mxu1 %vm1040_vm6, %v831_v56  ;;  %5251 = vmatprep.subr.mxu0 %v1215_v44 }
 0x299   :  { %5237 = vmatmul.mubr.msk.f32.gmra.mxu0 %vm942_vm5, %v5228_v47  ;;  %5245 = vmatmul.mubr.msk.f32.gmra.mxu1 %vm1040_vm6, %v5218_v31 }
 0x29a   :  { %5252 = vmatpush3.msra.mxu0 %v1215_v44  ;;  %5262 = vmatpush3.xpose.msk.msra.mxu1 %vm942_vm5, %v6523_v30 }
 0x29b   :  { %5263 = vmatprep.subr.msk.mxu1 %vm942_vm5, %v6534_v48  ;;  %5289 = vmatprep.subr.mxu0 %v6512_v35 }
 0x29e   :  { %5264 = vmatpush3.xpose.msk.msra.mxu1 %vm942_vm5, %v6534_v48 }
 0x29f   :  { %5265 = vmatprep.subr.msk.mxu1 %vm942_vm5, %v6543_v49 }
 0x2a2   :  { %5266 = vmatpush3.xpose.msk.msra.mxu1 %vm942_vm5, %v6543_v49 }
 0x2a3   :  { %5267 = vmatprep.subr.msk.mxu1 %vm942_vm5, %v6549_v50 }
 0x2a6   :  { %5268 = vmatpush3.xpose.msk.msra.mxu1 %vm942_vm5, %v6549_v50 }
 0x2a7   :  { %5269 = vmatprep.subr.msk.mxu1 %vm942_vm5, %v6555_v51 }
 0x2aa   :  { %5270 = vmatpush3.xpose.msk.msra.mxu1 %vm942_vm5, %v6555_v51 }
 0x2ab   :  { %5271 = vmatprep.subr.msk.mxu1 %vm942_vm5, %v6561_v57 }
 0x2ae   :  { %5272 = vmatpush3.xpose.msk.msra.mxu1 %vm942_vm5, %v6561_v57 }
 0x2af   :  { %5273 = vmatprep.subr.msk.mxu1 %vm942_vm5, %v6567_v52 }
 0x2b2   :  { %5274 = vmatpush3.xpose.msk.msra.mxu1 %vm942_vm5, %v6567_v52 }
 0x2b3   :  { %5275 = vmatprep.subr.msk.mxu1 %vm942_vm5, %v6574_v2 }
 0x2b6   :  { %5276 = vmatpush3.xpose.msk.msra.mxu1 %vm942_vm5, %v6574_v2 }
 0x2b7   :  { %5277 = vmatprep.subr.msk.mxu1 %vm942_vm5, %v6581_v53 }
 0x2ba   :  { %5278 = vmatpush3.xpose.msk.msra.mxu1 %vm942_vm5, %v6581_v53 }
 0x2bb   :  { %5279 = vmatprep.subr.msk.mxu1 %vm942_vm5, %v6588_v54 }
 0x2be   :  { %5280 = vmatpush3.xpose.msk.msra.mxu1 %vm942_vm5, %v6588_v54 }
 0x2bf   :  { %5281 = vmatprep.subr.msk.mxu1 %vm942_vm5, %v6595_v55 }
 0x2c2   :  { %5282 = vmatpush3.xpose.msk.msra.mxu1 %vm942_vm5, %v6595_v55 }
 0x354   :  { %v5235_v58 = vpop.f32.mrf.mxu0  ;;  %v5243_v3 = vpop.f32.mrf.mxu1 }
 0x355   :  { %v6603_v59 = vadd.f32 %v5243_v3, %v5235_v58 }
 0x356   :  { %v1021_v12 = vpop.f32.mrf.mxu0  ;;  %v1119_v60 = vpop.f32.mrf.mxu1 }
 0x357   :  { %v6605_v61 = vadd.f32 %v1119_v60, %v1021_v12  ;;  %v1144_v62 = vsel %vm1140_vm7, %v6603_v59, 0.0 }
 0x358   :  { %1145 = vadd.xlane.f32.xlu1 %v1144_v62 }
 0x359   :  { %v5246_v13 = vpop.f32.mrf.mxu1  ;;  %v5238_v63 = vpop.f32.mrf.mxu0  ;;  %v1141_v0 = vsel %vm1140_vm7, %v6605_v61, 0.0 }
 0x35a   :  { %v6611_v1 = vadd.f32 %v5246_v13, %v5238_v63  ;;  %1142 = vadd.xlane.f32.xlu0 %v1141_v0 }
 0x35b   :  { %v1129_v4 = vpop.f32.mrf.mxu1  ;;  %v1031_v5 = vpop.f32.mrf.mxu0 }
 0x35c   :  { %v6613_v6 = vadd.f32 %v1129_v4, %v1031_v5  ;;  %v1151_v7 = vsel %vm1150_vm8, %v6611_v1, 0.0  ;;  %v4703_v5 = vld [vmem:[#allocation2] ss:$0 sm:$0xff] }
 0x35d   :  { %1152 = vadd.xlane.f32.xlu1 %v1151_v7 }
 0x35e   :  { %v1147_v8 = vsel %vm1140_vm7, %v6613_v6, 0.0 }
 0x35f   :  { %1148 = vadd.xlane.f32.xlu0 %v1147_v8 }
 0x3e1   :  { %v1146_v9 = vpop.xlane.xlu1 %1145 }
 0x3e2   :  { %v1156_v10 = vmul.f32 0.041666668, %v1146_v9 }
 0x3e3   :  { %v1143_v11 = vpop.xlane.xlu0 %1142 }
 0x3e4   :  { %v1160_v15 = vsub.f32 %v6603_v59, %v1156_v10  ;;  %v1155_v17 = vmul.f32 0.041666668, %v1143_v11 }
 0x3e6   :  { %v1159_v19 = vsub.f32 %v6605_v61, %v1155_v17  ;;  %v1153_v28 = vpop.xlane.xlu1 %1152  ;;  %v1164_v22 = vmul.f32 %v1160_v15, %v1160_v15  ;;  %v4704_v17 = vld [vmem:[#allocation4] ss:$0 sm:$0xff] }
 0x3e7   :  { %v1158_v24 = vmul.f32 0.041666668, %v1153_v28 }
 0x3e8   :  { %v1149_v26 = vpop.xlane.xlu0 %1148  ;;  %v1170_v27 = vsel %vm1140_vm7, %v1164_v22, 0.0  ;;  %v1163_v32 = vmul.f32 %v1159_v19, %v1159_v19 }
 0x3e9   :  { %v1162_v34 = vsub.f32 %v6611_v1, %v1158_v24  ;;  %v1157_v37 = vmul.f32 0.041666668, %v1149_v26  ;;  %1171 = vadd.xlane.f32.xlu1 %v1170_v27 }
 0x3ea   :  { %v1167_v39 = vsel %vm1140_vm7, %v1163_v32, 0.0 }
 0x3eb   :  { %v1161_v40 = vsub.f32 %v6613_v6, %v1157_v37  ;;  %1168 = vadd.xlane.f32.xlu0 %v1167_v39  ;;  %v1166_v41 = vmul.f32 %v1162_v34, %v1162_v34 }
 0x3ed   :  { %v1176_v42 = vsel %vm1150_vm8, %v1166_v41, 0.0  ;;  %v1165_v43 = vmul.f32 %v1161_v40, %v1161_v40 }
 0x3ee   :  { %1177 = vadd.xlane.f32.xlu1 %v1176_v42 }
 0x3ef   :  { %v1173_v31 = vsel %vm1140_vm7, %v1165_v43, 0.0 }
 0x3f0   :  { %1174 = vadd.xlane.f32.xlu0 %v1173_v31  ;;  %v713_v31 = vld [vmem:[%s7176_s17] sm:$0xff] }
 0x472   :  { %v1172_v47 = vpop.xlane.xlu1 %1171 }
 0x473   :  { %v1180_v44 = vmul.f32 0.041666668, %v1172_v47 }
 0x474   :  { %v1169_v56 = vpop.xlane.xlu0 %1168 }
 0x475   :  { %v1184_v45 = vadd.f32 1e-05, %v1180_v44  ;;  %v1179_v58 = vmul.f32 0.041666668, %v1169_v56  ;;  %v714_v44 = vld [vmem:[%s7176_s17 + $0x8] sm:$0xff] }
 0x476   :  { %v716_v56 = vld [vmem:[%s7176_s17 + $0x18] sm:$0x3f] }
 0x477   :  { %5731 = vrsqrt.f32 %v1184_v45  ;;  %v1183_v3 = vadd.f32 1e-05, %v1179_v58  ;;  %v1178_v12 = vpop.xlane.xlu1 %1177 }
 0x478   :  { %v1182_v60 = vmul.f32 0.041666668, %v1178_v12 }
 0x479   :  { %5733 = vrsqrt.f32 %v1183_v3  ;;  %v1175_v62 = vpop.xlane.xlu0 %1174  ;;  %v715_v3 = vld [vmem:[%s7176_s17 + $0x10] sm:$0xff] }
 0x47a   :  { %v1186_v13 = vadd.f32 1e-05, %v1182_v60  ;;  %v1181_v63 = vmul.f32 0.041666668, %v1175_v62 }
 0x47c   :  { %5735 = vrsqrt.f32 %v1186_v13  ;;  %v1185_v0 = vadd.f32 1e-05, %v1181_v63 }
 0x47e   :  { %5737 = vrsqrt.f32 %v1185_v0 }
 0x484   :  { %v5732_v4 = vpop.eup %5731 }
 0x485   :  { %v1192_v7 = vmul.f32 %v5732_v4, %v1160_v15 }
 0x486   :  { %v5734_v8 = vpop.eup %5733 }
 0x487   :  { %v1191_v9 = vmul.f32 %v5734_v8, %v1159_v19  ;;  %v1202_v10 = vmul.f32 %v4703_v5, %v1192_v7 }
 0x489   :  { %v5736_v11 = vpop.eup %5735  ;;  %v1201_v28 = vmul.f32 %v4703_v5, %v1191_v9  ;;  %v1212_v27 = vadd.f32 %v4704_v17, %v1202_v10 }
 0x48a   :  { %v1194_v22 = vmul.f32 %v5736_v11, %v1162_v34 }
 0x48b   :  { %v5738_v24 = vpop.eup %5737  ;;  %v1211_v26 = vadd.f32 %v4704_v17, %v1201_v28 }
 0x48c   :  { %v1193_v32 = vmul.f32 %v5738_v24, %v1161_v40  ;;  %v1204_v37 = vmul.f32 %v4703_v5, %v1194_v22 }
 0x48d   :  { %5253 = vmatprep.mubr.msk.f32.mxu0 %vm1140_vm7, %v1211_v26 }
 0x48e   :  { %5254 = vmatmul.mubr.msk.f32.vlgmr.msra.gmra.mxu0 %vm1140_vm7, %v1212_v27  ;;  %v1203_v39 = vmul.f32 %v4703_v5, %v1193_v32  ;;  %v1214_v19 = vadd.f32 %v4704_v17, %v1204_v37 }
 0x48f   :  { %5290 = vmatpush3.msra.mxu0 %v6512_v35 }
 0x490   :  { %5291 = vmatprep.subr.mxu0 %v6516_v46  ;;  %v1213_v15 = vadd.f32 %v4704_v17, %v1203_v39 }
 0x491   :  { %5292 = vmatpush3.msra.mxu0 %v6516_v46 }
 0x492   :  { %5256 = vmatprep.mubr.msk.f32.mxu0 %vm1140_vm7, %v1213_v15  ;;  %5293 = vmatprep.subr.mxu0 %v6508_v29 }
 0x493   :  { %5257 = vmatmul.mubr.msk.f32.gmra.mxu0 %vm1140_vm7, %v1214_v19 }
 0x494   :  { %5294 = vmatpush3.msra.mxu0 %v6508_v29 }
 0x495   :  { %5295 = vmatprep.subr.mxu0 %v6510_v33 }
 0x496   :  { %5296 = vmatpush3.msra.mxu0 %v6510_v33 }
 0x497   :  { %5297 = vmatprep.subr.mxu0 %v6504_v25 }
 0x498   :  { %5298 = vmatpush3.msra.mxu0 %v6504_v25 }
 0x499   :  { %5299 = vmatprep.subr.mxu0 %v6506_v36 }
 0x49a   :  { %5300 = vmatpush3.msra.mxu0 %v6506_v36 }
 0x49b   :  { %5301 = vmatprep.subr.mxu0 %v6500_v21 }
 0x49c   :  { %5302 = vmatpush3.msra.mxu0 %v6500_v21 }
 0x49d   :  { %5303 = vmatprep.subr.mxu0 %v6502_v23 }
 0x49e   :  { %5304 = vmatpush3.msra.mxu0 %v6502_v23 }
 0x49f   :  { %5305 = vmatprep.subr.mxu0 %v6494_v18 }
 0x4a0   :  { %5306 = vmatpush3.msra.mxu0 %v6494_v18 }
 0x4a1   :  { %5307 = vmatprep.subr.mxu0 %v6498_v20 }
 0x4a2   :  { %5308 = vmatpush3.msra.mxu0 %v6498_v20 }
 0x4a3   :  { %5309 = vmatprep.subr.mxu0 %v6486_v14 }
 0x4a4   :  { %5310 = vmatpush3.msra.mxu0 %v6486_v14 }
 0x4a5   :  { %5311 = vmatprep.subr.mxu0 %v6490_v16 }
 0x4a6   :  { %5312 = vmatpush3.msra.mxu0 %v6490_v16 }
 0x54e   :  { %v5255_v34 = vpop.f32.mrf.mxu0 }
 0x550   :  { %v1296_v40 = vpop.f32.mrf.mxu0 }
 0x551   :  { %5283 = vmatprep.mubr.msk.f32.mxu1 %vm942_vm5, %v1296_v40 }
 0x552   :  { %5284 = vmatmul.mubr.msk.f32.vlgmr.msra.gmra.mxu1 %vm942_vm5, %v5255_v34 }
 0x553   :  { %v5258_v41 = vpop.f32.mrf.mxu0 }
 0x555   :  { %v1306_v42 = vpop.f32.mrf.mxu0 }
 0x556   :  { %5286 = vmatprep.mubr.msk.f32.mxu1 %vm942_vm5, %v1306_v42 }
 0x557   :  { %5287 = vmatmul.mubr.msk.f32.gmra.mxu1 %vm942_vm5, %v5258_v41 }
 0x612   :  { %v5285_v43 = vpop.f32.mrf.mxu1 }
 0x613   :  { %v1435_v12 = vadd.f32 %v5285_v43, %v714_v44 }
 0x614   :  { %v1429_v47 = vpop.f32.mrf.mxu1 }
 0x615   :  { %v1430_v45 = vadd.f32 %v1429_v47, %v713_v31  ;;  %v1450_v0 = vsel %vm1448_vm9, %v1435_v12, -inf }
 0x617   :  { %v5288_v58 = vpop.f32.mrf.mxu1  ;;  %v1449_v13 = vsel %vm1448_vm9, %v1430_v45, -inf }
 0x618   :  { %v1445_v60 = vadd.f32 %v5288_v58, %v716_v56  ;;  %v1454_v7 = vmax.f32 %v1449_v13, %v1450_v0 }
 0x619   :  { %v1439_v62 = vpop.f32.mrf.mxu1 }
 0x61a   :  { %v1440_v63 = vadd.f32 %v1439_v62, %v715_v3  ;;  %v1453_v4 = vsel %vm1452_vm10, %v1445_v60, -inf }
 0x61c   :  { %v1451_v5 = vsel %vm1448_vm9, %v1440_v63, -inf }
 0x61d   :  { %v1455_v8 = vmax.f32 %v1451_v5, %v1453_v4 }
 0x61f   :  { %v1456_v9 = vmax.f32 %v1454_v7, %v1455_v8 }
 0x621   :  { %v1457_v10 = vrot.slane %v1456_v9, 4 }
 0x623   :  { %v1458_v11 = vmax.f32 %v1456_v9, %v1457_v10 }
 0x625   :  { %v1459_v17 = vrot.slane %v1458_v11, 2 }
 0x627   :  { %v1460_v28 = vmax.f32 %v1458_v11, %v1459_v17 }
 0x629   :  { %v1461_v22 = vrot.slane %v1460_v28, 1 }
 0x62b   :  { %v1462_v24 = vmax.f32 %v1460_v28, %v1461_v22 }
 0x62d   :  { %v1463_v26 = vsub.f32 %v1430_v45, %v1462_v24  ;;  %v1465_v27 = vsub.f32 %v1440_v63, %v1462_v24  ;;  %v1464_v32 = vsub.f32 %v1435_v12, %v1462_v24  ;;  %v1466_v37 = vsub.f32 %v1445_v60, %v1462_v24 }
 0x62f   :  { %v1467_v39 = vmul.f32 1.442695, %v1463_v26  ;;  %v1471_v15 = vmul.f32 1.442695, %v1465_v27  ;;  %v1469_v19 = vmul.f32 1.442695, %v1464_v32 }
 0x630   :  { %v1473_v34 = vmul.f32 1.442695, %v1466_v37 }
 0x631   :  { %5739 = vpow2.f32 %v1467_v39 }
 0x632   :  { %5741 = vpow2.f32 %v1471_v15 }
 0x633   :  { %5743 = vpow2.f32 %v1469_v19 }
 0x634   :  { %5745 = vpow2.f32 %v1473_v34 }
 0x63e   :  { %v5740_v40 = vpop.eup %5739 }
 0x63f   :  { %v5742_v41 = vpop.eup %5741  ;;  %v1475_v42 = vsel %vm1448_vm9, %v5740_v40, 0.0 }
 0x640   :  { %v5744_v43 = vpop.eup %5743  ;;  %v1478_v56 = vsel %vm1448_vm9, %v5742_v41, 0.0 }
 0x641   :  { %v1476_v31 = vsel %vm1448_vm9, %v5744_v43, 0.0  ;;  %v5746_v47 = vpop.eup %5745 }
 0x642   :  { %v1477_v44 = vadd.f32 %v1476_v31, %v1475_v42  ;;  %v1480_v58 = vsel %vm1452_vm10, %v5746_v47, 0.0 }
 0x644   :  { %v1479_v45 = vadd.f32 %v1478_v56, %v1477_v44 }
 0x646   :  { %v1481_v3 = vadd.f32 %v1480_v58, %v1479_v45 }
 0x648   :  { %v1482_v12 = vrot.slane %v1481_v3, 4 }
 0x64a   :  { %v1483_v60 = vadd.f32 %v1482_v12, %v1481_v3  ;;  %v1640_v12 = vld [vmem:[%s7177_s21 + $0x10] sm:$0xff] }
 0x64b   :  { %5319 = vmatprep.subr.mxu0 %v1640_v12 }
 0x64c   :  { %v1484_v62 = vrot.slane %v1483_v60, 2 }
 0x64e   :  { %v1485_v13 = vadd.f32 %v1484_v62, %v1483_v60  ;;  %v6680_v60 = vld [vmem:[%s7178_s25 + $0x10] sm:$0xff] }
 0x64f   :  { %5355 = vmatprep.subr.mxu1 %v6680_v60 }
 0x650   :  { %v1486_v63 = vrot.slane %v1485_v13, 1  ;;  %5356 = vmatpush3.msra.mxu1 %v6680_v60 }
 0x652   :  { %v1487_v0 = vadd.f32 %v1486_v63, %v1485_v13 }
 0x654   :  { %5747 = vlog2.f32 %v1487_v0 }
 0x661   :  { %v5748_v4 = vpop.eup %5747 }
 0x662   :  { %v1489_v5 = vmul.f32 0.6931472, %v5748_v4 }
 0x664   :  { %v1491_v7 = vsub.f32 %v1464_v32, %v1489_v5  ;;  %v1490_v8 = vsub.f32 %v1463_v26, %v1489_v5  ;;  %v1493_v11 = vsub.f32 %v1466_v37, %v1489_v5  ;;  %v1492_v17 = vsub.f32 %v1465_v27, %v1489_v5 }
 0x666   :  { %v1497_v9 = vsel %vm1448_vm9, %v1491_v7, -inf  ;;  %v1494_v10 = vsel %vm1448_vm9, %v1490_v8, -inf  ;;  %v1503_v28 = vsel %vm1452_vm10, %v1493_v11, -inf  ;;  %v1500_v22 = vsel %vm1448_vm9, %v1492_v17, -inf }
 0x667   :  { %1498 = vmax.xlane.f32.xlu1 %v1497_v9  ;;  %1495 = vmax.xlane.f32.xlu0 %v1494_v10  ;;  %v1639_v10 = vld [vmem:[%s7177_s21 + $0x8] sm:$0xff] }
 0x66b   :  { %1504 = vmax.xlane.f32.xlu1 %v1503_v28  ;;  %1501 = vmax.xlane.f32.xlu0 %v1500_v22  ;;  %v1638_v22 = vld [vmem:[%s7177_s21] sm:$0xff] }
 0x6f0   :  { %v1499_v24 = vpop.xlane.xlu1 %1498  ;;  %v1496_v39 = vpop.xlane.xlu0 %1495 }
 0x6f1   :  { %v1507_v15 = vsub.f32 %v1491_v7, %v1499_v24  ;;  %v1506_v19 = vsub.f32 %v1490_v8, %v1496_v39  ;;  %v1637_v24 = vld [vmem:[%s7179_s29 + $0x10] sm:$0xff]  ;;  %v1636_v39 = vld [vmem:[%s7179_s29 + $0x8] sm:$0xff] }
 0x6f3   :  { %v1512_v32 = vmul.f32 1.442695, %v1507_v15  ;;  %v1510_v26 = vmul.f32 1.442695, %v1506_v19  ;;  %v1868_v15 = vld [vmem:[%s7178_s25 + $0x8] sm:$0xff]  ;;  %v1635_v19 = vld [vmem:[%s7179_s29] sm:$0xff] }
 0x6f4   :  { %v1505_v34 = vpop.xlane.xlu1 %1504  ;;  %v1502_v40 = vpop.xlane.xlu0 %1501  ;;  %5357 = vmatprep.subr.mxu1 %v1868_v15 }
 0x6f5   :  { %5749 = vpow2.f32 %v1512_v32  ;;  %v1509_v41 = vsub.f32 %v1493_v11, %v1505_v34  ;;  %v1508_v37 = vsub.f32 %v1492_v17, %v1502_v40  ;;  %5358 = vmatpush3.msra.mxu1 %v1868_v15  ;;  %v1867_v32 = vld [vmem:[%s7178_s25] sm:$0xff]  ;;  %v2169_v34 = vld [vmem:[%s7181_s30 + $0x10] sm:$0xff] }
 0x6f6   :  { %5751 = vpow2.f32 %v1510_v26  ;;  %5359 = vmatprep.subr.mxu1 %v1867_v32  ;;  %v1872_v26 = vld [vmem:[%s7180_s14 + $0x10] sm:$0xff] }
 0x6f7   :  { %v1516_v27 = vmul.f32 1.442695, %v1509_v41  ;;  %v1514_v42 = vmul.f32 1.442695, %v1508_v37  ;;  %5360 = vmatpush3.msra.mxu1 %v1867_v32  ;;  %v1871_v37 = vld [vmem:[%s7180_s14 + $0x8] sm:$0xff] }
 0x6f8   :  { %5379 = vmatprep.subr.mxu1 %v2169_v34 }
 0x6f9   :  { %5753 = vpow2.f32 %v1516_v27  ;;  %v2168_v27 = vld [vmem:[%s7181_s30 + $0x8] sm:$0xff] }
 0x6fa   :  { %5755 = vpow2.f32 %v1514_v42 }
 0x702   :  { %v5750_v43 = vpop.eup %5749 }
 0x703   :  { %v5752_v31 = vpop.eup %5751  ;;  %v1521_v47 = vsel %vm1448_vm9, %v5750_v43, 0.0 }
 0x704   :  { %1522 = vadd.xlane.f32.xlu1 %v1521_v47  ;;  %v1518_v44 = vsel %vm1448_vm9, %v5752_v31, 0.0  ;;  %v2167_v47 = vld [vmem:[%s7181_s30] sm:$0xff] }
 0x705   :  { %1519 = vadd.xlane.f32.xlu0 %v1518_v44  ;;  %v2077_v44 = vld [vmem:[%s7182_s6 + $0x10] sm:$0xff] }
 0x706   :  { %v5754_v56 = vpop.eup %5753 }
 0x707   :  { %v5756_v45 = vpop.eup %5755  ;;  %v1527_v58 = vsel %vm1452_vm10, %v5754_v56, 0.0 }
 0x708   :  { %1528 = vadd.xlane.f32.xlu1 %v1527_v58  ;;  %v1524_v3 = vsel %vm1448_vm9, %v5756_v45, 0.0 }
 0x709   :  { %1525 = vadd.xlane.f32.xlu0 %v1524_v3 }
 0x78d   :  { %v1523_v62 = vpop.xlane.xlu1 %1522 }
 0x78e   :  { %5757 = vrcp.f32 %v1523_v62  ;;  %v1520_v13 = vpop.xlane.xlu0 %1519 }
 0x78f   :  { %5759 = vrcp.f32 %v1520_v13  ;;  %v4737_v13 = vld [vmem:[%s7183_s10] ss:$0 sm:$0xff] }
 0x791   :  { %v1529_v63 = vpop.xlane.xlu1 %1528 }
 0x792   :  { %5761 = vrcp.f32 %v1529_v63  ;;  %v1526_v0 = vpop.xlane.xlu0 %1525 }
 0x793   :  { %5763 = vrcp.f32 %v1526_v0 }
 0x79b   :  { %v5758_v4 = vpop.eup %5757 }
 0x79c   :  { %v5760_v5 = vpop.eup %5759  ;;  %v1533_v7 = vmul.f32 %v5758_v4, %v5750_v43 }
 0x79d   :  { %v1531_v8 = vmul.f32 %v5760_v5, %v5752_v31  ;;  %v1870_v31 = vld [vmem:[%s7180_s14] sm:$0xff] }
 0x79f   :  { %v5762_v9 = vpop.eup %5761  ;;  %5313 = vmatprep.mubr.msk.f32.mxu0 %vm1448_vm9, %v1531_v8 }
 0x7a0   :  { %v5764_v11 = vpop.eup %5763  ;;  %5314 = vmatmul.mubr.msk.f32.vlgmr.msra.gmra.mxu0 %vm1448_vm9, %v1533_v7  ;;  %v1537_v17 = vmul.f32 %v5762_v9, %v5754_v56  ;;  %v2076_v56 = vld [vmem:[%s7182_s6 + $0x8] sm:$0xff] }
 0x7a1   :  { %v1535_v28 = vmul.f32 %v5764_v11, %v5756_v45  ;;  %5320 = vmatpush3.msra.mxu0 %v1640_v12  ;;  %v2075_v45 = vld [vmem:[%s7182_s6] sm:$0xff] }
 0x7a2   :  { %5321 = vmatprep.subr.mxu0 %v1639_v10 }
 0x7a3   :  { %5316 = vmatprep.mubr.msk.f32.mxu0 %vm1448_vm9, %v1535_v28  ;;  %5322 = vmatpush3.msra.mxu0 %v1639_v10 }
 0x7a4   :  { %5317 = vmatmul.mubr.msk.f32.gmra.mxu0 %vm1448_vm9, %v1537_v17  ;;  %5323 = vmatprep.subr.mxu0 %v1638_v22 }
 0x7a5   :  { %5325 = vmatprep.mubr.msk.f32.mxu0 %vm1140_vm7, %v6605_v61  ;;  %5324 = vmatpush3.msra.mxu0 %v1638_v22 }
 0x7a6   :  { %5331 = vmatprep.subr.mxu0 %v1637_v24 }
 0x7a8   :  { %5326 = vmatmul.mubr.msk.f32.vlgmr.msra.gmra.mxu0 %vm1140_vm7, %v6603_v59 }
 0x7a9   :  { %5328 = vmatprep.mubr.msk.f32.mxu0 %vm1140_vm7, %v6613_v6  ;;  %5332 = vmatpush3.msra.mxu0 %v1637_v24 }
 0x7aa   :  { %5333 = vmatprep.subr.mxu0 %v1636_v39 }
 0x7ab   :  { %5334 = vmatpush3.msra.mxu0 %v1636_v39 }
 0x7ac   :  { %5329 = vmatmul.mubr.msk.f32.gmra.mxu0 %vm1140_vm7, %v6611_v1  ;;  %5335 = vmatprep.subr.mxu0 %v1635_v19 }
 0x7ad   :  { %5336 = vmatpush3.msra.mxu0 %v1635_v19 }
 0x7ae   :  { %5343 = vmatprep.subr.mxu0 %v1872_v26 }
 0x860   :  { %v5315_v40 = vpop.f32.mrf.mxu0 }
 0x862   :  { %v1616_v41 = vpop.f32.mrf.mxu0 }
 0x863   :  { %5337 = vmatprep.mubr.msk.f32.mxu0 %vm1140_vm7, %v1616_v41  ;;  %5361 = vmatprep.mubr.msk.f32.mxu1 %vm1140_vm7, %v1616_v41 }
 0x864   :  { %v5318_v42 = vpop.f32.mrf.mxu0  ;;  %5338 = vmatmul.mubr.msk.f32.vlgmr.msra.gmra.mxu0 %vm1140_vm7, %v5315_v40  ;;  %5362 = vmatmul.mubr.msk.f32.vlgmr.msra.gmra.mxu1 %vm1140_vm7, %v5315_v40 }
 0x865   :  { %5344 = vmatpush3.msra.mxu0 %v1872_v26  ;;  %5380 = vmatpush3.msra.mxu1 %v2169_v34  ;;  %v4750_v26 = vld [vmem:[%s7183_s10 + $0x1] ss:$0 sm:$0xff] }
 0x866   :  { %v1626_v43 = vpop.f32.mrf.mxu0  ;;  %5345 = vmatprep.subr.mxu0 %v1871_v37  ;;  %5381 = vmatprep.subr.mxu1 %v2168_v27 }
 0x867   :  { %5340 = vmatprep.mubr.msk.f32.mxu0 %vm1140_vm7, %v1626_v43  ;;  %5364 = vmatprep.mubr.msk.f32.mxu1 %vm1140_vm7, %v1626_v43 }
 0x868   :  { %5341 = vmatmul.mubr.msk.f32.gmra.mxu0 %vm1140_vm7, %v5318_v42  ;;  %5365 = vmatmul.mubr.msk.f32.gmra.mxu1 %vm1140_vm7, %v5318_v42  ;;  %v5327_v58 = vpop.f32.mrf.mxu0 }
 0x869   :  { %5346 = vmatpush3.msra.mxu0 %v1871_v37  ;;  %5349 = vmatprep.mubr.msk.f32.mxu0 %vm1140_vm7, %v6605_v61 }
 0x86a   :  { %5382 = vmatpush3.msra.mxu1 %v2168_v27  ;;  %5385 = vmatprep.mubr.msk.f32.mxu1 %vm1140_vm7, %v6605_v61  ;;  %v1719_v3 = vpop.f32.mrf.mxu0 }
 0x86b   :  { %5347 = vmatprep.subr.mxu0 %v1870_v31  ;;  %5383 = vmatprep.subr.mxu1 %v2167_v47 }
 0x86c   :  { %5348 = vmatpush3.msra.mxu0 %v1870_v31  ;;  %5384 = vmatpush3.msra.mxu1 %v2167_v47  ;;  %v5330_v12 = vpop.f32.mrf.mxu0 }
 0x86d   :  { %5350 = vmatmul.mubr.msk.f32.vlgmr.msra.gmra.mxu0 %vm1140_vm7, %v6603_v59  ;;  %5386 = vmatmul.mubr.msk.f32.vlgmr.msra.gmra.mxu1 %vm1140_vm7, %v6603_v59 }
 0x86e   :  { %5352 = vmatprep.mubr.msk.f32.mxu0 %vm1140_vm7, %v6613_v6  ;;  %5388 = vmatprep.mubr.msk.f32.mxu1 %vm1140_vm7, %v6613_v6  ;;  %v1729_v62 = vpop.f32.mrf.mxu0 }
 0x86f   :  { %5367 = vmatprep.subr.mxu0 %v2077_v44 }
 0x870   :  { %5368 = vmatpush3.msra.mxu0 %v2077_v44 }
 0x871   :  { %5353 = vmatmul.mubr.msk.f32.gmra.mxu0 %vm1140_vm7, %v6611_v1  ;;  %5369 = vmatprep.subr.mxu0 %v2076_v56 }
 0x872   :  { %5389 = vmatmul.mubr.msk.f32.gmra.mxu1 %vm1140_vm7, %v6611_v1  ;;  %5370 = vmatpush3.msra.mxu0 %v2076_v56 }
 0x873   :  { %5373 = vmatprep.mubr.msk.f32.mxu0 %vm1140_vm7, %v1616_v41  ;;  %5371 = vmatprep.subr.mxu0 %v2075_v45 }
 0x874   :  { %5372 = vmatpush3.msra.mxu0 %v2075_v45 }
 0x875   :  { %5374 = vmatmul.mubr.msk.f32.vlgmr.msra.gmra.mxu0 %vm1140_vm7, %v5315_v40 }
 0x876   :  { %5376 = vmatprep.mubr.msk.f32.mxu0 %vm1140_vm7, %v1626_v43 }
 0x879   :  { %5377 = vmatmul.mubr.msk.f32.gmra.mxu0 %vm1140_vm7, %v5318_v42 }
 0x924   :  { %v5339_v63 = vpop.f32.mrf.mxu0  ;;  %v5363_v7 = vpop.f32.mrf.mxu1 }
 0x925   :  { %v1822_v0 = vadd.f32 %v5339_v63, %v5327_v58 }
 0x926   :  { %v1816_v4 = vpop.f32.mrf.mxu0  ;;  %v2024_v24 = vpop.f32.mrf.mxu1 }
 0x927   :  { %v1840_v5 = vadd.f32 %v4737_v13, %v1822_v0  ;;  %v1817_v8 = vadd.f32 %v1816_v4, %v1719_v3 }
 0x928   :  { %v5342_v9 = vpop.f32.mrf.mxu0  ;;  %v5366_v41 = vpop.f32.mrf.mxu1 }
 0x929   :  { %v4739_v10 = vmul.f32 -1.442695, %v1840_v5  ;;  %v1839_v11 = vadd.f32 %v4737_v13, %v1817_v8  ;;  %v1832_v17 = vadd.f32 %v5342_v9, %v5330_v12 }
 0x92a   :  { %v1826_v28 = vpop.f32.mrf.mxu0  ;;  %v2034_v45 = vpop.f32.mrf.mxu1 }
 0x92b   :  { %5765 = vpow2.f32 %v4739_v10  ;;  %v4738_v22 = vmul.f32 -1.442695, %v1839_v11  ;;  %v1842_v39 = vadd.f32 %v4737_v13, %v1832_v17  ;;  %v1827_v15 = vadd.f32 %v1826_v28, %v1729_v62 }
 0x92d   :  { %5767 = vpow2.f32 %v4738_v22  ;;  %v4741_v19 = vmul.f32 -1.442695, %v1842_v39  ;;  %v1841_v32 = vadd.f32 %v4737_v13, %v1827_v15  ;;  %v5351_v34 = vpop.f32.mrf.mxu0  ;;  %v5387_v11 = vpop.f32.mrf.mxu1 }
 0x92e   :  { %v2030_v40 = vadd.f32 %v5363_v7, %v5351_v34 }
 0x92f   :  { %5769 = vpow2.f32 %v4741_v19  ;;  %v4740_v37 = vmul.f32 -1.442695, %v1841_v32  ;;  %v1939_v27 = vpop.f32.mrf.mxu0  ;;  %v4760_v19 = vld [vmem:[%s7183_s10 + $0x3] ss:$0 sm:$0xff] }
 0x930   :  { %v2048_v42 = vadd.f32 %v4750_v26, %v2030_v40  ;;  %v2025_v43 = vadd.f32 %v2024_v24, %v1939_v27  ;;  %v2240_v24 = vpop.f32.mrf.mxu1  ;;  %v2246_v27 = vadd.f32 %v5387_v11, %v4760_v19 }
 0x931   :  { %5771 = vpow2.f32 %v4740_v37  ;;  %v5354_v31 = vpop.f32.mrf.mxu0 }
 0x932   :  { %v4752_v47 = vmul.f32 -1.442695, %v2048_v42  ;;  %v2047_v44 = vadd.f32 %v4750_v26, %v2025_v43  ;;  %v2040_v56 = vadd.f32 %v5366_v41, %v5354_v31  ;;  %v5390_v40 = vpop.f32.mrf.mxu1  ;;  %v4755_v41 = vld [vmem:[%s7183_s10 + $0x2] ss:$0 sm:$0xff] }
 0x933   :  { %v1949_v58 = vpop.f32.mrf.mxu0 }
 0x934   :  { %v4751_v3 = vmul.f32 -1.442695, %v2047_v44  ;;  %v2050_v12 = vadd.f32 %v4750_v26, %v2040_v56  ;;  %v2035_v62 = vadd.f32 %v2034_v45, %v1949_v58  ;;  %5773 = vpow2.f32 %v4752_v47  ;;  %v2250_v45 = vpop.f32.mrf.mxu1 }
 0x935   :  { %v5375_v22 = vpop.f32.mrf.mxu0  ;;  %v2241_v56 = vadd.f32 %v4760_v19, %v2240_v24 }
 0x936   :  { %v4754_v13 = vmul.f32 -1.442695, %v2050_v12  ;;  %v2049_v63 = vadd.f32 %v4750_v26, %v2035_v62  ;;  %5775 = vpow2.f32 %v4751_v3  ;;  %v2154_v58 = vadd.f32 %v5375_v22, %v4755_v41 }
 0x937   :  { %v2148_v32 = vpop.f32.mrf.mxu0  ;;  %v2256_v12 = vadd.f32 %v5390_v40, %v4760_v19 }
 0x938   :  { %v5766_v0 = vpop.eup %5765  ;;  %5777 = vpow2.f32 %v4754_v13  ;;  %v4753_v4 = vmul.f32 -1.442695, %v2049_v63 }
 0x939   :  { %v1856_v5 = vadd.f32 1.0, %v5766_v0  ;;  %v5378_v47 = vpop.f32.mrf.mxu0  ;;  %v2149_v0 = vadd.f32 %v4755_v41, %v2148_v32 }
 0x93a   :  { %v5768_v7 = vpop.eup %5767  ;;  %5779 = vpow2.f32 %v4753_v4 }
 0x93b   :  { %5781 = vrcp.f32 %v1856_v5  ;;  %v1855_v8 = vadd.f32 1.0, %v5768_v7  ;;  %v2251_v5 = vadd.f32 %v4760_v19, %v2250_v45  ;;  %v2158_v7 = vpop.f32.mrf.mxu0 }
 0x93c   :  { %v5770_v9 = vpop.eup %5769  ;;  %v2159_v22 = vadd.f32 %v4755_v41, %v2158_v7 }
 0x93d   :  { %5783 = vrcp.f32 %v1855_v8  ;;  %v1858_v10 = vadd.f32 1.0, %v5770_v9 }
 0x93e   :  { %v5772_v17 = vpop.eup %5771 }
 0x93f   :  { %5785 = vrcp.f32 %v1858_v10  ;;  %v1857_v28 = vadd.f32 1.0, %v5772_v17  ;;  %v2164_v10 = vadd.f32 %v5378_v47, %v4755_v41 }
 0x941   :  { %5787 = vrcp.f32 %v1857_v28  ;;  %v5774_v39 = vpop.eup %5773 }
 0x942   :  { %v2064_v34 = vadd.f32 1.0, %v5774_v39 }
 0x943   :  { %v5776_v15 = vpop.eup %5775 }
 0x944   :  { %v2063_v42 = vadd.f32 1.0, %v5776_v15  ;;  %5789 = vrcp.f32 %v2064_v34 }
 0x945   :  { %v5778_v26 = vpop.eup %5777 }
 0x946   :  { %v2066_v31 = vadd.f32 1.0, %v5778_v26  ;;  %5791 = vrcp.f32 %v2063_v42 }
 0x947   :  { %v5780_v37 = vpop.eup %5779 }
 0x948   :  { %v5782_v43 = vpop.eup %5781  ;;  %v2065_v62 = vadd.f32 1.0, %v5780_v37  ;;  %5793 = vrcp.f32 %v2066_v31 }
 0x949   :  { %v2260_v44 = vmul.f32 %v5782_v43, %v2246_v27 }
 0x94a   :  { %v5784_v3 = vpop.eup %5783 }
 0x94b   :  { %v2259_v13 = vmul.f32 %v5784_v3, %v2241_v56  ;;  %v2264_v63 = vadd.f32 %v2260_v44, %v2154_v58 }
 0x94c   :  { %v5786_v4 = vpop.eup %5785 }
 0x94d   :  { %v2262_v8 = vmul.f32 %v5786_v4, %v2256_v12  ;;  %5795 = vtanh.f32 %v2264_v63  ;;  %v2263_v9 = vadd.f32 %v2259_v13, %v2149_v0 }
 0x94e   :  { %v5788_v11 = vpop.eup %5787  ;;  %5797 = vrcp.f32 %v2065_v62 }
 0x94f   :  { %v2261_v17 = vmul.f32 %v5788_v11, %v2251_v5  ;;  %5799 = vtanh.f32 %v2263_v9  ;;  %v2266_v28 = vadd.f32 %v2262_v8, %v2164_v10 }
 0x951   :  { %5801 = vtanh.f32 %v2266_v28  ;;  %v2265_v24 = vadd.f32 %v2261_v17, %v2159_v22  ;;  %v5790_v39 = vpop.eup %5789 }
 0x952   :  { %v2272_v26 = vsub.f32 1.0, %v5790_v39  ;;  %v2280_v37 = vmul.f32 %v5790_v39, %v6603_v59 }
 0x953   :  { %5803 = vtanh.f32 %v2265_v24  ;;  %v5792_v15 = vpop.eup %5791 }
 0x954   :  { %v2271_v27 = vsub.f32 1.0, %v5792_v15  ;;  %v2279_v47 = vmul.f32 %v5792_v15, %v6605_v61 }
 0x955   :  { %v5794_v32 = vpop.eup %5793 }
 0x956   :  { %v2274_v41 = vsub.f32 1.0, %v5794_v32  ;;  %v2282_v56 = vmul.f32 %v5794_v32, %v6611_v1 }
 0x95a   :  { %v5796_v34 = vpop.eup %5795 }
 0x95b   :  { %v5798_v19 = vpop.eup %5797  ;;  %v2276_v40 = vmul.f32 %v5796_v34, %v2272_v26 }
 0x95c   :  { %v5800_v42 = vpop.eup %5799  ;;  %v2273_v12 = vsub.f32 1.0, %v5798_v19  ;;  %v2281_v61 = vmul.f32 %v5798_v19, %v6613_v6 }
 0x95d   :  { %v6745_v43 = vadd.f32 %v2280_v37, %v2276_v40  ;;  %v2275_v31 = vmul.f32 %v5800_v42, %v2271_v27  ;;  %v6773_v42 = vld [vmem:[%s7184_s11 + $0x10] sm:$0xff] }
 0x95e   :  { %v5802_v44 = vpop.eup %5801  ;;  %5391 = vmatprep.subr.mxu0 %v6773_v42 }
 0x95f   :  { %v2292_v45 = vsel %vm1140_vm7, %v6745_v43, 0.0  ;;  %v6751_v58 = vadd.f32 %v2279_v47, %v2275_v31  ;;  %v2278_v3 = vmul.f32 %v5802_v44, %v2274_v41  ;;  %v6776_v31 = vld [vmem:[%s7184_s11 + $0x8] sm:$0xff]  ;;  %5392 = vmatpush3.msra.mxu0 %v6773_v42  ;;  %v6781_v47 = vld [vmem:[%s7184_s11] sm:$0xff] }
 0x960   :  { %v5804_v62 = vpop.eup %5803  ;;  %2293 = vadd.xlane.f32.xlu1 %v2292_v45  ;;  %5393 = vmatprep.subr.mxu0 %v6776_v31 }
 0x961   :  { %v2289_v59 = vsel %vm1140_vm7, %v6751_v58, 0.0  ;;  %v6755_v13 = vadd.f32 %v2282_v56, %v2278_v3  ;;  %v2277_v63 = vmul.f32 %v5804_v62, %v2273_v12  ;;  %5394 = vmatpush3.msra.mxu0 %v6776_v31 }
 0x962   :  { %2290 = vadd.xlane.f32.xlu0 %v2289_v59  ;;  %5395 = vmatprep.subr.mxu0 %v6781_v47 }
 0x963   :  { %v2298_v1 = vsel %vm1150_vm8, %v6755_v13, 0.0  ;;  %v6760_v0 = vadd.f32 %v2281_v61, %v2277_v63  ;;  %5396 = vmatpush3.msra.mxu0 %v6781_v47 }
 0x964   :  { %2299 = vadd.xlane.f32.xlu1 %v2298_v1 }
 0x965   :  { %v2295_v4 = vsel %vm1140_vm7, %v6760_v0, 0.0 }
 0x966   :  { %2296 = vadd.xlane.f32.xlu0 %v2295_v4 }
 0x9e9   :  { %v2294_v5 = vpop.xlane.xlu1 %2293 }
 0x9ea   :  { %v2302_v7 = vmul.f32 0.041666668, %v2294_v5 }
 0x9eb   :  { %v2291_v8 = vpop.xlane.xlu0 %2290 }
 0x9ec   :  { %v2306_v9 = vsub.f32 %v6745_v43, %v2302_v7  ;;  %v2301_v10 = vmul.f32 0.041666668, %v2291_v8  ;;  %v4765_v7 = vld [vmem:[#allocation6] ss:$0 sm:$0xff] }
 0x9ed   :  { %v2300_v11 = vpop.xlane.xlu1 %2299 }
 0x9ee   :  { %v2305_v6 = vsub.f32 %v6751_v58, %v2301_v10  ;;  %v2304_v17 = vmul.f32 0.041666668, %v2300_v11  ;;  %v2310_v28 = vmul.f32 %v2306_v9, %v2306_v9 }
 0x9ef   :  { %v2297_v22 = vpop.xlane.xlu0 %2296 }
 0x9f0   :  { %v2308_v24 = vsub.f32 %v6755_v13, %v2304_v17  ;;  %v2303_v39 = vmul.f32 0.041666668, %v2297_v22  ;;  %v2316_v15 = vsel %vm1140_vm7, %v2310_v28, 0.0  ;;  %v2309_v32 = vmul.f32 %v2305_v6, %v2305_v6  ;;  %v4766_v22 = vld [vmem:[#allocation7] ss:$0 sm:$0xff] }
 0x9f1   :  { %2317 = vadd.xlane.f32.xlu1 %v2316_v15 }
 0x9f2   :  { %v2307_v26 = vsub.f32 %v6760_v0, %v2303_v39  ;;  %v2313_v34 = vsel %vm1140_vm7, %v2309_v32, 0.0  ;;  %v2312_v19 = vmul.f32 %v2308_v24, %v2308_v24 }
 0x9f3   :  { %2314 = vadd.xlane.f32.xlu0 %v2313_v34 }
 0x9f4   :  { %v2322_v40 = vsel %vm1150_vm8, %v2312_v19, 0.0  ;;  %v2311_v37 = vmul.f32 %v2307_v26, %v2307_v26 }
 0x9f5   :  { %2323 = vadd.xlane.f32.xlu1 %v2322_v40 }
 0x9f6   :  { %v2319_v27 = vsel %vm1140_vm7, %v2311_v37, 0.0 }
 0x9f7   :  { %2320 = vadd.xlane.f32.xlu0 %v2319_v27 }
 0xa7a   :  { %v2318_v41 = vpop.xlane.xlu1 %2317 }
 0xa7b   :  { %v2326_v44 = vmul.f32 0.041666668, %v2318_v41  ;;  %v6802_v41 = vld [vmem:[%s6260_s27 + $0x8] sm:$0xff] }
 0xa7c   :  { %v2315_v56 = vpop.xlane.xlu0 %2314 }
 0xa7d   :  { %v2330_v45 = vadd.f32 1e-05, %v2326_v44  ;;  %v2325_v3 = vmul.f32 0.041666668, %v2315_v56  ;;  %v6807_v44 = vld [vmem:[%s6260_s27] sm:$0xff] }
 0xa7e   :  { %v2324_v12 = vpop.xlane.xlu1 %2323  ;;  %v4767_v56 = vld [vmem:[#allocation9] ss:$0 sm:$0xff] }
 0xa7f   :  { %5805 = vrsqrt.f32 %v2330_v45  ;;  %v2329_v62 = vadd.f32 1e-05, %v2325_v3  ;;  %v2328_v59 = vmul.f32 0.041666668, %v2324_v12 }
 0xa80   :  { %v2321_v63 = vpop.xlane.xlu0 %2320 }
 0xa81   :  { %5807 = vrsqrt.f32 %v2329_v62  ;;  %v2332_v61 = vadd.f32 1e-05, %v2328_v59  ;;  %v2327_v1 = vmul.f32 0.041666668, %v2321_v63 }
 0xa83   :  { %5809 = vrsqrt.f32 %v2332_v61  ;;  %v2331_v4 = vadd.f32 1e-05, %v2327_v1 }
 0xa85   :  { %5811 = vrsqrt.f32 %v2331_v4 }
 0xa8c   :  { %v5806_v5 = vpop.eup %5805 }
 0xa8d   :  { %v2338_v8 = vmul.f32 %v5806_v5, %v2306_v9 }
 0xa8e   :  { %v5808_v10 = vpop.eup %5807 }
 0xa8f   :  { %v2337_v11 = vmul.f32 %v5808_v10, %v2305_v6  ;;  %v2348_v28 = vmul.f32 %v4765_v7, %v2338_v8  ;;  %v6109_v10 = vmov 0.0  }
 0xa90   :  { %v5810_v17 = vpop.eup %5809  ;;  %5417 = vmatprep.subr.mxu0 %v6109_v10 }
 0xa91   :  { %v2347_v39 = vmul.f32 %v4765_v7, %v2337_v11  ;;  %v2340_v15 = vmul.f32 %v5810_v17, %v2308_v24  ;;  %v2358_v40 = vadd.f32 %v4766_v22, %v2348_v28  ;;  %v6792_v24 = vld [vmem:[%s6260_s27 + $0x18] sm:$0xff]  ;;  %v4772_v11 = vld [vmem:[#allocation10] ss:$0 sm:$0xff] }
 0xa92   :  { %v5812_v32 = vpop.eup %5811  ;;  %5403 = vmatprep.subr.mxu1 %v6792_v24 }
 0xa93   :  { %v2357_v34 = vadd.f32 %v4766_v22, %v2347_v39  ;;  %v2339_v19 = vmul.f32 %v5812_v32, %v2307_v26  ;;  %v2350_v37 = vmul.f32 %v4765_v7, %v2340_v15  ;;  %5404 = vmatpush3.msra.mxu1 %v6792_v24  ;;  %v6797_v26 = vld [vmem:[%s6260_s27 + $0x10] sm:$0xff]  ;;  %s7185_s27 = sld [smem:[#allocation19_spill]] }
 0xa94   :  { %5405 = vmatprep.subr.mxu1 %v6797_v26 }
 0xa95   :  { %5397 = vmatprep.mubr.msk.f32.mxu0 %vm1140_vm7, %v2357_v34  ;;  %v2349_v27 = vmul.f32 %v4765_v7, %v2339_v19  ;;  %v2360_v6 = vadd.f32 %v4766_v22, %v2350_v37  ;;  %5406 = vmatpush3.msra.mxu1 %v6797_v26 }
 0xa96   :  { %5398 = vmatmul.mubr.msk.f32.vlgmr.msra.gmra.mxu0 %vm1140_vm7, %v2358_v40  ;;  %5407 = vmatprep.subr.mxu1 %v6802_v41 }
 0xa97   :  { %v2359_v9 = vadd.f32 %v4766_v22, %v2349_v27  ;;  %5408 = vmatpush3.msra.mxu1 %v6802_v41 }
 0xa98   :  { %5409 = vmatprep.subr.mxu1 %v6807_v44 }
 0xa99   :  { %5400 = vmatprep.mubr.msk.f32.mxu0 %vm1140_vm7, %v2359_v9  ;;  %5410 = vmatpush3.msra.mxu1 %v6807_v44  ;;  %v729_v15 = vld [vmem:[%s7185_s27] sm:$0xff] }
 0xa9a   :  { %5401 = vmatmul.mubr.msk.f32.gmra.mxu0 %vm1140_vm7, %v2360_v6 }
 0xa9b   :  { %5425 = vmatprep.mubr.msk.f32.mxu0 %vm6110_vm11, %v6109_v10 }
 0xb56   :  { %v5399_v45 = vpop.f32.mrf.mxu0 }
 0xb57   :  { %v2455_v3 = vadd.f32 %v5399_v45, %v4767_v56 }
 0xb58   :  { %v2449_v12 = vpop.f32.mrf.mxu0 }
 0xb59   :  { %v2450_v62 = vadd.f32 %v4767_v56, %v2449_v12  ;;  %v2469_v61 = vmax.f32 %v2455_v3, 0.0  ;;  %v730_v3 = vld [vmem:[%s7185_s27 + $0x8] sm:$0x3]  ;;  %v5896_v12 = vld [vmem:[%s6160_s8] sm:$0xff] }
 0xb5a   :  { %v5402_v59 = vpop.f32.mrf.mxu0 }
 0xb5b   :  { %v2468_v63 = vmax.f32 %v2450_v62, 0.0  ;;  %v2465_v1 = vadd.f32 %v5402_v59, %v4767_v56 }
 0xb5c   :  { %v2459_v4 = vpop.f32.mrf.mxu0 }
 0xb5d   :  { %v2460_v5 = vadd.f32 %v4767_v56, %v2459_v4  ;;  %5411 = vmatprep.mubr.msk.f32.mxu1 %vm213_vm0, %v2468_v63  ;;  %v2471_v8 = vmax.f32 %v2465_v1, 0.0  ;;  %v5897_v63 = vld [vmem:[%s6155_s3 + $0x8] sm:$0xff]  ;;  %v5899_v1 = vld [vmem:[%s6155_s3 + $0x10] sm:$0xff]  ;;  %v5900_v4 = vld [vmem:[%s7173_s5] sm:$0xff] }
 0xb5e   :  { %5412 = vmatmul.mubr.msk.f32.vlgmr.msra.gmra.mxu1 %vm213_vm0, %v2469_v61  ;;  %v5898_v61 = vld [vmem:[%s7173_s5 + $0x8] sm:$0xff] }
 0xb5f   :  { %v2470_v7 = vmax.f32 %v2460_v5, 0.0  ;;  %v5901_v5 = vld [vmem:[%s6155_s3 + $0x18] sm:$0x3f] }
 0xb61   :  { %5414 = vmatprep.mubr.msk.f32.mxu1 %vm213_vm0, %v2470_v7  ;;  %v5902_v7 = vld [vmem:[%s7175_s13 + $0x10] sm:$0xff] }
 0xb62   :  { %5415 = vmatmul.mubr.msk.f32.gmra.mxu1 %vm213_vm0, %v2471_v8 }
 0xb63   :  { %5436 = vmatprep.mubr.msk.f32.mxu1 %vm2584_vm12, %v729_v15 }
 0xc1e   :  { %v5413_v17 = vpop.f32.mrf.mxu1 }
 0xc1f   :  { %v2567_v28 = vadd.f32 %v5413_v17, %v4772_v11  ;;  %v5903_v17 = vld [vmem:[%s6160_s8 + $0x8] sm:$0xff] }
 0xc20   :  { %v2561_v22 = vpop.f32.mrf.mxu1 }
 0xc21   :  { %v2581_v39 = vadd.f32 %v2567_v28, %v6745_v43  ;;  %v2562_v27 = vadd.f32 %v4772_v11, %v2561_v22  ;;  %v5904_v28 = vld [vmem:[%s7174_s9] sm:$0xff]  ;;  %v5905_v22 = vld [vmem:[%s6160_s8 + $0x10] sm:$0xff] }
 0xc22   :  { %v5416_v32 = vpop.f32.mrf.mxu1 }
 0xc23   :  { %v2577_v34 = vadd.f32 %v5416_v32, %v4772_v11  ;;  %2666 = vrot.lane.b32.xlu1 %v2581_v39, %s6111_s16  ;;  %v2580_v43 = vadd.f32 %v2562_v27, %v6751_v58 }
 0xc24   :  { %v2571_v19 = vpop.f32.mrf.mxu1 }
 0xc25   :  { %v2583_v40 = vadd.f32 %v2577_v34, %v6755_v13  ;;  %v2572_v37 = vadd.f32 %v4772_v11, %v2571_v19  ;;  %v728_v13 = vld [vmem:[%s7186_s15] sm:$0x3f] }
 0xc27   :  { %v2582_v9 = vadd.f32 %v2572_v37, %v6760_v0  ;;  %2670 = vrot.lane.b32.xlu0 %v2583_v40, %s6111_s16  ;;  %5418 = vmatpush3.msk.msra.mxu0 %vm751_vm1, %v2583_v40  ;;  %v5895_v0 = vld [vmem:[%s6155_s3] sm:$0xff] }
 0xc28   :  { %5419 = vmatprep.subr.mxu0 %v6109_v10 }
 0xc29   :  { %2668 = vrot.lane.b32.xlu1 %v2582_v9, %s6111_s16  ;;  %5420 = vmatpush3.msra.mxu0 %v2582_v9 }
 0xc2a   :  { %5421 = vmatprep.subr.mxu0 %v6109_v10 }
 0xc2b   :  { %5422 = vmatpush3.msra.mxu0 %v2581_v39  ;;  %v5906_v39 = vld [vmem:[%s6160_s8 + $0x18] sm:$0x3f] }
 0xc2c   :  { %5423 = vmatprep.subr.mxu0 %v6109_v10 }
 0xc2d   :  { %2664 = vrot.lane.b32.xlu1 %v2580_v43, %s6111_s16  ;;  %5424 = vmatpush3.msra.mxu0 %v2580_v43 }
 0xc2e   :  { %5426 = vmatmul.mubr.msk.f32.vlgmr.msra.gmra.mxu0 %vm2584_vm12, %v728_v13 }
 0xc2f   :  { %5441 = vmatprep.mubr.msk.f32.mxu0 %vm738_vm3, %v5895_v0 }
 0xc95   :  { %v2667_v6 = vpop.permute.xlu1 %2666 }
 0xc99   :  { %v2671_v56 = vpop.permute.xlu0 %2670 }
 0xc9a   :  { %5428 = vmatprep.subr.msk.mxu1 %vm751_vm1, %v2671_v56 }
 0xc9b   :  { %5429 = vmatpush3.msk.msra.mxu1 %vm751_vm1, %v2671_v56  ;;  %v2669_v58 = vpop.permute.xlu1 %2668 }
 0xc9c   :  { %5430 = vmatprep.subr.mxu1 %v2669_v58 }
 0xc9d   :  { %5431 = vmatpush3.msra.mxu1 %v2669_v58 }
 0xc9e   :  { %5432 = vmatprep.subr.mxu1 %v2667_v6 }
 0xc9f   :  { %5433 = vmatpush3.msra.mxu1 %v2667_v6  ;;  %v2665_v45 = vpop.permute.xlu1 %2664 }
 0xca0   :  { %5434 = vmatprep.subr.mxu1 %v2665_v45 }
 0xca1   :  { %5435 = vmatpush3.msra.mxu1 %v2665_v45 }
 0xca2   :  { %5437 = vmatmul.mubr.msk.f32.vlgmr.msra.gmra.mxu1 %vm2584_vm12, %v730_v3 }
 0xca3   :  { %5451 = vmatprep.mubr.msk.f32.mxu1 %vm840_vm4, %v5896_v12 }
 0xcee   :  { %v2657_v62 = vpop.f32.mrf.mxu0 }
 0xcef   :  { %5439 = vmatprep.subr.msk.mxu0 %vm751_vm1, %v2657_v62 }
 0xcf0   :  { %5440 = vmatpush3.msk.msra.mxu0 %vm751_vm1, %v2657_v62  ;;  %v5427_v59 = vpop.f32.mrf.mxu0 }
 0xcf1   :  { %5442 = vmatmul.mubr.msk.f32.vlgmr.msra.gmra.mxu0 %vm738_vm3, %v5897_v63  ;;  %5457 = vmatprep.subr.mxu0 %v5898_v61 }
 0xcf2   :  { %5444 = vmatprep.mubr.msk.f32.mxu0 %vm738_vm3, %v5899_v1  ;;  %5458 = vmatpush3.msra.mxu0 %v5898_v61 }
 0xcf3   :  { %5459 = vmatprep.subr.mxu0 %v5900_v4 }
 0xcf4   :  { %5460 = vmatpush3.msra.mxu0 %v5900_v4 }
 0xcf5   :  { %5445 = vmatmul.mubr.msk.f32.gmra.mxu0 %vm738_vm3, %v5901_v5  ;;  %5475 = vmatprep.subr.mxu0 %v5902_v7 }
 0xd62   :  { %v5438_v8 = vpop.f32.mrf.mxu1 }
 0xd63   :  { %5447 = vmatprep.subr.msk.mxu1 %vm853_vm2, %v5438_v8 }
 0xd64   :  { %v2749_v11 = vpop.f32.mrf.mxu1  ;;  %5448 = vmatpush3.msk.msra.mxu1 %vm853_vm2, %v5438_v8 }
 0xd65   :  { %5449 = vmatprep.subr.mxu1 %v2749_v11 }
 0xd66   :  { %5450 = vmatpush3.msra.mxu1 %v2749_v11 }
 0xd67   :  { %5452 = vmatmul.mubr.msk.f32.vlgmr.msra.gmra.mxu1 %vm840_vm4, %v5903_v17  ;;  %5467 = vmatprep.subr.mxu1 %v5904_v28 }
 0xd68   :  { %5468 = vmatpush3.msra.mxu1 %v5904_v28  ;;  %5454 = vmatprep.mubr.msk.f32.mxu1 %vm840_vm4, %v5905_v22 }
 0xd69   :  { %5487 = vmatprep.subr.msk.mxu1 %vm942_vm5, %v6514_v38 }
 0xd6b   :  { %5455 = vmatmul.mubr.msk.f32.gmra.mxu1 %vm840_vm4, %v5906_v39 }
 0xdb1   :  { %v5443_v15 = vpop.f32.mrf.mxu0 }
 0xdb3   :  { %v2827_v32 = vpop.f32.mrf.mxu0 }
 0xdb4   :  { %5469 = vmatprep.mubr.msk.f32.mxu1 %vm1040_vm6, %v2827_v32 }
 0xdb5   :  { %5470 = vmatmul.mubr.msk.f32.vlgmr.msra.gmra.mxu1 %vm1040_vm6, %v5443_v15  ;;  %v5446_v34 = vpop.f32.mrf.mxu0 }
 0xdb6   :  { %5488 = vmatpush3.xpose.msk.msra.mxu1 %vm942_vm5, %v6514_v38 }
 0xdb7   :  { %5489 = vmatprep.subr.msk.mxu1 %vm942_vm5, %v6523_v30  ;;  %v2837_v19 = vpop.f32.mrf.mxu0 }
 0xdb8   :  { %5472 = vmatprep.mubr.msk.f32.mxu1 %vm1040_vm6, %v2837_v19 }
 0xdb9   :  { %5473 = vmatmul.mubr.msk.f32.gmra.mxu1 %vm1040_vm6, %v5446_v34 }
 0xdba   :  { %5490 = vmatpush3.xpose.msk.msra.mxu1 %vm942_vm5, %v6523_v30 }
 0xdbb   :  { %5491 = vmatprep.subr.msk.mxu1 %vm942_vm5, %v6534_v48 }
 0xdbe   :  { %5492 = vmatpush3.xpose.msk.msra.mxu1 %vm942_vm5, %v6534_v48 }
 0xdbf   :  { %5493 = vmatprep.subr.msk.mxu1 %vm942_vm5, %v6543_v49 }
 0xdc2   :  { %5494 = vmatpush3.xpose.msk.msra.mxu1 %vm942_vm5, %v6543_v49  ;;  %v5907_v49 = vld [vmem:[%s7175_s13 + $0x8] sm:$0xff] }
 0xdc3   :  { %5495 = vmatprep.subr.msk.mxu1 %vm942_vm5, %v6549_v50 }
 0xdc6   :  { %5496 = vmatpush3.xpose.msk.msra.mxu1 %vm942_vm5, %v6549_v50 }
 0xdc7   :  { %5497 = vmatprep.subr.msk.mxu1 %vm942_vm5, %v6555_v51 }
 0xdca   :  { %5498 = vmatpush3.xpose.msk.msra.mxu1 %vm942_vm5, %v6555_v51  ;;  %v5908_v51 = vld [vmem:[%s7175_s13] sm:$0xff] }
 0xdcb   :  { %5499 = vmatprep.subr.msk.mxu1 %vm942_vm5, %v6561_v57 }
 0xdce   :  { %5500 = vmatpush3.xpose.msk.msra.mxu1 %vm942_vm5, %v6561_v57 }
 0xdcf   :  { %5501 = vmatprep.subr.msk.mxu1 %vm942_vm5, %v6567_v52 }
 0xdd2   :  { %5502 = vmatpush3.xpose.msk.msra.mxu1 %vm942_vm5, %v6567_v52 }
 0xdd3   :  { %5503 = vmatprep.subr.msk.mxu1 %vm942_vm5, %v6574_v2 }
 0xdd6   :  { %5504 = vmatpush3.xpose.msk.msra.mxu1 %vm942_vm5, %v6574_v2 }
 0xdd7   :  { %5505 = vmatprep.subr.msk.mxu1 %vm942_vm5, %v6581_v53 }
 0xdda   :  { %5506 = vmatpush3.xpose.msk.msra.mxu1 %vm942_vm5, %v6581_v53 }
 0xddb   :  { %5507 = vmatprep.subr.msk.mxu1 %vm942_vm5, %v6588_v54 }
 0xdde   :  { %5508 = vmatpush3.xpose.msk.msra.mxu1 %vm942_vm5, %v6588_v54 }
 0xddf   :  { %5509 = vmatprep.subr.msk.mxu1 %vm942_vm5, %v6595_v55 }
 0xde2   :  { %5510 = vmatpush3.xpose.msk.msra.mxu1 %vm942_vm5, %v6595_v55 }
 0xde3   :  { %5583 = vmatprep.subr.mxu1 %v6680_v60 }
 0xe27   :  { %v5453_v38 = vpop.f32.mrf.mxu1 }
 0xe29   :  { %v2915_v30 = vpop.f32.mrf.mxu1 }
 0xe2a   :  { %5461 = vmatprep.mubr.msk.f32.mxu0 %vm942_vm5, %v2915_v30 }
 0xe2b   :  { %v5456_v48 = vpop.f32.mrf.mxu1  ;;  %5462 = vmatmul.mubr.msk.f32.vlgmr.msra.gmra.mxu0 %vm942_vm5, %v5453_v38 }
 0xe2c   :  { %5476 = vmatpush3.msra.mxu0 %v5902_v7 }
 0xe2d   :  { %5477 = vmatprep.subr.mxu0 %v5907_v49  ;;  %v2925_v50 = vpop.f32.mrf.mxu1 }
 0xe2e   :  { %5478 = vmatpush3.msra.mxu0 %v5907_v49  ;;  %5464 = vmatprep.mubr.msk.f32.mxu0 %vm942_vm5, %v2925_v50 }
 0xe2f   :  { %5479 = vmatprep.subr.mxu0 %v5908_v51  ;;  %5465 = vmatmul.mubr.msk.f32.gmra.mxu0 %vm942_vm5, %v5456_v48 }
 0xe30   :  { %5480 = vmatpush3.msra.mxu0 %v5908_v51 }
 0xe31   :  { %5517 = vmatprep.subr.mxu0 %v6512_v35 }
 0xe75   :  { %v5471_v57 = vpop.f32.mrf.mxu1 }
 0xe77   :  { %v3109_v52 = vpop.f32.mrf.mxu1 }
 0xe79   :  { %v5474_v54 = vpop.f32.mrf.mxu1 }
 0xe7b   :  { %v3119_v9 = vpop.f32.mrf.mxu1 }
 0xeeb   :  { %v5463_v2 = vpop.f32.mrf.mxu0 }
 0xeec   :  { %v6922_v53 = vadd.f32 %v5471_v57, %v5463_v2 }
 0xeed   :  { %v3012_v55 = vpop.f32.mrf.mxu0 }
 0xeee   :  { %v6924_v60 = vadd.f32 %v3109_v52, %v3012_v55  ;;  %v3131_v40 = vsel %vm1140_vm7, %v6922_v53, 0.0 }
 0xeef   :  { %3132 = vadd.xlane.f32.xlu1 %v3131_v40  ;;  %v5466_v37 = vpop.f32.mrf.mxu0 }
 0xef0   :  { %v3128_v27 = vsel %vm1140_vm7, %v6924_v60, 0.0  ;;  %v6932_v0 = vadd.f32 %v5474_v54, %v5466_v37 }
 0xef1   :  { %3129 = vadd.xlane.f32.xlu0 %v3128_v27  ;;  %v3022_v43 = vpop.f32.mrf.mxu0 }
 0xef2   :  { %v6930_v13 = vadd.f32 %v3119_v9, %v3022_v43  ;;  %v3137_v56 = vsel %vm1150_vm8, %v6932_v0, 0.0  ;;  %v5909_v9 = vld [vmem:[#allocation2] ss:$0 sm:$0xff] }
 0xef4   :  { %v3134_v6 = vsel %vm1140_vm7, %v6930_v13, 0.0 }
 0xef5   :  { %3135 = vadd.xlane.f32.xlu0 %v3134_v6 }
 0xef9   :  { %3138 = vadd.xlane.f32.xlu0 %v3137_v56 }
 0xf78   :  { %v3133_v58 = vpop.xlane.xlu1 %3132 }
 0xf79   :  { %v3141_v45 = vmul.f32 0.041666668, %v3133_v58  ;;  %v5910_v58 = vld [vmem:[#allocation4] ss:$0 sm:$0xff] }
 0xf7a   :  { %v3130_v3 = vpop.xlane.xlu0 %3129 }
 0xf7b   :  { %v3145_v12 = vsub.f32 %v6922_v53, %v3141_v45  ;;  %v3140_v62 = vmul.f32 0.041666668, %v3130_v3 }
 0xf7d   :  { %v3144_v59 = vsub.f32 %v6924_v60, %v3140_v62  ;;  %v3149_v63 = vmul.f32 %v3145_v12, %v3145_v12 }
 0xf7e   :  { %v3136_v61 = vpop.xlane.xlu0 %3135 }
 0xf7f   :  { %v3142_v1 = vmul.f32 0.041666668, %v3136_v61  ;;  %v3155_v4 = vsel %vm1140_vm7, %v3149_v63, 0.0  ;;  %v3148_v5 = vmul.f32 %v3144_v59, %v3144_v59 }
 0xf80   :  { %3156 = vadd.xlane.f32.xlu1 %v3155_v4 }
 0xf81   :  { %v3146_v7 = vsub.f32 %v6930_v13, %v3142_v1  ;;  %v3152_v8 = vsel %vm1140_vm7, %v3148_v5, 0.0 }
 0xf82   :  { %3153 = vadd.xlane.f32.xlu0 %v3152_v8  ;;  %v3139_v11 = vpop.xlane.xlu0 %3138  ;;  %v5917_v8 = vld [vmem:[%s7176_s17 + $0x8] sm:$0xff] }
 0xf83   :  { %v3143_v17 = vmul.f32 0.041666668, %v3139_v11  ;;  %v3150_v28 = vmul.f32 %v3146_v7, %v3146_v7 }
 0xf85   :  { %v3147_v22 = vsub.f32 %v6932_v0, %v3143_v17  ;;  %v3158_v39 = vsel %vm1140_vm7, %v3150_v28, 0.0  ;;  %v5918_v17 = vld [vmem:[%s7176_s17 + $0x18] sm:$0x3f] }
 0xf86   :  { %3159 = vadd.xlane.f32.xlu0 %v3158_v39 }
 0xf87   :  { %v3151_v15 = vmul.f32 %v3147_v22, %v3147_v22 }
 0xf89   :  { %v3161_v32 = vsel %vm1150_vm8, %v3151_v15, 0.0  ;;  %v5919_v15 = vld [vmem:[%s7176_s17 + $0x10] sm:$0xff] }
 0xf8a   :  { %3162 = vadd.xlane.f32.xlu1 %v3161_v32 }
0x1009   :  { %v3157_v34 = vpop.xlane.xlu1 %3156 }
0x100a   :  { %v3165_v19 = vmul.f32 0.041666668, %v3157_v34 }
0x100b   :  { %v3154_v38 = vpop.xlane.xlu0 %3153 }
0x100c   :  { %v3169_v30 = vadd.f32 1e-05, %v3165_v19  ;;  %v3164_v48 = vmul.f32 0.041666668, %v3154_v38 }
0x100e   :  { %5813 = vrsqrt.f32 %v3169_v30  ;;  %v3168_v49 = vadd.f32 1e-05, %v3164_v48 }
0x100f   :  { %v3160_v50 = vpop.xlane.xlu0 %3159 }
0x1010   :  { %5815 = vrsqrt.f32 %v3168_v49  ;;  %v3166_v51 = vmul.f32 0.041666668, %v3160_v50 }
0x1012   :  { %v3170_v57 = vadd.f32 1e-05, %v3166_v51 }
0x1013   :  { %v3163_v52 = vpop.xlane.xlu1 %3162 }
0x1014   :  { %5817 = vrsqrt.f32 %v3170_v57  ;;  %v3167_v2 = vmul.f32 0.041666668, %v3163_v52 }
0x1016   :  { %v3171_v54 = vadd.f32 1e-05, %v3167_v2 }
0x1018   :  { %5819 = vrsqrt.f32 %v3171_v54 }
0x101b   :  { %v5814_v55 = vpop.eup %5813 }
0x101c   :  { %v3177_v40 = vmul.f32 %v5814_v55, %v3145_v12 }
0x101d   :  { %v5816_v37 = vpop.eup %5815 }
0x101e   :  { %v3176_v27 = vmul.f32 %v5816_v37, %v3144_v59  ;;  %v3181_v43 = vmul.f32 %v5909_v9, %v3177_v40 }
0x1020   :  { %v3180_v6 = vmul.f32 %v5909_v9, %v3176_v27  ;;  %v3185_v62 = vadd.f32 %v5910_v58, %v3181_v43 }
0x1021   :  { %v5818_v56 = vpop.eup %5817 }
0x1022   :  { %v3184_v45 = vadd.f32 %v5910_v58, %v3180_v6  ;;  %v3178_v3 = vmul.f32 %v5818_v56, %v3146_v7 }
0x1024   :  { %5481 = vmatprep.mubr.msk.f32.mxu0 %vm1140_vm7, %v3184_v45  ;;  %v3182_v63 = vmul.f32 %v5909_v9, %v3178_v3 }
0x1025   :  { %v5820_v61 = vpop.eup %5819  ;;  %5482 = vmatmul.mubr.msk.f32.vlgmr.msra.gmra.mxu0 %vm1140_vm7, %v3185_v62 }
0x1026   :  { %5518 = vmatpush3.msra.mxu0 %v6512_v35  ;;  %v3186_v1 = vadd.f32 %v5910_v58, %v3182_v63  ;;  %v3179_v12 = vmul.f32 %v5820_v61, %v3147_v22 }
0x1027   :  { %5519 = vmatprep.subr.mxu0 %v6516_v46 }
0x1028   :  { %5520 = vmatpush3.msra.mxu0 %v6516_v46  ;;  %5484 = vmatprep.mubr.msk.f32.mxu0 %vm1140_vm7, %v3186_v1  ;;  %v3183_v59 = vmul.f32 %v5909_v9, %v3179_v12  ;;  %v5916_v46 = vld [vmem:[%s7176_s17] sm:$0xff] }
0x1029   :  { %5521 = vmatprep.subr.mxu0 %v6508_v29 }
0x102a   :  { %5522 = vmatpush3.msra.mxu0 %v6508_v29  ;;  %v3187_v4 = vadd.f32 %v5910_v58, %v3183_v59  ;;  %v6983_v29 = vld [vmem:[%s7181_s30 + $0x10] sm:$0xff] }
0x102b   :  { %5523 = vmatprep.subr.mxu0 %v6510_v33 }
0x102c   :  { %5524 = vmatpush3.msra.mxu0 %v6510_v33 }
0x102d   :  { %5485 = vmatmul.mubr.msk.f32.gmra.mxu0 %vm1140_vm7, %v3187_v4  ;;  %5525 = vmatprep.subr.mxu0 %v6504_v25 }
0x102e   :  { %5526 = vmatpush3.msra.mxu0 %v6504_v25  ;;  %v5913_v25 = vld [vmem:[%s7178_s25 + $0x8] sm:$0xff] }
0x102f   :  { %5527 = vmatprep.subr.mxu0 %v6506_v36 }
0x1030   :  { %5528 = vmatpush3.msra.mxu0 %v6506_v36 }
0x1031   :  { %5529 = vmatprep.subr.mxu0 %v6500_v21 }
0x1032   :  { %5530 = vmatpush3.msra.mxu0 %v6500_v21  ;;  %v6974_v21 = vld [vmem:[%s7177_s21 + $0x10] sm:$0xff] }
0x1033   :  { %5531 = vmatprep.subr.mxu0 %v6502_v23 }
0x1034   :  { %5532 = vmatpush3.msra.mxu0 %v6502_v23 }
0x1035   :  { %5533 = vmatprep.subr.mxu0 %v6494_v18 }
0x1036   :  { %5534 = vmatpush3.msra.mxu0 %v6494_v18 }
0x1037   :  { %5535 = vmatprep.subr.mxu0 %v6498_v20 }
0x1038   :  { %5536 = vmatpush3.msra.mxu0 %v6498_v20  ;;  %v5912_v20 = vld [vmem:[%s7178_s25 + $0x10] sm:$0xff] }
0x1039   :  { %5537 = vmatprep.subr.mxu0 %v6486_v14 }
0x103a   :  { %5538 = vmatpush3.msra.mxu0 %v6486_v14 }
0x103b   :  { %5539 = vmatprep.subr.mxu0 %v6490_v16 }
0x103c   :  { %5540 = vmatpush3.msra.mxu0 %v6490_v16  ;;  %v5914_v16 = vld [vmem:[%s7178_s25] sm:$0xff] }
0x103d   :  { %5547 = vmatprep.subr.mxu0 %v6974_v21 }
0x10e5   :  { %v5483_v23 = vpop.f32.mrf.mxu0 }
0x10e7   :  { %v3266_v18 = vpop.f32.mrf.mxu0 }
0x10e8   :  { %5511 = vmatprep.mubr.msk.f32.mxu1 %vm942_vm5, %v3266_v18 }
0x10e9   :  { %5512 = vmatmul.mubr.msk.f32.vlgmr.msra.gmra.mxu1 %vm942_vm5, %v5483_v23 }
0x10ea   :  { %5584 = vmatpush3.msra.mxu1 %v5912_v20 }
0x10eb   :  { %5585 = vmatprep.subr.mxu1 %v5913_v25 }
0x10ec   :  { %5586 = vmatpush3.msra.mxu1 %v5913_v25 }
0x10ed   :  { %v5486_v14 = vpop.f32.mrf.mxu0  ;;  %5587 = vmatprep.subr.mxu1 %v5914_v16 }
0x10ee   :  { %5588 = vmatpush3.msra.mxu1 %v5914_v16 }
0x10ef   :  { %v3276_v36 = vpop.f32.mrf.mxu0  ;;  %5607 = vmatprep.subr.mxu1 %v6983_v29 }
0x10f0   :  { %5514 = vmatprep.mubr.msk.f32.mxu1 %vm942_vm5, %v3276_v36 }
0x10f1   :  { %5515 = vmatmul.mubr.msk.f32.gmra.mxu1 %vm942_vm5, %v5486_v14 }
0x11a9   :  { %v5513_v33 = vpop.f32.mrf.mxu1 }
0x11aa   :  { %v3369_v11 = vadd.f32 %v5917_v8, %v5513_v33 }
0x11ab   :  { %v3363_v35 = vpop.f32.mrf.mxu1 }
0x11ac   :  { %v3364_v5 = vadd.f32 %v5916_v46, %v3363_v35  ;;  %v3383_v34 = vsel %vm1448_vm9, %v3369_v11, -inf }
0x11ae   :  { %v3382_v39 = vsel %vm1448_vm9, %v3364_v5, -inf }
0x11af   :  { %v3386_v30 = vmax.f32 %v3382_v39, %v3383_v34 }
0x11b1   :  { %v5516_v7 = vpop.f32.mrf.mxu1 }
0x11b2   :  { %v3379_v28 = vadd.f32 %v5918_v17, %v5516_v7 }
0x11b3   :  { %v3373_v22 = vpop.f32.mrf.mxu1 }
0x11b4   :  { %v3374_v32 = vadd.f32 %v5919_v15, %v3373_v22  ;;  %v3385_v19 = vsel %vm1452_vm10, %v3379_v28, -inf }
0x11b6   :  { %v3384_v38 = vsel %vm1448_vm9, %v3374_v32, -inf }
0x11b7   :  { %v3387_v48 = vmax.f32 %v3384_v38, %v3385_v19 }
0x11b9   :  { %v3388_v49 = vmax.f32 %v3386_v30, %v3387_v48 }
0x11bb   :  { %v3389_v50 = vrot.slane %v3388_v49, 4 }
0x11bd   :  { %v3390_v51 = vmax.f32 %v3388_v49, %v3389_v50 }
0x11bf   :  { %v3391_v57 = vrot.slane %v3390_v51, 2 }
0x11c1   :  { %v3392_v52 = vmax.f32 %v3390_v51, %v3391_v57 }
0x11c3   :  { %v3393_v2 = vrot.slane %v3392_v52, 1 }
0x11c5   :  { %v3394_v54 = vmax.f32 %v3392_v52, %v3393_v2 }
0x11c7   :  { %v3395_v55 = vsub.f32 %v3364_v5, %v3394_v54  ;;  %v3397_v40 = vsub.f32 %v3374_v32, %v3394_v54  ;;  %v3396_v37 = vsub.f32 %v3369_v11, %v3394_v54  ;;  %v3398_v27 = vsub.f32 %v3379_v28, %v3394_v54 }
0x11c9   :  { %v3399_v9 = vmul.f32 1.442695, %v3395_v55  ;;  %v3403_v43 = vmul.f32 1.442695, %v3397_v40  ;;  %v3401_v6 = vmul.f32 1.442695, %v3396_v37 }
0x11ca   :  { %v3405_v56 = vmul.f32 1.442695, %v3398_v27 }
0x11cb   :  { %5821 = vpow2.f32 %v3399_v9 }
0x11cc   :  { %5823 = vpow2.f32 %v3403_v43 }
0x11cd   :  { %5825 = vpow2.f32 %v3401_v6 }
0x11ce   :  { %5827 = vpow2.f32 %v3405_v56 }
0x11d8   :  { %v5822_v58 = vpop.eup %5821 }
0x11d9   :  { %v5824_v45 = vpop.eup %5823  ;;  %v3407_v3 = vsel %vm1448_vm9, %v5822_v58, 0.0 }
0x11da   :  { %v5826_v62 = vpop.eup %5825  ;;  %v3410_v12 = vsel %vm1448_vm9, %v5824_v45, 0.0 }
0x11db   :  { %v3408_v63 = vsel %vm1448_vm9, %v5826_v62, 0.0  ;;  %v5828_v61 = vpop.eup %5827 }
0x11dc   :  { %v3409_v1 = vadd.f32 %v3408_v63, %v3407_v3  ;;  %v3412_v4 = vsel %vm1452_vm10, %v5828_v61, 0.0 }
0x11de   :  { %v3411_v59 = vadd.f32 %v3410_v12, %v3409_v1 }
0x11e0   :  { %v3413_v23 = vadd.f32 %v3412_v4, %v3411_v59  ;;  %v5920_v4 = vld [vmem:[%s7177_s21 + $0x8] sm:$0xff] }
0x11e2   :  { %v3414_v18 = vrot.slane %v3413_v23, 4 }
0x11e4   :  { %v3415_v20 = vadd.f32 %v3414_v18, %v3413_v23  ;;  %v5921_v23 = vld [vmem:[%s7177_s21] sm:$0xff]  ;;  %v5922_v18 = vld [vmem:[%s7179_s29 + $0x10] sm:$0xff] }
0x11e6   :  { %v3416_v25 = vrot.slane %v3415_v20, 2 }
0x11e8   :  { %v3417_v14 = vadd.f32 %v3416_v25, %v3415_v20  ;;  %v5924_v20 = vld [vmem:[%s7179_s29] sm:$0xff]  ;;  %v5925_v25 = vld [vmem:[%s7180_s14 + $0x10] sm:$0xff] }
0x11ea   :  { %v3418_v16 = vrot.slane %v3417_v14, 1 }
0x11ec   :  { %v3419_v36 = vadd.f32 %v3418_v16, %v3417_v14 }
0x11ee   :  { %5829 = vlog2.f32 %v3419_v36 }
0x11fb   :  { %v5830_v33 = vpop.eup %5829 }
0x11fc   :  { %v3421_v35 = vmul.f32 0.6931472, %v5830_v33 }
0x11fe   :  { %v3423_v46 = vsub.f32 %v3396_v37, %v3421_v35  ;;  %v3422_v5 = vsub.f32 %v3395_v55, %v3421_v35  ;;  %v3425_v11 = vsub.f32 %v3398_v27, %v3421_v35  ;;  %v3424_v17 = vsub.f32 %v3397_v40, %v3421_v35  ;;  %v5926_v35 = vld [vmem:[%s7180_s14 + $0x8] sm:$0xff] }
0x1200   :  { %v3429_v7 = vsel %vm1448_vm9, %v3423_v46, -inf  ;;  %v3426_v8 = vsel %vm1448_vm9, %v3422_v5, -inf  ;;  %v3435_v28 = vsel %vm1452_vm10, %v3425_v11, -inf  ;;  %v3432_v22 = vsel %vm1448_vm9, %v3424_v17, -inf }
0x1201   :  { %3430 = vmax.xlane.f32.xlu1 %v3429_v7  ;;  %3427 = vmax.xlane.f32.xlu0 %v3426_v8  ;;  %v5930_v7 = vld [vmem:[%s7182_s6 + $0x10] sm:$0xff]  ;;  %v5931_v8 = vld [vmem:[%s7182_s6 + $0x8] sm:$0xff] }
0x1205   :  { %3436 = vmax.xlane.f32.xlu1 %v3435_v28  ;;  %3433 = vmax.xlane.f32.xlu0 %v3432_v22 }
0x128a   :  { %v3431_v39 = vpop.xlane.xlu1 %3430  ;;  %v3428_v15 = vpop.xlane.xlu0 %3427 }
0x128b   :  { %v3439_v32 = vsub.f32 %v3423_v46, %v3431_v39  ;;  %v3438_v34 = vsub.f32 %v3422_v5, %v3428_v15  ;;  %v5927_v46 = vld [vmem:[%s7181_s30 + $0x8] sm:$0xff]  ;;  %v5929_v5 = vld [vmem:[%s7181_s30] sm:$0xff] }
0x128c   :  { %v5933_v39 = vld [vmem:[%s7183_s10] ss:$0 sm:$0xff] }
0x128d   :  { %v3444_v19 = vmul.f32 1.442695, %v3439_v32  ;;  %v3442_v38 = vmul.f32 1.442695, %v3438_v34 }
0x128e   :  { %v3437_v30 = vpop.xlane.xlu1 %3436  ;;  %v3434_v48 = vpop.xlane.xlu0 %3433 }
0x128f   :  { %5831 = vpow2.f32 %v3444_v19  ;;  %v3441_v49 = vsub.f32 %v3425_v11, %v3437_v30  ;;  %v3440_v50 = vsub.f32 %v3424_v17, %v3434_v48  ;;  %v5932_v11 = vld [vmem:[%s7182_s6] sm:$0xff] }
0x1290   :  { %5833 = vpow2.f32 %v3442_v38 }
0x1291   :  { %v3448_v51 = vmul.f32 1.442695, %v3441_v49  ;;  %v3446_v57 = vmul.f32 1.442695, %v3440_v50 }
0x1293   :  { %5835 = vpow2.f32 %v3448_v51 }
0x1294   :  { %5837 = vpow2.f32 %v3446_v57 }
0x129c   :  { %v5832_v52 = vpop.eup %5831 }
0x129d   :  { %v5834_v2 = vpop.eup %5833  ;;  %v3453_v54 = vsel %vm1448_vm9, %v5832_v52, 0.0 }
0x129e   :  { %3454 = vadd.xlane.f32.xlu1 %v3453_v54  ;;  %v3450_v55 = vsel %vm1448_vm9, %v5834_v2, 0.0 }
0x129f   :  { %3451 = vadd.xlane.f32.xlu0 %v3450_v55 }
0x12a0   :  { %v5836_v40 = vpop.eup %5835 }
0x12a1   :  { %v5838_v37 = vpop.eup %5837  ;;  %v3459_v27 = vsel %vm1452_vm10, %v5836_v40, 0.0 }
0x12a2   :  { %3460 = vadd.xlane.f32.xlu1 %v3459_v27  ;;  %v3456_v9 = vsel %vm1448_vm9, %v5838_v37, 0.0 }
0x12a3   :  { %3457 = vadd.xlane.f32.xlu0 %v3456_v9 }
0x1327   :  { %v3455_v43 = vpop.xlane.xlu1 %3454 }
0x1328   :  { %5839 = vrcp.f32 %v3455_v43  ;;  %v3452_v6 = vpop.xlane.xlu0 %3451 }
0x1329   :  { %5841 = vrcp.f32 %v3452_v6 }
0x132b   :  { %v3461_v56 = vpop.xlane.xlu1 %3460 }
0x132c   :  { %5843 = vrcp.f32 %v3461_v56  ;;  %v3458_v58 = vpop.xlane.xlu0 %3457 }
0x132d   :  { %5845 = vrcp.f32 %v3458_v58 }
0x1335   :  { %v5840_v45 = vpop.eup %5839 }
0x1336   :  { %v5842_v3 = vpop.eup %5841  ;;  %v3465_v62 = vmul.f32 %v5840_v45, %v5832_v52 }
0x1337   :  { %v3463_v63 = vmul.f32 %v5842_v3, %v5834_v2 }
0x1339   :  { %v5844_v61 = vpop.eup %5843  ;;  %5541 = vmatprep.mubr.msk.f32.mxu0 %vm1448_vm9, %v3463_v63 }
0x133a   :  { %v5846_v1 = vpop.eup %5845  ;;  %5542 = vmatmul.mubr.msk.f32.vlgmr.msra.gmra.mxu0 %vm1448_vm9, %v3465_v62  ;;  %v3469_v12 = vmul.f32 %v5844_v61, %v5836_v40 }
0x133b   :  { %v3467_v59 = vmul.f32 %v5846_v1, %v5838_v37  ;;  %5548 = vmatpush3.msra.mxu0 %v6974_v21  ;;  %v5923_v21 = vld [vmem:[%s7179_s29 + $0x8] sm:$0xff]  ;;  %v5934_v37 = vld [vmem:[%s7183_s10 + $0x1] ss:$0 sm:$0xff] }
0x133c   :  { %5549 = vmatprep.subr.mxu0 %v5920_v4 }
0x133d   :  { %5544 = vmatprep.mubr.msk.f32.mxu0 %vm1448_vm9, %v3467_v59  ;;  %5550 = vmatpush3.msra.mxu0 %v5920_v4 }
0x133e   :  { %5545 = vmatmul.mubr.msk.f32.gmra.mxu0 %vm1448_vm9, %v3469_v12  ;;  %5551 = vmatprep.subr.mxu0 %v5921_v23 }
0x133f   :  { %5553 = vmatprep.mubr.msk.f32.mxu0 %vm1140_vm7, %v6924_v60  ;;  %5552 = vmatpush3.msra.mxu0 %v5921_v23 }
0x1340   :  { %5559 = vmatprep.subr.mxu0 %v5922_v18 }
0x1342   :  { %5554 = vmatmul.mubr.msk.f32.vlgmr.msra.gmra.mxu0 %vm1140_vm7, %v6922_v53 }
0x1343   :  { %5556 = vmatprep.mubr.msk.f32.mxu0 %vm1140_vm7, %v6930_v13  ;;  %5560 = vmatpush3.msra.mxu0 %v5922_v18 }
0x1344   :  { %5561 = vmatprep.subr.mxu0 %v5923_v21 }
0x1345   :  { %5562 = vmatpush3.msra.mxu0 %v5923_v21 }
0x1346   :  { %5557 = vmatmul.mubr.msk.f32.gmra.mxu0 %vm1140_vm7, %v6932_v0  ;;  %5563 = vmatprep.subr.mxu0 %v5924_v20 }
0x1347   :  { %5564 = vmatpush3.msra.mxu0 %v5924_v20 }
0x1348   :  { %5571 = vmatprep.subr.mxu0 %v5925_v25 }
0x13fa   :  { %v5543_v14 = vpop.f32.mrf.mxu0 }
0x13fc   :  { %v3548_v16 = vpop.f32.mrf.mxu0 }
0x13fd   :  { %5565 = vmatprep.mubr.msk.f32.mxu0 %vm1140_vm7, %v3548_v16  ;;  %5589 = vmatprep.mubr.msk.f32.mxu1 %vm1140_vm7, %v3548_v16 }
0x13fe   :  { %v5546_v36 = vpop.f32.mrf.mxu0  ;;  %5566 = vmatmul.mubr.msk.f32.vlgmr.msra.gmra.mxu0 %vm1140_vm7, %v5543_v14  ;;  %5590 = vmatmul.mubr.msk.f32.vlgmr.msra.gmra.mxu1 %vm1140_vm7, %v5543_v14 }
0x13ff   :  { %5572 = vmatpush3.msra.mxu0 %v5925_v25  ;;  %5608 = vmatpush3.msra.mxu1 %v6983_v29  ;;  %v5928_v29 = vld [vmem:[%s7180_s14] sm:$0xff] }
0x1400   :  { %v3558_v33 = vpop.f32.mrf.mxu0  ;;  %5573 = vmatprep.subr.mxu0 %v5926_v35  ;;  %5609 = vmatprep.subr.mxu1 %v5927_v46 }
0x1401   :  { %5568 = vmatprep.mubr.msk.f32.mxu0 %vm1140_vm7, %v3558_v33  ;;  %5592 = vmatprep.mubr.msk.f32.mxu1 %vm1140_vm7, %v3558_v33 }
0x1402   :  { %5569 = vmatmul.mubr.msk.f32.gmra.mxu0 %vm1140_vm7, %v5546_v36  ;;  %5593 = vmatmul.mubr.msk.f32.gmra.mxu1 %vm1140_vm7, %v5546_v36 }
0x1403   :  { %5574 = vmatpush3.msra.mxu0 %v5926_v35  ;;  %5577 = vmatprep.mubr.msk.f32.mxu0 %vm1140_vm7, %v6924_v60 }
0x1404   :  { %5610 = vmatpush3.msra.mxu1 %v5927_v46  ;;  %5613 = vmatprep.mubr.msk.f32.mxu1 %vm1140_vm7, %v6924_v60 }
0x1405   :  { %5575 = vmatprep.subr.mxu0 %v5928_v29  ;;  %5611 = vmatprep.subr.mxu1 %v5929_v5 }
0x1406   :  { %5576 = vmatpush3.msra.mxu0 %v5928_v29  ;;  %5612 = vmatpush3.msra.mxu1 %v5929_v5 }
0x1407   :  { %5578 = vmatmul.mubr.msk.f32.vlgmr.msra.gmra.mxu0 %vm1140_vm7, %v6922_v53  ;;  %5614 = vmatmul.mubr.msk.f32.vlgmr.msra.gmra.mxu1 %vm1140_vm7, %v6922_v53 }
0x1408   :  { %5580 = vmatprep.mubr.msk.f32.mxu0 %vm1140_vm7, %v6930_v13  ;;  %5616 = vmatprep.mubr.msk.f32.mxu1 %vm1140_vm7, %v6930_v13 }
0x1409   :  { %5595 = vmatprep.subr.mxu0 %v5930_v7  ;;  %5631 = vmatprep.subr.mxu1 %v6792_v24 }
0x140a   :  { %5596 = vmatpush3.msra.mxu0 %v5930_v7  ;;  %5632 = vmatpush3.msra.mxu1 %v6792_v24 }
0x140b   :  { %5581 = vmatmul.mubr.msk.f32.gmra.mxu0 %vm1140_vm7, %v6932_v0  ;;  %5597 = vmatprep.subr.mxu0 %v5931_v8 }
0x140c   :  { %5617 = vmatmul.mubr.msk.f32.gmra.mxu1 %vm1140_vm7, %v6932_v0  ;;  %5598 = vmatpush3.msra.mxu0 %v5931_v8 }
0x140d   :  { %5601 = vmatprep.mubr.msk.f32.mxu0 %vm1140_vm7, %v3548_v16  ;;  %5599 = vmatprep.subr.mxu0 %v5932_v11 }
0x140e   :  { %5600 = vmatpush3.msra.mxu0 %v5932_v11  ;;  %5633 = vmatprep.subr.mxu1 %v6797_v26 }
0x140f   :  { %5602 = vmatmul.mubr.msk.f32.vlgmr.msra.gmra.mxu0 %vm1140_vm7, %v5543_v14  ;;  %5619 = vmatprep.subr.mxu0 %v6773_v42 }
0x1410   :  { %5604 = vmatprep.mubr.msk.f32.mxu0 %vm1140_vm7, %v3558_v33  ;;  %5620 = vmatpush3.msra.mxu0 %v6773_v42  ;;  %v5555_v42 = vpop.f32.mrf.mxu0 }
0x1411   :  { %5621 = vmatprep.subr.mxu0 %v6776_v31  ;;  %5634 = vmatpush3.msra.mxu1 %v6797_v26 }
0x1412   :  { %5622 = vmatpush3.msra.mxu0 %v6776_v31  ;;  %5635 = vmatprep.subr.mxu1 %v6802_v41  ;;  %v3645_v24 = vpop.f32.mrf.mxu0 }
0x1413   :  { %5605 = vmatmul.mubr.msk.f32.gmra.mxu0 %vm1140_vm7, %v5546_v36  ;;  %5623 = vmatprep.subr.mxu0 %v6781_v47 }
0x1414   :  { %5624 = vmatpush3.msra.mxu0 %v6781_v47  ;;  %5636 = vmatpush3.msra.mxu1 %v6802_v41  ;;  %v5558_v31 = vpop.f32.mrf.mxu0 }
0x1415   :  { %5637 = vmatprep.subr.mxu1 %v6807_v44  ;;  %5645 = vmatprep.subr.mxu0 %v6109_v10 }
0x1416   :  { %5638 = vmatpush3.msra.mxu1 %v6807_v44  ;;  %v3655_v26 = vpop.f32.mrf.mxu0 }
0x14be   :  { %v5567_v17 = vpop.f32.mrf.mxu0  ;;  %v5591_v32 = vpop.f32.mrf.mxu1 }
0x14bf   :  { %v3748_v28 = vadd.f32 %v5567_v17, %v5555_v42 }
0x14c0   :  { %v3742_v22 = vpop.f32.mrf.mxu0  ;;  %v3940_v44 = vpop.f32.mrf.mxu1 }
0x14c1   :  { %v3762_v15 = vadd.f32 %v5933_v39, %v3748_v28  ;;  %v3743_v34 = vadd.f32 %v3742_v22, %v3645_v24  ;;  %v5935_v24 = vld [vmem:[%s7183_s10 + $0x3] ss:$0 sm:$0xff] }
0x14c2   :  { %v5570_v47 = vpop.f32.mrf.mxu0  ;;  %v5594_v54 = vpop.f32.mrf.mxu1 }
0x14c3   :  { %v4833_v19 = vmul.f32 -1.442695, %v3762_v15  ;;  %v3761_v41 = vadd.f32 %v5933_v39, %v3743_v34  ;;  %v3758_v38 = vadd.f32 %v5570_v47, %v5558_v31  ;;  %v5936_v34 = vld [vmem:[%s7183_s10 + $0x2] ss:$0 sm:$0xff] }
0x14c4   :  { %v3752_v30 = vpop.f32.mrf.mxu0  ;;  %v3950_v45 = vpop.f32.mrf.mxu1 }
0x14c5   :  { %5847 = vpow2.f32 %v4833_v19  ;;  %v4832_v48 = vmul.f32 -1.442695, %v3761_v41  ;;  %v3764_v49 = vadd.f32 %v5933_v39, %v3758_v38  ;;  %v3753_v50 = vadd.f32 %v3752_v30, %v3655_v26 }
0x14c7   :  { %5849 = vpow2.f32 %v4832_v48  ;;  %v4835_v51 = vmul.f32 -1.442695, %v3764_v49  ;;  %v3763_v57 = vadd.f32 %v5933_v39, %v3753_v50  ;;  %v5579_v52 = vpop.f32.mrf.mxu0  ;;  %v5615_v14 = vpop.f32.mrf.mxu1 }
0x14c8   :  { %v3946_v2 = vadd.f32 %v5591_v32, %v5579_v52  ;;  %v4144_v31 = vadd.f32 %v5935_v24, %v5615_v14 }
0x14c9   :  { %5851 = vpow2.f32 %v4835_v51  ;;  %v4834_v55 = vmul.f32 -1.442695, %v3763_v57  ;;  %v3855_v40 = vpop.f32.mrf.mxu0  ;;  %v4138_v35 = vpop.f32.mrf.mxu1 }
0x14ca   :  { %v3960_v27 = vadd.f32 %v5934_v37, %v3946_v2  ;;  %v3941_v9 = vadd.f32 %v3940_v44, %v3855_v40  ;;  %v4139_v15 = vadd.f32 %v5935_v24, %v4138_v35 }
0x14cb   :  { %5853 = vpow2.f32 %v4834_v55  ;;  %v5582_v43 = vpop.f32.mrf.mxu0 }
0x14cc   :  { %v4845_v6 = vmul.f32 -1.442695, %v3960_v27  ;;  %v3959_v56 = vadd.f32 %v5934_v37, %v3941_v9  ;;  %v3956_v58 = vadd.f32 %v5594_v54, %v5582_v43  ;;  %v5618_v11 = vpop.f32.mrf.mxu1 }
0x14cd   :  { %v3865_v3 = vpop.f32.mrf.mxu0  ;;  %v4154_v41 = vadd.f32 %v5935_v24, %v5618_v11 }
0x14ce   :  { %v4844_v62 = vmul.f32 -1.442695, %v3959_v56  ;;  %v3962_v63 = vadd.f32 %v5934_v37, %v3956_v58  ;;  %v3951_v61 = vadd.f32 %v3950_v45, %v3865_v3  ;;  %5855 = vpow2.f32 %v4845_v6  ;;  %v4148_v32 = vpop.f32.mrf.mxu1 }
0x14cf   :  { %v5603_v33 = vpop.f32.mrf.mxu0  ;;  %v4149_v50 = vadd.f32 %v5935_v24, %v4148_v32 }
0x14d0   :  { %v4847_v1 = vmul.f32 -1.442695, %v3962_v63  ;;  %v3961_v12 = vadd.f32 %v5934_v37, %v3951_v61  ;;  %5857 = vpow2.f32 %v4844_v62  ;;  %v4059_v47 = vadd.f32 %v5936_v34, %v5603_v33 }
0x14d1   :  { %v4053_v5 = vpop.f32.mrf.mxu0 }
0x14d2   :  { %v5848_v59 = vpop.eup %5847  ;;  %5859 = vpow2.f32 %v4847_v1  ;;  %v4846_v4 = vmul.f32 -1.442695, %v3961_v12  ;;  %v4054_v44 = vadd.f32 %v5936_v34, %v4053_v5 }
0x14d3   :  { %v3778_v23 = vadd.f32 1.0, %v5848_v59  ;;  %v5606_v22 = vpop.f32.mrf.mxu0 }
0x14d4   :  { %v5850_v18 = vpop.eup %5849  ;;  %5861 = vpow2.f32 %v4846_v4  ;;  %v4069_v2 = vadd.f32 %v5936_v34, %v5606_v22 }
0x14d5   :  { %5863 = vrcp.f32 %v3778_v23  ;;  %v3777_v21 = vadd.f32 1.0, %v5850_v18  ;;  %v4063_v51 = vpop.f32.mrf.mxu0 }
0x14d6   :  { %v5852_v20 = vpop.eup %5851  ;;  %v4064_v37 = vadd.f32 %v5936_v34, %v4063_v51 }
0x14d7   :  { %5865 = vrcp.f32 %v3777_v21  ;;  %v3780_v25 = vadd.f32 1.0, %v5852_v20 }
0x14d8   :  { %v5854_v16 = vpop.eup %5853 }
0x14d9   :  { %5867 = vrcp.f32 %v3780_v25  ;;  %v3779_v36 = vadd.f32 1.0, %v5854_v16 }
0x14db   :  { %5869 = vrcp.f32 %v3779_v36  ;;  %v5856_v46 = vpop.eup %5855 }
0x14dc   :  { %v3976_v8 = vadd.f32 1.0, %v5856_v46 }
0x14dd   :  { %v5858_v29 = vpop.eup %5857 }
0x14de   :  { %v3975_v26 = vadd.f32 1.0, %v5858_v29  ;;  %5871 = vrcp.f32 %v3976_v8 }
0x14df   :  { %v5860_v7 = vpop.eup %5859 }
0x14e0   :  { %v3978_v28 = vadd.f32 1.0, %v5860_v7  ;;  %5873 = vrcp.f32 %v3975_v26 }
0x14e1   :  { %v5862_v42 = vpop.eup %5861 }
0x14e2   :  { %v5864_v17 = vpop.eup %5863  ;;  %v3977_v38 = vadd.f32 1.0, %v5862_v42  ;;  %5875 = vrcp.f32 %v3978_v28 }
0x14e3   :  { %v4158_v39 = vmul.f32 %v5864_v17, %v4144_v31 }
0x14e4   :  { %v5866_v19 = vpop.eup %5865 }
0x14e5   :  { %v4157_v30 = vmul.f32 %v5866_v19, %v4139_v15  ;;  %v4162_v48 = vadd.f32 %v4158_v39, %v4059_v47 }
0x14e6   :  { %v5868_v49 = vpop.eup %5867 }
0x14e7   :  { %v4160_v57 = vmul.f32 %v5868_v49, %v4154_v41  ;;  %5877 = vtanh.f32 %v4162_v48  ;;  %v4161_v52 = vadd.f32 %v4157_v30, %v4054_v44 }
0x14e8   :  { %v5870_v54 = vpop.eup %5869  ;;  %5879 = vrcp.f32 %v3977_v38 }
0x14e9   :  { %v4159_v55 = vmul.f32 %v5870_v54, %v4149_v50  ;;  %5881 = vtanh.f32 %v4161_v52  ;;  %v4164_v40 = vadd.f32 %v4160_v57, %v4069_v2 }
0x14eb   :  { %5883 = vtanh.f32 %v4164_v40  ;;  %v4163_v27 = vadd.f32 %v4159_v55, %v4064_v37  ;;  %v5872_v9 = vpop.eup %5871 }
0x14ec   :  { %v4170_v56 = vsub.f32 1.0, %v5872_v9  ;;  %v4178_v62 = vmul.f32 %v5872_v9, %v6922_v53 }
0x14ed   :  { %5885 = vtanh.f32 %v4163_v27  ;;  %v5874_v43 = vpop.eup %5873 }
0x14ee   :  { %v4169_v63 = vsub.f32 1.0, %v5874_v43  ;;  %v4177_v59 = vmul.f32 %v5874_v43, %v6924_v60 }
0x14ef   :  { %v5876_v6 = vpop.eup %5875 }
0x14f0   :  { %v4172_v4 = vsub.f32 1.0, %v5876_v6  ;;  %v4180_v18 = vmul.f32 %v5876_v6, %v6932_v0  ;;  %v5937_v6 = vld [vmem:[#allocation6] ss:$0 sm:$0xff] }
0x14f4   :  { %v5878_v58 = vpop.eup %5877 }
0x14f5   :  { %v5880_v45 = vpop.eup %5879  ;;  %v4174_v3 = vmul.f32 %v5878_v58, %v4170_v56 }
0x14f6   :  { %v5882_v61 = vpop.eup %5881  ;;  %v4171_v14 = vsub.f32 1.0, %v5880_v45  ;;  %v4179_v60 = vmul.f32 %v5880_v45, %v6930_v13 }
0x14f7   :  { %v7083_v1 = vadd.f32 %v4178_v62, %v4174_v3  ;;  %v4173_v12 = vmul.f32 %v5882_v61, %v4169_v63  ;;  %v5938_v62 = vld [vmem:[#allocation7] ss:$0 sm:$0xff] }
0x14f8   :  { %v5884_v23 = vpop.eup %5883 }
0x14f9   :  { %v4188_v21 = vsel %vm1140_vm7, %v7083_v1, 0.0  ;;  %v7089_v20 = vadd.f32 %v4177_v59, %v4173_v12  ;;  %v4176_v25 = vmul.f32 %v5884_v23, %v4172_v4 }
0x14fa   :  { %v5886_v16 = vpop.eup %5885  ;;  %4189 = vadd.xlane.f32.xlu1 %v4188_v21 }
0x14fb   :  { %v4185_v53 = vsel %vm1140_vm7, %v7089_v20, 0.0  ;;  %v7093_v36 = vadd.f32 %v4180_v18, %v4176_v25  ;;  %v4175_v33 = vmul.f32 %v5886_v16, %v4171_v14  ;;  %v5939_v25 = vld [vmem:[#allocation9] ss:$0 sm:$0xff] }
0x14fc   :  { %4186 = vadd.xlane.f32.xlu0 %v4185_v53 }
0x14fd   :  { %v4194_v0 = vsel %vm1150_vm8, %v7093_v36, 0.0  ;;  %v7098_v35 = vadd.f32 %v4179_v60, %v4175_v33 }
0x14fe   :  { %4195 = vadd.xlane.f32.xlu1 %v4194_v0 }
0x14ff   :  { %v4191_v46 = vsel %vm1140_vm7, %v7098_v35, 0.0 }
0x1500   :  { %4192 = vadd.xlane.f32.xlu0 %v4191_v46 }
0x1583   :  { %v4190_v29 = vpop.xlane.xlu1 %4189 }
0x1584   :  { %v4198_v5 = vmul.f32 0.041666668, %v4190_v29 }
0x1585   :  { %v4187_v7 = vpop.xlane.xlu0 %4186 }
0x1586   :  { %v4202_v8 = vsub.f32 %v7083_v1, %v4198_v5  ;;  %v4197_v11 = vmul.f32 0.041666668, %v4187_v7 }
0x1587   :  { %v4196_v42 = vpop.xlane.xlu1 %4195 }
0x1588   :  { %v4201_v13 = vsub.f32 %v7089_v20, %v4197_v11  ;;  %v4200_v24 = vmul.f32 0.041666668, %v4196_v42  ;;  %v4206_v31 = vmul.f32 %v4202_v8, %v4202_v8  ;;  %v5940_v11 = vld [vmem:[%s7185_s27] sm:$0xff] }
0x1589   :  { %v4193_v26 = vpop.xlane.xlu0 %4192 }
0x158a   :  { %v4204_v17 = vsub.f32 %v7093_v36, %v4200_v24  ;;  %v4199_v28 = vmul.f32 0.041666668, %v4193_v26  ;;  %v4212_v22 = vsel %vm1140_vm7, %v4206_v31, 0.0  ;;  %v4205_v39 = vmul.f32 %v4201_v13, %v4201_v13 }
0x158b   :  { %4213 = vadd.xlane.f32.xlu1 %v4212_v22 }
0x158c   :  { %v4203_v15 = vsub.f32 %v7098_v35, %v4199_v28  ;;  %v4209_v32 = vsel %vm1140_vm7, %v4205_v39, 0.0  ;;  %v4208_v34 = vmul.f32 %v4204_v17, %v4204_v17 }
0x158d   :  { %4210 = vadd.xlane.f32.xlu0 %v4209_v32 }
0x158e   :  { %v4218_v47 = vsel %vm1150_vm8, %v4208_v34, 0.0  ;;  %v4207_v19 = vmul.f32 %v4203_v15, %v4203_v15 }
0x158f   :  { %4219 = vadd.xlane.f32.xlu1 %v4218_v47 }
0x1590   :  { %v4215_v41 = vsel %vm1140_vm7, %v4207_v19, 0.0 }
0x1591   :  { %4216 = vadd.xlane.f32.xlu0 %v4215_v41 }
0x1614   :  { %v4214_v38 = vpop.xlane.xlu1 %4213 }
0x1615   :  { %v4222_v30 = vmul.f32 0.041666668, %v4214_v38 }
0x1616   :  { %v4211_v48 = vpop.xlane.xlu0 %4210 }
0x1617   :  { %v4226_v44 = vadd.f32 1e-05, %v4222_v30  ;;  %v4221_v49 = vmul.f32 0.041666668, %v4211_v48 }
0x1618   :  { %v4220_v50 = vpop.xlane.xlu1 %4219 }
0x1619   :  { %5887 = vrsqrt.f32 %v4226_v44  ;;  %v4225_v51 = vadd.f32 1e-05, %v4221_v49  ;;  %v4224_v57 = vmul.f32 0.041666668, %v4220_v50 }
0x161a   :  { %v4217_v52 = vpop.xlane.xlu0 %4216 }
0x161b   :  { %5889 = vrsqrt.f32 %v4225_v51  ;;  %v4228_v2 = vadd.f32 1e-05, %v4224_v57  ;;  %v4223_v54 = vmul.f32 0.041666668, %v4217_v52 }
0x161d   :  { %5891 = vrsqrt.f32 %v4228_v2  ;;  %v4227_v55 = vadd.f32 1e-05, %v4223_v54 }
0x161f   :  { %5893 = vrsqrt.f32 %v4227_v55 }
0x1626   :  { %v5888_v40 = vpop.eup %5887 }
0x1627   :  { %v4234_v37 = vmul.f32 %v5888_v40, %v4202_v8 }
0x1628   :  { %v5890_v27 = vpop.eup %5889 }
0x1629   :  { %v4233_v9 = vmul.f32 %v5890_v27, %v4201_v13  ;;  %v4238_v56 = vmul.f32 %v5937_v6, %v4234_v37  ;;  %v5941_v13 = vld [vmem:[#allocation10] ss:$0 sm:$0xff] }
0x162a   :  { %v5892_v43 = vpop.eup %5891 }
0x162b   :  { %v4237_v58 = vmul.f32 %v5937_v6, %v4233_v9  ;;  %v4236_v45 = vmul.f32 %v5892_v43, %v4204_v17  ;;  %v4242_v12 = vadd.f32 %v5938_v62, %v4238_v56 }
0x162c   :  { %v5894_v3 = vpop.eup %5893 }
0x162d   :  { %v4241_v63 = vadd.f32 %v5938_v62, %v4237_v58  ;;  %v4235_v61 = vmul.f32 %v5894_v3, %v4203_v15  ;;  %v4240_v59 = vmul.f32 %v5937_v6, %v4236_v45 }
0x162f   :  { %5625 = vmatprep.mubr.msk.f32.mxu0 %vm1140_vm7, %v4241_v63  ;;  %v4239_v4 = vmul.f32 %v5937_v6, %v4235_v61  ;;  %v4244_v18 = vadd.f32 %v5938_v62, %v4240_v59 }
0x1630   :  { %5626 = vmatmul.mubr.msk.f32.vlgmr.msra.gmra.mxu0 %vm1140_vm7, %v4242_v12 }
0x1631   :  { %v4243_v23 = vadd.f32 %v5938_v62, %v4239_v4 }
0x1633   :  { %5628 = vmatprep.mubr.msk.f32.mxu0 %vm1140_vm7, %v4243_v23 }
0x1634   :  { %5629 = vmatmul.mubr.msk.f32.gmra.mxu0 %vm1140_vm7, %v4244_v18 }
0x1635   :  { %5653 = vmatprep.mubr.msk.f32.mxu0 %vm6110_vm11, %v6109_v10 }
0x16f0   :  { %v5627_v21 = vpop.f32.mrf.mxu0 }
0x16f1   :  { %v4329_v14 = vadd.f32 %v5939_v25, %v5627_v21 }
0x16f2   :  { %v4323_v16 = vpop.f32.mrf.mxu0 }
0x16f3   :  { %v4324_v53 = vadd.f32 %v5939_v25, %v4323_v16  ;;  %v4343_v0 = vmax.f32 %v4329_v14, 0.0 }
0x16f4   :  { %v5630_v33 = vpop.f32.mrf.mxu0 }
0x16f5   :  { %v4342_v60 = vmax.f32 %v4324_v53, 0.0  ;;  %v4339_v46 = vadd.f32 %v5939_v25, %v5630_v33 }
0x16f6   :  { %v4333_v29 = vpop.f32.mrf.mxu0 }
0x16f7   :  { %v4334_v5 = vadd.f32 %v5939_v25, %v4333_v29  ;;  %5639 = vmatprep.mubr.msk.f32.mxu1 %vm213_vm0, %v4342_v60  ;;  %v4345_v8 = vmax.f32 %v4339_v46, 0.0 }
0x16f8   :  { %5640 = vmatmul.mubr.msk.f32.vlgmr.msra.gmra.mxu1 %vm213_vm0, %v4343_v0 }
0x16f9   :  { %v4344_v7 = vmax.f32 %v4334_v5, 0.0 }
0x16fb   :  { %5642 = vmatprep.mubr.msk.f32.mxu1 %vm213_vm0, %v4344_v7 }
0x16fc   :  { %5643 = vmatmul.mubr.msk.f32.gmra.mxu1 %vm213_vm0, %v4345_v8 }
0x16fd   :  { %5664 = vmatprep.mubr.msk.f32.mxu1 %vm2584_vm12, %v5940_v11 }
0x17b8   :  { %v5641_v42 = vpop.f32.mrf.mxu1 }
0x17b9   :  { %v4430_v24 = vadd.f32 %v5941_v13, %v5641_v42 }
0x17ba   :  { %v4424_v31 = vpop.f32.mrf.mxu1 }
0x17bb   :  { %v4444_v26 = vadd.f32 %v4430_v24, %v7083_v1  ;;  %v4425_v32 = vadd.f32 %v5941_v13, %v4424_v31 }
0x17bc   :  { %v5644_v17 = vpop.f32.mrf.mxu1 }
0x17bd   :  { %v4440_v28 = vadd.f32 %v5941_v13, %v5644_v17  ;;  %4525 = vrot.lane.b32.xlu1 %v4444_v26, %s6111_s16  ;;  %v4443_v1 = vadd.f32 %v4425_v32, %v7089_v20  ;;  %v5943_v20 = vld [vmem:[%s7185_s27 + $0x8] sm:$0x3] }
0x17be   :  { %v4434_v22 = vpop.f32.mrf.mxu1 }
0x17bf   :  { %v4446_v39 = vadd.f32 %v4440_v28, %v7093_v36  ;;  %v4435_v15 = vadd.f32 %v5941_v13, %v4434_v22  ;;  %v5942_v36 = vld [vmem:[%s7186_s15] sm:$0x3f] }
0x17c1   :  { %v4445_v34 = vadd.f32 %v4435_v15, %v7098_v35  ;;  %4529 = vrot.lane.b32.xlu0 %v4446_v39, %s6111_s16  ;;  %5646 = vmatpush3.msk.msra.mxu0 %vm751_vm1, %v4446_v39 }
0x17c2   :  { %5647 = vmatprep.subr.mxu0 %v6109_v10 }
0x17c3   :  { %4527 = vrot.lane.b32.xlu1 %v4445_v34, %s6111_s16  ;;  %5648 = vmatpush3.msra.mxu0 %v4445_v34 }
0x17c4   :  { %5649 = vmatprep.subr.mxu0 %v6109_v10 }
0x17c5   :  { %5650 = vmatpush3.msra.mxu0 %v4444_v26 }
0x17c6   :  { %5651 = vmatprep.subr.mxu0 %v6109_v10 }
0x17c7   :  { %4523 = vrot.lane.b32.xlu1 %v4443_v1, %s6111_s16  ;;  %5652 = vmatpush3.msra.mxu0 %v4443_v1 }
0x17c8   :  { %5654 = vmatmul.mubr.msk.f32.vlgmr.msra.gmra.mxu0 %vm2584_vm12, %v5942_v36 }
0x182f   :  { %v4526_v35 = vpop.permute.xlu1 %4525 }
0x1833   :  { %v4530_v47 = vpop.permute.xlu0 %4529 }
0x1834   :  { %5656 = vmatprep.subr.msk.mxu1 %vm751_vm1, %v4530_v47 }
0x1835   :  { %5657 = vmatpush3.msk.msra.mxu1 %vm751_vm1, %v4530_v47  ;;  %v4528_v19 = vpop.permute.xlu1 %4527 }
0x1836   :  { %5658 = vmatprep.subr.mxu1 %v4528_v19 }
0x1837   :  { %5659 = vmatpush3.msra.mxu1 %v4528_v19 }
0x1838   :  { %5660 = vmatprep.subr.mxu1 %v4526_v35 }
0x1839   :  { %5661 = vmatpush3.msra.mxu1 %v4526_v35  ;;  %v4524_v10 = vpop.permute.xlu1 %4523 }
0x183a   :  { %5662 = vmatprep.subr.mxu1 %v4524_v10 }
0x183b   :  { %5663 = vmatpush3.msra.mxu1 %v4524_v10 }
0x183c   :  { %5665 = vmatmul.mubr.msk.f32.vlgmr.msra.gmra.mxu1 %vm2584_vm12, %v5943_v20 }
0x1888   :  { %v4516_v41 = vpop.f32.mrf.mxu0 }
0x1889   :  { %4612 = vst.msk [vmem:[%s6270_s24] sm:$0x3f] %vm4611_vm13, %v4516_v41 }
0x188a   :  { %v5655_v38 = vpop.f32.mrf.mxu0 }
0x18fc   :  { %v5666_v30 = vpop.f32.mrf.mxu1 }
0x18fd   :  { %4615 = vst.msk [vmem:[%s6275_s19 + $0x8] sm:$0x3] %vm4614_vm14, %v5666_v30 }
0x18fe   :  { %v4602_v48 = vpop.f32.mrf.mxu1 }
0x18ff   :  { %4613 = vst.msk [vmem:[%s6275_s19] sm:$0xff] %vm942_vm5, %v4602_v48 }
0x1900   :  { %4624 = vsyncpa [#allocation3], 1 }
0x1901   :  { %4625 = vsyncpa [#allocation5], 1 }
0x1902   :  { %4626 = vsyncpa [#allocation8], 1 }
0x1903   :  { %4627 = vsyncpa [#allocation11], 1 }

</bundles_post_ra>
